<compile_context>
chip_gen: v5e
topology: v5e:2x2
jax: 0.10.0
libtpu: 0.0.40
codegen_flags: <defaults>
</compile_context>

<pallas_src>
import functools

import jax
import jax.numpy as jnp
import numpy as np
from jax.experimental import pallas as pl
from jax.experimental.pallas import tpu as pltpu


def _softmax_rows(x):
    """Row softmax in f32; the divide runs on the EUP (approx reciprocal)."""
    m = jnp.max(x, axis=-1, keepdims=True)
    e = jnp.exp(x - m)
    s = jnp.sum(e, axis=-1, keepdims=True)
    return e * pl.reciprocal(s, approx=True)


def ccattn_kernel(gamma_ref, x_ref, wqkv_ref, wout_ref, o_ref,
                  qkv_acc, attn_acc, *, num_heads, batch_tile, n_spatial):
    """One batch tile per grid step: fused qkv projection, criss-cross
    attention for every (batch, head) in the tile, output projection,
    gamma scale and residual."""
    x = x_ref[...]                          # (C, batch_tile*N)  f32
    C = x.shape[0]
    N = n_spatial
    d = C // num_heads                      # module requires d == N

    # Fused 1x1 qkv conv over the whole lane-dense slab (bf16 MXU, f32 acc),
    # stored once into VMEM scratch in bf16 for the attention matmuls.
    qkv_acc[...] = jax.lax.dot_general(
        wqkv_ref[...], x.astype(jnp.bfloat16),
        (((1,), (0,)), ((), ())),
        preferred_element_type=jnp.float32).astype(jnp.bfloat16)   # (3C, bt*N)

    for b in range(batch_tile):             # static, tiny loops
        col = b * N
        for h in range(num_heads):
            row = h * d
            qh = qkv_acc[row:row + d, col:col + N]                 # (d, N) bf16
            kh = qkv_acc[C + row:C + row + d, col:col + N]
            vh = qkv_acc[2 * C + row:2 * C + row + d, col:col + N]

            # energy_h = q^T k  (contract channel axes; no materialised .T)
            e_h = jax.lax.dot_general(qh, kh, (((0,), (0,)), ((), ())),
                                      preferred_element_type=jnp.float32)  # (N, N)
            a_h = _softmax_rows(e_h).astype(jnp.bfloat16)
            # out_h = v @ a_h^T  (contract spatial axes)
            out_h = jax.lax.dot_general(vh, a_h, (((1,), (1,)), ((), ())),
                                        preferred_element_type=jnp.float32)  # (d, N)

            # energy_v = q k^T
            e_v = jax.lax.dot_general(qh, kh, (((1,), (1,)), ((), ())),
                                      preferred_element_type=jnp.float32)  # (d, d)
            a_v = _softmax_rows(e_v).astype(jnp.bfloat16)
            # out_v = a_v @ v^T   ((d, d) == (d, N) since d == N)
            out_v = jax.lax.dot_general(a_v, vh, (((1,), (1,)), ((), ())),
                                        preferred_element_type=jnp.float32)  # (d, N)

            attn_acc[row:row + d, col:col + N] = (out_h + out_v).astype(jnp.bfloat16)

    # 1x1 out conv over the slab, gamma scale, residual (f32 epilogue).
    y = jax.lax.dot_general(wout_ref[...], attn_acc[...],
                            (((1,), (0,)), ((), ())),
                            preferred_element_type=jnp.float32)    # (C, bt*N)
    o_ref[...] = gamma_ref[0] * y + x


def criss_cross_attention(x_nchw, w_qkv, w_out, gamma, *, num_heads=2,
                          batch_tile=None):
    B, C, H, W = x_nchw.shape
    N = H * W
    assert C % num_heads == 0
    assert C // num_heads == N, "CrissCrossAttention requires C//num_heads == H*W"

    if batch_tile is None:
        # Fold batches onto the lane axis until the block is a few hundred
        # lanes wide (full MXU width on v6e/v7x), keeping a divisor of B so
        # blocks tile evenly.  For large B this leaves >1 "parallel" grid
        # steps for the two v7x TensorCores.
        batch_tile = 1
        for cand in range(1, B + 1):
            if B % cand == 0 and cand * N <= max(512, N):
                batch_tile = cand
    assert B % batch_tile == 0
    num_tiles = B // batch_tile
    lanes = batch_tile * N

    # Lane-dense (C, B*N) slab: channels on sublanes, batch*spatial on lanes.
    x2d = jnp.transpose(x_nchw.reshape(B, C, N).astype(jnp.float32),
                        (1, 0, 2)).reshape(C, B * N)
    wqkv2 = w_qkv.reshape(3 * C, C).astype(jnp.bfloat16)   # bf16 MXU operands
    wout2 = w_out.reshape(C, C).astype(jnp.bfloat16)
    gamma1 = jnp.asarray(gamma, jnp.float32).reshape(1)

    kernel = functools.partial(ccattn_kernel, num_heads=num_heads,
                               batch_tile=batch_tile, n_spatial=N)
    y2d = pl.pallas_call(
        kernel,
        out_shape=jax.ShapeDtypeStruct((C, B * N), jnp.float32),
        grid=(num_tiles,),
        in_specs=[
            pl.BlockSpec(memory_space=pltpu.MemorySpace.SMEM),   # gamma scalar
            pl.BlockSpec((C, lanes), lambda i: (0, i)),          # x batch tile
            pl.BlockSpec((3 * C, C), lambda i: (0, 0)),          # qkv weight (resident)
            pl.BlockSpec((C, C), lambda i: (0, 0)),              # out weight (resident)
        ],
        out_specs=pl.BlockSpec((C, lanes), lambda i: (0, i)),
        scratch_shapes=[
            pltpu.VMEM((3 * C, lanes), jnp.bfloat16),            # qkv slab
            pltpu.VMEM((C, lanes), jnp.bfloat16),                # head-output slab
        ],
        compiler_params=pltpu.CompilerParams(
            dimension_semantics=("parallel",)),
    )(gamma1, x2d, wqkv2, wout2)

    return jnp.transpose(y2d.reshape(C, B, N), (1, 0, 2)).reshape(B, C, H, W)


def reference(x_nchw, w_qkv, w_out, gamma, *, num_heads=2):
    """Pure-JAX transcription of the PyTorch forward, using the same bf16
    matmul operands / f32 accumulation as the kernel (softmax in f32)."""
    B, C, H, W = x_nchw.shape
    N = H * W
    d = C // num_heads
    f32, bf16 = jnp.float32, jnp.bfloat16

    xb = x_nchw.reshape(B, C, N).astype(f32)
    wq = w_qkv.reshape(3 * C, C).astype(bf16)
    wo = w_out.reshape(C, C).astype(bf16)

    qkv = jnp.einsum('oc,bcn->bon', wq, xb.astype(bf16),
                     preferred_element_type=f32).astype(bf16)
    q, k, v = jnp.split(qkv, 3, axis=1)
    q = q.reshape(B, num_heads, d, N)
    k = k.reshape(B, num_heads, d, N)
    v = v.reshape(B, num_heads, d, N)

    e_h = jnp.einsum('bhcn,bhcm->bhnm', q, k, preferred_element_type=f32)
    a_h = jax.nn.softmax(e_h, axis=3).astype(bf16)
    out_h = jnp.einsum('bhcm,bhnm->bhcn', v, a_h, preferred_element_type=f32)

    e_v = jnp.einsum('bhcn,bhen->bhce', q, k, preferred_element_type=f32)
    a_v = jax.nn.softmax(e_v, axis=3).astype(bf16)
    out_v = jnp.einsum('bhik,bhjk->bhij', a_v, v, preferred_element_type=f32)

    out = (out_h + out_v).reshape(B, C, N).astype(bf16)
    y = jnp.einsum('oc,bcn->bon', wo, out, preferred_element_type=f32)
    return (jnp.asarray(gamma, f32) * y + xb).reshape(B, C, H, W)


if __name__ == "__main__":
    # Module constraint: C // num_heads == H * W.  Chosen so d = N = 128
    # (lane-dense, MXU-aligned).
    B, num_heads, H, W = 2, 2, 8, 16
    N = H * W                      # 128
    C = num_heads * N              # 256

    key = jax.random.PRNGKey(0)
    kx, kq, ko = jax.random.split(key, 3)
    x = jax.random.normal(kx, (B, C, H, W), dtype=jnp.float32)
    # Conv2d 1x1, no bias -> weight shape (out, in, 1, 1).
    w_qkv = jax.random.normal(kq, (3 * C, C, 1, 1), dtype=jnp.float32) / jnp.sqrt(C)
    w_out = jax.random.normal(ko, (C, C, 1, 1), dtype=jnp.float32) / jnp.sqrt(C)
    # PyTorch initializes gamma to 0 (output == x); use a nonzero value so the
    # attention path is actually exercised.
    gamma = jnp.float32(0.5)

    y = jax.block_until_ready(
        criss_cross_attention(x, w_qkv, w_out, gamma, num_heads=num_heads))
    y_ref = jax.block_until_ready(
        reference(x, w_qkv, w_out, gamma, num_heads=num_heads))

    err = float(jnp.max(jnp.abs(y - y_ref)))
    scale = float(1.0 + jnp.max(jnp.abs(y_ref)))
    assert np.isfinite(err) and err < 1e-2 * scale, f"mismatch: max abs err {err}"

    print("KERNEL_OK")
</pallas_src>

<mosaic_0001>
module attributes {stable_mosaic.version = 11 : i64} {
  func.func @ccattn_kernel(%arg0: i32, %arg1: memref<1xf32, #tpu.memory_space<smem>>, %arg2: memref<256x256xf32, #tpu.memory_space<vmem>>, %arg3: memref<768x256xbf16, #tpu.memory_space<vmem>>, %arg4: memref<256x256xbf16, #tpu.memory_space<vmem>>, %arg5: memref<256x256xf32, #tpu.memory_space<vmem>>, %arg6: memref<768x256xbf16, #tpu.memory_space<vmem>>, %arg7: memref<256x256xbf16, #tpu.memory_space<vmem>>) attributes {dimension_semantics = [#tpu.dimension_semantics<parallel>], iteration_bounds = array<i64: 1>, scalar_prefetch = 0 : i64, scratch_operands = 2 : i64, tpu.core_type = #tpu.core_type<tc>, window_params = [{transform_indices = @transform_0, window_bounds = array<i64: 1>}, {transform_indices = @transform_1, window_bounds = array<i64: 256, 256>}, {pipeline_mode = #tpu.pipeline_mode<synchronous>, transform_indices = @transform_2, window_bounds = array<i64: 768, 256>}, {pipeline_mode = #tpu.pipeline_mode<synchronous>, transform_indices = @transform_3, window_bounds = array<i64: 256, 256>}, {transform_indices = @transform_4, window_bounds = array<i64: 256, 256>}]} {
    %c0 = arith.constant 0 : index
    %c0_0 = arith.constant 0 : index
    %0 = vector.load %arg2[%c0, %c0_0] : memref<256x256xf32, #tpu.memory_space<vmem>>, vector<256x256xf32>
    %c0_1 = arith.constant 0 : index
    %c0_2 = arith.constant 0 : index
    %1 = vector.load %arg3[%c0_1, %c0_2] : memref<768x256xbf16, #tpu.memory_space<vmem>>, vector<768x256xbf16>
    %2 = arith.truncf %0 : vector<256x256xf32> to vector<256x256xbf16>
    %cst = arith.constant dense<0.000000e+00> : vector<768x256xf32>
    %3 = tpu.matmul %1, %2, %cst {dimension_numbers = #tpu.dot_dimension_numbers<[1], [0], [0], [1], [0, 0, 1, 1], [], []>} : vector<768x256xbf16>, vector<256x256xbf16>, vector<768x256xf32> -> vector<768x256xf32>
    %4 = arith.truncf %3 : vector<768x256xf32> to vector<768x256xbf16>
    %c0_3 = arith.constant 0 : index
    %c0_4 = arith.constant 0 : index
    %5 = vector.load %arg6[%c0_3, %c0_4] : memref<768x256xbf16, #tpu.memory_space<vmem>>, vector<768x256xbf16>
    tpu.vector_store %arg6[%c0_3, %c0_4], %4 {strides = array<i32>} : memref<768x256xbf16, #tpu.memory_space<vmem>>, vector<768x256xbf16>,
    %c0_5 = arith.constant 0 : index
    %c0_6 = arith.constant 0 : index
    %6 = vector.load %arg6[%c0_5, %c0_6] : memref<768x256xbf16, #tpu.memory_space<vmem>>, vector<128x128xbf16>
    %c256 = arith.constant 256 : index
    %c0_7 = arith.constant 0 : index
    %7 = vector.load %arg6[%c256, %c0_7] : memref<768x256xbf16, #tpu.memory_space<vmem>>, vector<128x128xbf16>
    %c512 = arith.constant 512 : index
    %c0_8 = arith.constant 0 : index
    %8 = vector.load %arg6[%c512, %c0_8] : memref<768x256xbf16, #tpu.memory_space<vmem>>, vector<128x128xbf16>
    %cst_9 = arith.constant dense<0.000000e+00> : vector<128x128xf32>
    %9 = tpu.matmul %6, %7, %cst_9 {dimension_numbers = #tpu.dot_dimension_numbers<[0], [0], [1], [1], [0, 1, 1, 1], [], []>} : vector<128x128xbf16>, vector<128x128xbf16>, vector<128x128xf32> -> vector<128x128xf32>
    %cst_10 = arith.constant dense<0xFF800000> : vector<128xf32>
    %10 = vector.multi_reduction <maximumf>, %9, %cst_10 [1] : vector<128x128xf32> to vector<128xf32>
    %11 = vector.shape_cast %10 : vector<128xf32> to vector<128x1xf32>
    %12 = vector.broadcast %11 : vector<128x1xf32> to vector<128x128xf32>
    %13 = arith.subf %9, %12 : vector<128x128xf32>
    %14 = math.exp %13 : vector<128x128xf32>
    %cst_11 = arith.constant dense<0.000000e+00> : vector<128xf32>
    %15 = vector.multi_reduction <add>, %14, %cst_11 [1] : vector<128x128xf32> to vector<128xf32>
    %16 = vector.shape_cast %15 : vector<128xf32> to vector<128x1xf32>
    %17 = tpu.reciprocal %16 {approx = true} : vector<128x1xf32> -> vector<128x1xf32>
    %18 = vector.broadcast %17 : vector<128x1xf32> to vector<128x128xf32>
    %19 = arith.mulf %14, %18 : vector<128x128xf32>
    %20 = arith.truncf %19 : vector<128x128xf32> to vector<128x128xbf16>
    %cst_12 = arith.constant dense<0.000000e+00> : vector<128x128xf32>
    %21 = tpu.matmul %8, %20, %cst_12 {dimension_numbers = #tpu.dot_dimension_numbers<[1], [1], [0], [0], [0, 0, 1, 0], [], []>} : vector<128x128xbf16>, vector<128x128xbf16>, vector<128x128xf32> -> vector<128x128xf32>
    %cst_13 = arith.constant dense<0.000000e+00> : vector<128x128xf32>
    %22 = tpu.matmul %6, %7, %cst_13 {dimension_numbers = #tpu.dot_dimension_numbers<[1], [1], [0], [0], [0, 0, 1, 0], [], []>} : vector<128x128xbf16>, vector<128x128xbf16>, vector<128x128xf32> -> vector<128x128xf32>
    %cst_14 = arith.constant dense<0xFF800000> : vector<128xf32>
    %23 = vector.multi_reduction <maximumf>, %22, %cst_14 [1] : vector<128x128xf32> to vector<128xf32>
    %24 = vector.shape_cast %23 : vector<128xf32> to vector<128x1xf32>
    %25 = vector.broadcast %24 : vector<128x1xf32> to vector<128x128xf32>
    %26 = arith.subf %22, %25 : vector<128x128xf32>
    %27 = math.exp %26 : vector<128x128xf32>
    %cst_15 = arith.constant dense<0.000000e+00> : vector<128xf32>
    %28 = vector.multi_reduction <add>, %27, %cst_15 [1] : vector<128x128xf32> to vector<128xf32>
    %29 = vector.shape_cast %28 : vector<128xf32> to vector<128x1xf32>
    %30 = tpu.reciprocal %29 {approx = true} : vector<128x1xf32> -> vector<128x1xf32>
    %31 = vector.broadcast %30 : vector<128x1xf32> to vector<128x128xf32>
    %32 = arith.mulf %27, %31 : vector<128x128xf32>
    %33 = arith.truncf %32 : vector<128x128xf32> to vector<128x128xbf16>
    %cst_16 = arith.constant dense<0.000000e+00> : vector<128x128xf32>
    %34 = tpu.matmul %33, %8, %cst_16 {dimension_numbers = #tpu.dot_dimension_numbers<[1], [1], [0], [0], [0, 0, 1, 0], [], []>} : vector<128x128xbf16>, vector<128x128xbf16>, vector<128x128xf32> -> vector<128x128xf32>
    %35 = arith.addf %21, %34 : vector<128x128xf32>
    %36 = arith.truncf %35 : vector<128x128xf32> to vector<128x128xbf16>
    %c0_17 = arith.constant 0 : index
    %c0_18 = arith.constant 0 : index
    %37 = vector.load %arg7[%c0_17, %c0_18] : memref<256x256xbf16, #tpu.memory_space<vmem>>, vector<128x128xbf16>
    tpu.vector_store %arg7[%c0_17, %c0_18], %36 {strides = array<i32>} : memref<256x256xbf16, #tpu.memory_space<vmem>>, vector<128x128xbf16>,
    %c128 = arith.constant 128 : index
    %c0_19 = arith.constant 0 : index
    %38 = vector.load %arg6[%c128, %c0_19] : memref<768x256xbf16, #tpu.memory_space<vmem>>, vector<128x128xbf16>
    %c384 = arith.constant 384 : index
    %c0_20 = arith.constant 0 : index
    %39 = vector.load %arg6[%c384, %c0_20] : memref<768x256xbf16, #tpu.memory_space<vmem>>, vector<128x128xbf16>
    %c640 = arith.constant 640 : index
    %c0_21 = arith.constant 0 : index
    %40 = vector.load %arg6[%c640, %c0_21] : memref<768x256xbf16, #tpu.memory_space<vmem>>, vector<128x128xbf16>
    %cst_22 = arith.constant dense<0.000000e+00> : vector<128x128xf32>
    %41 = tpu.matmul %38, %39, %cst_22 {dimension_numbers = #tpu.dot_dimension_numbers<[0], [0], [1], [1], [0, 1, 1, 1], [], []>} : vector<128x128xbf16>, vector<128x128xbf16>, vector<128x128xf32> -> vector<128x128xf32>
    %cst_23 = arith.constant dense<0xFF800000> : vector<128xf32>
    %42 = vector.multi_reduction <maximumf>, %41, %cst_23 [1] : vector<128x128xf32> to vector<128xf32>
    %43 = vector.shape_cast %42 : vector<128xf32> to vector<128x1xf32>
    %44 = vector.broadcast %43 : vector<128x1xf32> to vector<128x128xf32>
    %45 = arith.subf %41, %44 : vector<128x128xf32>
    %46 = math.exp %45 : vector<128x128xf32>
    %cst_24 = arith.constant dense<0.000000e+00> : vector<128xf32>
    %47 = vector.multi_reduction <add>, %46, %cst_24 [1] : vector<128x128xf32> to vector<128xf32>
    %48 = vector.shape_cast %47 : vector<128xf32> to vector<128x1xf32>
    %49 = tpu.reciprocal %48 {approx = true} : vector<128x1xf32> -> vector<128x1xf32>
    %50 = vector.broadcast %49 : vector<128x1xf32> to vector<128x128xf32>
    %51 = arith.mulf %46, %50 : vector<128x128xf32>
    %52 = arith.truncf %51 : vector<128x128xf32> to vector<128x128xbf16>
    %cst_25 = arith.constant dense<0.000000e+00> : vector<128x128xf32>
    %53 = tpu.matmul %40, %52, %cst_25 {dimension_numbers = #tpu.dot_dimension_numbers<[1], [1], [0], [0], [0, 0, 1, 0], [], []>} : vector<128x128xbf16>, vector<128x128xbf16>, vector<128x128xf32> -> vector<128x128xf32>
    %cst_26 = arith.constant dense<0.000000e+00> : vector<128x128xf32>
    %54 = tpu.matmul %38, %39, %cst_26 {dimension_numbers = #tpu.dot_dimension_numbers<[1], [1], [0], [0], [0, 0, 1, 0], [], []>} : vector<128x128xbf16>, vector<128x128xbf16>, vector<128x128xf32> -> vector<128x128xf32>
    %cst_27 = arith.constant dense<0xFF800000> : vector<128xf32>
    %55 = vector.multi_reduction <maximumf>, %54, %cst_27 [1] : vector<128x128xf32> to vector<128xf32>
    %56 = vector.shape_cast %55 : vector<128xf32> to vector<128x1xf32>
    %57 = vector.broadcast %56 : vector<128x1xf32> to vector<128x128xf32>
    %58 = arith.subf %54, %57 : vector<128x128xf32>
    %59 = math.exp %58 : vector<128x128xf32>
    %cst_28 = arith.constant dense<0.000000e+00> : vector<128xf32>
    %60 = vector.multi_reduction <add>, %59, %cst_28 [1] : vector<128x128xf32> to vector<128xf32>
    %61 = vector.shape_cast %60 : vector<128xf32> to vector<128x1xf32>
    %62 = tpu.reciprocal %61 {approx = true} : vector<128x1xf32> -> vector<128x1xf32>
    %63 = vector.broadcast %62 : vector<128x1xf32> to vector<128x128xf32>
    %64 = arith.mulf %59, %63 : vector<128x128xf32>
    %65 = arith.truncf %64 : vector<128x128xf32> to vector<128x128xbf16>
    %cst_29 = arith.constant dense<0.000000e+00> : vector<128x128xf32>
    %66 = tpu.matmul %65, %40, %cst_29 {dimension_numbers = #tpu.dot_dimension_numbers<[1], [1], [0], [0], [0, 0, 1, 0], [], []>} : vector<128x128xbf16>, vector<128x128xbf16>, vector<128x128xf32> -> vector<128x128xf32>
    %67 = arith.addf %53, %66 : vector<128x128xf32>
    %68 = arith.truncf %67 : vector<128x128xf32> to vector<128x128xbf16>
    %c128_30 = arith.constant 128 : index
    %c0_31 = arith.constant 0 : index
    %69 = vector.load %arg7[%c128_30, %c0_31] : memref<256x256xbf16, #tpu.memory_space<vmem>>, vector<128x128xbf16>
    tpu.vector_store %arg7[%c128_30, %c0_31], %68 {strides = array<i32>} : memref<256x256xbf16, #tpu.memory_space<vmem>>, vector<128x128xbf16>,
    %c0_32 = arith.constant 0 : index
    %c128_33 = arith.constant 128 : index
    %70 = vector.load %arg6[%c0_32, %c128_33] : memref<768x256xbf16, #tpu.memory_space<vmem>>, vector<128x128xbf16>
    %c256_34 = arith.constant 256 : index
    %c128_35 = arith.constant 128 : index
    %71 = vector.load %arg6[%c256_34, %c128_35] : memref<768x256xbf16, #tpu.memory_space<vmem>>, vector<128x128xbf16>
    %c512_36 = arith.constant 512 : index
    %c128_37 = arith.constant 128 : index
    %72 = vector.load %arg6[%c512_36, %c128_37] : memref<768x256xbf16, #tpu.memory_space<vmem>>, vector<128x128xbf16>
    %cst_38 = arith.constant dense<0.000000e+00> : vector<128x128xf32>
    %73 = tpu.matmul %70, %71, %cst_38 {dimension_numbers = #tpu.dot_dimension_numbers<[0], [0], [1], [1], [0, 1, 1, 1], [], []>} : vector<128x128xbf16>, vector<128x128xbf16>, vector<128x128xf32> -> vector<128x128xf32>
    %cst_39 = arith.constant dense<0xFF800000> : vector<128xf32>
    %74 = vector.multi_reduction <maximumf>, %73, %cst_39 [1] : vector<128x128xf32> to vector<128xf32>
    %75 = vector.shape_cast %74 : vector<128xf32> to vector<128x1xf32>
    %76 = vector.broadcast %75 : vector<128x1xf32> to vector<128x128xf32>
    %77 = arith.subf %73, %76 : vector<128x128xf32>
    %78 = math.exp %77 : vector<128x128xf32>
    %cst_40 = arith.constant dense<0.000000e+00> : vector<128xf32>
    %79 = vector.multi_reduction <add>, %78, %cst_40 [1] : vector<128x128xf32> to vector<128xf32>
    %80 = vector.shape_cast %79 : vector<128xf32> to vector<128x1xf32>
    %81 = tpu.reciprocal %80 {approx = true} : vector<128x1xf32> -> vector<128x1xf32>
    %82 = vector.broadcast %81 : vector<128x1xf32> to vector<128x128xf32>
    %83 = arith.mulf %78, %82 : vector<128x128xf32>
    %84 = arith.truncf %83 : vector<128x128xf32> to vector<128x128xbf16>
    %cst_41 = arith.constant dense<0.000000e+00> : vector<128x128xf32>
    %85 = tpu.matmul %72, %84, %cst_41 {dimension_numbers = #tpu.dot_dimension_numbers<[1], [1], [0], [0], [0, 0, 1, 0], [], []>} : vector<128x128xbf16>, vector<128x128xbf16>, vector<128x128xf32> -> vector<128x128xf32>
    %cst_42 = arith.constant dense<0.000000e+00> : vector<128x128xf32>
    %86 = tpu.matmul %70, %71, %cst_42 {dimension_numbers = #tpu.dot_dimension_numbers<[1], [1], [0], [0], [0, 0, 1, 0], [], []>} : vector<128x128xbf16>, vector<128x128xbf16>, vector<128x128xf32> -> vector<128x128xf32>
    %cst_43 = arith.constant dense<0xFF800000> : vector<128xf32>
    %87 = vector.multi_reduction <maximumf>, %86, %cst_43 [1] : vector<128x128xf32> to vector<128xf32>
    %88 = vector.shape_cast %87 : vector<128xf32> to vector<128x1xf32>
    %89 = vector.broadcast %88 : vector<128x1xf32> to vector<128x128xf32>
    %90 = arith.subf %86, %89 : vector<128x128xf32>
    %91 = math.exp %90 : vector<128x128xf32>
    %cst_44 = arith.constant dense<0.000000e+00> : vector<128xf32>
    %92 = vector.multi_reduction <add>, %91, %cst_44 [1] : vector<128x128xf32> to vector<128xf32>
    %93 = vector.shape_cast %92 : vector<128xf32> to vector<128x1xf32>
    %94 = tpu.reciprocal %93 {approx = true} : vector<128x1xf32> -> vector<128x1xf32>
    %95 = vector.broadcast %94 : vector<128x1xf32> to vector<128x128xf32>
    %96 = arith.mulf %91, %95 : vector<128x128xf32>
    %97 = arith.truncf %96 : vector<128x128xf32> to vector<128x128xbf16>
    %cst_45 = arith.constant dense<0.000000e+00> : vector<128x128xf32>
    %98 = tpu.matmul %97, %72, %cst_45 {dimension_numbers = #tpu.dot_dimension_numbers<[1], [1], [0], [0], [0, 0, 1, 0], [], []>} : vector<128x128xbf16>, vector<128x128xbf16>, vector<128x128xf32> -> vector<128x128xf32>
    %99 = arith.addf %85, %98 : vector<128x128xf32>
    %100 = arith.truncf %99 : vector<128x128xf32> to vector<128x128xbf16>
    %c0_46 = arith.constant 0 : index
    %c128_47 = arith.constant 128 : index
    %101 = vector.load %arg7[%c0_46, %c128_47] : memref<256x256xbf16, #tpu.memory_space<vmem>>, vector<128x128xbf16>
    tpu.vector_store %arg7[%c0_46, %c128_47], %100 {strides = array<i32>} : memref<256x256xbf16, #tpu.memory_space<vmem>>, vector<128x128xbf16>,
    %c128_48 = arith.constant 128 : index
    %c128_49 = arith.constant 128 : index
    %102 = vector.load %arg6[%c128_48, %c128_49] : memref<768x256xbf16, #tpu.memory_space<vmem>>, vector<128x128xbf16>
    %c384_50 = arith.constant 384 : index
    %c128_51 = arith.constant 128 : index
    %103 = vector.load %arg6[%c384_50, %c128_51] : memref<768x256xbf16, #tpu.memory_space<vmem>>, vector<128x128xbf16>
    %c640_52 = arith.constant 640 : index
    %c128_53 = arith.constant 128 : index
    %104 = vector.load %arg6[%c640_52, %c128_53] : memref<768x256xbf16, #tpu.memory_space<vmem>>, vector<128x128xbf16>
    %cst_54 = arith.constant dense<0.000000e+00> : vector<128x128xf32>
    %105 = tpu.matmul %102, %103, %cst_54 {dimension_numbers = #tpu.dot_dimension_numbers<[0], [0], [1], [1], [0, 1, 1, 1], [], []>} : vector<128x128xbf16>, vector<128x128xbf16>, vector<128x128xf32> -> vector<128x128xf32>
    %cst_55 = arith.constant dense<0xFF800000> : vector<128xf32>
    %106 = vector.multi_reduction <maximumf>, %105, %cst_55 [1] : vector<128x128xf32> to vector<128xf32>
    %107 = vector.shape_cast %106 : vector<128xf32> to vector<128x1xf32>
    %108 = vector.broadcast %107 : vector<128x1xf32> to vector<128x128xf32>
    %109 = arith.subf %105, %108 : vector<128x128xf32>
    %110 = math.exp %109 : vector<128x128xf32>
    %cst_56 = arith.constant dense<0.000000e+00> : vector<128xf32>
    %111 = vector.multi_reduction <add>, %110, %cst_56 [1] : vector<128x128xf32> to vector<128xf32>
    %112 = vector.shape_cast %111 : vector<128xf32> to vector<128x1xf32>
    %113 = tpu.reciprocal %112 {approx = true} : vector<128x1xf32> -> vector<128x1xf32>
    %114 = vector.broadcast %113 : vector<128x1xf32> to vector<128x128xf32>
    %115 = arith.mulf %110, %114 : vector<128x128xf32>
    %116 = arith.truncf %115 : vector<128x128xf32> to vector<128x128xbf16>
    %cst_57 = arith.constant dense<0.000000e+00> : vector<128x128xf32>
    %117 = tpu.matmul %104, %116, %cst_57 {dimension_numbers = #tpu.dot_dimension_numbers<[1], [1], [0], [0], [0, 0, 1, 0], [], []>} : vector<128x128xbf16>, vector<128x128xbf16>, vector<128x128xf32> -> vector<128x128xf32>
    %cst_58 = arith.constant dense<0.000000e+00> : vector<128x128xf32>
    %118 = tpu.matmul %102, %103, %cst_58 {dimension_numbers = #tpu.dot_dimension_numbers<[1], [1], [0], [0], [0, 0, 1, 0], [], []>} : vector<128x128xbf16>, vector<128x128xbf16>, vector<128x128xf32> -> vector<128x128xf32>
    %cst_59 = arith.constant dense<0xFF800000> : vector<128xf32>
    %119 = vector.multi_reduction <maximumf>, %118, %cst_59 [1] : vector<128x128xf32> to vector<128xf32>
    %120 = vector.shape_cast %119 : vector<128xf32> to vector<128x1xf32>
    %121 = vector.broadcast %120 : vector<128x1xf32> to vector<128x128xf32>
    %122 = arith.subf %118, %121 : vector<128x128xf32>
    %123 = math.exp %122 : vector<128x128xf32>
    %cst_60 = arith.constant dense<0.000000e+00> : vector<128xf32>
    %124 = vector.multi_reduction <add>, %123, %cst_60 [1] : vector<128x128xf32> to vector<128xf32>
    %125 = vector.shape_cast %124 : vector<128xf32> to vector<128x1xf32>
    %126 = tpu.reciprocal %125 {approx = true} : vector<128x1xf32> -> vector<128x1xf32>
    %127 = vector.broadcast %126 : vector<128x1xf32> to vector<128x128xf32>
    %128 = arith.mulf %123, %127 : vector<128x128xf32>
    %129 = arith.truncf %128 : vector<128x128xf32> to vector<128x128xbf16>
    %cst_61 = arith.constant dense<0.000000e+00> : vector<128x128xf32>
    %130 = tpu.matmul %129, %104, %cst_61 {dimension_numbers = #tpu.dot_dimension_numbers<[1], [1], [0], [0], [0, 0, 1, 0], [], []>} : vector<128x128xbf16>, vector<128x128xbf16>, vector<128x128xf32> -> vector<128x128xf32>
    %131 = arith.addf %117, %130 : vector<128x128xf32>
    %132 = arith.truncf %131 : vector<128x128xf32> to vector<128x128xbf16>
    %c128_62 = arith.constant 128 : index
    %c128_63 = arith.constant 128 : index
    %133 = vector.load %arg7[%c128_62, %c128_63] : memref<256x256xbf16, #tpu.memory_space<vmem>>, vector<128x128xbf16>
    tpu.vector_store %arg7[%c128_62, %c128_63], %132 {strides = array<i32>} : memref<256x256xbf16, #tpu.memory_space<vmem>>, vector<128x128xbf16>,
    %c0_64 = arith.constant 0 : index
    %c0_65 = arith.constant 0 : index
    %134 = vector.load %arg4[%c0_64, %c0_65] : memref<256x256xbf16, #tpu.memory_space<vmem>>, vector<256x256xbf16>
    %c0_66 = arith.constant 0 : index
    %c0_67 = arith.constant 0 : index
    %135 = vector.load %arg7[%c0_66, %c0_67] : memref<256x256xbf16, #tpu.memory_space<vmem>>, vector<256x256xbf16>
    %cst_68 = arith.constant dense<0.000000e+00> : vector<256x256xf32>
    %136 = tpu.matmul %134, %135, %cst_68 {dimension_numbers = #tpu.dot_dimension_numbers<[1], [0], [0], [1], [0, 0, 1, 1], [], []>} : vector<256x256xbf16>, vector<256x256xbf16>, vector<256x256xf32> -> vector<256x256xf32>
    %c0_69 = arith.constant 0 : index
    %137 = memref.load %arg1[%c0_69] : memref<1xf32, #tpu.memory_space<smem>>
    %138 = vector.broadcast %137 : f32 to vector<256x256xf32>
    %139 = arith.mulf %138, %136 : vector<256x256xf32>
    %140 = arith.addf %139, %0 : vector<256x256xf32>
    %c0_70 = arith.constant 0 : index
    %c0_71 = arith.constant 0 : index
    %141 = vector.load %arg5[%c0_70, %c0_71] : memref<256x256xf32, #tpu.memory_space<vmem>>, vector<256x256xf32>
    tpu.vector_store %arg5[%c0_70, %c0_71], %140 {strides = array<i32>} : memref<256x256xf32, #tpu.memory_space<vmem>>, vector<256x256xf32>,
    return
  }
  func.func @transform_0(%arg0: i32) -> i32 {
    %c0_i32 = arith.constant 0 : i32
    %c0_i32_0 = arith.constant 0 : i32
    return %c0_i32 : i32
  }
  func.func @transform_1(%arg0: i32) -> (i32, i32) {
    %c0_i32 = arith.constant 0 : i32
    %c0_i32_0 = arith.constant 0 : i32
    return %c0_i32, %arg0 : i32, i32
  }
  func.func @transform_2(%arg0: i32) -> (i32, i32) {
    %c0_i32 = arith.constant 0 : i32
    %c0_i32_0 = arith.constant 0 : i32
    %c0_i32_1 = arith.constant 0 : i32
    return %c0_i32, %c0_i32_0 : i32, i32
  }
  func.func @transform_3(%arg0: i32) -> (i32, i32) {
    %c0_i32 = arith.constant 0 : i32
    %c0_i32_0 = arith.constant 0 : i32
    %c0_i32_1 = arith.constant 0 : i32
    return %c0_i32, %c0_i32_0 : i32, i32
  }
  func.func @transform_4(%arg0: i32) -> (i32, i32) {
    %c0_i32 = arith.constant 0 : i32
    %c0_i32_0 = arith.constant 0 : i32
    return %c0_i32, %arg0 : i32, i32
  }
}

</mosaic_0001>

<bundles_post_ra>
// kernel: tpu_custom_call.1
= control target key start
LH: loop header
LB: loop body
LE: loop exit
PB: predicated region body
PF: predicated region fallthrough
CT: control target
= control target key end

     0   :  { %10 = vsyncpa [#allocation6], 0  ;;  %s9684_s0 = inlined_call_operand.<no memory space> [shape: f32[1], index: 0, kind: input, shape index: {}]   ;;  %s9685_s1 = inlined_call_operand.hbm [shape: f32[256,256], index: 1, kind: input, shape index: {}]   ;;  %s9686_s2 = inlined_call_operand.hbm [shape: bf16[768,256], index: 2, kind: input, shape index: {}]   ;;  %s9687_s3 = inlined_call_operand.hbm [shape: bf16[256,256], index: 3, kind: input, shape index: {}]   ;;  %s9688_s4 = inlined_call_operand.hbm [shape: f32[256,256], index: 4, kind: output, shape index: {}]  }
   0x1   :  { %11 = vsyncpa [#allocation9], 0  ;;  %s32_s17 = sshll.u32 %s9686_s2, 4  ;;  %s33_s17 = int_to_ptr.hbm [resolvable:$true] %s32_s17 }
   0x2   :  { %12 = vsyncpa [#allocation7], 0  ;;  %s7892_s18 = smov [#allocation8]   ;;  %s19_s22 = sshll.u32 %s9685_s1, 4  ;;  %s20_s22 = int_to_ptr.hbm [resolvable:$true] %s19_s22 }
   0x3   :  { %s34_s19 = sshll.u32 %s7892_s18, 4  ;;  %s7893_s23 = smov 128   ;;  %s35_s19 = int_to_ptr.vmem [resolvable:$true] %s34_s19 }
   0x4   :  { %s7894_s24 = smov 8   ;;  %s7895_s25 = smov [#allocation5]  }
   0x5   :  { %40 = dma.hbm_to_vmem [thread:$0]  %s33_s17, 12288, %s35_s19, [#allocation9], %s7893_s23, %s7893_s23, %s7894_s24  }
   0x6   :  { %s21_s26 = sshll.u32 %s7895_s25, 4  ;;  %s7896_s27 = smov 256   ;;  %s22_s26 = int_to_ptr.vmem [resolvable:$true] %s21_s26 }
   0x7   :  { %s7897_s28 = smov 16   ;;  %s45_s30 = sshll.u32 %s9687_s3, 4  ;;  %s46_s30 = int_to_ptr.hbm [resolvable:$true] %s45_s30 }
   0x8   :  { %27 = dma.hbm_to_vmem [thread:$0]  %s20_s22, 8192, %s22_s26, [#allocation6], %s7896_s27, %s7896_s27, %s7897_s28  }
   0x9   :  { %s7898_s5 = smov [#allocation10]  }
   0xa   :  { %s47_s1 = sshll.u32 %s7898_s5, 4  ;;  %s48_s1 = int_to_ptr.vmem [resolvable:$true] %s47_s1 }
   0xb   :  { %53 = dma.hbm_to_vmem [thread:$0]  %s46_s30, 4096, %s48_s1, [#allocation9], %s7893_s23, %s7893_s23, %s7894_s24  }
   0xc   :  { %7886 = dma.done.wait [#allocation6], 8192  }
   0xd   :  { %7887 = vsyncadd [#allocation6], 4294959104 }
   0xe   :  { %7888 = dma.done.wait [#allocation9], 16384  }
   0xf   :  { %7889 = vsyncadd [#allocation9], 4294950912  ;;  %v94_v0 = vld [vmem:[#allocation5 + $0xe0] sm:$0xff]  ;;  %v96_v1 = vld [vmem:[#allocation5 + $0xf0] sm:$0xff]  ;;  %s5826_s10 = sshll.u32 %s9688_s4, 4  ;;  %s5827_s10 = int_to_ptr.hbm [resolvable:$true] %s5826_s10 }
  0x10   :  { %v126_v2 = vld [vmem:[#allocation5 + $0x1e0] sm:$0xff]  ;;  %v240_v3 = vpack.c.bf16 %v96_v1, %v94_v0  ;;  %v128_v4 = vld [vmem:[#allocation5 + $0x1f0] sm:$0xff]  ;;  %v95_v5 = vld [vmem:[#allocation5 + $0xe8] sm:$0xff] }
  0x11   :  { %v97_v6 = vld [vmem:[#allocation5 + $0xf8] sm:$0xff]  ;;  %v256_v7 = vpack.c.bf16 %v128_v4, %v126_v2  ;;  %v127_v9 = vld [vmem:[#allocation5 + $0x1e8] sm:$0xff]  ;;  %v90_v11 = vld [vmem:[#allocation5 + $0xc0] sm:$0xff] }
  0x12   :  { %v241_v8 = vpack.c.bf16 %v97_v6, %v95_v5  ;;  %v129_v10 = vld [vmem:[#allocation5 + $0x1f8] sm:$0xff]  ;;  %738 = vmatpush.bf16.msra.mxu0 %v240_v3  ;;  %v92_v13 = vld [vmem:[#allocation5 + $0xd0] sm:$0xff]  ;;  %v122_v14 = vld [vmem:[#allocation5 + $0x1c0] sm:$0xff] }
  0x13   :  { %v257_v12 = vpack.c.bf16 %v129_v10, %v127_v9  ;;  %v124_v15 = vld [vmem:[#allocation5 + $0x1d0] sm:$0xff]  ;;  %987 = vmatpush.bf16.msra.mxu1 %v256_v7  ;;  %v238_v16 = vpack.c.bf16 %v92_v13, %v90_v11  ;;  %v91_v18 = vld [vmem:[#allocation5 + $0xc8] sm:$0xff]  ;;  %v93_v19 = vld [vmem:[#allocation5 + $0xd8] sm:$0xff] }
  0x14   :  { %1236 = vmatpush.bf16.msra.mxu2 %v241_v8  ;;  %v254_v17 = vpack.c.bf16 %v124_v15, %v122_v14  ;;  %v123_v20 = vld [vmem:[#allocation5 + $0x1c8] sm:$0xff]  ;;  %v239_v21 = vpack.c.bf16 %v93_v19, %v91_v18  ;;  %v125_v22 = vld [vmem:[#allocation5 + $0x1d8] sm:$0xff]  ;;  %v86_v23 = vld [vmem:[#allocation5 + $0xa0] sm:$0xff] }
  0x15   :  { %1485 = vmatpush.bf16.msra.mxu3 %v257_v12  ;;  %v88_v24 = vld [vmem:[#allocation5 + $0xb0] sm:$0xff]  ;;  %v255_v25 = vpack.c.bf16 %v125_v22, %v123_v20  ;;  %v118_v26 = vld [vmem:[#allocation5 + $0x1a0] sm:$0xff]  ;;  %v87_v28 = vld [vmem:[#allocation5 + $0xa8] sm:$0xff] }
  0x16   :  { %v120_v27 = vld [vmem:[#allocation5 + $0x1b0] sm:$0xff]  ;;  %739 = vmatpush.bf16.msra.mxu0 %v238_v16  ;;  %v236_v29 = vpack.c.bf16 %v88_v24, %v86_v23  ;;  %v89_v30 = vld [vmem:[#allocation5 + $0xb8] sm:$0xff]  ;;  %v119_v31 = vld [vmem:[#allocation5 + $0x1a8] sm:$0xff] }
  0x17   :  { %v121_v32 = vld [vmem:[#allocation5 + $0x1b8] sm:$0xff]  ;;  %988 = vmatpush.bf16.msra.mxu1 %v254_v17  ;;  %v252_v33 = vpack.c.bf16 %v120_v27, %v118_v26  ;;  %v237_v34 = vpack.c.bf16 %v89_v30, %v87_v28  ;;  %v82_v35 = vld [vmem:[#allocation5 + $0x80] sm:$0xff]  ;;  %v84_v36 = vld [vmem:[#allocation5 + $0x90] sm:$0xff] }
  0x18   :  { %1237 = vmatpush.bf16.msra.mxu2 %v239_v21  ;;  %v114_v37 = vld [vmem:[#allocation5 + $0x180] sm:$0xff]  ;;  %v253_v38 = vpack.c.bf16 %v121_v32, %v119_v31  ;;  %v116_v39 = vld [vmem:[#allocation5 + $0x190] sm:$0xff]  ;;  %v83_v40 = vld [vmem:[#allocation5 + $0x88] sm:$0xff]  ;;  %v234_v44 = vpack.c.bf16 %v84_v36, %v82_v35 }
  0x19   :  { %1486 = vmatpush.bf16.msra.mxu3 %v255_v25  ;;  %v85_v41 = vld [vmem:[#allocation5 + $0x98] sm:$0xff]  ;;  %v115_v42 = vld [vmem:[#allocation5 + $0x188] sm:$0xff]  ;;  %v250_v45 = vpack.c.bf16 %v116_v39, %v114_v37  ;;  %v78_v47 = vld [vmem:[#allocation5 + $0x60] sm:$0xff] }
  0x1a   :  { %v117_v43 = vld [vmem:[#allocation5 + $0x198] sm:$0xff]  ;;  %740 = vmatpush.bf16.msra.mxu0 %v236_v29  ;;  %v235_v46 = vpack.c.bf16 %v85_v41, %v83_v40  ;;  %v80_v48 = vld [vmem:[#allocation5 + $0x70] sm:$0xff]  ;;  %v110_v49 = vld [vmem:[#allocation5 + $0x160] sm:$0xff] }
  0x1b   :  { %989 = vmatpush.bf16.msra.mxu1 %v252_v33  ;;  %v251_v50 = vpack.c.bf16 %v117_v43, %v115_v42  ;;  %v112_v51 = vld [vmem:[#allocation5 + $0x170] sm:$0xff]  ;;  %v79_v52 = vld [vmem:[#allocation5 + $0x68] sm:$0xff]  ;;  %v81_v53 = vld [vmem:[#allocation5 + $0x78] sm:$0xff]  ;;  %v232_v56 = vpack.c.bf16 %v80_v48, %v78_v47 }
  0x1c   :  { %1238 = vmatpush.bf16.msra.mxu2 %v237_v34  ;;  %v111_v54 = vld [vmem:[#allocation5 + $0x168] sm:$0xff]  ;;  %v113_v55 = vld [vmem:[#allocation5 + $0x178] sm:$0xff]  ;;  %v248_v57 = vpack.c.bf16 %v112_v51, %v110_v49  ;;  %v233_v58 = vpack.c.bf16 %v81_v53, %v79_v52  ;;  %v74_v59 = vld [vmem:[#allocation5 + $0x40] sm:$0xff] }
  0x1d   :  { %1487 = vmatpush.bf16.msra.mxu3 %v253_v38  ;;  %v76_v60 = vld [vmem:[#allocation5 + $0x50] sm:$0xff]  ;;  %v106_v61 = vld [vmem:[#allocation5 + $0x140] sm:$0xff]  ;;  %v249_v62 = vpack.c.bf16 %v113_v55, %v111_v54  ;;  %v75_v0 = vld [vmem:[#allocation5 + $0x48] sm:$0xff] }
  0x1e   :  { %741 = vmatpush.bf16.msra.mxu0 %v234_v44  ;;  %v108_v63 = vld [vmem:[#allocation5 + $0x150] sm:$0xff]  ;;  %v77_v1 = vld [vmem:[#allocation5 + $0x58] sm:$0xff]  ;;  %v107_v2 = vld [vmem:[#allocation5 + $0x148] sm:$0xff]  ;;  %v230_v4 = vpack.c.bf16 %v76_v60, %v74_v59 }
  0x1f   :  { %990 = vmatpush.bf16.msra.mxu1 %v250_v45  ;;  %v109_v3 = vld [vmem:[#allocation5 + $0x158] sm:$0xff]  ;;  %v246_v5 = vpack.c.bf16 %v108_v63, %v106_v61  ;;  %v231_v6 = vpack.c.bf16 %v77_v1, %v75_v0  ;;  %v70_v7 = vld [vmem:[#allocation5 + $0x20] sm:$0xff]  ;;  %v72_v8 = vld [vmem:[#allocation5 + $0x30] sm:$0xff] }
  0x20   :  { %1239 = vmatpush.bf16.msra.mxu2 %v235_v46  ;;  %v102_v9 = vld [vmem:[#allocation5 + $0x120] sm:$0xff]  ;;  %v247_v10 = vpack.c.bf16 %v109_v3, %v107_v2  ;;  %v104_v11 = vld [vmem:[#allocation5 + $0x130] sm:$0xff]  ;;  %v71_v12 = vld [vmem:[#allocation5 + $0x28] sm:$0xff]  ;;  %v228_v16 = vpack.c.bf16 %v72_v8, %v70_v7 }
  0x21   :  { %1488 = vmatpush.bf16.msra.mxu3 %v251_v50  ;;  %v73_v13 = vld [vmem:[#allocation5 + $0x38] sm:$0xff]  ;;  %v103_v14 = vld [vmem:[#allocation5 + $0x128] sm:$0xff]  ;;  %v244_v17 = vpack.c.bf16 %v104_v11, %v102_v9  ;;  %v66_v19 = vld [vmem:[#allocation5] sm:$0xff] }
  0x22   :  { %742 = vmatpush.bf16.msra.mxu0 %v232_v56  ;;  %v105_v15 = vld [vmem:[#allocation5 + $0x138] sm:$0xff]  ;;  %v229_v18 = vpack.c.bf16 %v73_v13, %v71_v12  ;;  %v68_v20 = vld [vmem:[#allocation5 + $0x10] sm:$0xff]  ;;  %v98_v21 = vld [vmem:[#allocation5 + $0x100] sm:$0xff] }
  0x23   :  { %991 = vmatpush.bf16.msra.mxu1 %v248_v57  ;;  %v245_v22 = vpack.c.bf16 %v105_v15, %v103_v14  ;;  %v100_v23 = vld [vmem:[#allocation5 + $0x110] sm:$0xff]  ;;  %v67_v24 = vld [vmem:[#allocation5 + $0x8] sm:$0xff]  ;;  %v69_v25 = vld [vmem:[#allocation5 + $0x18] sm:$0xff]  ;;  %v226_v28 = vpack.c.bf16 %v68_v20, %v66_v19 }
  0x24   :  { %1240 = vmatpush.bf16.msra.mxu2 %v233_v58  ;;  %v99_v26 = vld [vmem:[#allocation5 + $0x108] sm:$0xff]  ;;  %v101_v27 = vld [vmem:[#allocation5 + $0x118] sm:$0xff]  ;;  %v5842_v29 = vld [vmem:[#allocation8] sm:$0xf]  ;;  %v242_v31 = vpack.c.bf16 %v100_v23, %v98_v21  ;;  %v227_v32 = vpack.c.bf16 %v69_v25, %v67_v24 }
  0x25   :  { %1489 = vmatpush.bf16.msra.mxu3 %v249_v62  ;;  %v6865_v30 = vld [vmem:[#allocation8 + $0x4] sm:$0xf0]  ;;  %v6864_v33 = vld [vmem:[#allocation8 + $0x4] sm:$0xf]  ;;  %v5844_v34 = vld [vmem:[#allocation8 + $0x8] sm:$0xf0]  ;;  %v243_v35 = vpack.c.bf16 %v101_v27, %v99_v26 }
  0x26   :  { %743 = vmatpush.bf16.msra.mxu0 %v230_v4  ;;  %v5843_v36 = vor.u32 %v6865_v30, %v5842_v29  ;;  %v5847_v37 = vor.u32 %v6864_v33, %v5844_v34  ;;  %v5850_v38 = vld [vmem:[#allocation8 + $0x10] sm:$0xf]  ;;  %v6867_v39 = vld [vmem:[#allocation8 + $0x14] sm:$0xf0]  ;;  %v6866_v40 = vld [vmem:[#allocation8 + $0x14] sm:$0xf] }
  0x27   :  { %992 = vmatpush.bf16.msra.mxu1 %v246_v5  ;;  %v5852_v41 = vld [vmem:[#allocation8 + $0x18] sm:$0xf0]  ;;  %v5851_v42 = vor.u32 %v6867_v39, %v5850_v38  ;;  %v5858_v44 = vld [vmem:[#allocation8 + $0x20] sm:$0xf]  ;;  %v6869_v45 = vld [vmem:[#allocation8 + $0x24] sm:$0xf0] }
  0x28   :  { %1241 = vmatpush.bf16.msra.mxu2 %v231_v6  ;;  %v5855_v43 = vor.u32 %v6866_v40, %v5852_v41  ;;  %v6868_v46 = vld [vmem:[#allocation8 + $0x24] sm:$0xf]  ;;  %v5860_v47 = vld [vmem:[#allocation8 + $0x28] sm:$0xf0]  ;;  %v5859_v48 = vor.u32 %v6869_v45, %v5858_v44  ;;  %v5866_v50 = vld [vmem:[#allocation8 + $0x30] sm:$0xf] }
  0x29   :  { %1490 = vmatpush.bf16.msra.mxu3 %v247_v10  ;;  %v5863_v49 = vor.u32 %v6868_v46, %v5860_v47  ;;  %v6871_v51 = vld [vmem:[#allocation8 + $0x34] sm:$0xf0]  ;;  %v6870_v52 = vld [vmem:[#allocation8 + $0x34] sm:$0xf]  ;;  %v5868_v53 = vld [vmem:[#allocation8 + $0x38] sm:$0xf0] }
  0x2a   :  { %744 = vmatpush.bf16.msra.mxu0 %v228_v16  ;;  %v5867_v54 = vor.u32 %v6871_v51, %v5866_v50  ;;  %v5871_v55 = vor.u32 %v6870_v52, %v5868_v53  ;;  %v5874_v56 = vld [vmem:[#allocation8 + $0x40] sm:$0xf]  ;;  %v6873_v57 = vld [vmem:[#allocation8 + $0x44] sm:$0xf0]  ;;  %v6872_v58 = vld [vmem:[#allocation8 + $0x44] sm:$0xf] }
  0x2b   :  { %993 = vmatpush.bf16.msra.mxu1 %v244_v17  ;;  %v5876_v59 = vld [vmem:[#allocation8 + $0x48] sm:$0xf0]  ;;  %v5875_v60 = vor.u32 %v6873_v57, %v5874_v56  ;;  %v5882_v62 = vld [vmem:[#allocation8 + $0x50] sm:$0xf]  ;;  %v6875_v63 = vld [vmem:[#allocation8 + $0x54] sm:$0xf0] }
  0x2c   :  { %1242 = vmatpush.bf16.msra.mxu2 %v229_v18  ;;  %v5879_v61 = vor.u32 %v6872_v58, %v5876_v59  ;;  %v6874_v0 = vld [vmem:[#allocation8 + $0x54] sm:$0xf]  ;;  %v5884_v1 = vld [vmem:[#allocation8 + $0x58] sm:$0xf0]  ;;  %v5883_v2 = vor.u32 %v6875_v63, %v5882_v62  ;;  %v5890_v4 = vld [vmem:[#allocation8 + $0x60] sm:$0xf] }
  0x2d   :  { %1491 = vmatpush.bf16.msra.mxu3 %v245_v22  ;;  %v5887_v3 = vor.u32 %v6874_v0, %v5884_v1  ;;  %v6877_v5 = vld [vmem:[#allocation8 + $0x64] sm:$0xf0]  ;;  %v6876_v6 = vld [vmem:[#allocation8 + $0x64] sm:$0xf]  ;;  %v5892_v7 = vld [vmem:[#allocation8 + $0x68] sm:$0xf0] }
  0x2e   :  { %745 = vmatpush.bf16.msra.mxu0 %v226_v28  ;;  %v5891_v8 = vor.u32 %v6877_v5, %v5890_v4  ;;  %v5895_v9 = vor.u32 %v6876_v6, %v5892_v7  ;;  %v5898_v10 = vld [vmem:[#allocation8 + $0x70] sm:$0xf]  ;;  %v6879_v11 = vld [vmem:[#allocation8 + $0x74] sm:$0xf0]  ;;  %v6878_v12 = vld [vmem:[#allocation8 + $0x74] sm:$0xf] }
  0x2f   :  { %994 = vmatpush.bf16.msra.mxu1 %v242_v31  ;;  %v5900_v13 = vld [vmem:[#allocation8 + $0x78] sm:$0xf0]  ;;  %v5899_v14 = vor.u32 %v6879_v11, %v5898_v10  ;;  %v5906_v16 = vld [vmem:[#allocation8 + $0x80] sm:$0xf]  ;;  %v6881_v17 = vld [vmem:[#allocation8 + $0x84] sm:$0xf0] }
  0x30   :  { %1243 = vmatpush.bf16.msra.mxu2 %v227_v32  ;;  %v5903_v15 = vor.u32 %v6878_v12, %v5900_v13  ;;  %v6880_v18 = vld [vmem:[#allocation8 + $0x84] sm:$0xf]  ;;  %v5908_v19 = vld [vmem:[#allocation8 + $0x88] sm:$0xf0]  ;;  %v5907_v20 = vor.u32 %v6881_v17, %v5906_v16  ;;  %v5914_v31 = vld [vmem:[#allocation8 + $0x90] sm:$0xf] }
  0x31   :  { %1492 = vmatpush.bf16.msra.mxu3 %v243_v35  ;;  %746 = vmatmul.bf16.vlgmr.msra.gmra.mxu0 %v5843_v36  ;;  %v5911_v22 = vor.u32 %v6880_v18, %v5908_v19  ;;  %v6883_v32 = vld [vmem:[#allocation8 + $0x94] sm:$0xf0]  ;;  %v6882_v33 = vld [vmem:[#allocation8 + $0x94] sm:$0xf]  ;;  %v5916_v34 = vld [vmem:[#allocation8 + $0x98] sm:$0xf0] }
  0x32   :  { %995 = vmatmul.bf16.vlgmr.msra.gmra.mxu1 %v5847_v37  ;;  %v5919_v39 = vor.u32 %v6882_v33, %v5916_v34  ;;  %v5922_v51 = vld [vmem:[#allocation8 + $0xa0] sm:$0xf]  ;;  %v6885_v52 = vld [vmem:[#allocation8 + $0xa4] sm:$0xf0]  ;;  %v6884_v53 = vld [vmem:[#allocation8 + $0xa4] sm:$0xf] }
  0x33   :  { %1244 = vmatmul.bf16.vlgmr.msra.gmra.mxu2 %v5843_v36  ;;  %v5915_v36 = vor.u32 %v6883_v32, %v5914_v31  ;;  %v5923_v56 = vor.u32 %v6885_v52, %v5922_v51  ;;  %v5930_v7 = vld [vmem:[#allocation8 + $0xb0] sm:$0xf]  ;;  %v5932_v10 = vld [vmem:[#allocation8 + $0xb8] sm:$0xf0] }
  0x34   :  { %1493 = vmatmul.bf16.vlgmr.msra.gmra.mxu3 %v5847_v37 }
  0x41   :  { %751 = vmatmul.bf16.gmra.mxu0 %v5851_v42 }
  0x42   :  { %1000 = vmatmul.bf16.gmra.mxu1 %v5855_v43 }
  0x43   :  { %1249 = vmatmul.bf16.gmra.mxu2 %v5851_v42 }
  0x44   :  { %1498 = vmatmul.bf16.gmra.mxu3 %v5855_v43 }
  0x51   :  { %756 = vmatmul.bf16.gmra.mxu0 %v5859_v48 }
  0x52   :  { %1005 = vmatmul.bf16.gmra.mxu1 %v5863_v49 }
  0x53   :  { %1254 = vmatmul.bf16.gmra.mxu2 %v5859_v48 }
  0x54   :  { %1503 = vmatmul.bf16.gmra.mxu3 %v5863_v49 }
  0x61   :  { %761 = vmatmul.bf16.gmra.mxu0 %v5867_v54 }
  0x62   :  { %1010 = vmatmul.bf16.gmra.mxu1 %v5871_v55 }
  0x63   :  { %1259 = vmatmul.bf16.gmra.mxu2 %v5867_v54  ;;  %v5924_v54 = vld [vmem:[#allocation8 + $0xa8] sm:$0xf0] }
  0x64   :  { %1508 = vmatmul.bf16.gmra.mxu3 %v5871_v55  ;;  %v5927_v59 = vor.u32 %v6884_v53, %v5924_v54 }
  0x71   :  { %766 = vmatmul.bf16.gmra.mxu0 %v5875_v60 }
  0x72   :  { %1015 = vmatmul.bf16.gmra.mxu1 %v5879_v61 }
  0x73   :  { %1264 = vmatmul.bf16.gmra.mxu2 %v5875_v60 }
  0x74   :  { %1513 = vmatmul.bf16.gmra.mxu3 %v5879_v61 }
  0x81   :  { %771 = vmatmul.bf16.gmra.mxu0 %v5883_v2 }
  0x82   :  { %1020 = vmatmul.bf16.gmra.mxu1 %v5887_v3 }
  0x83   :  { %1269 = vmatmul.bf16.gmra.mxu2 %v5883_v2 }
  0x84   :  { %1518 = vmatmul.bf16.gmra.mxu3 %v5887_v3 }
  0x91   :  { %776 = vmatmul.bf16.gmra.mxu0 %v5891_v8 }
  0x92   :  { %1025 = vmatmul.bf16.gmra.mxu1 %v5895_v9 }
  0x93   :  { %1274 = vmatmul.bf16.gmra.mxu2 %v5891_v8  ;;  %v6887_v8 = vld [vmem:[#allocation8 + $0xb4] sm:$0xf0] }
  0x94   :  { %1523 = vmatmul.bf16.gmra.mxu3 %v5895_v9  ;;  %v6886_v9 = vld [vmem:[#allocation8 + $0xb4] sm:$0xf]  ;;  %v5931_v12 = vor.u32 %v6887_v8, %v5930_v7 }
  0xa1   :  { %781 = vmatmul.bf16.gmra.mxu0 %v5899_v14 }
  0xa2   :  { %1030 = vmatmul.bf16.gmra.mxu1 %v5903_v15 }
  0xa3   :  { %1279 = vmatmul.bf16.gmra.mxu2 %v5899_v14 }
  0xa4   :  { %1528 = vmatmul.bf16.gmra.mxu3 %v5903_v15  ;;  %v5935_v15 = vor.u32 %v6886_v9, %v5932_v10 }
  0xae   :  { %v747_v21 = vpop.f32.mrf.mxu0 }
  0xaf   :  { %v996_v23 = vpop.f32.mrf.mxu1 }
  0xb0   :  { %v997_v27 = vadd.f32 %v996_v23, %v747_v21 }
  0xb1   :  { %786 = vmatmul.bf16.gmra.mxu0 %v5907_v20 }
  0xb2   :  { %1035 = vmatmul.bf16.gmra.mxu1 %v5911_v22 }
  0xb3   :  { %1284 = vmatmul.bf16.gmra.mxu2 %v5907_v20 }
  0xb4   :  { %1533 = vmatmul.bf16.gmra.mxu3 %v5911_v22 }
  0xb6   :  { %v1245_v24 = vpop.f32.mrf.mxu2  ;;  %v749_v26 = vpop.f32.mrf.mxu0 }
  0xb7   :  { %v1494_v25 = vpop.f32.mrf.mxu3  ;;  %v998_v29 = vpop.f32.mrf.mxu1 }
  0xb8   :  { %v1495_v28 = vadd.f32 %v1494_v25, %v1245_v24  ;;  %v999_v40 = vadd.f32 %v998_v29, %v749_v26  ;;  %v6888_v29 = vld [vmem:[#allocation8 + $0xc4] sm:$0xf] }
  0xba   :  { %v1734_v30 = vpack.c.bf16 %v1495_v28, %v997_v27  ;;  %v5938_v27 = vld [vmem:[#allocation8 + $0xc0] sm:$0xf]  ;;  %v6889_v28 = vld [vmem:[#allocation8 + $0xc4] sm:$0xf0] }
  0xbb   :  { %v5939_v32 = vor.u32 %v6889_v28, %v5938_v27 }
  0xbc   :  { %1830 = vst [vmem:[#allocation2] sm:$0xff] %v1734_v30  ;;  %v5940_v30 = vld [vmem:[#allocation8 + $0xc8] sm:$0xf0] }
  0xbe   :  { %v1247_v35 = vpop.f32.mrf.mxu2  ;;  %v752_v38 = vpop.f32.mrf.mxu0 }
  0xbf   :  { %v1496_v37 = vpop.f32.mrf.mxu3  ;;  %v1001_v42 = vpop.f32.mrf.mxu1 }
  0xc0   :  { %v1497_v41 = vadd.f32 %v1496_v37, %v1247_v35  ;;  %v1002_v47 = vadd.f32 %v1001_v42, %v752_v38  ;;  %v5943_v35 = vor.u32 %v6888_v29, %v5940_v30 }
  0xc1   :  { %791 = vmatmul.bf16.gmra.mxu0 %v5915_v36 }
  0xc2   :  { %v1735_v43 = vpack.c.bf16 %v1497_v41, %v999_v40  ;;  %1040 = vmatmul.bf16.gmra.mxu1 %v5919_v39 }
  0xc3   :  { %1289 = vmatmul.bf16.gmra.mxu2 %v5915_v36 }
  0xc4   :  { %1831 = vst [vmem:[#allocation2 + $0x8] sm:$0xff] %v1735_v43  ;;  %1538 = vmatmul.bf16.gmra.mxu3 %v5919_v39 }
  0xc6   :  { %v1250_v44 = vpop.f32.mrf.mxu2  ;;  %v754_v46 = vpop.f32.mrf.mxu0 }
  0xc7   :  { %v1499_v45 = vpop.f32.mrf.mxu3  ;;  %v1003_v49 = vpop.f32.mrf.mxu1 }
  0xc8   :  { %v1500_v48 = vadd.f32 %v1499_v45, %v1250_v44  ;;  %v1004_v60 = vadd.f32 %v1003_v49, %v754_v46  ;;  %v6890_v49 = vld [vmem:[#allocation8 + $0xd4] sm:$0xf] }
  0xca   :  { %v1736_v50 = vpack.c.bf16 %v1500_v48, %v1002_v47  ;;  %v5946_v47 = vld [vmem:[#allocation8 + $0xd0] sm:$0xf]  ;;  %v6891_v48 = vld [vmem:[#allocation8 + $0xd4] sm:$0xf0] }
  0xcb   :  { %v5947_v52 = vor.u32 %v6891_v48, %v5946_v47 }
  0xcc   :  { %1832 = vst [vmem:[#allocation2 + $0x10] sm:$0xff] %v1736_v50  ;;  %v5948_v50 = vld [vmem:[#allocation8 + $0xd8] sm:$0xf0] }
  0xce   :  { %v1252_v55 = vpop.f32.mrf.mxu2  ;;  %v757_v58 = vpop.f32.mrf.mxu0 }
  0xcf   :  { %v1501_v57 = vpop.f32.mrf.mxu3  ;;  %v1006_v62 = vpop.f32.mrf.mxu1 }
  0xd0   :  { %v1502_v61 = vadd.f32 %v1501_v57, %v1252_v55  ;;  %v1007_v3 = vadd.f32 %v1006_v62, %v757_v58  ;;  %v5951_v55 = vor.u32 %v6890_v49, %v5948_v50 }
  0xd1   :  { %796 = vmatmul.bf16.gmra.mxu0 %v5923_v56 }
  0xd2   :  { %v1737_v63 = vpack.c.bf16 %v1502_v61, %v1004_v60  ;;  %1045 = vmatmul.bf16.gmra.mxu1 %v5927_v59 }
  0xd3   :  { %1294 = vmatmul.bf16.gmra.mxu2 %v5923_v56 }
  0xd4   :  { %1833 = vst [vmem:[#allocation2 + $0x18] sm:$0xff] %v1737_v63  ;;  %1543 = vmatmul.bf16.gmra.mxu3 %v5927_v59 }
  0xd6   :  { %v1255_v0 = vpop.f32.mrf.mxu2  ;;  %v759_v2 = vpop.f32.mrf.mxu0 }
  0xd7   :  { %v1504_v1 = vpop.f32.mrf.mxu3  ;;  %v1008_v5 = vpop.f32.mrf.mxu1 }
  0xd8   :  { %v1505_v4 = vadd.f32 %v1504_v1, %v1255_v0  ;;  %v1009_v16 = vadd.f32 %v1008_v5, %v759_v2  ;;  %v6892_v5 = vld [vmem:[#allocation8 + $0xe4] sm:$0xf] }
  0xda   :  { %v1738_v6 = vpack.c.bf16 %v1505_v4, %v1007_v3  ;;  %v5954_v3 = vld [vmem:[#allocation8 + $0xe0] sm:$0xf]  ;;  %v6893_v4 = vld [vmem:[#allocation8 + $0xe4] sm:$0xf0] }
  0xdb   :  { %v5955_v8 = vor.u32 %v6893_v4, %v5954_v3  ;;  %v6898_v4 = vld [vmem:[#allocation8 + $0x114] sm:$0xf] }
  0xdc   :  { %1834 = vst [vmem:[#allocation2 + $0x20] sm:$0xff] %v1738_v6  ;;  %v5956_v6 = vld [vmem:[#allocation8 + $0xe8] sm:$0xf0] }
  0xde   :  { %v1257_v11 = vpop.f32.mrf.mxu2  ;;  %v762_v14 = vpop.f32.mrf.mxu0 }
  0xdf   :  { %v1506_v13 = vpop.f32.mrf.mxu3  ;;  %v1011_v18 = vpop.f32.mrf.mxu1 }
  0xe0   :  { %v1507_v17 = vadd.f32 %v1506_v13, %v1257_v11  ;;  %v1012_v23 = vadd.f32 %v1011_v18, %v762_v14  ;;  %v5959_v11 = vor.u32 %v6892_v5, %v5956_v6  ;;  %v5980_v5 = vld [vmem:[#allocation8 + $0x118] sm:$0xf0] }
  0xe1   :  { %801 = vmatmul.bf16.gmra.mxu0 %v5931_v12 }
  0xe2   :  { %v1739_v19 = vpack.c.bf16 %v1507_v17, %v1009_v16  ;;  %1050 = vmatmul.bf16.gmra.mxu1 %v5935_v15 }
  0xe3   :  { %1299 = vmatmul.bf16.gmra.mxu2 %v5931_v12 }
  0xe4   :  { %1835 = vst [vmem:[#allocation2 + $0x28] sm:$0xff] %v1739_v19  ;;  %1548 = vmatmul.bf16.gmra.mxu3 %v5935_v15 }
  0xe6   :  { %v1260_v20 = vpop.f32.mrf.mxu2  ;;  %v764_v22 = vpop.f32.mrf.mxu0 }
  0xe7   :  { %v1509_v21 = vpop.f32.mrf.mxu3  ;;  %v1013_v25 = vpop.f32.mrf.mxu1 }
  0xe8   :  { %v1510_v24 = vadd.f32 %v1509_v21, %v1260_v20  ;;  %v1014_v36 = vadd.f32 %v1013_v25, %v764_v22  ;;  %v6894_v25 = vld [vmem:[#allocation8 + $0xf4] sm:$0xf] }
  0xea   :  { %v1740_v26 = vpack.c.bf16 %v1510_v24, %v1012_v23  ;;  %v5962_v23 = vld [vmem:[#allocation8 + $0xf0] sm:$0xf]  ;;  %v6895_v24 = vld [vmem:[#allocation8 + $0xf4] sm:$0xf0] }
  0xeb   :  { %v5963_v28 = vor.u32 %v6895_v24, %v5962_v23 }
  0xec   :  { %1836 = vst [vmem:[#allocation2 + $0x30] sm:$0xff] %v1740_v26  ;;  %v5964_v26 = vld [vmem:[#allocation8 + $0xf8] sm:$0xf0] }
  0xee   :  { %v1262_v31 = vpop.f32.mrf.mxu2  ;;  %v767_v34 = vpop.f32.mrf.mxu0 }
  0xef   :  { %v1511_v33 = vpop.f32.mrf.mxu3  ;;  %v1016_v38 = vpop.f32.mrf.mxu1 }
  0xf0   :  { %v1512_v37 = vadd.f32 %v1511_v33, %v1262_v31  ;;  %v1017_v43 = vadd.f32 %v1016_v38, %v767_v34  ;;  %v5967_v31 = vor.u32 %v6894_v25, %v5964_v26 }
  0xf1   :  { %806 = vmatmul.bf16.gmra.mxu0 %v5939_v32 }
  0xf2   :  { %v1741_v39 = vpack.c.bf16 %v1512_v37, %v1014_v36  ;;  %1055 = vmatmul.bf16.gmra.mxu1 %v5943_v35 }
  0xf3   :  { %1304 = vmatmul.bf16.gmra.mxu2 %v5939_v32 }
  0xf4   :  { %1837 = vst [vmem:[#allocation2 + $0x38] sm:$0xff] %v1741_v39  ;;  %1553 = vmatmul.bf16.gmra.mxu3 %v5943_v35 }
  0xf6   :  { %v1265_v40 = vpop.f32.mrf.mxu2  ;;  %v769_v42 = vpop.f32.mrf.mxu0 }
  0xf7   :  { %v1514_v41 = vpop.f32.mrf.mxu3  ;;  %v1018_v45 = vpop.f32.mrf.mxu1 }
  0xf8   :  { %v1515_v44 = vadd.f32 %v1514_v41, %v1265_v40  ;;  %v1019_v56 = vadd.f32 %v1018_v45, %v769_v42  ;;  %v6896_v45 = vld [vmem:[#allocation8 + $0x104] sm:$0xf] }
  0xfa   :  { %v1742_v46 = vpack.c.bf16 %v1515_v44, %v1017_v43  ;;  %v5970_v43 = vld [vmem:[#allocation8 + $0x100] sm:$0xf]  ;;  %v6897_v44 = vld [vmem:[#allocation8 + $0x104] sm:$0xf0] }
  0xfb   :  { %v5971_v48 = vor.u32 %v6897_v44, %v5970_v43  ;;  %v5988_v43 = vld [vmem:[#allocation8 + $0x128] sm:$0xf0]  ;;  %v6962_v44 = vld [vmem:[#allocation2 + $0x24] sm:$0xf0] }
  0xfc   :  { %1838 = vst [vmem:[#allocation2 + $0x40] sm:$0xff] %v1742_v46  ;;  %v5972_v46 = vld [vmem:[#allocation8 + $0x108] sm:$0xf0] }
  0xfe   :  { %v1267_v51 = vpop.f32.mrf.mxu2  ;;  %v772_v54 = vpop.f32.mrf.mxu0 }
  0xff   :  { %v1516_v53 = vpop.f32.mrf.mxu3  ;;  %v1021_v58 = vpop.f32.mrf.mxu1 }
 0x100   :  { %v1517_v57 = vadd.f32 %v1516_v53, %v1267_v51  ;;  %v1022_v63 = vadd.f32 %v1021_v58, %v772_v54  ;;  %v5975_v51 = vor.u32 %v6896_v45, %v5972_v46 }
 0x101   :  { %811 = vmatmul.bf16.gmra.mxu0 %v5947_v52 }
 0x102   :  { %v1743_v59 = vpack.c.bf16 %v1517_v57, %v1019_v56  ;;  %1060 = vmatmul.bf16.gmra.mxu1 %v5951_v55 }
 0x103   :  { %1309 = vmatmul.bf16.gmra.mxu2 %v5947_v52  ;;  %v6242_v25 = vld [vmem:[#allocation2 + $0x40] sm:$0xf] }
 0x104   :  { %1839 = vst [vmem:[#allocation2 + $0x48] sm:$0xff] %v1743_v59  ;;  %1558 = vmatmul.bf16.gmra.mxu3 %v5951_v55 }
 0x106   :  { %v1270_v60 = vpop.f32.mrf.mxu2  ;;  %v774_v62 = vpop.f32.mrf.mxu0 }
 0x107   :  { %v1519_v61 = vpop.f32.mrf.mxu3  ;;  %v1023_v1 = vpop.f32.mrf.mxu1 }
 0x108   :  { %v1520_v0 = vadd.f32 %v1519_v61, %v1270_v60  ;;  %v1024_v12 = vadd.f32 %v1023_v1, %v774_v62 }
 0x10a   :  { %v1744_v2 = vpack.c.bf16 %v1520_v0, %v1022_v63  ;;  %v5978_v63 = vld [vmem:[#allocation8 + $0x110] sm:$0xf] }
 0x10c   :  { %1840 = vst [vmem:[#allocation2 + $0x50] sm:$0xff] %v1744_v2  ;;  %v6899_v2 = vld [vmem:[#allocation8 + $0x114] sm:$0xf0] }
 0x10e   :  { %v1272_v7 = vpop.f32.mrf.mxu2  ;;  %v777_v10 = vpop.f32.mrf.mxu0 }
 0x10f   :  { %v1521_v9 = vpop.f32.mrf.mxu3  ;;  %v1026_v14 = vpop.f32.mrf.mxu1 }
 0x110   :  { %v1522_v13 = vadd.f32 %v1521_v9, %v1272_v7  ;;  %v1027_v19 = vadd.f32 %v1026_v14, %v777_v10 }
 0x111   :  { %816 = vmatmul.bf16.gmra.mxu0 %v5955_v8 }
 0x112   :  { %v1745_v15 = vpack.c.bf16 %v1522_v13, %v1024_v12  ;;  %1065 = vmatmul.bf16.gmra.mxu1 %v5959_v11  ;;  %v5983_v12 = vor.u32 %v6898_v4, %v5980_v5 }
 0x113   :  { %1314 = vmatmul.bf16.gmra.mxu2 %v5955_v8 }
 0x114   :  { %1841 = vst [vmem:[#allocation2 + $0x58] sm:$0xff] %v1745_v15  ;;  %1563 = vmatmul.bf16.gmra.mxu3 %v5959_v11  ;;  %v5979_v11 = vor.u32 %v6899_v2, %v5978_v63  ;;  %v6226_v63 = vld [vmem:[#allocation2] sm:$0xf] }
 0x116   :  { %v1275_v16 = vpop.f32.mrf.mxu2  ;;  %v779_v18 = vpop.f32.mrf.mxu0 }
 0x117   :  { %v1524_v17 = vpop.f32.mrf.mxu3  ;;  %v1028_v21 = vpop.f32.mrf.mxu1 }
 0x118   :  { %v1525_v20 = vadd.f32 %v1524_v17, %v1275_v16  ;;  %v1029_v32 = vadd.f32 %v1028_v21, %v779_v18  ;;  %v6964_v21 = vld [vmem:[#allocation2 + $0x44] sm:$0xf0] }
 0x11a   :  { %v1746_v22 = vpack.c.bf16 %v1525_v20, %v1027_v19  ;;  %v6246_v19 = vld [vmem:[#allocation2 + $0x50] sm:$0xf] }
 0x11b   :  { %v6965_v17 = vld [vmem:[#allocation2 + $0x54] sm:$0xf0] }
 0x11c   :  { %1842 = vst [vmem:[#allocation2 + $0x60] sm:$0xff] %v1746_v22  ;;  %v7945_v20 = vor.u32 %v6965_v17, %v6246_v19  ;;  %v5996_v19 = vld [vmem:[#allocation8 + $0x138] sm:$0xf0] }
 0x11e   :  { %v1277_v27 = vpop.f32.mrf.mxu2  ;;  %v782_v30 = vpop.f32.mrf.mxu0 }
 0x11f   :  { %v1526_v29 = vpop.f32.mrf.mxu3  ;;  %v1031_v34 = vpop.f32.mrf.mxu1 }
 0x120   :  { %v1527_v33 = vadd.f32 %v1526_v29, %v1277_v27  ;;  %v1032_v39 = vadd.f32 %v1031_v34, %v782_v30  ;;  %v7948_v29 = vor.u32 %v6964_v21, %v6242_v25  ;;  %v6238_v30 = vld [vmem:[#allocation2 + $0x30] sm:$0xf]  ;;  %v5986_v34 = vld [vmem:[#allocation8 + $0x120] sm:$0xf] }
 0x121   :  { %821 = vmatmul.bf16.gmra.mxu0 %v5963_v28 }
 0x122   :  { %v1747_v35 = vpack.c.bf16 %v1527_v33, %v1029_v32  ;;  %1070 = vmatmul.bf16.gmra.mxu1 %v5967_v31 }
 0x123   :  { %1319 = vmatmul.bf16.gmra.mxu2 %v5963_v28  ;;  %v6250_v10 = vld [vmem:[#allocation2 + $0x60] sm:$0xf]  ;;  %v6442_v25 = vld [vmem:[#allocation2 + $0x64] sm:$0xf] }
 0x124   :  { %1843 = vst [vmem:[#allocation2 + $0x68] sm:$0xff] %v1747_v35  ;;  %1568 = vmatmul.bf16.gmra.mxu3 %v5967_v31  ;;  %v6963_v31 = vld [vmem:[#allocation2 + $0x34] sm:$0xf0]  ;;  %v6901_v35 = vld [vmem:[#allocation8 + $0x124] sm:$0xf0] }
 0x126   :  { %v1280_v36 = vpop.f32.mrf.mxu2  ;;  %v784_v38 = vpop.f32.mrf.mxu0 }
 0x127   :  { %v1529_v37 = vpop.f32.mrf.mxu3  ;;  %v1033_v41 = vpop.f32.mrf.mxu1 }
 0x128   :  { %v1530_v40 = vadd.f32 %v1529_v37, %v1280_v36  ;;  %v1034_v52 = vadd.f32 %v1033_v41, %v784_v38 }
 0x12a   :  { %v1748_v42 = vpack.c.bf16 %v1530_v40, %v1032_v39  ;;  %v7951_v39 = vor.u32 %v6963_v31, %v6238_v30 }
 0x12b   :  { %v6966_v6 = vld [vmem:[#allocation2 + $0x64] sm:$0xf0]  ;;  %v7014_v21 = vld [vmem:[#allocation2 + $0x68] sm:$0xf0] }
 0x12c   :  { %1844 = vst [vmem:[#allocation2 + $0x70] sm:$0xff] %v1748_v42  ;;  %v7942_v16 = vor.u32 %v6966_v6, %v6250_v10  ;;  %v6900_v42 = vld [vmem:[#allocation8 + $0x124] sm:$0xf]  ;;  %v6903_v10 = vld [vmem:[#allocation8 + $0x134] sm:$0xf0] }
 0x12e   :  { %v1282_v47 = vpop.f32.mrf.mxu2  ;;  %v787_v50 = vpop.f32.mrf.mxu0 }
 0x12f   :  { %v1531_v49 = vpop.f32.mrf.mxu3  ;;  %v1036_v54 = vpop.f32.mrf.mxu1 }
 0x130   :  { %v1532_v53 = vadd.f32 %v1531_v49, %v1282_v47  ;;  %v1037_v59 = vadd.f32 %v1036_v54, %v787_v50  ;;  %v5987_v49 = vor.u32 %v6901_v35, %v5986_v34  ;;  %v5991_v50 = vor.u32 %v6900_v42, %v5988_v43  ;;  %v6438_v35 = vld [vmem:[#allocation2 + $0x54] sm:$0xf] }
 0x131   :  { %826 = vmatmul.bf16.gmra.mxu0 %v5971_v48 }
 0x132   :  { %v1749_v55 = vpack.c.bf16 %v1532_v53, %v1034_v52  ;;  %1075 = vmatmul.bf16.gmra.mxu1 %v5975_v51 }
 0x133   :  { %1324 = vmatmul.bf16.gmra.mxu2 %v5971_v48  ;;  %v6254_v0 = vld [vmem:[#allocation2 + $0x70] sm:$0xf]  ;;  %v6234_v48 = vld [vmem:[#allocation2 + $0x20] sm:$0xf]  ;;  %v6446_v5 = vld [vmem:[#allocation2 + $0x74] sm:$0xf] }
 0x134   :  { %1845 = vst [vmem:[#allocation2 + $0x78] sm:$0xff] %v1749_v55  ;;  %1573 = vmatmul.bf16.gmra.mxu3 %v5975_v51  ;;  %v7960_v54 = vor.u32 %v6962_v44, %v6234_v48  ;;  %v6961_v55 = vld [vmem:[#allocation2 + $0x14] sm:$0xf0]  ;;  %v6434_v44 = vld [vmem:[#allocation2 + $0x44] sm:$0xf] }
 0x136   :  { %v1285_v56 = vpop.f32.mrf.mxu2  ;;  %v789_v58 = vpop.f32.mrf.mxu0 }
 0x137   :  { %v1534_v57 = vpop.f32.mrf.mxu3  ;;  %v1038_v61 = vpop.f32.mrf.mxu1 }
 0x138   :  { %v1535_v60 = vadd.f32 %v1534_v57, %v1285_v56  ;;  %v1039_v13 = vadd.f32 %v1038_v61, %v789_v58  ;;  %v6230_v57 = vld [vmem:[#allocation2 + $0x10] sm:$0xf] }
 0x139   :  { %v7963_v58 = vor.u32 %v6961_v55, %v6230_v57  ;;  %v6905_v55 = vld [vmem:[#allocation8 + $0x144] sm:$0xf0] }
 0x13a   :  { %v1750_v62 = vpack.c.bf16 %v1535_v60, %v1037_v59  ;;  %v6960_v59 = vld [vmem:[#allocation2 + $0x4] sm:$0xf0] }
 0x13b   :  { %v6967_v1 = vld [vmem:[#allocation2 + $0x74] sm:$0xf0]  ;;  %v7966_v4 = vor.u32 %v6960_v59, %v6226_v63  ;;  %v7015_v6 = vld [vmem:[#allocation2 + $0x78] sm:$0xf0]  ;;  %v6904_v63 = vld [vmem:[#allocation8 + $0x144] sm:$0xf] }
 0x13c   :  { %1846 = vst [vmem:[#allocation2 + $0x80] sm:$0xff] %v1750_v62  ;;  %v7939_v3 = vor.u32 %v6967_v1, %v6254_v0 }
 0x13e   :  { %7132 = vmatpush.lsf.bf16.msrb.mxu0 %v7939_v3  ;;  %v1287_v7 = vpop.f32.mrf.mxu2  ;;  %v792_v9 = vpop.f32.mrf.mxu0 }
 0x13f   :  { %v1536_v8 = vpop.f32.mrf.mxu3  ;;  %v1041_v15 = vpop.f32.mrf.mxu1 }
 0x140   :  { %v1537_v14 = vadd.f32 %v1536_v8, %v1287_v7  ;;  %v1042_v26 = vadd.f32 %v1041_v15, %v792_v9  ;;  %v5994_v9 = vld [vmem:[#allocation8 + $0x130] sm:$0xf] }
 0x141   :  { %831 = vmatmul.bf16.gmra.mxu0 %v5979_v11 }
 0x142   :  { %v1751_v18 = vpack.c.bf16 %v1537_v14, %v1039_v13  ;;  %7133 = vmatpush.lsf.bf16.msrb.mxu0 %v7942_v16  ;;  %1080 = vmatmul.bf16.gmra.mxu1 %v5983_v12  ;;  %v7969_v14 = vor.u32 %v7015_v6, %v6446_v5 }
 0x143   :  { %1329 = vmatmul.bf16.gmra.mxu2 %v5979_v11  ;;  %v6322_v33 = vld [vmem:[#allocation2 + $0x80] sm:$0xf]  ;;  %v6514_v37 = vld [vmem:[#allocation2 + $0x84] sm:$0xf] }
 0x144   :  { %1847 = vst [vmem:[#allocation2 + $0x88] sm:$0xff] %v1751_v18  ;;  %1578 = vmatmul.bf16.gmra.mxu3 %v5983_v12  ;;  %v6902_v18 = vld [vmem:[#allocation8 + $0x134] sm:$0xf] }
 0x146   :  { %7134 = vmatpush.lsf.bf16.msrb.mxu0 %v7945_v20  ;;  %v1290_v22 = vpop.f32.mrf.mxu2  ;;  %v794_v24 = vpop.f32.mrf.mxu0 }
 0x147   :  { %v1539_v23 = vpop.f32.mrf.mxu3  ;;  %v1043_v28 = vpop.f32.mrf.mxu1 }
 0x148   :  { %v1540_v27 = vadd.f32 %v1539_v23, %v1290_v22  ;;  %v1044_v51 = vadd.f32 %v1043_v28, %v794_v24 }
 0x14a   :  { %v1752_v32 = vpack.c.bf16 %v1540_v27, %v1042_v26  ;;  %7135 = vmatpush.lsf.bf16.msrb.mxu0 %v7948_v29  ;;  %v5995_v26 = vor.u32 %v6903_v10, %v5994_v9  ;;  %v5999_v27 = vor.u32 %v6902_v18, %v5996_v19  ;;  %v7009_v18 = vld [vmem:[#allocation2 + $0x18] sm:$0xf0] }
 0x14b   :  { %v6984_v36 = vld [vmem:[#allocation2 + $0x84] sm:$0xf0]  ;;  %v7032_v38 = vld [vmem:[#allocation2 + $0x88] sm:$0xf0] }
 0x14c   :  { %1848 = vst [vmem:[#allocation2 + $0x90] sm:$0xff] %v1752_v32  ;;  %v7953_v40 = vor.u32 %v6984_v36, %v6322_v33  ;;  %v7955_v41 = vor.u32 %v7032_v38, %v6514_v37  ;;  %v7978_v32 = vor.u32 %v7014_v21, %v6442_v25  ;;  %v7013_v33 = vld [vmem:[#allocation2 + $0x58] sm:$0xf0]  ;;  %v7012_v37 = vld [vmem:[#allocation2 + $0x48] sm:$0xf0] }
 0x14d   :  { %v7981_v36 = vor.u32 %v7013_v33, %v6438_v35  ;;  %v7984_v48 = vor.u32 %v7012_v37, %v6434_v44  ;;  %v6422_v21 = vld [vmem:[#allocation2 + $0x14] sm:$0xf]  ;;  %v6010_v37 = vld [vmem:[#allocation8 + $0x150] sm:$0xf] }
 0x14e   :  { %7136 = vmatpush.lsf.bf16.msrb.mxu0 %v7951_v39  ;;  %v1292_v45 = vpop.f32.mrf.mxu2  ;;  %v797_v47 = vpop.f32.mrf.mxu0 }
 0x14f   :  { %7190 = vxpose.binary.xlu0.c.b16.start [1/16] %v7955_v41, %v7953_v40, 128  ;;  %v1541_v46 = vpop.f32.mrf.mxu3  ;;  %v1046_v53 = vpop.f32.mrf.mxu1 }
 0x150   :  { %v1542_v52 = vadd.f32 %v1541_v46, %v1292_v45  ;;  %v1047_v0 = vadd.f32 %v1046_v53, %v797_v47  ;;  %v6002_v53 = vld [vmem:[#allocation8 + $0x140] sm:$0xf] }
 0x151   :  { %836 = vmatmul.bf16.gmra.mxu0 %v5987_v49 }
 0x152   :  { %v1753_v56 = vpack.c.bf16 %v1542_v52, %v1044_v51  ;;  %7137 = vmatpush.lsf.bf16.msrb.mxu0 %v7960_v54  ;;  %1085 = vmatmul.bf16.gmra.mxu1 %v5991_v50 }
 0x153   :  { %1334 = vmatmul.bf16.gmra.mxu2 %v5987_v49  ;;  %v6326_v8 = vld [vmem:[#allocation2 + $0x90] sm:$0xf]  ;;  %v6518_v12 = vld [vmem:[#allocation2 + $0x94] sm:$0xf] }
 0x154   :  { %1849 = vst [vmem:[#allocation2 + $0x98] sm:$0xff] %v1753_v56  ;;  %1583 = vmatmul.bf16.gmra.mxu3 %v5991_v50  ;;  %v6430_v49 = vld [vmem:[#allocation2 + $0x34] sm:$0xf]  ;;  %v7011_v50 = vld [vmem:[#allocation2 + $0x38] sm:$0xf0] }
 0x156   :  { %7138 = vmatpush.lsf.bf16.msrb.mxu0 %v7963_v58  ;;  %v1295_v60 = vpop.f32.mrf.mxu2  ;;  %v799_v62 = vpop.f32.mrf.mxu0 }
 0x157   :  { %v1544_v61 = vpop.f32.mrf.mxu3  ;;  %v1048_v2 = vpop.f32.mrf.mxu1 }
 0x158   :  { %v1545_v1 = vadd.f32 %v1544_v61, %v1295_v60  ;;  %v1049_v28 = vadd.f32 %v1048_v2, %v799_v62  ;;  %v7987_v60 = vor.u32 %v7011_v50, %v6430_v49  ;;  %v6012_v49 = vld [vmem:[#allocation8 + $0x158] sm:$0xf0] }
 0x15a   :  { %v1754_v7 = vpack.c.bf16 %v1545_v1, %v1047_v0  ;;  %7139 = vmatpush.lsf.bf16.msrb.mxu0 %v7966_v4  ;;  %v6004_v0 = vld [vmem:[#allocation8 + $0x148] sm:$0xf0] }
 0x15b   :  { %v6985_v11 = vld [vmem:[#allocation2 + $0x94] sm:$0xf0]  ;;  %v7033_v13 = vld [vmem:[#allocation2 + $0x98] sm:$0xf0]  ;;  %v7010_v1 = vld [vmem:[#allocation2 + $0x28] sm:$0xf0]  ;;  %v6007_v9 = vor.u32 %v6904_v63, %v6004_v0 }
 0x15c   :  { %1850 = vst [vmem:[#allocation2 + $0xa0] sm:$0xff] %v1754_v7  ;;  %v7971_v15 = vor.u32 %v6985_v11, %v6326_v8  ;;  %v7973_v17 = vor.u32 %v7033_v13, %v6518_v12  ;;  %v6426_v7 = vld [vmem:[#allocation2 + $0x24] sm:$0xf]  ;;  %v6003_v8 = vor.u32 %v6905_v55, %v6002_v53 }
 0x15d   :  { %v7996_v13 = vor.u32 %v7010_v1, %v6426_v7 }
 0x15e   :  { %v1297_v22 = vpop.f32.mrf.mxu2  ;;  %v802_v24 = vpop.f32.mrf.mxu0 }
 0x15f   :  { %7191 = vxpose.binary.xlu0.c.b16.cont [2/16] %v7973_v17, %v7971_v15, 128  ;;  %v1546_v23 = vpop.f32.mrf.mxu3  ;;  %v1051_v31 = vpop.f32.mrf.mxu1 }
 0x160   :  { %7140 = vllmr.16.mxu0  ;;  %v1547_v30 = vadd.f32 %v1546_v23, %v1297_v22  ;;  %v1052_v45 = vadd.f32 %v1051_v31, %v802_v24  ;;  %v7999_v22 = vor.u32 %v7009_v18, %v6422_v21  ;;  %v7008_v23 = vld [vmem:[#allocation2 + $0x8] sm:$0xf0] }
 0x161   :  { %841 = vmatmul.bf16.gmra.mxu0 %v5995_v26 }
 0x162   :  { %7157 = vmatpush.lsf.bf16.msrb.mxu0 %v7969_v14  ;;  %v1755_v34 = vpack.c.bf16 %v1547_v30, %v1049_v28  ;;  %1090 = vmatmul.bf16.gmra.mxu1 %v5999_v27 }
 0x163   :  { %1339 = vmatmul.bf16.gmra.mxu2 %v5995_v26  ;;  %v6330_v52 = vld [vmem:[#allocation2 + $0xa0] sm:$0xf]  ;;  %v6522_v57 = vld [vmem:[#allocation2 + $0xa4] sm:$0xf] }
 0x164   :  { %1851 = vst [vmem:[#allocation2 + $0xa8] sm:$0xff] %v1755_v34  ;;  %1588 = vmatmul.bf16.gmra.mxu3 %v5999_v27  ;;  %v6418_v27 = vld [vmem:[#allocation2 + $0x4] sm:$0xf] }
 0x165   :  { %v8002_v33 = vor.u32 %v7008_v23, %v6418_v27 }
 0x166   :  { %7158 = vmatpush.lsf.bf16.msrb.mxu0 %v7978_v32  ;;  %v1300_v38 = vpop.f32.mrf.mxu2  ;;  %v804_v43 = vpop.f32.mrf.mxu0 }
 0x167   :  { %v1549_v42 = vpop.f32.mrf.mxu3  ;;  %v1053_v47 = vpop.f32.mrf.mxu1 }
 0x168   :  { %v1550_v46 = vadd.f32 %v1549_v42, %v1300_v38  ;;  %v1054_v10 = vadd.f32 %v1053_v47, %v804_v43  ;;  %v6907_v38 = vld [vmem:[#allocation8 + $0x154] sm:$0xf0]  ;;  %v6906_v47 = vld [vmem:[#allocation8 + $0x154] sm:$0xf] }
 0x169   :  { %v6011_v53 = vor.u32 %v6907_v38, %v6010_v37  ;;  %v6015_v55 = vor.u32 %v6906_v47, %v6012_v49 }
 0x16a   :  { %7159 = vmatpush.lsf.bf16.msrb.mxu0 %v7981_v36  ;;  %v1756_v51 = vpack.c.bf16 %v1550_v46, %v1052_v45 }
 0x16b   :  { %v6986_v56 = vld [vmem:[#allocation2 + $0xa4] sm:$0xf0]  ;;  %v7034_v59 = vld [vmem:[#allocation2 + $0xa8] sm:$0xf0] }
 0x16c   :  { %1852 = vst [vmem:[#allocation2 + $0xb0] sm:$0xff] %v1756_v51  ;;  %v7989_v61 = vor.u32 %v6986_v56, %v6330_v52  ;;  %v7991_v62 = vor.u32 %v7034_v59, %v6522_v57 }
 0x16e   :  { %7160 = vmatpush.lsf.bf16.msrb.mxu0 %v7984_v48  ;;  %v1302_v2 = vpop.f32.mrf.mxu2  ;;  %v807_v6 = vpop.f32.mrf.mxu0 }
 0x16f   :  { %7192 = vxpose.binary.xlu0.c.b16.cont [3/16] %v7991_v62, %v7989_v61, 128  ;;  %v1551_v5 = vpop.f32.mrf.mxu3  ;;  %v1056_v12 = vpop.f32.mrf.mxu1 }
 0x170   :  { %v1552_v11 = vadd.f32 %v1551_v5, %v1302_v2  ;;  %v1057_v28 = vadd.f32 %v1056_v12, %v807_v6 }
 0x171   :  { %846 = vmatmul.bf16.gmra.mxu0 %v6003_v8 }
 0x172   :  { %7161 = vmatpush.lsf.bf16.msrb.mxu0 %v7987_v60  ;;  %v1757_v19 = vpack.c.bf16 %v1552_v11, %v1054_v10  ;;  %1095 = vmatmul.bf16.gmra.mxu1 %v6007_v9  ;;  %v6018_v10 = vld [vmem:[#allocation8 + $0x160] sm:$0xf]  ;;  %v6909_v11 = vld [vmem:[#allocation8 + $0x164] sm:$0xf0] }
 0x173   :  { %1344 = vmatmul.bf16.gmra.mxu2 %v6003_v8  ;;  %v6334_v35 = vld [vmem:[#allocation2 + $0xb0] sm:$0xf]  ;;  %v6526_v43 = vld [vmem:[#allocation2 + $0xb4] sm:$0xf] }
 0x174   :  { %1853 = vst [vmem:[#allocation2 + $0xb8] sm:$0xff] %v1757_v19  ;;  %1593 = vmatmul.bf16.gmra.mxu3 %v6007_v9 }
 0x176   :  { %7162 = vmatpush.lsf.bf16.msrb.mxu0 %v7996_v13  ;;  %v1305_v24 = vpop.f32.mrf.mxu2  ;;  %v809_v26 = vpop.f32.mrf.mxu0 }
 0x177   :  { %v1554_v25 = vpop.f32.mrf.mxu3  ;;  %v1058_v31 = vpop.f32.mrf.mxu1 }
 0x178   :  { %v1555_v30 = vadd.f32 %v1554_v25, %v1305_v24  ;;  %v1059_v56 = vadd.f32 %v1058_v31, %v809_v26  ;;  %v6908_v24 = vld [vmem:[#allocation8 + $0x164] sm:$0xf]  ;;  %v6020_v25 = vld [vmem:[#allocation8 + $0x168] sm:$0xf0] }
 0x179   :  { %v6023_v31 = vor.u32 %v6908_v24, %v6020_v25 }
 0x17a   :  { %7163 = vmatpush.lsf.bf16.msrb.mxu0 %v7999_v22  ;;  %v1758_v34 = vpack.c.bf16 %v1555_v30, %v1057_v28  ;;  %v6019_v30 = vor.u32 %v6909_v11, %v6018_v10 }
 0x17b   :  { %v6987_v42 = vld [vmem:[#allocation2 + $0xb4] sm:$0xf0]  ;;  %v7035_v44 = vld [vmem:[#allocation2 + $0xb8] sm:$0xf0] }
 0x17c   :  { %1854 = vst [vmem:[#allocation2 + $0xc0] sm:$0xff] %v1758_v34  ;;  %v8005_v45 = vor.u32 %v6987_v42, %v6334_v35  ;;  %v8007_v46 = vor.u32 %v7035_v44, %v6526_v43 }
 0x17e   :  { %7164 = vmatpush.lsf.bf16.msrb.mxu0 %v8002_v33  ;;  %v1307_v50 = vpop.f32.mrf.mxu2  ;;  %v812_v52 = vpop.f32.mrf.mxu0 }
 0x17f   :  { %7193 = vxpose.binary.xlu0.c.b16.cont [4/16] %v8007_v46, %v8005_v45, 128  ;;  %v1556_v51 = vpop.f32.mrf.mxu3  ;;  %v1061_v59 = vpop.f32.mrf.mxu1 }
 0x180   :  { %v1557_v57 = vadd.f32 %v1556_v51, %v1307_v50  ;;  %v1062_v5 = vadd.f32 %v1061_v59, %v812_v52 }
 0x181   :  { %851 = vmatmul.bf16.gmra.mxu0 %v6011_v53 }
 0x182   :  { %v1759_v63 = vpack.c.bf16 %v1557_v57, %v1059_v56  ;;  %1100 = vmatmul.bf16.gmra.mxu1 %v6015_v55 }
 0x183   :  { %1349 = vmatmul.bf16.gmra.mxu2 %v6011_v53  ;;  %v6338_v9 = vld [vmem:[#allocation2 + $0xc0] sm:$0xf]  ;;  %v6530_v18 = vld [vmem:[#allocation2 + $0xc4] sm:$0xf]  ;;  %v6026_v53 = vld [vmem:[#allocation8 + $0x170] sm:$0xf] }
 0x184   :  { %1855 = vst [vmem:[#allocation2 + $0xc8] sm:$0xff] %v1759_v63  ;;  %1598 = vmatmul.bf16.gmra.mxu3 %v6015_v55  ;;  %v6911_v55 = vld [vmem:[#allocation8 + $0x174] sm:$0xf0] }
 0x186   :  { %v1310_v0 = vpop.f32.mrf.mxu2  ;;  %v814_v2 = vpop.f32.mrf.mxu0 }
 0x187   :  { %v1559_v1 = vpop.f32.mrf.mxu3  ;;  %v1063_v7 = vpop.f32.mrf.mxu1 }
 0x188   :  { %v1560_v6 = vadd.f32 %v1559_v1, %v1310_v0  ;;  %v1064_v34 = vadd.f32 %v1063_v7, %v814_v2  ;;  %v6910_v1 = vld [vmem:[#allocation8 + $0x174] sm:$0xf]  ;;  %v6028_v2 = vld [vmem:[#allocation8 + $0x178] sm:$0xf0] }
 0x18a   :  { %v1760_v8 = vpack.c.bf16 %v1560_v6, %v1062_v5 }
 0x18b   :  { %v6988_v12 = vld [vmem:[#allocation2 + $0xc4] sm:$0xf0]  ;;  %v7036_v19 = vld [vmem:[#allocation2 + $0xc8] sm:$0xf0] }
 0x18c   :  { %1856 = vst [vmem:[#allocation2 + $0xd0] sm:$0xff] %v1760_v8  ;;  %v8011_v21 = vor.u32 %v6988_v12, %v6338_v9  ;;  %v8013_v23 = vor.u32 %v7036_v19, %v6530_v18  ;;  %v6027_v8 = vor.u32 %v6911_v55, %v6026_v53  ;;  %v6031_v9 = vor.u32 %v6910_v1, %v6028_v2 }
 0x18e   :  { %9789 = vst [vmem:[#allocation15_spill] sm:$0xff] %v8013_v23  ;;  %v1312_v26 = vpop.f32.mrf.mxu2  ;;  %v817_v28 = vpop.f32.mrf.mxu0 }
 0x18f   :  { %7194 = vxpose.binary.xlu0.c.b16.cont [5/16] %v8013_v23, %v8011_v21, 128  ;;  %v1561_v27 = vpop.f32.mrf.mxu3  ;;  %v1066_v37 = vpop.f32.mrf.mxu1 }
 0x190   :  { %v1562_v35 = vadd.f32 %v1561_v27, %v1312_v26  ;;  %v1067_v47 = vadd.f32 %v1066_v37, %v817_v28 }
 0x191   :  { %856 = vmatmul.bf16.gmra.mxu0 %v6019_v30 }
 0x192   :  { %v1761_v38 = vpack.c.bf16 %v1562_v35, %v1064_v34  ;;  %1105 = vmatmul.bf16.gmra.mxu1 %v6023_v31  ;;  %v6034_v34 = vld [vmem:[#allocation8 + $0x180] sm:$0xf]  ;;  %v6913_v35 = vld [vmem:[#allocation8 + $0x184] sm:$0xf0] }
 0x193   :  { %1354 = vmatmul.bf16.gmra.mxu2 %v6019_v30  ;;  %v6342_v52 = vld [vmem:[#allocation2 + $0xd0] sm:$0xf]  ;;  %v6534_v57 = vld [vmem:[#allocation2 + $0xd4] sm:$0xf]  ;;  %v6035_v53 = vor.u32 %v6913_v35, %v6034_v34 }
 0x194   :  { %1857 = vst [vmem:[#allocation2 + $0xd8] sm:$0xff] %v1761_v38  ;;  %1603 = vmatmul.bf16.gmra.mxu3 %v6023_v31 }
 0x196   :  { %v1315_v42 = vpop.f32.mrf.mxu2  ;;  %v819_v44 = vpop.f32.mrf.mxu0 }
 0x197   :  { %v1564_v43 = vpop.f32.mrf.mxu3  ;;  %v1068_v50 = vpop.f32.mrf.mxu1 }
 0x198   :  { %v1565_v49 = vadd.f32 %v1564_v43, %v1315_v42  ;;  %v1069_v10 = vadd.f32 %v1068_v50, %v819_v44 }
 0x19a   :  { %v1762_v51 = vpack.c.bf16 %v1565_v49, %v1067_v47  ;;  %v6912_v47 = vld [vmem:[#allocation8 + $0x184] sm:$0xf]  ;;  %v6036_v49 = vld [vmem:[#allocation8 + $0x188] sm:$0xf0] }
 0x19b   :  { %v6989_v56 = vld [vmem:[#allocation2 + $0xd4] sm:$0xf0]  ;;  %v7037_v59 = vld [vmem:[#allocation2 + $0xd8] sm:$0xf0]  ;;  %v6039_v55 = vor.u32 %v6912_v47, %v6036_v49 }
 0x19c   :  { %1858 = vst [vmem:[#allocation2 + $0xe0] sm:$0xff] %v1762_v51  ;;  %v8017_v63 = vor.u32 %v6989_v56, %v6342_v52  ;;  %v8019_v0 = vor.u32 %v7037_v59, %v6534_v57 }
 0x19e   :  { %9790 = vst [vmem:[#allocation16_spill] sm:$0xff] %v8019_v0  ;;  %v1317_v5 = vpop.f32.mrf.mxu2  ;;  %v822_v7 = vpop.f32.mrf.mxu0 }
 0x19f   :  { %7195 = vxpose.binary.xlu0.c.b16.cont [6/16] %v8019_v0, %v8017_v63, 128  ;;  %v1566_v6 = vpop.f32.mrf.mxu3  ;;  %v1071_v12 = vpop.f32.mrf.mxu1 }
 0x1a0   :  { %v1567_v11 = vadd.f32 %v1566_v6, %v1317_v5  ;;  %v1072_v26 = vadd.f32 %v1071_v12, %v822_v7  ;;  %v6042_v12 = vld [vmem:[#allocation8 + $0x190] sm:$0xf] }
 0x1a1   :  { %861 = vmatmul.bf16.gmra.mxu0 %v6027_v8 }
 0x1a2   :  { %v1763_v18 = vpack.c.bf16 %v1567_v11, %v1069_v10  ;;  %1110 = vmatmul.bf16.gmra.mxu1 %v6031_v9 }
 0x1a3   :  { %1359 = vmatmul.bf16.gmra.mxu2 %v6027_v8  ;;  %v6346_v31 = vld [vmem:[#allocation2 + $0xe0] sm:$0xf]  ;;  %v6538_v38 = vld [vmem:[#allocation2 + $0xe4] sm:$0xf] }
 0x1a4   :  { %1859 = vst [vmem:[#allocation2 + $0xe8] sm:$0xff] %v1763_v18  ;;  %1608 = vmatmul.bf16.gmra.mxu3 %v6031_v9  ;;  %v6915_v18 = vld [vmem:[#allocation8 + $0x194] sm:$0xf0] }
 0x1a5   :  { %v6043_v35 = vor.u32 %v6915_v18, %v6042_v12 }
 0x1a6   :  { %v1320_v19 = vpop.f32.mrf.mxu2  ;;  %v824_v25 = vpop.f32.mrf.mxu0 }
 0x1a7   :  { %v1569_v24 = vpop.f32.mrf.mxu3  ;;  %v1073_v28 = vpop.f32.mrf.mxu1 }
 0x1a8   :  { %v1570_v27 = vadd.f32 %v1569_v24, %v1320_v19  ;;  %v1074_v56 = vadd.f32 %v1073_v28, %v824_v25  ;;  %v6914_v28 = vld [vmem:[#allocation8 + $0x194] sm:$0xf] }
 0x1aa   :  { %v1764_v30 = vpack.c.bf16 %v1570_v27, %v1072_v26 }
 0x1ab   :  { %v6990_v37 = vld [vmem:[#allocation2 + $0xe4] sm:$0xf0]  ;;  %v7038_v42 = vld [vmem:[#allocation2 + $0xe8] sm:$0xf0] }
 0x1ac   :  { %1860 = vst [vmem:[#allocation2 + $0xf0] sm:$0xff] %v1764_v30  ;;  %v8023_v43 = vor.u32 %v6990_v37, %v6346_v31  ;;  %v8025_v44 = vor.u32 %v7038_v42, %v6538_v38  ;;  %v6044_v30 = vld [vmem:[#allocation8 + $0x198] sm:$0xf0] }
 0x1ad   :  { %v6047_v37 = vor.u32 %v6914_v28, %v6044_v30 }
 0x1ae   :  { %9791 = vst [vmem:[#allocation17_spill] sm:$0xff] %v8025_v44  ;;  %v1322_v50 = vpop.f32.mrf.mxu2  ;;  %v827_v52 = vpop.f32.mrf.mxu0 }
 0x1af   :  { %7196 = vxpose.binary.xlu0.c.b16.cont [7/16] %v8025_v44, %v8023_v43, 128  ;;  %v1571_v51 = vpop.f32.mrf.mxu3  ;;  %v1076_v59 = vpop.f32.mrf.mxu1 }
 0x1b0   :  { %v1572_v57 = vadd.f32 %v1571_v51, %v1322_v50  ;;  %v1077_v7 = vadd.f32 %v1076_v59, %v827_v52 }
 0x1b1   :  { %866 = vmatmul.bf16.gmra.mxu0 %v6035_v53 }
 0x1b2   :  { %v1765_v1 = vpack.c.bf16 %v1572_v57, %v1074_v56  ;;  %1115 = vmatmul.bf16.gmra.mxu1 %v6039_v55 }
 0x1b3   :  { %1364 = vmatmul.bf16.gmra.mxu2 %v6035_v53  ;;  %v6350_v11 = vld [vmem:[#allocation2 + $0xf0] sm:$0xf]  ;;  %v6542_v24 = vld [vmem:[#allocation2 + $0xf4] sm:$0xf] }
 0x1b4   :  { %1861 = vst [vmem:[#allocation2 + $0xf8] sm:$0xff] %v1765_v1  ;;  %1613 = vmatmul.bf16.gmra.mxu3 %v6039_v55  ;;  %v6050_v1 = vld [vmem:[#allocation8 + $0x1a0] sm:$0xf] }
 0x1b6   :  { %v1325_v2 = vpop.f32.mrf.mxu2  ;;  %v829_v6 = vpop.f32.mrf.mxu0 }
 0x1b7   :  { %v1574_v5 = vpop.f32.mrf.mxu3  ;;  %v1078_v9 = vpop.f32.mrf.mxu1 }
 0x1b8   :  { %v1575_v8 = vadd.f32 %v1574_v5, %v1325_v2  ;;  %v1079_v38 = vadd.f32 %v1078_v9, %v829_v6  ;;  %v6917_v2 = vld [vmem:[#allocation8 + $0x1a4] sm:$0xf0]  ;;  %v6916_v5 = vld [vmem:[#allocation8 + $0x1a4] sm:$0xf]  ;;  %v6052_v6 = vld [vmem:[#allocation8 + $0x1a8] sm:$0xf0] }
 0x1b9   :  { %v6051_v9 = vor.u32 %v6917_v2, %v6050_v1 }
 0x1ba   :  { %v1766_v10 = vpack.c.bf16 %v1575_v8, %v1077_v7 }
 0x1bb   :  { %v6991_v19 = vld [vmem:[#allocation2 + $0xf4] sm:$0xf0]  ;;  %v7039_v25 = vld [vmem:[#allocation2 + $0xf8] sm:$0xf0] }
 0x1bc   :  { %1862 = vst [vmem:[#allocation2 + $0x100] sm:$0xff] %v1766_v10  ;;  %v8029_v26 = vor.u32 %v6991_v19, %v6350_v11  ;;  %v8031_v27 = vor.u32 %v7039_v25, %v6542_v24  ;;  %v6055_v10 = vor.u32 %v6916_v5, %v6052_v6 }
 0x1be   :  { %9792 = vst [vmem:[#allocation18_spill] sm:$0xff] %v8031_v27  ;;  %v1327_v31 = vpop.f32.mrf.mxu2  ;;  %v832_v47 = vpop.f32.mrf.mxu0 }
 0x1bf   :  { %7197 = vxpose.binary.xlu0.c.b16.end [8/16] %v8031_v27, %v8029_v26, 128  ;;  %v1576_v34 = vpop.f32.mrf.mxu3  ;;  %v1081_v49 = vpop.f32.mrf.mxu1 }
 0x1c0   :  { %v1577_v42 = vadd.f32 %v1576_v34, %v1327_v31  ;;  %v1082_v53 = vadd.f32 %v1081_v49, %v832_v47  ;;  %v6918_v47 = vld [vmem:[#allocation8 + $0x1b4] sm:$0xf]  ;;  %v6060_v49 = vld [vmem:[#allocation8 + $0x1b8] sm:$0xf0] }
 0x1c1   :  { %871 = vmatmul.bf16.gmra.mxu0 %v6043_v35 }
 0x1c2   :  { %v1767_v50 = vpack.c.bf16 %v1577_v42, %v1079_v38  ;;  %1120 = vmatmul.bf16.gmra.mxu1 %v6047_v37  ;;  %v6058_v38 = vld [vmem:[#allocation8 + $0x1b0] sm:$0xf]  ;;  %v6919_v42 = vld [vmem:[#allocation8 + $0x1b4] sm:$0xf0] }
 0x1c3   :  { %1369 = vmatmul.bf16.gmra.mxu2 %v6043_v35 }
 0x1c4   :  { %1863 = vst [vmem:[#allocation2 + $0x108] sm:$0xff] %v1767_v50  ;;  %1618 = vmatmul.bf16.gmra.mxu3 %v6047_v37 }
 0x1c6   :  { %v1330_v51 = vpop.f32.mrf.mxu2  ;;  %v834_v56 = vpop.f32.mrf.mxu0 }
 0x1c7   :  { %v1579_v52 = vpop.f32.mrf.mxu3  ;;  %v1083_v57 = vpop.f32.mrf.mxu1 }
 0x1c8   :  { %v1580_v55 = vadd.f32 %v1579_v52, %v1330_v51  ;;  %v1084_v11 = vadd.f32 %v1083_v57, %v834_v56  ;;  %v6059_v52 = vor.u32 %v6919_v42, %v6058_v38 }
 0x1ca   :  { %v1768_v59 = vpack.c.bf16 %v1580_v55, %v1082_v53  ;;  %v6063_v53 = vor.u32 %v6918_v47, %v6060_v49 }
 0x1cc   :  { %1864 = vst [vmem:[#allocation2 + $0x110] sm:$0xff] %v1768_v59 }
 0x1ce   :  { %v1332_v7 = vpop.f32.mrf.mxu2  ;;  %v837_v18 = vpop.f32.mrf.mxu0 }
 0x1cf   :  { %v1581_v8 = vpop.f32.mrf.mxu3  ;;  %v1086_v19 = vpop.f32.mrf.mxu1 }
 0x1d0   :  { %v1582_v12 = vadd.f32 %v1581_v8, %v1332_v7  ;;  %v1087_v30 = vadd.f32 %v1086_v19, %v837_v18  ;;  %v6920_v18 = vld [vmem:[#allocation8 + $0x1c4] sm:$0xf]  ;;  %v6068_v19 = vld [vmem:[#allocation8 + $0x1c8] sm:$0xf0] }
 0x1d1   :  { %876 = vmatmul.bf16.gmra.mxu0 %v6051_v9 }
 0x1d2   :  { %v1769_v24 = vpack.c.bf16 %v1582_v12, %v1084_v11  ;;  %1125 = vmatmul.bf16.gmra.mxu1 %v6055_v10  ;;  %v6066_v11 = vld [vmem:[#allocation8 + $0x1c0] sm:$0xf]  ;;  %v6921_v12 = vld [vmem:[#allocation8 + $0x1c4] sm:$0xf0] }
 0x1d3   :  { %1374 = vmatmul.bf16.gmra.mxu2 %v6051_v9 }
 0x1d4   :  { %1865 = vst [vmem:[#allocation2 + $0x118] sm:$0xff] %v1769_v24  ;;  %1623 = vmatmul.bf16.gmra.mxu3 %v6055_v10 }
 0x1d6   :  { %v1335_v25 = vpop.f32.mrf.mxu2  ;;  %v839_v34 = vpop.f32.mrf.mxu0 }
 0x1d7   :  { %v1584_v28 = vpop.f32.mrf.mxu3  ;;  %v1088_v35 = vpop.f32.mrf.mxu1 }
 0x1d8   :  { %v1585_v31 = vadd.f32 %v1584_v28, %v1335_v25  ;;  %v1089_v55 = vadd.f32 %v1088_v35, %v839_v34  ;;  %v6067_v28 = vor.u32 %v6921_v12, %v6066_v11 }
 0x1da   :  { %v1770_v37 = vpack.c.bf16 %v1585_v31, %v1087_v30  ;;  %v6071_v30 = vor.u32 %v6920_v18, %v6068_v19 }
 0x1dc   :  { %1866 = vst [vmem:[#allocation2 + $0x120] sm:$0xff] %v1770_v37 }
 0x1de   :  { %v1337_v50 = vpop.f32.mrf.mxu2  ;;  %v842_v57 = vpop.f32.mrf.mxu0 }
 0x1df   :  { %v1586_v51 = vpop.f32.mrf.mxu3  ;;  %v1091_v59 = vpop.f32.mrf.mxu1 }
 0x1e0   :  { %v1587_v56 = vadd.f32 %v1586_v51, %v1337_v50  ;;  %v1092_v6 = vadd.f32 %v1091_v59, %v842_v57  ;;  %v6922_v57 = vld [vmem:[#allocation8 + $0x1d4] sm:$0xf]  ;;  %v6076_v59 = vld [vmem:[#allocation8 + $0x1d8] sm:$0xf0] }
 0x1e1   :  { %881 = vmatmul.bf16.gmra.mxu0 %v6059_v52 }
 0x1e2   :  { %v1771_v1 = vpack.c.bf16 %v1587_v56, %v1089_v55  ;;  %1130 = vmatmul.bf16.gmra.mxu1 %v6063_v53  ;;  %v6074_v55 = vld [vmem:[#allocation8 + $0x1d0] sm:$0xf]  ;;  %v6923_v56 = vld [vmem:[#allocation8 + $0x1d4] sm:$0xf0] }
 0x1e3   :  { %1379 = vmatmul.bf16.gmra.mxu2 %v6059_v52 }
 0x1e4   :  { %1867 = vst [vmem:[#allocation2 + $0x128] sm:$0xff] %v1771_v1  ;;  %1628 = vmatmul.bf16.gmra.mxu3 %v6063_v53 }
 0x1e6   :  { %v1340_v2 = vpop.f32.mrf.mxu2  ;;  %v844_v8 = vpop.f32.mrf.mxu0 }
 0x1e7   :  { %v1589_v5 = vpop.f32.mrf.mxu3  ;;  %v1093_v9 = vpop.f32.mrf.mxu1 }
 0x1e8   :  { %v1590_v7 = vadd.f32 %v1589_v5, %v1340_v2  ;;  %v1094_v31 = vadd.f32 %v1093_v9, %v844_v8  ;;  %v6075_v5 = vor.u32 %v6923_v56, %v6074_v55 }
 0x1ea   :  { %v1772_v10 = vpack.c.bf16 %v1590_v7, %v1092_v6  ;;  %v6079_v6 = vor.u32 %v6922_v57, %v6076_v59 }
 0x1ec   :  { %1868 = vst [vmem:[#allocation2 + $0x130] sm:$0xff] %v1772_v10 }
 0x1ee   :  { %v1342_v24 = vpop.f32.mrf.mxu2  ;;  %v847_v35 = vpop.f32.mrf.mxu0 }
 0x1ef   :  { %v1591_v25 = vpop.f32.mrf.mxu3  ;;  %v1096_v37 = vpop.f32.mrf.mxu1 }
 0x1f0   :  { %v1592_v34 = vadd.f32 %v1591_v25, %v1342_v24  ;;  %v1097_v49 = vadd.f32 %v1096_v37, %v847_v35  ;;  %v6924_v35 = vld [vmem:[#allocation8 + $0x1e4] sm:$0xf]  ;;  %v6084_v37 = vld [vmem:[#allocation8 + $0x1e8] sm:$0xf0] }
 0x1f1   :  { %886 = vmatmul.bf16.gmra.mxu0 %v6067_v28 }
 0x1f2   :  { %v1773_v38 = vpack.c.bf16 %v1592_v34, %v1094_v31  ;;  %1135 = vmatmul.bf16.gmra.mxu1 %v6071_v30  ;;  %v6082_v31 = vld [vmem:[#allocation8 + $0x1e0] sm:$0xf]  ;;  %v6925_v34 = vld [vmem:[#allocation8 + $0x1e4] sm:$0xf0] }
 0x1f3   :  { %1384 = vmatmul.bf16.gmra.mxu2 %v6067_v28 }
 0x1f4   :  { %1869 = vst [vmem:[#allocation2 + $0x138] sm:$0xff] %v1773_v38  ;;  %1633 = vmatmul.bf16.gmra.mxu3 %v6071_v30 }
 0x1f6   :  { %v1345_v42 = vpop.f32.mrf.mxu2  ;;  %v849_v51 = vpop.f32.mrf.mxu0 }
 0x1f7   :  { %v1594_v47 = vpop.f32.mrf.mxu3  ;;  %v1098_v52 = vpop.f32.mrf.mxu1 }
 0x1f8   :  { %v1595_v50 = vadd.f32 %v1594_v47, %v1345_v42  ;;  %v1099_v7 = vadd.f32 %v1098_v52, %v849_v51  ;;  %v6083_v47 = vor.u32 %v6925_v34, %v6082_v31 }
 0x1fa   :  { %v1774_v53 = vpack.c.bf16 %v1595_v50, %v1097_v49  ;;  %v6087_v49 = vor.u32 %v6924_v35, %v6084_v37 }
 0x1fc   :  { %1870 = vst [vmem:[#allocation2 + $0x140] sm:$0xff] %v1774_v53 }
 0x1fe   :  { %v1347_v1 = vpop.f32.mrf.mxu2  ;;  %v852_v9 = vpop.f32.mrf.mxu0 }
 0x1ff   :  { %v1596_v2 = vpop.f32.mrf.mxu3  ;;  %v1101_v10 = vpop.f32.mrf.mxu1 }
 0x200   :  { %v1597_v8 = vadd.f32 %v1596_v2, %v1347_v1  ;;  %v1102_v19 = vadd.f32 %v1101_v10, %v852_v9  ;;  %v6926_v9 = vld [vmem:[#allocation8 + $0x1f4] sm:$0xf]  ;;  %v6092_v10 = vld [vmem:[#allocation8 + $0x1f8] sm:$0xf0] }
 0x201   :  { %891 = vmatmul.bf16.gmra.mxu0 %v6075_v5 }
 0x202   :  { %v1775_v11 = vpack.c.bf16 %v1597_v8, %v1099_v7  ;;  %1140 = vmatmul.bf16.gmra.mxu1 %v6079_v6  ;;  %v6090_v7 = vld [vmem:[#allocation8 + $0x1f0] sm:$0xf]  ;;  %v6927_v8 = vld [vmem:[#allocation8 + $0x1f4] sm:$0xf0] }
 0x203   :  { %1389 = vmatmul.bf16.gmra.mxu2 %v6075_v5 }
 0x204   :  { %1871 = vst [vmem:[#allocation2 + $0x148] sm:$0xff] %v1775_v11  ;;  %1638 = vmatmul.bf16.gmra.mxu3 %v6079_v6 }
 0x206   :  { %v1350_v12 = vpop.f32.mrf.mxu2  ;;  %v854_v25 = vpop.f32.mrf.mxu0 }
 0x207   :  { %v1599_v18 = vpop.f32.mrf.mxu3  ;;  %v1103_v28 = vpop.f32.mrf.mxu1 }
 0x208   :  { %v1600_v24 = vadd.f32 %v1599_v18, %v1350_v12  ;;  %v1104_v50 = vadd.f32 %v1103_v28, %v854_v25  ;;  %v6091_v18 = vor.u32 %v6927_v8, %v6090_v7 }
 0x20a   :  { %v1776_v30 = vpack.c.bf16 %v1600_v24, %v1102_v19  ;;  %v6095_v19 = vor.u32 %v6926_v9, %v6092_v10 }
 0x20c   :  { %1872 = vst [vmem:[#allocation2 + $0x150] sm:$0xff] %v1776_v30 }
 0x20e   :  { %v1352_v38 = vpop.f32.mrf.mxu2  ;;  %v857_v52 = vpop.f32.mrf.mxu0 }
 0x20f   :  { %v1601_v42 = vpop.f32.mrf.mxu3  ;;  %v1106_v53 = vpop.f32.mrf.mxu1 }
 0x210   :  { %v1602_v51 = vadd.f32 %v1601_v42, %v1352_v38  ;;  %v1107_v59 = vadd.f32 %v1106_v53, %v857_v52  ;;  %v6928_v52 = vld [vmem:[#allocation8 + $0x204] sm:$0xf]  ;;  %v6100_v53 = vld [vmem:[#allocation8 + $0x208] sm:$0xf0] }
 0x211   :  { %896 = vmatmul.bf16.gmra.mxu0 %v6083_v47 }
 0x212   :  { %v1777_v55 = vpack.c.bf16 %v1602_v51, %v1104_v50  ;;  %1145 = vmatmul.bf16.gmra.mxu1 %v6087_v49  ;;  %v6098_v50 = vld [vmem:[#allocation8 + $0x200] sm:$0xf]  ;;  %v6929_v51 = vld [vmem:[#allocation8 + $0x204] sm:$0xf0] }
 0x213   :  { %1394 = vmatmul.bf16.gmra.mxu2 %v6083_v47 }
 0x214   :  { %1873 = vst [vmem:[#allocation2 + $0x158] sm:$0xff] %v1777_v55  ;;  %1643 = vmatmul.bf16.gmra.mxu3 %v6087_v49 }
 0x216   :  { %v1355_v56 = vpop.f32.mrf.mxu2  ;;  %v859_v2 = vpop.f32.mrf.mxu0 }
 0x217   :  { %v1604_v57 = vpop.f32.mrf.mxu3  ;;  %v1108_v5 = vpop.f32.mrf.mxu1 }
 0x218   :  { %v1605_v1 = vadd.f32 %v1604_v57, %v1355_v56  ;;  %v1109_v24 = vadd.f32 %v1108_v5, %v859_v2  ;;  %v6099_v57 = vor.u32 %v6929_v51, %v6098_v50 }
 0x21a   :  { %v1778_v6 = vpack.c.bf16 %v1605_v1, %v1107_v59  ;;  %v6103_v59 = vor.u32 %v6928_v52, %v6100_v53 }
 0x21c   :  { %1874 = vst [vmem:[#allocation2 + $0x160] sm:$0xff] %v1778_v6 }
 0x21e   :  { %v1357_v11 = vpop.f32.mrf.mxu2  ;;  %v862_v28 = vpop.f32.mrf.mxu0 }
 0x21f   :  { %v1606_v12 = vpop.f32.mrf.mxu3  ;;  %v1111_v30 = vpop.f32.mrf.mxu1 }
 0x220   :  { %v1607_v25 = vadd.f32 %v1606_v12, %v1357_v11  ;;  %v1112_v37 = vadd.f32 %v1111_v30, %v862_v28  ;;  %v6931_v30 = vld [vmem:[#allocation8 + $0x214] sm:$0xf0] }
 0x221   :  { %901 = vmatmul.bf16.gmra.mxu0 %v6091_v18 }
 0x222   :  { %v1779_v31 = vpack.c.bf16 %v1607_v25, %v1109_v24  ;;  %1150 = vmatmul.bf16.gmra.mxu1 %v6095_v19 }
 0x223   :  { %1399 = vmatmul.bf16.gmra.mxu2 %v6091_v18 }
 0x224   :  { %1875 = vst [vmem:[#allocation2 + $0x168] sm:$0xff] %v1779_v31  ;;  %1648 = vmatmul.bf16.gmra.mxu3 %v6095_v19  ;;  %v6106_v19 = vld [vmem:[#allocation8 + $0x210] sm:$0xf] }
 0x226   :  { %v1360_v34 = vpop.f32.mrf.mxu2  ;;  %v864_v42 = vpop.f32.mrf.mxu0 }
 0x227   :  { %v1609_v35 = vpop.f32.mrf.mxu3  ;;  %v1113_v47 = vpop.f32.mrf.mxu1 }
 0x228   :  { %v1610_v38 = vadd.f32 %v1609_v35, %v1360_v34  ;;  %v1114_v1 = vadd.f32 %v1113_v47, %v864_v42  ;;  %v6930_v34 = vld [vmem:[#allocation8 + $0x214] sm:$0xf]  ;;  %v6108_v35 = vld [vmem:[#allocation8 + $0x218] sm:$0xf0]  ;;  %v6107_v42 = vor.u32 %v6931_v30, %v6106_v19  ;;  %v6971_v19 = vld [vmem:[#allocation2 + $0x134] sm:$0xf0] }
 0x229   :  { %v6111_v47 = vor.u32 %v6930_v34, %v6108_v35  ;;  %v6933_v30 = vld [vmem:[#allocation8 + $0x224] sm:$0xf0]  ;;  %v6932_v34 = vld [vmem:[#allocation8 + $0x224] sm:$0xf]  ;;  %v6116_v35 = vld [vmem:[#allocation8 + $0x228] sm:$0xf0] }
 0x22a   :  { %v1780_v49 = vpack.c.bf16 %v1610_v38, %v1112_v37  ;;  %v6282_v38 = vld [vmem:[#allocation2 + $0x160] sm:$0xf] }
 0x22b   :  { %v6974_v37 = vld [vmem:[#allocation2 + $0x164] sm:$0xf0] }
 0x22c   :  { %1876 = vst [vmem:[#allocation2 + $0x170] sm:$0xff] %v1780_v49 }
 0x22e   :  { %v1362_v55 = vpop.f32.mrf.mxu2  ;;  %v867_v5 = vpop.f32.mrf.mxu0 }
 0x22f   :  { %v1611_v56 = vpop.f32.mrf.mxu3  ;;  %v1116_v6 = vpop.f32.mrf.mxu1 }
 0x230   :  { %v1612_v2 = vadd.f32 %v1611_v56, %v1362_v55  ;;  %v1117_v10 = vadd.f32 %v1116_v6, %v867_v5  ;;  %v6283_v55 = vor.u32 %v6974_v37, %v6282_v38  ;;  %v6972_v5 = vld [vmem:[#allocation2 + $0x144] sm:$0xf0]  ;;  %v6274_v6 = vld [vmem:[#allocation2 + $0x140] sm:$0xf] }
 0x231   :  { %906 = vmatmul.bf16.gmra.mxu0 %v6099_v57  ;;  %v6970_v37 = vld [vmem:[#allocation2 + $0x124] sm:$0xf0]  ;;  %v6266_v38 = vld [vmem:[#allocation2 + $0x120] sm:$0xf] }
 0x232   :  { %v1781_v7 = vpack.c.bf16 %v1612_v2, %v1114_v1  ;;  %1155 = vmatmul.bf16.gmra.mxu1 %v6103_v59  ;;  %v6278_v1 = vld [vmem:[#allocation2 + $0x150] sm:$0xf] }
 0x233   :  { %1404 = vmatmul.bf16.gmra.mxu2 %v6099_v57  ;;  %v6286_v25 = vld [vmem:[#allocation2 + $0x170] sm:$0xf]  ;;  %v6973_v57 = vld [vmem:[#allocation2 + $0x154] sm:$0xf0] }
 0x234   :  { %1877 = vst [vmem:[#allocation2 + $0x178] sm:$0xff] %v1781_v7  ;;  %1653 = vmatmul.bf16.gmra.mxu3 %v6103_v59  ;;  %v6279_v2 = vor.u32 %v6973_v57, %v6278_v1  ;;  %v6969_v57 = vld [vmem:[#allocation2 + $0x114] sm:$0xf0]  ;;  %v6262_v1 = vld [vmem:[#allocation2 + $0x110] sm:$0xf] }
 0x236   :  { %v1365_v8 = vpop.f32.mrf.mxu2  ;;  %v869_v11 = vpop.f32.mrf.mxu0 }
 0x237   :  { %v1614_v9 = vpop.f32.mrf.mxu3  ;;  %v1118_v12 = vpop.f32.mrf.mxu1 }
 0x238   :  { %v1615_v18 = vadd.f32 %v1614_v9, %v1365_v8  ;;  %v1119_v51 = vadd.f32 %v1118_v12, %v869_v11  ;;  %v6275_v12 = vor.u32 %v6972_v5, %v6274_v6  ;;  %v6263_v5 = vor.u32 %v6969_v57, %v6262_v1  ;;  %v6258_v6 = vld [vmem:[#allocation2 + $0x100] sm:$0xf] }
 0x23a   :  { %v1782_v24 = vpack.c.bf16 %v1615_v18, %v1117_v10 }
 0x23b   :  { %v6975_v28 = vld [vmem:[#allocation2 + $0x174] sm:$0xf0] }
 0x23c   :  { %v6287_v31 = vor.u32 %v6975_v28, %v6286_v25  ;;  %1878 = vst [vmem:[#allocation2 + $0x180] sm:$0xff] %v1782_v24  ;;  %v6270_v25 = vld [vmem:[#allocation2 + $0x130] sm:$0xf]  ;;  %v6114_v28 = vld [vmem:[#allocation8 + $0x220] sm:$0xf] }
 0x23e   :  { %2086 = vmatpush.bf16.msra.mxu0 %v6287_v31  ;;  %2287 = vmatpush.bf16.xpose.msrb.mxu1 %v6287_v31  ;;  %v1367_v49 = vpop.f32.mrf.mxu2  ;;  %v872_v52 = vpop.f32.mrf.mxu0  ;;  %v6271_v31 = vor.u32 %v6971_v19, %v6270_v25  ;;  %v6122_v25 = vld [vmem:[#allocation8 + $0x230] sm:$0xf] }
 0x23f   :  { %v1616_v50 = vpop.f32.mrf.mxu3  ;;  %v1121_v53 = vpop.f32.mrf.mxu1 }
 0x240   :  { %v1617_v56 = vadd.f32 %v1616_v50, %v1367_v49  ;;  %v1122_v9 = vadd.f32 %v1121_v53, %v872_v52 }
 0x241   :  { %911 = vmatmul.bf16.gmra.mxu0 %v6107_v42 }
 0x242   :  { %2087 = vmatpush.bf16.msra.mxu0 %v6283_v55  ;;  %v1783_v59 = vpack.c.bf16 %v1617_v56, %v1119_v51  ;;  %1160 = vmatmul.bf16.gmra.mxu1 %v6111_v47 }
 0x243   :  { %1409 = vmatmul.bf16.gmra.mxu2 %v6107_v42  ;;  %v6115_v42 = vor.u32 %v6933_v30, %v6114_v28  ;;  %v6935_v28 = vld [vmem:[#allocation8 + $0x234] sm:$0xf0]  ;;  %v6934_v30 = vld [vmem:[#allocation8 + $0x234] sm:$0xf] }
 0x244   :  { %1879 = vst [vmem:[#allocation2 + $0x188] sm:$0xff] %v1783_v59  ;;  %1658 = vmatmul.bf16.gmra.mxu3 %v6111_v47  ;;  %v6119_v47 = vor.u32 %v6932_v34, %v6116_v35  ;;  %v6124_v34 = vld [vmem:[#allocation8 + $0x238] sm:$0xf0]  ;;  %v6123_v35 = vor.u32 %v6935_v28, %v6122_v25 }
 0x246   :  { %2088 = vmatpush.bf16.msra.mxu0 %v6279_v2  ;;  %2288 = vmatpush.bf16.xpose.msrb.mxu1 %v6283_v55  ;;  %v1370_v7 = vpop.f32.mrf.mxu2  ;;  %v874_v10 = vpop.f32.mrf.mxu0  ;;  %v6267_v55 = vor.u32 %v6970_v37, %v6266_v38  ;;  %v6127_v37 = vor.u32 %v6934_v30, %v6124_v34 }
 0x247   :  { %v1619_v8 = vpop.f32.mrf.mxu3  ;;  %v1123_v11 = vpop.f32.mrf.mxu1 }
 0x248   :  { %v1620_v18 = vadd.f32 %v1619_v8, %v1370_v7  ;;  %v1124_v51 = vadd.f32 %v1123_v11, %v874_v10 }
 0x24a   :  { %2089 = vmatpush.bf16.msra.mxu0 %v6275_v12  ;;  %v1784_v24 = vpack.c.bf16 %v1620_v18, %v1122_v9 }
 0x24c   :  { %1880 = vst [vmem:[#allocation2 + $0x190] sm:$0xff] %v1784_v24 }
 0x24e   :  { %2090 = vmatpush.bf16.msra.mxu0 %v6271_v31  ;;  %2289 = vmatpush.bf16.xpose.msrb.mxu1 %v6279_v2  ;;  %v1372_v49 = vpop.f32.mrf.mxu2  ;;  %v877_v52 = vpop.f32.mrf.mxu0  ;;  %v6968_v2 = vld [vmem:[#allocation2 + $0x104] sm:$0xf0] }
 0x24f   :  { %v1621_v50 = vpop.f32.mrf.mxu3  ;;  %v1126_v53 = vpop.f32.mrf.mxu1  ;;  %v6259_v18 = vor.u32 %v6968_v2, %v6258_v6  ;;  %v6130_v2 = vld [vmem:[#allocation8 + $0x240] sm:$0xf]  ;;  %v6937_v6 = vld [vmem:[#allocation8 + $0x244] sm:$0xf0] }
 0x250   :  { %v1622_v56 = vadd.f32 %v1621_v50, %v1372_v49  ;;  %v1127_v9 = vadd.f32 %v1126_v53, %v877_v52 }
 0x251   :  { %916 = vmatmul.bf16.gmra.mxu0 %v6115_v42 }
 0x252   :  { %2091 = vmatpush.bf16.msra.mxu0 %v6267_v55  ;;  %v1785_v59 = vpack.c.bf16 %v1622_v56, %v1124_v51  ;;  %1165 = vmatmul.bf16.gmra.mxu1 %v6119_v47 }
 0x253   :  { %1414 = vmatmul.bf16.gmra.mxu2 %v6115_v42 }
 0x254   :  { %1881 = vst [vmem:[#allocation2 + $0x198] sm:$0xff] %v1785_v59  ;;  %1663 = vmatmul.bf16.gmra.mxu3 %v6119_v47 }
 0x256   :  { %2092 = vmatpush.bf16.msra.mxu0 %v6263_v5  ;;  %2290 = vmatpush.bf16.xpose.msrb.mxu1 %v6275_v12  ;;  %v1375_v7 = vpop.f32.mrf.mxu2  ;;  %v879_v10 = vpop.f32.mrf.mxu0 }
 0x257   :  { %v1624_v8 = vpop.f32.mrf.mxu3  ;;  %v1128_v11 = vpop.f32.mrf.mxu1 }
 0x258   :  { %v1625_v19 = vadd.f32 %v1624_v8, %v1375_v7  ;;  %v1129_v42 = vadd.f32 %v1128_v11, %v879_v10  ;;  %v6936_v7 = vld [vmem:[#allocation8 + $0x244] sm:$0xf]  ;;  %v6132_v8 = vld [vmem:[#allocation8 + $0x248] sm:$0xf0] }
 0x259   :  { %v6135_v10 = vor.u32 %v6936_v7, %v6132_v8 }
 0x25a   :  { %2093 = vmatpush.bf16.msra.mxu0 %v6259_v18  ;;  %v1786_v24 = vpack.c.bf16 %v1625_v19, %v1127_v9  ;;  %v6131_v9 = vor.u32 %v6937_v6, %v6130_v2 }
 0x25c   :  { %1882 = vst [vmem:[#allocation2 + $0x1a0] sm:$0xff] %v1786_v24 }
 0x25e   :  { %2291 = vmatpush.bf16.xpose.msrb.mxu1 %v6271_v31  ;;  %v1377_v38 = vpop.f32.mrf.mxu2  ;;  %v882_v47 = vpop.f32.mrf.mxu0 }
 0x25f   :  { %v1626_v12 = vpop.f32.mrf.mxu3  ;;  %v1131_v49 = vpop.f32.mrf.mxu1 }
 0x260   :  { %v1627_v50 = vadd.f32 %v1626_v12, %v1377_v38  ;;  %v1132_v56 = vadd.f32 %v1131_v49, %v882_v47  ;;  %v6138_v47 = vld [vmem:[#allocation8 + $0x250] sm:$0xf]  ;;  %v6939_v49 = vld [vmem:[#allocation8 + $0x254] sm:$0xf0] }
 0x261   :  { %921 = vmatmul.bf16.gmra.mxu0 %v6123_v35 }
 0x262   :  { %v1787_v51 = vpack.c.bf16 %v1627_v50, %v1129_v42  ;;  %1170 = vmatmul.bf16.gmra.mxu1 %v6127_v37  ;;  %v6938_v50 = vld [vmem:[#allocation8 + $0x254] sm:$0xf] }
 0x263   :  { %1419 = vmatmul.bf16.gmra.mxu2 %v6123_v35 }
 0x264   :  { %1883 = vst [vmem:[#allocation2 + $0x1a8] sm:$0xff] %v1787_v51  ;;  %1668 = vmatmul.bf16.gmra.mxu3 %v6127_v37  ;;  %v6140_v51 = vld [vmem:[#allocation8 + $0x258] sm:$0xf0] }
 0x266   :  { %2292 = vmatpush.bf16.xpose.msrb.mxu1 %v6267_v55  ;;  %v1380_v52 = vpop.f32.mrf.mxu2  ;;  %v884_v57 = vpop.f32.mrf.mxu0 }
 0x267   :  { %v1629_v53 = vpop.f32.mrf.mxu3  ;;  %v1133_v31 = vpop.f32.mrf.mxu1 }
 0x268   :  { %v1630_v59 = vadd.f32 %v1629_v53, %v1380_v52  ;;  %v1134_v24 = vadd.f32 %v1133_v31, %v884_v57  ;;  %v6139_v52 = vor.u32 %v6939_v49, %v6138_v47  ;;  %v6143_v53 = vor.u32 %v6938_v50, %v6140_v51 }
 0x26a   :  { %v1788_v1 = vpack.c.bf16 %v1630_v59, %v1132_v56 }
 0x26c   :  { %1884 = vst [vmem:[#allocation2 + $0x1b0] sm:$0xff] %v1788_v1 }
 0x26e   :  { %2293 = vmatpush.bf16.xpose.msrb.mxu1 %v6263_v5  ;;  %v1382_v11 = vpop.f32.mrf.mxu2  ;;  %v887_v25 = vpop.f32.mrf.mxu0 }
 0x26f   :  { %v1631_v19 = vpop.f32.mrf.mxu3  ;;  %v1136_v55 = vpop.f32.mrf.mxu1 }
 0x270   :  { %v1632_v28 = vadd.f32 %v1631_v19, %v1382_v11  ;;  %v1137_v37 = vadd.f32 %v1136_v55, %v887_v25  ;;  %v6941_v25 = vld [vmem:[#allocation8 + $0x264] sm:$0xf0]  ;;  %v6940_v55 = vld [vmem:[#allocation8 + $0x264] sm:$0xf] }
 0x271   :  { %926 = vmatmul.bf16.gmra.mxu0 %v6131_v9 }
 0x272   :  { %v1789_v30 = vpack.c.bf16 %v1632_v28, %v1134_v24  ;;  %1175 = vmatmul.bf16.gmra.mxu1 %v6135_v10  ;;  %v6146_v24 = vld [vmem:[#allocation8 + $0x260] sm:$0xf]  ;;  %v6148_v28 = vld [vmem:[#allocation8 + $0x268] sm:$0xf0] }
 0x273   :  { %1424 = vmatmul.bf16.gmra.mxu2 %v6131_v9 }
 0x274   :  { %1885 = vst [vmem:[#allocation2 + $0x1b8] sm:$0xff] %v1789_v30  ;;  %1673 = vmatmul.bf16.gmra.mxu3 %v6135_v10  ;;  %v6147_v30 = vor.u32 %v6941_v25, %v6146_v24 }
 0x276   :  { %2294 = vmatpush.bf16.xpose.msrb.mxu1 %v6259_v18  ;;  %v1385_v34 = vpop.f32.mrf.mxu2  ;;  %v889_v38 = vpop.f32.mrf.mxu0 }
 0x277   :  { %v1634_v35 = vpop.f32.mrf.mxu3  ;;  %v1138_v5 = vpop.f32.mrf.mxu1 }
 0x278   :  { %v1635_v12 = vadd.f32 %v1634_v35, %v1385_v34  ;;  %v1139_v31 = vadd.f32 %v1138_v5, %v889_v38  ;;  %v6151_v34 = vor.u32 %v6940_v55, %v6148_v28 }
 0x27a   :  { %v1790_v42 = vpack.c.bf16 %v1635_v12, %v1137_v37 }
 0x27c   :  { %1886 = vst [vmem:[#allocation2 + $0x1c0] sm:$0xff] %v1790_v42 }
 0x27e   :  { %v1387_v56 = vpop.f32.mrf.mxu2  ;;  %v892_v59 = vpop.f32.mrf.mxu0 }
 0x27f   :  { %v1636_v57 = vpop.f32.mrf.mxu3  ;;  %v1141_v1 = vpop.f32.mrf.mxu1 }
 0x280   :  { %v1637_v18 = vadd.f32 %v1636_v57, %v1387_v56  ;;  %v1142_v8 = vadd.f32 %v1141_v1, %v892_v59  ;;  %v6943_v59 = vld [vmem:[#allocation8 + $0x274] sm:$0xf0]  ;;  %v6942_v1 = vld [vmem:[#allocation8 + $0x274] sm:$0xf] }
 0x281   :  { %931 = vmatmul.bf16.gmra.mxu0 %v6139_v52 }
 0x282   :  { %v1791_v2 = vpack.c.bf16 %v1637_v18, %v1139_v31  ;;  %1180 = vmatmul.bf16.gmra.mxu1 %v6143_v53  ;;  %v6154_v31 = vld [vmem:[#allocation8 + $0x270] sm:$0xf]  ;;  %v6156_v18 = vld [vmem:[#allocation8 + $0x278] sm:$0xf0] }
 0x283   :  { %1429 = vmatmul.bf16.gmra.mxu2 %v6139_v52 }
 0x284   :  { %1887 = vst [vmem:[#allocation2 + $0x1c8] sm:$0xff] %v1791_v2  ;;  %1678 = vmatmul.bf16.gmra.mxu3 %v6143_v53  ;;  %v6155_v2 = vor.u32 %v6943_v59, %v6154_v31 }
 0x286   :  { %v1390_v6 = vpop.f32.mrf.mxu2  ;;  %v894_v9 = vpop.f32.mrf.mxu0 }
 0x287   :  { %v1639_v7 = vpop.f32.mrf.mxu3  ;;  %v1143_v10 = vpop.f32.mrf.mxu1 }
 0x288   :  { %v1640_v11 = vadd.f32 %v1639_v7, %v1390_v6  ;;  %v1144_v38 = vadd.f32 %v1143_v10, %v894_v9  ;;  %v6159_v6 = vor.u32 %v6942_v1, %v6156_v18 }
 0x28a   :  { %v1792_v19 = vpack.c.bf16 %v1640_v11, %v1142_v8 }
 0x28c   :  { %1888 = vst [vmem:[#allocation2 + $0x1d0] sm:$0xff] %v1792_v19 }
 0x28e   :  { %v1392_v35 = vpop.f32.mrf.mxu2  ;;  %v897_v5 = vpop.f32.mrf.mxu0 }
 0x28f   :  { %v1641_v37 = vpop.f32.mrf.mxu3  ;;  %v1146_v12 = vpop.f32.mrf.mxu1 }
 0x290   :  { %v1642_v42 = vadd.f32 %v1641_v37, %v1392_v35  ;;  %v1147_v51 = vadd.f32 %v1146_v12, %v897_v5  ;;  %v6945_v5 = vld [vmem:[#allocation8 + $0x284] sm:$0xf0]  ;;  %v6944_v12 = vld [vmem:[#allocation8 + $0x284] sm:$0xf] }
 0x291   :  { %936 = vmatmul.bf16.gmra.mxu0 %v6147_v30 }
 0x292   :  { %v1793_v47 = vpack.c.bf16 %v1642_v42, %v1144_v38  ;;  %1185 = vmatmul.bf16.gmra.mxu1 %v6151_v34  ;;  %v6162_v38 = vld [vmem:[#allocation8 + $0x280] sm:$0xf]  ;;  %v6164_v42 = vld [vmem:[#allocation8 + $0x288] sm:$0xf0] }
 0x293   :  { %1434 = vmatmul.bf16.gmra.mxu2 %v6147_v30 }
 0x294   :  { %1889 = vst [vmem:[#allocation2 + $0x1d8] sm:$0xff] %v1793_v47  ;;  %1683 = vmatmul.bf16.gmra.mxu3 %v6151_v34  ;;  %v6163_v47 = vor.u32 %v6945_v5, %v6162_v38 }
 0x296   :  { %v1395_v49 = vpop.f32.mrf.mxu2  ;;  %v899_v52 = vpop.f32.mrf.mxu0 }
 0x297   :  { %v1644_v50 = vpop.f32.mrf.mxu3  ;;  %v1148_v53 = vpop.f32.mrf.mxu1 }
 0x298   :  { %v1645_v56 = vadd.f32 %v1644_v50, %v1395_v49  ;;  %v1149_v9 = vadd.f32 %v1148_v53, %v899_v52  ;;  %v6167_v49 = vor.u32 %v6944_v12, %v6164_v42 }
 0x29a   :  { %v1794_v57 = vpack.c.bf16 %v1645_v56, %v1147_v51 }
 0x29c   :  { %1890 = vst [vmem:[#allocation2 + $0x1e0] sm:$0xff] %v1794_v57 }
 0x29e   :  { %v1397_v7 = vpop.f32.mrf.mxu2  ;;  %v902_v10 = vpop.f32.mrf.mxu0 }
 0x29f   :  { %v1646_v8 = vpop.f32.mrf.mxu3  ;;  %v1151_v11 = vpop.f32.mrf.mxu1 }
 0x2a0   :  { %v1647_v19 = vadd.f32 %v1646_v8, %v1397_v7  ;;  %v1152_v28 = vadd.f32 %v1151_v11, %v902_v10  ;;  %v6170_v8 = vld [vmem:[#allocation8 + $0x290] sm:$0xf]  ;;  %v6947_v10 = vld [vmem:[#allocation8 + $0x294] sm:$0xf0] }
 0x2a1   :  { %941 = vmatmul.bf16.gmra.mxu0 %v6155_v2 }
 0x2a2   :  { %v1795_v24 = vpack.c.bf16 %v1647_v19, %v1149_v9  ;;  %1190 = vmatmul.bf16.gmra.mxu1 %v6159_v6 }
 0x2a3   :  { %1439 = vmatmul.bf16.gmra.mxu2 %v6155_v2 }
 0x2a4   :  { %1891 = vst [vmem:[#allocation2 + $0x1e8] sm:$0xff] %v1795_v24  ;;  %1688 = vmatmul.bf16.gmra.mxu3 %v6159_v6  ;;  %v6946_v24 = vld [vmem:[#allocation8 + $0x294] sm:$0xf] }
 0x2a6   :  { %v1400_v25 = vpop.f32.mrf.mxu2  ;;  %v904_v30 = vpop.f32.mrf.mxu0 }
 0x2a7   :  { %v1649_v55 = vpop.f32.mrf.mxu3  ;;  %v1153_v34 = vpop.f32.mrf.mxu1 }
 0x2a8   :  { %v1650_v35 = vadd.f32 %v1649_v55, %v1400_v25  ;;  %v1154_v52 = vadd.f32 %v1153_v34, %v904_v30  ;;  %v6172_v25 = vld [vmem:[#allocation8 + $0x298] sm:$0xf0] }
 0x2a9   :  { %v6175_v30 = vor.u32 %v6946_v24, %v6172_v25 }
 0x2aa   :  { %v1796_v37 = vpack.c.bf16 %v1650_v35, %v1152_v28  ;;  %v6171_v28 = vor.u32 %v6947_v10, %v6170_v8  ;;  %v6180_v8 = vld [vmem:[#allocation8 + $0x2a8] sm:$0xf0] }
 0x2ab   :  { %v6998_v42 = vld [vmem:[#allocation2 + $0x1e4] sm:$0xf0] }
 0x2ac   :  { %1892 = vst [vmem:[#allocation2 + $0x1f0] sm:$0xff] %v1796_v37 }
 0x2ae   :  { %v1402_v50 = vpop.f32.mrf.mxu2  ;;  %v907_v53 = vpop.f32.mrf.mxu0 }
 0x2af   :  { %v1651_v51 = vpop.f32.mrf.mxu3  ;;  %v1156_v56 = vpop.f32.mrf.mxu1 }
 0x2b0   :  { %v1652_v57 = vadd.f32 %v1651_v51, %v1402_v50  ;;  %v1157_v18 = vadd.f32 %v1156_v56, %v907_v53 }
 0x2b1   :  { %946 = vmatmul.bf16.gmra.mxu0 %v6163_v47 }
 0x2b2   :  { %v1797_v31 = vpack.c.bf16 %v1652_v57, %v1154_v52  ;;  %1195 = vmatmul.bf16.gmra.mxu1 %v6167_v49 }
 0x2b3   :  { %1444 = vmatmul.bf16.gmra.mxu2 %v6163_v47  ;;  %v6382_v11 = vld [vmem:[#allocation2 + $0x1f0] sm:$0xf] }
 0x2b4   :  { %1893 = vst [vmem:[#allocation2 + $0x1f8] sm:$0xff] %v1797_v31  ;;  %1693 = vmatmul.bf16.gmra.mxu3 %v6167_v49  ;;  %v6378_v49 = vld [vmem:[#allocation2 + $0x1e0] sm:$0xf] }
 0x2b5   :  { %v8038_v50 = vor.u32 %v6998_v42, %v6378_v49 }
 0x2b6   :  { %v1405_v59 = vpop.f32.mrf.mxu2  ;;  %v909_v2 = vpop.f32.mrf.mxu0 }
 0x2b7   :  { %v1654_v1 = vpop.f32.mrf.mxu3  ;;  %v1158_v6 = vpop.f32.mrf.mxu1 }
 0x2b8   :  { %v1655_v7 = vadd.f32 %v1654_v1, %v1405_v59  ;;  %v1159_v37 = vadd.f32 %v1158_v6, %v909_v2  ;;  %v6997_v59 = vld [vmem:[#allocation2 + $0x1d4] sm:$0xf0]  ;;  %v6949_v2 = vld [vmem:[#allocation8 + $0x2a4] sm:$0xf0]  ;;  %v6374_v6 = vld [vmem:[#allocation2 + $0x1d0] sm:$0xf] }
 0x2ba   :  { %v1798_v9 = vpack.c.bf16 %v1655_v7, %v1157_v18  ;;  %v6178_v18 = vld [vmem:[#allocation8 + $0x2a0] sm:$0xf]  ;;  %v6948_v7 = vld [vmem:[#allocation8 + $0x2a4] sm:$0xf] }
 0x2bb   :  { %v6999_v19 = vld [vmem:[#allocation2 + $0x1f4] sm:$0xf0]  ;;  %v6179_v10 = vor.u32 %v6949_v2, %v6178_v18  ;;  %v6188_v18 = vld [vmem:[#allocation8 + $0x2b8] sm:$0xf0] }
 0x2bc   :  { %v8035_v55 = vor.u32 %v6999_v19, %v6382_v11  ;;  %1894 = vst [vmem:[#allocation2 + $0x200] sm:$0xff] %v1798_v9  ;;  %v8041_v9 = vor.u32 %v6997_v59, %v6374_v6  ;;  %v6183_v11 = vor.u32 %v6948_v7, %v6180_v8  ;;  %v6366_v59 = vld [vmem:[#allocation2 + $0x1b0] sm:$0xf] }
 0x2be   :  { %3027 = vmatpush.bf16.xpose.msra.mxu1 %v8035_v55  ;;  %v1407_v34 = vpop.f32.mrf.mxu2  ;;  %v912_v38 = vpop.f32.mrf.mxu0 }
 0x2bf   :  { %v1656_v35 = vpop.f32.mrf.mxu3  ;;  %v1161_v5 = vpop.f32.mrf.mxu1 }
 0x2c0   :  { %v1657_v12 = vadd.f32 %v1656_v35, %v1407_v34  ;;  %v1162_v53 = vadd.f32 %v1161_v5, %v912_v38  ;;  %v6996_v35 = vld [vmem:[#allocation2 + $0x1c4] sm:$0xf0]  ;;  %v6370_v38 = vld [vmem:[#allocation2 + $0x1c0] sm:$0xf] }
 0x2c1   :  { %951 = vmatmul.bf16.gmra.mxu0 %v6171_v28  ;;  %v8044_v5 = vor.u32 %v6996_v35, %v6370_v38 }
 0x2c2   :  { %v1799_v47 = vpack.c.bf16 %v1657_v12, %v1159_v37  ;;  %1200 = vmatmul.bf16.gmra.mxu1 %v6175_v30 }
 0x2c3   :  { %1449 = vmatmul.bf16.gmra.mxu2 %v6171_v28 }
 0x2c4   :  { %1895 = vst [vmem:[#allocation2 + $0x208] sm:$0xff] %v1799_v47  ;;  %1698 = vmatmul.bf16.gmra.mxu3 %v6175_v30 }
 0x2c6   :  { %3028 = vmatpush.bf16.xpose.msra.mxu1 %v8038_v50  ;;  %v1410_v51 = vpop.f32.mrf.mxu2  ;;  %v914_v56 = vpop.f32.mrf.mxu0 }
 0x2c7   :  { %v1659_v52 = vpop.f32.mrf.mxu3  ;;  %v1163_v57 = vpop.f32.mrf.mxu1 }
 0x2c8   :  { %v1660_v31 = vadd.f32 %v1659_v52, %v1410_v51  ;;  %v1164_v25 = vadd.f32 %v1163_v57, %v914_v56  ;;  %v6186_v57 = vld [vmem:[#allocation8 + $0x2b0] sm:$0xf] }
 0x2ca   :  { %v1800_v1 = vpack.c.bf16 %v1660_v31, %v1162_v53  ;;  %v6995_v53 = vld [vmem:[#allocation2 + $0x1b4] sm:$0xf0] }
 0x2cb   :  { %v6951_v31 = vld [vmem:[#allocation8 + $0x2b4] sm:$0xf0]  ;;  %v8047_v2 = vor.u32 %v6995_v53, %v6366_v59  ;;  %v6194_v53 = vld [vmem:[#allocation8 + $0x2c0] sm:$0xf]  ;;  %v6196_v59 = vld [vmem:[#allocation8 + $0x2c8] sm:$0xf0] }
 0x2cc   :  { %1896 = vst [vmem:[#allocation2 + $0x210] sm:$0xff] %v1800_v1  ;;  %v6950_v1 = vld [vmem:[#allocation8 + $0x2b4] sm:$0xf]  ;;  %v6187_v6 = vor.u32 %v6951_v31, %v6186_v57  ;;  %v6358_v57 = vld [vmem:[#allocation2 + $0x190] sm:$0xf] }
 0x2cd   :  { %v6191_v7 = vor.u32 %v6950_v1, %v6188_v18  ;;  %v6952_v31 = vld [vmem:[#allocation8 + $0x2c4] sm:$0xf] }
 0x2ce   :  { %3029 = vmatpush.bf16.xpose.msra.mxu1 %v8041_v9  ;;  %v1412_v19 = vpop.f32.mrf.mxu2  ;;  %v917_v28 = vpop.f32.mrf.mxu0 }
 0x2cf   :  { %v1661_v24 = vpop.f32.mrf.mxu3  ;;  %v1166_v30 = vpop.f32.mrf.mxu1 }
 0x2d0   :  { %v1662_v34 = vadd.f32 %v1661_v24, %v1412_v19  ;;  %v1167_v47 = vadd.f32 %v1166_v30, %v917_v28  ;;  %v6994_v28 = vld [vmem:[#allocation2 + $0x1a4] sm:$0xf0] }
 0x2d1   :  { %956 = vmatmul.bf16.gmra.mxu0 %v6179_v10 }
 0x2d2   :  { %v1801_v37 = vpack.c.bf16 %v1662_v34, %v1164_v25  ;;  %1205 = vmatmul.bf16.gmra.mxu1 %v6183_v11  ;;  %v6362_v34 = vld [vmem:[#allocation2 + $0x1a0] sm:$0xf] }
 0x2d3   :  { %1454 = vmatmul.bf16.gmra.mxu2 %v6179_v10  ;;  %v8050_v35 = vor.u32 %v6994_v28, %v6362_v34 }
 0x2d4   :  { %1897 = vst [vmem:[#allocation2 + $0x218] sm:$0xff] %v1801_v37  ;;  %1703 = vmatmul.bf16.gmra.mxu3 %v6183_v11 }
 0x2d6   :  { %3030 = vmatpush.bf16.xpose.msra.mxu1 %v8044_v5  ;;  %v1415_v12 = vpop.f32.mrf.mxu2  ;;  %v919_v49 = vpop.f32.mrf.mxu0 }
 0x2d7   :  { %v1664_v42 = vpop.f32.mrf.mxu3  ;;  %v1168_v51 = vpop.f32.mrf.mxu1 }
 0x2d8   :  { %v1665_v52 = vadd.f32 %v1664_v42, %v1415_v12  ;;  %v1169_v11 = vadd.f32 %v1168_v51, %v919_v49  ;;  %v6993_v51 = vld [vmem:[#allocation2 + $0x194] sm:$0xf0] }
 0x2d9   :  { %v8053_v1 = vor.u32 %v6993_v51, %v6358_v57  ;;  %v6204_v57 = vld [vmem:[#allocation8 + $0x2d8] sm:$0xf0] }
 0x2da   :  { %v1802_v56 = vpack.c.bf16 %v1665_v52, %v1167_v47 }
 0x2dc   :  { %1898 = vst [vmem:[#allocation2 + $0x220] sm:$0xff] %v1802_v56  ;;  %v6953_v56 = vld [vmem:[#allocation8 + $0x2c4] sm:$0xf0] }
 0x2dd   :  { %v6195_v18 = vor.u32 %v6953_v56, %v6194_v53  ;;  %v6955_v53 = vld [vmem:[#allocation8 + $0x2d4] sm:$0xf0]  ;;  %v6954_v56 = vld [vmem:[#allocation8 + $0x2d4] sm:$0xf] }
 0x2de   :  { %3031 = vmatpush.bf16.xpose.msra.mxu1 %v8047_v2  ;;  %v1417_v8 = vpop.f32.mrf.mxu2  ;;  %v922_v19 = vpop.f32.mrf.mxu0 }
 0x2df   :  { %v1666_v10 = vpop.f32.mrf.mxu3  ;;  %v1171_v24 = vpop.f32.mrf.mxu1 }
 0x2e0   :  { %v1667_v25 = vadd.f32 %v1666_v10, %v1417_v8  ;;  %v1172_v12 = vadd.f32 %v1171_v24, %v922_v19 }
 0x2e1   :  { %961 = vmatmul.bf16.gmra.mxu0 %v6187_v6 }
 0x2e2   :  { %v1803_v30 = vpack.c.bf16 %v1667_v25, %v1169_v11  ;;  %1210 = vmatmul.bf16.gmra.mxu1 %v6191_v7  ;;  %v6992_v25 = vld [vmem:[#allocation2 + $0x184] sm:$0xf0] }
 0x2e3   :  { %1459 = vmatmul.bf16.gmra.mxu2 %v6187_v6  ;;  %v6199_v6 = vor.u32 %v6952_v31, %v6196_v59  ;;  %v6207_v59 = vor.u32 %v6954_v56, %v6204_v57 }
 0x2e4   :  { %1899 = vst [vmem:[#allocation2 + $0x228] sm:$0xff] %v1803_v30  ;;  %1708 = vmatmul.bf16.gmra.mxu3 %v6191_v7  ;;  %v6354_v30 = vld [vmem:[#allocation2 + $0x180] sm:$0xf] }
 0x2e5   :  { %v8056_v34 = vor.u32 %v6992_v25, %v6354_v30 }
 0x2e6   :  { %3032 = vmatpush.bf16.xpose.msra.mxu1 %v8050_v35  ;;  %v1420_v37 = vpop.f32.mrf.mxu2  ;;  %v924_v42 = vpop.f32.mrf.mxu0 }
 0x2e7   :  { %v1669_v38 = vpop.f32.mrf.mxu3  ;;  %v1173_v47 = vpop.f32.mrf.mxu1 }
 0x2e8   :  { %v1670_v49 = vadd.f32 %v1669_v38, %v1420_v37  ;;  %v1174_v10 = vadd.f32 %v1173_v47, %v924_v42 }
 0x2ea   :  { %v1804_v52 = vpack.c.bf16 %v1670_v49, %v1172_v12 }
 0x2ec   :  { %1900 = vst [vmem:[#allocation2 + $0x230] sm:$0xff] %v1804_v52  ;;  %v6202_v52 = vld [vmem:[#allocation8 + $0x2d0] sm:$0xf] }
 0x2ed   :  { %v6203_v31 = vor.u32 %v6955_v53, %v6202_v52  ;;  %v6956_v52 = vld [vmem:[#allocation8 + $0x2e4] sm:$0xf] }
 0x2ee   :  { %3033 = vmatpush.bf16.xpose.msra.mxu1 %v8053_v1  ;;  %v1422_v7 = vpop.f32.mrf.mxu2  ;;  %v927_v11 = vpop.f32.mrf.mxu0 }
 0x2ef   :  { %v1671_v8 = vpop.f32.mrf.mxu3  ;;  %v1176_v19 = vpop.f32.mrf.mxu1 }
 0x2f0   :  { %v1672_v24 = vadd.f32 %v1671_v8, %v1422_v7  ;;  %v1177_v12 = vadd.f32 %v1176_v19, %v927_v11 }
 0x2f1   :  { %966 = vmatmul.bf16.gmra.mxu0 %v6195_v18 }
 0x2f2   :  { %v1805_v28 = vpack.c.bf16 %v1672_v24, %v1174_v10  ;;  %1215 = vmatmul.bf16.gmra.mxu1 %v6199_v6 }
 0x2f3   :  { %1464 = vmatmul.bf16.gmra.mxu2 %v6195_v18 }
 0x2f4   :  { %1901 = vst [vmem:[#allocation2 + $0x238] sm:$0xff] %v1805_v28  ;;  %1713 = vmatmul.bf16.gmra.mxu3 %v6199_v6 }
 0x2f6   :  { %3034 = vmatpush.bf16.xpose.msra.mxu1 %v8056_v34  ;;  %v1425_v37 = vpop.f32.mrf.mxu2  ;;  %v929_v49 = vpop.f32.mrf.mxu0 }
 0x2f7   :  { %v1674_v38 = vpop.f32.mrf.mxu3  ;;  %v1178_v42 = vpop.f32.mrf.mxu1 }
 0x2f8   :  { %v1675_v47 = vadd.f32 %v1674_v38, %v1425_v37  ;;  %v1179_v18 = vadd.f32 %v1178_v42, %v929_v49  ;;  %v6212_v49 = vld [vmem:[#allocation8 + $0x2e8] sm:$0xf0] }
 0x2f9   :  { %v6215_v53 = vor.u32 %v6956_v52, %v6212_v49 }
 0x2fa   :  { %v1806_v51 = vpack.c.bf16 %v1675_v47, %v1177_v12  ;;  %v6210_v47 = vld [vmem:[#allocation8 + $0x2e0] sm:$0xf] }
 0x2fc   :  { %1902 = vst [vmem:[#allocation2 + $0x240] sm:$0xff] %v1806_v51  ;;  %v6957_v51 = vld [vmem:[#allocation8 + $0x2e4] sm:$0xf0] }
 0x2fd   :  { %v6211_v42 = vor.u32 %v6957_v51, %v6210_v47  ;;  %v6958_v47 = vld [vmem:[#allocation8 + $0x2f4] sm:$0xf] }
 0x2fe   :  { %v1427_v7 = vpop.f32.mrf.mxu2  ;;  %v932_v6 = vpop.f32.mrf.mxu0 }
 0x2ff   :  { %v1676_v8 = vpop.f32.mrf.mxu3  ;;  %v1181_v10 = vpop.f32.mrf.mxu1 }
 0x300   :  { %v1677_v24 = vadd.f32 %v1676_v8, %v1427_v7  ;;  %v1182_v28 = vadd.f32 %v1181_v10, %v932_v6 }
 0x301   :  { %971 = vmatmul.bf16.gmra.mxu0 %v6203_v31 }
 0x302   :  { %v1807_v25 = vpack.c.bf16 %v1677_v24, %v1179_v18  ;;  %1220 = vmatmul.bf16.gmra.mxu1 %v6207_v59 }
 0x303   :  { %1469 = vmatmul.bf16.gmra.mxu2 %v6203_v31 }
 0x304   :  { %1903 = vst [vmem:[#allocation2 + $0x248] sm:$0xff] %v1807_v25  ;;  %1718 = vmatmul.bf16.gmra.mxu3 %v6207_v59 }
 0x306   :  { %v1430_v11 = vpop.f32.mrf.mxu2  ;;  %v934_v30 = vpop.f32.mrf.mxu0 }
 0x307   :  { %v1679_v19 = vpop.f32.mrf.mxu3  ;;  %v1183_v37 = vpop.f32.mrf.mxu1 }
 0x308   :  { %v1680_v38 = vadd.f32 %v1679_v19, %v1430_v11  ;;  %v1184_v7 = vadd.f32 %v1183_v37, %v934_v30  ;;  %v6220_v30 = vld [vmem:[#allocation8 + $0x2f8] sm:$0xf0] }
 0x309   :  { %v6223_v51 = vor.u32 %v6958_v47, %v6220_v30  ;;  %v6478_v30 = vld [vmem:[#allocation2 + $0x174] sm:$0xf] }
 0x30a   :  { %v1808_v12 = vpack.c.bf16 %v1680_v38, %v1182_v28  ;;  %v6218_v38 = vld [vmem:[#allocation8 + $0x2f0] sm:$0xf] }
 0x30c   :  { %1904 = vst [vmem:[#allocation2 + $0x250] sm:$0xff] %v1808_v12  ;;  %v6959_v12 = vld [vmem:[#allocation8 + $0x2f4] sm:$0xf0] }
 0x30d   :  { %v6219_v37 = vor.u32 %v6959_v12, %v6218_v38 }
 0x30e   :  { %v1432_v56 = vpop.f32.mrf.mxu2  ;;  %v937_v8 = vpop.f32.mrf.mxu0 }
 0x30f   :  { %v1681_v57 = vpop.f32.mrf.mxu3  ;;  %v1186_v31 = vpop.f32.mrf.mxu1 }
 0x310   :  { %v1682_v59 = vadd.f32 %v1681_v57, %v1432_v56  ;;  %v1187_v24 = vadd.f32 %v1186_v31, %v937_v8 }
 0x311   :  { %976 = vmatmul.bf16.gmra.mxu0 %v6211_v42 }
 0x312   :  { %v1809_v18 = vpack.c.bf16 %v1682_v59, %v1184_v7  ;;  %1225 = vmatmul.bf16.gmra.mxu1 %v6215_v53 }
 0x313   :  { %1474 = vmatmul.bf16.gmra.mxu2 %v6211_v42 }
 0x314   :  { %1905 = vst [vmem:[#allocation2 + $0x258] sm:$0xff] %v1809_v18  ;;  %1723 = vmatmul.bf16.gmra.mxu3 %v6215_v53 }
 0x316   :  { %v1435_v6 = vpop.f32.mrf.mxu2  ;;  %v939_v25 = vpop.f32.mrf.mxu0 }
 0x317   :  { %v1684_v10 = vpop.f32.mrf.mxu3  ;;  %v1188_v11 = vpop.f32.mrf.mxu1 }
 0x318   :  { %v1685_v19 = vadd.f32 %v1684_v10, %v1435_v6  ;;  %v1189_v56 = vadd.f32 %v1188_v11, %v939_v25 }
 0x31a   :  { %v1810_v28 = vpack.c.bf16 %v1685_v19, %v1187_v24  ;;  %v7023_v19 = vld [vmem:[#allocation2 + $0x178] sm:$0xf0] }
 0x31c   :  { %1906 = vst [vmem:[#allocation2 + $0x260] sm:$0xff] %v1810_v28 }
 0x31e   :  { %v1437_v52 = vpop.f32.mrf.mxu2  ;;  %v942_v57 = vpop.f32.mrf.mxu0 }
 0x31f   :  { %v1686_v49 = vpop.f32.mrf.mxu3  ;;  %v1191_v42 = vpop.f32.mrf.mxu1 }
 0x320   :  { %v1687_v53 = vadd.f32 %v1686_v49, %v1437_v52  ;;  %v1192_v59 = vadd.f32 %v1191_v42, %v942_v57  ;;  %v8059_v52 = vor.u32 %v7023_v19, %v6478_v30 }
 0x321   :  { %981 = vmatmul.bf16.gmra.mxu0 %v6219_v37 }
 0x322   :  { %v1811_v7 = vpack.c.bf16 %v1687_v53, %v1189_v56  ;;  %1230 = vmatmul.bf16.gmra.mxu1 %v6223_v51 }
 0x323   :  { %1479 = vmatmul.bf16.gmra.mxu2 %v6219_v37 }
 0x324   :  { %1907 = vst [vmem:[#allocation2 + $0x268] sm:$0xff] %v1811_v7  ;;  %1728 = vmatmul.bf16.gmra.mxu3 %v6223_v51  ;;  %v7022_v51 = vld [vmem:[#allocation2 + $0x168] sm:$0xf0] }
 0x326   :  { %v1440_v8 = vpop.f32.mrf.mxu2  ;;  %v944_v18 = vpop.f32.mrf.mxu0 }
 0x327   :  { %v1689_v31 = vpop.f32.mrf.mxu3  ;;  %v1193_v6 = vpop.f32.mrf.mxu1 }
 0x328   :  { %v1690_v10 = vadd.f32 %v1689_v31, %v1440_v8  ;;  %v1194_v11 = vadd.f32 %v1193_v6, %v944_v18  ;;  %v6474_v8 = vld [vmem:[#allocation2 + $0x164] sm:$0xf] }
 0x329   :  { %v8065_v31 = vor.u32 %v7022_v51, %v6474_v8  ;;  %v6310_v8 = vld [vmem:[#allocation2 + $0x250] sm:$0xf] }
 0x32a   :  { %v1812_v24 = vpack.c.bf16 %v1690_v10, %v1192_v59 }
 0x32c   :  { %1908 = vst [vmem:[#allocation2 + $0x270] sm:$0xff] %v1812_v24 }
 0x32e   :  { %v1442_v28 = vpop.f32.mrf.mxu2  ;;  %v947_v38 = vpop.f32.mrf.mxu0 }
 0x32f   :  { %v1691_v25 = vpop.f32.mrf.mxu3  ;;  %v1196_v12 = vpop.f32.mrf.mxu1 }
 0x330   :  { %v1692_v47 = vadd.f32 %v1691_v25, %v1442_v28  ;;  %v1197_v57 = vadd.f32 %v1196_v12, %v947_v38  ;;  %v6982_v38 = vld [vmem:[#allocation2 + $0x264] sm:$0xf0] }
 0x331   :  { %7141 = vmatmul.lmr.bf16.vlgmr.msra.gmra.16.mxu0 }
 0x332   :  { %v1813_v37 = vpack.c.bf16 %v1692_v47, %v1194_v11  ;;  %2295 = vmatmul.bf16.vlgmr.msrb.gmra.mxu1 %v7966_v4  ;;  %2826 = vmatpush.bf16.msra.mxu0 %v8035_v55  ;;  %v6470_v11 = vld [vmem:[#allocation2 + $0x154] sm:$0xf]  ;;  %v6314_v47 = vld [vmem:[#allocation2 + $0x260] sm:$0xf] }
 0x333   :  { %3767 = vmatpush.bf16.xpose.msrb.mxu1 %v8059_v52  ;;  %v6318_v4 = vld [vmem:[#allocation2 + $0x270] sm:$0xf]  ;;  %v8078_v30 = vor.u32 %v6982_v38, %v6314_v47 }
 0x334   :  { %1909 = vst [vmem:[#allocation2 + $0x278] sm:$0xff] %v1813_v37 }
 0x335   :  { %9794 = vst [vmem:[#allocation20_spill] sm:$0xff] %v8078_v30 }
 0x336   :  { %v1445_v49 = vpop.f32.mrf.mxu2  ;;  %2827 = vmatpush.bf16.msra.mxu0 %v8038_v50  ;;  %v949_v42 = vpop.f32.mrf.mxu0  ;;  %v7021_v50 = vld [vmem:[#allocation2 + $0x158] sm:$0xf0] }
 0x337   :  { %v1694_v56 = vpop.f32.mrf.mxu3  ;;  %v1198_v53 = vpop.f32.mrf.mxu1  ;;  %v8073_v12 = vor.u32 %v7021_v50, %v6470_v11  ;;  %v6306_v11 = vld [vmem:[#allocation2 + $0x240] sm:$0xf] }
 0x338   :  { %v1695_v7 = vadd.f32 %v1694_v56, %v1445_v49  ;;  %v1199_v24 = vadd.f32 %v1198_v53, %v949_v42  ;;  %v6981_v53 = vld [vmem:[#allocation2 + $0x254] sm:$0xf0] }
 0x339   :  { %7142 = vmatmul.lmr.bf16.gmra.16.mxu0 }
 0x33a   :  { %v1814_v59 = vpack.c.bf16 %v1695_v7, %v1197_v57  ;;  %2828 = vmatpush.bf16.msra.mxu0 %v8041_v9 }
 0x33b   :  { %v6983_v18 = vld [vmem:[#allocation2 + $0x274] sm:$0xf0]  ;;  %3768 = vmatpush.bf16.xpose.msrb.mxu1 %v8065_v31 }
 0x33c   :  { %1910 = vst [vmem:[#allocation2 + $0x280] sm:$0xff] %v1814_v59  ;;  %v8069_v55 = vor.u32 %v6983_v18, %v6318_v4  ;;  %v8086_v59 = vor.u32 %v6981_v53, %v6310_v8 }
 0x33e   :  { %9793 = vst [vmem:[#allocation19_spill] sm:$0xff] %v8069_v55  ;;  %2536 = vmatpush.bf16.xpose.msrb.mxu2 %v8069_v55  ;;  %v1447_v6 = vpop.f32.mrf.mxu2  ;;  %2829 = vmatpush.bf16.msra.mxu0 %v8044_v5  ;;  %v952_v19 = vpop.f32.mrf.mxu0  ;;  %v7020_v5 = vld [vmem:[#allocation2 + $0x148] sm:$0xf0] }
 0x33f   :  { %v1696_v10 = vpop.f32.mrf.mxu3  ;;  %v1201_v28 = vpop.f32.mrf.mxu1  ;;  %9795 = vst [vmem:[#allocation21_spill] sm:$0xff] %v8086_v59 }
 0x340   :  { %v1697_v25 = vadd.f32 %v1696_v10, %v1447_v6  ;;  %v1202_v49 = vadd.f32 %v1201_v28, %v952_v19  ;;  %v6462_v19 = vld [vmem:[#allocation2 + $0x134] sm:$0xf]  ;;  %v6980_v28 = vld [vmem:[#allocation2 + $0x244] sm:$0xf0] }
 0x341   :  { %7143 = vmatmul.lmr.bf16.gmra.16.mxu0  ;;  %v8094_v38 = vor.u32 %v6980_v28, %v6306_v11 }
 0x342   :  { %v1815_v9 = vpack.c.bf16 %v1697_v25, %v1199_v24  ;;  %2300 = vmatmul.bf16.gmra.mxu1 %v7963_v58  ;;  %2830 = vmatpush.bf16.msra.mxu0 %v8047_v2  ;;  %v6466_v58 = vld [vmem:[#allocation2 + $0x144] sm:$0xf] }
 0x343   :  { %3769 = vmatpush.bf16.xpose.msrb.mxu1 %v8073_v12  ;;  %v8082_v7 = vor.u32 %v7020_v5, %v6466_v58  ;;  %9796 = vst [vmem:[#allocation22_spill] sm:$0xff] %v8094_v38  ;;  %v6302_v58 = vld [vmem:[#allocation2 + $0x230] sm:$0xf] }
 0x344   :  { %1911 = vst [vmem:[#allocation2 + $0x288] sm:$0xff] %v1815_v9 }
 0x346   :  { %2537 = vmatpush.bf16.xpose.msrb.mxu2 %v8078_v30  ;;  %v1450_v37 = vpop.f32.mrf.mxu2  ;;  %2831 = vmatpush.bf16.msra.mxu0 %v8050_v35  ;;  %v954_v56 = vpop.f32.mrf.mxu0  ;;  %v7019_v35 = vld [vmem:[#allocation2 + $0x138] sm:$0xf0] }
 0x347   :  { %v1699_v51 = vpop.f32.mrf.mxu3  ;;  %v1203_v57 = vpop.f32.mrf.mxu1  ;;  %v8090_v25 = vor.u32 %v7019_v35, %v6462_v19 }
 0x348   :  { %v1700_v42 = vadd.f32 %v1699_v51, %v1450_v37  ;;  %v1204_v50 = vadd.f32 %v1203_v57, %v954_v56  ;;  %v6458_v56 = vld [vmem:[#allocation2 + $0x124] sm:$0xf]  ;;  %v6979_v57 = vld [vmem:[#allocation2 + $0x234] sm:$0xf0] }
 0x349   :  { %7144 = vmatmul.lmr.bf16.gmra.16.mxu0  ;;  %v8100_v53 = vor.u32 %v6979_v57, %v6302_v58  ;;  %v6977_v57 = vld [vmem:[#allocation2 + $0x214] sm:$0xf0]  ;;  %v6294_v58 = vld [vmem:[#allocation2 + $0x210] sm:$0xf] }
 0x34a   :  { %v1816_v2 = vpack.c.bf16 %v1700_v42, %v1202_v49  ;;  %2832 = vmatpush.bf16.msra.mxu0 %v8053_v1 }
 0x34b   :  { %3770 = vmatpush.bf16.xpose.msrb.mxu1 %v8082_v7  ;;  %9797 = vst [vmem:[#allocation23_spill] sm:$0xff] %v8100_v53  ;;  %v7000_v30 = vld [vmem:[#allocation2 + $0x284] sm:$0xf0] }
 0x34c   :  { %1912 = vst [vmem:[#allocation2 + $0x290] sm:$0xff] %v1816_v2  ;;  %v7017_v2 = vld [vmem:[#allocation2 + $0x118] sm:$0xf0] }
 0x34e   :  { %2538 = vmatpush.bf16.xpose.msrb.mxu2 %v8086_v59  ;;  %v1452_v4 = vpop.f32.mrf.mxu2  ;;  %2833 = vmatpush.bf16.msra.mxu0 %v8056_v34  ;;  %v957_v6 = vpop.f32.mrf.mxu0  ;;  %v7018_v34 = vld [vmem:[#allocation2 + $0x128] sm:$0xf0] }
 0x34f   :  { %v1701_v18 = vpop.f32.mrf.mxu3  ;;  %v1206_v10 = vpop.f32.mrf.mxu1  ;;  %v8097_v42 = vor.u32 %v7018_v34, %v6458_v56  ;;  %v7016_v34 = vld [vmem:[#allocation2 + $0x108] sm:$0xf0]  ;;  %v6450_v56 = vld [vmem:[#allocation2 + $0x104] sm:$0xf] }
 0x350   :  { %v1702_v24 = vadd.f32 %v1701_v18, %v1452_v4  ;;  %v1207_v5 = vadd.f32 %v1206_v10, %v957_v6  ;;  %v6454_v10 = vld [vmem:[#allocation2 + $0x114] sm:$0xf] }
 0x351   :  { %7145 = vmatmul.lmr.bf16.gmra.16.mxu0  ;;  %v8103_v19 = vor.u32 %v7017_v2, %v6454_v10  ;;  %v8113_v2 = vor.u32 %v6977_v57, %v6294_v58  ;;  %v6976_v10 = vld [vmem:[#allocation2 + $0x204] sm:$0xf0] }
 0x352   :  { %v1817_v1 = vpack.c.bf16 %v1702_v24, %v1204_v50  ;;  %2305 = vmatmul.bf16.gmra.mxu1 %v7960_v54  ;;  %v6978_v24 = vld [vmem:[#allocation2 + $0x224] sm:$0xf0] }
 0x353   :  { %3771 = vmatpush.bf16.xpose.msrb.mxu1 %v8090_v25  ;;  %9799 = vst [vmem:[#allocation25_spill] sm:$0xff] %v8113_v2 }
 0x354   :  { %1913 = vst [vmem:[#allocation2 + $0x298] sm:$0xff] %v1817_v1  ;;  %v6298_v1 = vld [vmem:[#allocation2 + $0x220] sm:$0xf] }
 0x355   :  { %v8107_v11 = vor.u32 %v6978_v24, %v6298_v1 }
 0x356   :  { %2539 = vmatpush.bf16.xpose.msrb.mxu2 %v8094_v38  ;;  %v1455_v9 = vpop.f32.mrf.mxu2  ;;  %v959_v37 = vpop.f32.mrf.mxu0 }
 0x357   :  { %v1704_v47 = vpop.f32.mrf.mxu3  ;;  %v1208_v51 = vpop.f32.mrf.mxu1  ;;  %9798 = vst [vmem:[#allocation24_spill] sm:$0xff] %v8107_v11 }
 0x358   :  { %v1705_v49 = vadd.f32 %v1704_v47, %v1455_v9  ;;  %v1209_v4 = vadd.f32 %v1208_v51, %v959_v37 }
 0x359   :  { %7146 = vmatmul.lmr.bf16.gmra.16.mxu0 }
 0x35a   :  { %v1818_v54 = vpack.c.bf16 %v1705_v49, %v1207_v5 }
 0x35b   :  { %3772 = vmatpush.bf16.xpose.msrb.mxu1 %v8097_v42 }
 0x35c   :  { %1914 = vst [vmem:[#allocation2 + $0x2a0] sm:$0xff] %v1818_v54  ;;  %v8110_v54 = vor.u32 %v7016_v34, %v6450_v56 }
 0x35e   :  { %2540 = vmatpush.bf16.xpose.msrb.mxu2 %v8100_v53  ;;  %v1457_v8 = vpop.f32.mrf.mxu2  ;;  %v962_v18 = vpop.f32.mrf.mxu0 }
 0x35f   :  { %v1706_v35 = vpop.f32.mrf.mxu3  ;;  %v1211_v50 = vpop.f32.mrf.mxu1 }
 0x360   :  { %v1707_v6 = vadd.f32 %v1706_v35, %v1457_v8  ;;  %v1212_v5 = vadd.f32 %v1211_v50, %v962_v18 }
 0x361   :  { %7147 = vmatmul.lmr.bf16.gmra.16.mxu0 }
 0x362   :  { %v1819_v28 = vpack.c.bf16 %v1707_v6, %v1209_v4  ;;  %2310 = vmatmul.bf16.gmra.mxu1 %v7951_v39 }
 0x363   :  { %3773 = vmatpush.bf16.xpose.msrb.mxu1 %v8103_v19 }
 0x364   :  { %1915 = vst [vmem:[#allocation2 + $0x2a8] sm:$0xff] %v1819_v28  ;;  %v6290_v28 = vld [vmem:[#allocation2 + $0x200] sm:$0xf] }
 0x365   :  { %v8117_v1 = vor.u32 %v6976_v10, %v6290_v28 }
 0x366   :  { %2541 = vmatpush.bf16.xpose.msrb.mxu2 %v8107_v11  ;;  %v1460_v9 = vpop.f32.mrf.mxu2  ;;  %v964_v37 = vpop.f32.mrf.mxu0 }
 0x367   :  { %v1709_v47 = vpop.f32.mrf.mxu3  ;;  %v1213_v51 = vpop.f32.mrf.mxu1  ;;  %9800 = vst [vmem:[#allocation26_spill] sm:$0xff] %v8117_v1 }
 0x368   :  { %v1710_v49 = vadd.f32 %v1709_v47, %v1460_v9  ;;  %v1214_v4 = vadd.f32 %v1213_v51, %v964_v37 }
 0x369   :  { %7148 = vmatmul.lmr.bf16.gmra.16.mxu0 }
 0x36a   :  { %v1820_v39 = vpack.c.bf16 %v1710_v49, %v1212_v5 }
 0x36b   :  { %3774 = vmatpush.bf16.xpose.msrb.mxu1 %v8110_v54 }
 0x36c   :  { %1916 = vst [vmem:[#allocation2 + $0x2b0] sm:$0xff] %v1820_v39 }
 0x36e   :  { %2542 = vmatpush.bf16.xpose.msrb.mxu2 %v8113_v2  ;;  %v1462_v8 = vpop.f32.mrf.mxu2  ;;  %v967_v18 = vpop.f32.mrf.mxu0 }
 0x36f   :  { %v1711_v35 = vpop.f32.mrf.mxu3  ;;  %v1216_v50 = vpop.f32.mrf.mxu1 }
 0x370   :  { %v1712_v6 = vadd.f32 %v1711_v35, %v1462_v8  ;;  %v1217_v47 = vadd.f32 %v1216_v50, %v967_v18 }
 0x371   :  { %7149 = vmatmul.lmr.bf16.gmra.16.mxu0 }
 0x372   :  { %v1821_v24 = vpack.c.bf16 %v1712_v6, %v1214_v4  ;;  %2315 = vmatmul.bf16.gmra.mxu1 %v7948_v29 }
 0x374   :  { %1917 = vst [vmem:[#allocation2 + $0x2b8] sm:$0xff] %v1821_v24 }
 0x376   :  { %2543 = vmatpush.bf16.xpose.msrb.mxu2 %v8117_v1  ;;  %v1465_v34 = vpop.f32.mrf.mxu2  ;;  %v969_v5 = vpop.f32.mrf.mxu0 }
 0x377   :  { %v1714_v9 = vpop.f32.mrf.mxu3  ;;  %v1218_v49 = vpop.f32.mrf.mxu1 }
 0x378   :  { %v1715_v37 = vadd.f32 %v1714_v9, %v1465_v34  ;;  %v1219_v39 = vadd.f32 %v1218_v49, %v969_v5 }
 0x379   :  { %7150 = vmatmul.lmr.bf16.gmra.16.mxu0 }
 0x37a   :  { %v1822_v51 = vpack.c.bf16 %v1715_v37, %v1217_v47 }
 0x37c   :  { %1918 = vst [vmem:[#allocation2 + $0x2c0] sm:$0xff] %v1822_v51  ;;  %v7198_v51 = vpop.trf.xlu0 }
 0x37e   :  { %v1467_v56 = vpop.f32.mrf.mxu2  ;;  %v972_v58 = vpop.f32.mrf.mxu0 }
 0x37f   :  { %v1716_v57 = vpop.f32.mrf.mxu3  ;;  %v1221_v29 = vpop.f32.mrf.mxu1 }
 0x380   :  { %v1717_v8 = vadd.f32 %v1716_v57, %v1467_v56  ;;  %v1222_v18 = vadd.f32 %v1221_v29, %v972_v58 }
 0x381   :  { %7151 = vmatmul.lmr.bf16.gmra.16.mxu0 }
 0x382   :  { %v1823_v35 = vpack.c.bf16 %v1717_v8, %v1219_v39  ;;  %2320 = vmatmul.bf16.gmra.mxu1 %v7945_v20 }
 0x384   :  { %1919 = vst [vmem:[#allocation2 + $0x2c8] sm:$0xff] %v1823_v35 }
 0x386   :  { %v1470_v4 = vpop.f32.mrf.mxu2  ;;  %v974_v50 = vpop.f32.mrf.mxu0 }
 0x387   :  { %v1719_v6 = vpop.f32.mrf.mxu3  ;;  %v1223_v10 = vpop.f32.mrf.mxu1 }
 0x388   :  { %v1720_v24 = vadd.f32 %v1719_v6, %v1470_v4  ;;  %v1224_v47 = vadd.f32 %v1223_v10, %v974_v50  ;;  %v8122_v4 = vpop.trf.xlu0 }
 0x389   :  { %7152 = vmatmul.lmr.bf16.gmra.16.mxu0 }
 0x38a   :  { %v1824_v28 = vpack.c.bf16 %v1720_v24, %v1222_v18 }
 0x38c   :  { %1920 = vst [vmem:[#allocation2 + $0x2d0] sm:$0xff] %v1824_v28 }
 0x38e   :  { %v1472_v34 = vpop.f32.mrf.mxu2  ;;  %v977_v5 = vpop.f32.mrf.mxu0 }
 0x38f   :  { %v1721_v9 = vpop.f32.mrf.mxu3  ;;  %v1226_v49 = vpop.f32.mrf.mxu1 }
 0x390   :  { %v1722_v37 = vadd.f32 %v1721_v9, %v1472_v34  ;;  %v1227_v39 = vadd.f32 %v1226_v49, %v977_v5 }
 0x391   :  { %7153 = vmatmul.lmr.bf16.gmra.16.mxu0 }
 0x392   :  { %v1825_v56 = vpack.c.bf16 %v1722_v37, %v1224_v47  ;;  %2325 = vmatmul.bf16.gmra.mxu1 %v7942_v16  ;;  %v7200_v16 = vpop.trf.xlu0 }
 0x394   :  { %1921 = vst [vmem:[#allocation2 + $0x2d8] sm:$0xff] %v1825_v56 }
 0x396   :  { %v1475_v20 = vpop.f32.mrf.mxu2  ;;  %v979_v58 = vpop.f32.mrf.mxu0 }
 0x397   :  { %v1724_v57 = vpop.f32.mrf.mxu3  ;;  %v1228_v29 = vpop.f32.mrf.mxu1 }
 0x398   :  { %v1725_v8 = vadd.f32 %v1724_v57, %v1475_v20  ;;  %v1229_v50 = vadd.f32 %v1228_v29, %v979_v58  ;;  %v7047_v57 = vld [vmem:[#allocation2 + $0x1f8] sm:$0xf0] }
 0x399   :  { %7154 = vmatmul.lmr.bf16.gmra.16.mxu0 }
 0x39a   :  { %v1826_v35 = vpack.c.bf16 %v1725_v8, %v1227_v39 }
 0x39c   :  { %1922 = vst [vmem:[#allocation2 + $0x2e0] sm:$0xff] %v1826_v35 }
 0x39e   :  { %v1477_v6 = vpop.f32.mrf.mxu2  ;;  %v982_v10 = vpop.f32.mrf.mxu0 }
 0x39f   :  { %v1726_v18 = vpop.f32.mrf.mxu3  ;;  %v1231_v24 = vpop.f32.mrf.mxu1 }
 0x3a0   :  { %v1727_v28 = vadd.f32 %v1726_v18, %v1477_v6  ;;  %v1232_v5 = vadd.f32 %v1231_v24, %v982_v10  ;;  %v6574_v6 = vld [vmem:[#allocation2 + $0x1f4] sm:$0xf]  ;;  %v8130_v18 = vpop.trf.xlu0  ;;  %v7046_v24 = vld [vmem:[#allocation2 + $0x1e8] sm:$0xf0] }
 0x3a1   :  { %7155 = vmatmul.lmr.bf16.gmra.16.mxu0 }
 0x3a2   :  { %v1827_v34 = vpack.c.bf16 %v1727_v28, %v1229_v50  ;;  %2330 = vmatmul.bf16.gmra.mxu1 %v7939_v3  ;;  %v8132_v50 = vor.u32 %v7047_v57, %v6574_v6  ;;  %v6406_v6 = vld [vmem:[#allocation2 + $0x2d0] sm:$0xf] }
 0x3a3   :  { %v6410_v57 = vld [vmem:[#allocation2 + $0x2e0] sm:$0xf] }
 0x3a4   :  { %1923 = vst [vmem:[#allocation2 + $0x2e8] sm:$0xff] %v1827_v34 }
 0x3a6   :  { %v1480_v9 = vpop.f32.mrf.mxu2  ;;  %v984_v49 = vpop.f32.mrf.mxu0 }
 0x3a7   :  { %v1729_v47 = vpop.f32.mrf.mxu3  ;;  %v1233_v37 = vpop.f32.mrf.mxu1 }
 0x3a8   :  { %v1730_v56 = vadd.f32 %v1729_v47, %v1480_v9  ;;  %v1234_v29 = vadd.f32 %v1233_v37, %v984_v49  ;;  %v6570_v9 = vld [vmem:[#allocation2 + $0x1e4] sm:$0xf] }
 0x3a9   :  { %7156 = vmatmul.lmr.bf16.gmra.16.mxu0 }
 0x3aa   :  { %v1828_v20 = vpack.c.bf16 %v1730_v56, %v1232_v5  ;;  %v6566_v56 = vld [vmem:[#allocation2 + $0x1d4] sm:$0xf] }
 0x3ac   :  { %1924 = vst [vmem:[#allocation2 + $0x2f0] sm:$0xff] %v1828_v20  ;;  %v7006_v20 = vld [vmem:[#allocation2 + $0x2e4] sm:$0xf0] }
 0x3ae   :  { %v1482_v39 = vpop.f32.mrf.mxu2  ;;  %v8125_v8 = vpop.f32.mrf.mxu0 }
 0x3af   :  { %v1731_v58 = vpop.f32.mrf.mxu3  ;;  %v8127_v35 = vpop.f32.mrf.mxu1  ;;  %2135 = vmax.xlane.f32.xlu1 %v8125_v8 }
 0x3b0   :  { %v1732_v3 = vadd.f32 %v1731_v58, %v1482_v39  ;;  %7165 = vllmr.16.mxu0  ;;  %v7044_v58 = vld [vmem:[#allocation2 + $0x1c8] sm:$0xf0] }
 0x3b1   :  { %2834 = vmatmul.bf16.vlgmr.msra.gmra.mxu0 %v7198_v51  ;;  %v8144_v51 = vor.u32 %v7046_v24, %v6570_v9 }
 0x3b2   :  { %v1829_v10 = vpack.c.bf16 %v1732_v3, %v1234_v29  ;;  %3035 = vmatmul.bf16.vlgmr.msra.gmra.mxu1 %v7953_v40  ;;  %3566 = vmatpush.bf16.msra.mxu0 %v8059_v52  ;;  %v7202_v40 = vpop.trf.xlu0 }
 0x3b3   :  { %4507 = vmatpush.bf16.xpose.msra.mxu1 %v8132_v50  ;;  %v6414_v47 = vld [vmem:[#allocation2 + $0x2f0] sm:$0xf] }
 0x3b4   :  { %1925 = vst [vmem:[#allocation2 + $0x2f8] sm:$0xff] %v1829_v10 }
 0x3b6   :  { %3567 = vmatpush.bf16.msra.mxu0 %v8065_v31  ;;  %v8138_v28 = vpop.f32.mrf.mxu0  ;;  %v7045_v31 = vld [vmem:[#allocation2 + $0x1d8] sm:$0xf0] }
 0x3b7   :  { %v8140_v34 = vpop.f32.mrf.mxu1  ;;  %2336 = vmax.xlane.f32.xlu1 %v8127_v35  ;;  %2137 = vmax.xlane.f32.xlu2 %v8138_v28 }
 0x3ba   :  { %3568 = vmatpush.bf16.msra.mxu0 %v8073_v12  ;;  %v8158_v12 = vor.u32 %v7045_v31, %v6566_v56  ;;  %v8165_v39 = vpop.trf.xlu0  ;;  %v6402_v56 = vld [vmem:[#allocation2 + $0x2c0] sm:$0xf] }
 0x3bb   :  { %v7007_v52 = vld [vmem:[#allocation2 + $0x2f4] sm:$0xf0]  ;;  %4508 = vmatpush.bf16.xpose.msra.mxu1 %v8144_v51 }
 0x3bc   :  { %v8148_v5 = vor.u32 %v7007_v52, %v6414_v47  ;;  %v6558_v52 = vld [vmem:[#allocation2 + $0x1b4] sm:$0xf] }
 0x3be   :  { %9801 = vst [vmem:[#allocation27_spill] sm:$0xff] %v8148_v5  ;;  %3276 = vmatpush.bf16.xpose.msra.mxu2 %v8148_v5  ;;  %3569 = vmatpush.bf16.msra.mxu0 %v8082_v7  ;;  %v8152_v49 = vpop.f32.mrf.mxu0  ;;  %v8163_v7 = vor.u32 %v7006_v20, %v6410_v57  ;;  %v6550_v5 = vld [vmem:[#allocation2 + $0x194] sm:$0xf] }
 0x3bf   :  { %v8154_v37 = vpop.f32.mrf.mxu1  ;;  %2338 = vmax.xlane.f32.xlu2 %v8140_v34  ;;  %2139 = vmax.xlane.f32.xlu1 %v8152_v49 }
 0x3c0   :  { %9802 = vst [vmem:[#allocation28_spill] sm:$0xff] %v8163_v7 }
 0x3c1   :  { %2839 = vmatmul.bf16.gmra.mxu0 %v7200_v16 }
 0x3c2   :  { %3040 = vmatmul.bf16.gmra.mxu1 %v7971_v15  ;;  %3570 = vmatpush.bf16.msra.mxu0 %v8090_v25  ;;  %v6562_v15 = vld [vmem:[#allocation2 + $0x1c4] sm:$0xf]  ;;  %v7005_v25 = vld [vmem:[#allocation2 + $0x2d4] sm:$0xf0]  ;;  %v7204_v24 = vpop.trf.xlu0 }
 0x3c3   :  { %4509 = vmatpush.bf16.xpose.msra.mxu1 %v8158_v12  ;;  %v8175_v16 = vor.u32 %v7044_v58, %v6562_v15  ;;  %v8179_v10 = vor.u32 %v7005_v25, %v6406_v6  ;;  %v6554_v15 = vld [vmem:[#allocation2 + $0x1a4] sm:$0xf]  ;;  %v6398_v6 = vld [vmem:[#allocation2 + $0x2b0] sm:$0xf] }
 0x3c5   :  { %9803 = vst [vmem:[#allocation29_spill] sm:$0xff] %v8179_v10 }
 0x3c6   :  { %3277 = vmatpush.bf16.xpose.msra.mxu2 %v8163_v7  ;;  %3571 = vmatpush.bf16.msra.mxu0 %v8097_v42  ;;  %v8169_v29 = vpop.f32.mrf.mxu0  ;;  %v7043_v42 = vld [vmem:[#allocation2 + $0x1b8] sm:$0xf0]  ;;  %v7002_v7 = vld [vmem:[#allocation2 + $0x2a4] sm:$0xf0] }
 0x3c7   :  { %v8171_v3 = vpop.f32.mrf.mxu1  ;;  %2340 = vmax.xlane.f32.xlu1 %v8154_v37  ;;  %2141 = vmax.xlane.f32.xlu2 %v8169_v29  ;;  %v8189_v31 = vor.u32 %v7043_v42, %v6558_v52  ;;  %v7041_v52 = vld [vmem:[#allocation2 + $0x198] sm:$0xf0] }
 0x3ca   :  { %3572 = vmatpush.bf16.msra.mxu0 %v8103_v19  ;;  %v7004_v19 = vld [vmem:[#allocation2 + $0x2c4] sm:$0xf0] }
 0x3cb   :  { %4510 = vmatpush.bf16.xpose.msra.mxu1 %v8175_v16  ;;  %v8193_v20 = vor.u32 %v7004_v19, %v6402_v56 }
 0x3cd   :  { %9804 = vst [vmem:[#allocation30_spill] sm:$0xff] %v8193_v20 }
 0x3ce   :  { %3278 = vmatpush.bf16.xpose.msra.mxu2 %v8179_v10  ;;  %3573 = vmatpush.bf16.msra.mxu0 %v8110_v54  ;;  %v8183_v9 = vpop.f32.mrf.mxu0  ;;  %v7042_v54 = vld [vmem:[#allocation2 + $0x1a8] sm:$0xf0] }
 0x3cf   :  { %v8185_v47 = vpop.f32.mrf.mxu1  ;;  %2342 = vmax.xlane.f32.xlu2 %v8171_v3  ;;  %2143 = vmax.xlane.f32.xlu1 %v8183_v9  ;;  %v8204_v25 = vor.u32 %v7042_v54, %v6554_v15  ;;  %v8216_v54 = vor.u32 %v7041_v52, %v6550_v5  ;;  %v7040_v10 = vld [vmem:[#allocation2 + $0x188] sm:$0xf0]  ;;  %v6546_v5 = vld [vmem:[#allocation2 + $0x184] sm:$0xf]  ;;  %v6390_v52 = vld [vmem:[#allocation2 + $0x290] sm:$0xf] }
 0x3d1   :  { %2844 = vmatmul.bf16.gmra.mxu0 %v7202_v40  ;;  %v8202_v40 = vpop.trf.xlu0 }
 0x3d2   :  { %3045 = vmatmul.bf16.gmra.mxu1 %v7989_v61  ;;  %9805 = vst [vmem:[#allocation31_spill] sm:$0xff] %v8202_v40  ;;  %v7003_v61 = vld [vmem:[#allocation2 + $0x2b4] sm:$0xf0] }
 0x3d3   :  { %4511 = vmatpush.bf16.xpose.msra.mxu1 %v8189_v31  ;;  %v8207_v42 = vor.u32 %v7003_v61, %v6398_v6  ;;  %v6394_v61 = vld [vmem:[#allocation2 + $0x2a0] sm:$0xf] }
 0x3d4   :  { %v8220_v6 = vor.u32 %v7002_v7, %v6394_v61 }
 0x3d5   :  { %9806 = vst [vmem:[#allocation32_spill] sm:$0xff] %v8207_v42 }
 0x3d6   :  { %3279 = vmatpush.bf16.xpose.msra.mxu2 %v8193_v20  ;;  %v8196_v57 = vpop.f32.mrf.mxu0  ;;  %9807 = vst [vmem:[#allocation33_spill] sm:$0xff] %v8220_v6 }
 0x3d7   :  { %v8198_v58 = vpop.f32.mrf.mxu1  ;;  %2344 = vmax.xlane.f32.xlu2 %v8185_v47 }
 0x3d8   :  { %2346 = vmax.xlane.f32.xlu1 %v8198_v58 }
 0x3d9   :  { %v7206_v15 = vpop.trf.xlu0 }
 0x3db   :  { %4512 = vmatpush.bf16.xpose.msra.mxu1 %v8204_v25 }
 0x3de   :  { %3280 = vmatpush.bf16.xpose.msra.mxu2 %v8207_v42  ;;  %v8210_v19 = vpop.f32.mrf.mxu0 }
 0x3df   :  { %v8212_v56 = vpop.f32.mrf.mxu1  ;;  %2145 = vmax.xlane.f32.xlu2 %v8196_v57 }
 0x3e0   :  { %2147 = vmax.xlane.f32.xlu1 %v8210_v19 }
 0x3e1   :  { %2849 = vmatmul.bf16.gmra.mxu0 %v7204_v24  ;;  %v7001_v24 = vld [vmem:[#allocation2 + $0x294] sm:$0xf0]  ;;  %v8234_v61 = vpop.trf.xlu0 }
 0x3e2   :  { %3050 = vmatmul.bf16.gmra.mxu1 %v8005_v45  ;;  %v8229_v45 = vor.u32 %v7040_v10, %v6546_v5  ;;  %v8232_v7 = vor.u32 %v7001_v24, %v6390_v52  ;;  %9809 = vst [vmem:[#allocation35_spill] sm:$0xff] %v8234_v61  ;;  %v6386_v10 = vld [vmem:[#allocation2 + $0x280] sm:$0xf] }
 0x3e3   :  { %4513 = vmatpush.bf16.xpose.msra.mxu1 %v8216_v54  ;;  %v8244_v5 = vor.u32 %v7000_v30, %v6386_v10 }
 0x3e4   :  { %9808 = vst [vmem:[#allocation34_spill] sm:$0xff] %v8232_v7 }
 0x3e5   :  { %9810 = vst [vmem:[#allocation36_spill] sm:$0xff] %v8244_v5 }
 0x3e6   :  { %3281 = vmatpush.bf16.xpose.msra.mxu2 %v8220_v6  ;;  %v8223_v20 = vpop.f32.mrf.mxu0 }
 0x3e7   :  { %v8225_v42 = vpop.f32.mrf.mxu1  ;;  %2348 = vmax.xlane.f32.xlu2 %v8212_v56 }
 0x3e8   :  { %2350 = vmax.xlane.f32.xlu1 %v8225_v42 }
 0x3e9   :  { %v7208_v24 = vpop.trf.xlu0 }
 0x3eb   :  { %4514 = vmatpush.bf16.xpose.msra.mxu1 %v8229_v45 }
 0x3ee   :  { %3282 = vmatpush.bf16.xpose.msra.mxu2 %v8232_v7  ;;  %v8237_v6 = vpop.f32.mrf.mxu0 }
 0x3ef   :  { %v8239_v55 = vpop.f32.mrf.mxu1  ;;  %2149 = vmax.xlane.f32.xlu2 %v8223_v20 }
 0x3f0   :  { %2151 = vmax.xlane.f32.xlu1 %v8237_v6 }
 0x3f1   :  { %2854 = vmatmul.bf16.gmra.mxu0 %v7206_v15 }
 0x3f2   :  { %3055 = vmatmul.bf16.gmra.mxu1 %v8011_v21  ;;  %v8259_v21 = vpop.trf.xlu0 }
 0x3f3   :  { %9811 = vst [vmem:[#allocation37_spill] sm:$0xff] %v8259_v21 }
 0x3f6   :  { %3283 = vmatpush.bf16.xpose.msra.mxu2 %v8244_v5  ;;  %v8247_v52 = vpop.f32.mrf.mxu0 }
 0x3f7   :  { %v8249_v7 = vpop.f32.mrf.mxu1  ;;  %2352 = vmax.xlane.f32.xlu2 %v8239_v55 }
 0x3f8   :  { %2354 = vmax.xlane.f32.xlu1 %v8249_v7 }
 0x3fa   :  { %v7210_v10 = vpop.trf.xlu0 }
 0x3fe   :  { %v8253_v59 = vpop.f32.mrf.mxu0 }
 0x3ff   :  { %v8255_v38 = vpop.f32.mrf.mxu1  ;;  %2153 = vmax.xlane.f32.xlu2 %v8247_v52 }
 0x400   :  { %2155 = vmax.xlane.f32.xlu1 %v8253_v59 }
 0x401   :  { %2859 = vmatmul.bf16.gmra.mxu0 %v7208_v24 }
 0x402   :  { %3060 = vmatmul.bf16.gmra.mxu1 %v8017_v63  ;;  %v8274_v24 = vpop.trf.xlu0 }
 0x403   :  { %9812 = vst [vmem:[#allocation38_spill] sm:$0xff] %v8274_v24 }
 0x406   :  { %v8262_v30 = vpop.f32.mrf.mxu0 }
 0x407   :  { %v8264_v15 = vpop.f32.mrf.mxu1  ;;  %2356 = vmax.xlane.f32.xlu2 %v8255_v38 }
 0x408   :  { %2358 = vmax.xlane.f32.xlu1 %v8264_v15 }
 0x40a   :  { %v7212_v1 = vpop.trf.xlu0 }
 0x40e   :  { %v8268_v5 = vpop.f32.mrf.mxu0 }
 0x40f   :  { %v8270_v53 = vpop.f32.mrf.mxu1  ;;  %2157 = vmax.xlane.f32.xlu2 %v8262_v30 }
 0x411   :  { %2864 = vmatmul.bf16.gmra.mxu0 %v7210_v10 }
 0x412   :  { %3065 = vmatmul.bf16.gmra.mxu1 %v8023_v43 }
 0x416   :  { %v8276_v63 = vpop.f32.mrf.mxu0 }
 0x417   :  { %v8278_v11 = vpop.f32.mrf.mxu1  ;;  %2159 = vmax.xlane.f32.xlu2 %v8268_v5 }
 0x418   :  { %2362 = vmax.xlane.f32.xlu1 %v8278_v11 }
 0x41e   :  { %v8282_v2 = vpop.f32.mrf.mxu0 }
 0x41f   :  { %2360 = vmax.xlane.f32.xlu2 %v8270_v53  ;;  %v8287_v10 = vpop.f32.mrf.mxu1 }
 0x420   :  { %2163 = vmax.xlane.f32.xlu1 %v8282_v2 }
 0x421   :  { %2869 = vmatmul.bf16.gmra.mxu0 %v7212_v1 }
 0x422   :  { %3070 = vmatmul.bf16.gmra.mxu1 %v8029_v26  ;;  %v2136_v43 = vpop.xlane.xlu1 %2135 }
 0x423   :  { %v2167_v27 = vsub.f32 %v8125_v8, %v2136_v43 }
 0x425   :  { %v2183_v24 = vmul.f32 1.442695, %v2167_v27 }
 0x426   :  { %v8290_v44 = vpop.f32.mrf.mxu0 }
 0x427   :  { %7214 = vpow2.f32 %v2183_v24  ;;  %2161 = vmax.xlane.f32.xlu2 %v8276_v63  ;;  %v8298_v23 = vpop.f32.mrf.mxu1 }
 0x428   :  { %2165 = vmax.xlane.f32.xlu1 %v8290_v44 }
 0x42a   :  { %v2337_v21 = vpop.xlane.xlu1 %2336  ;;  %v2138_v0 = vpop.xlane.xlu2 %2137 }
 0x42b   :  { %v2368_v61 = vsub.f32 %v8127_v35, %v2337_v21  ;;  %v2168_v1 = vsub.f32 %v8138_v28, %v2138_v0 }
 0x42d   :  { %v8296_v26 = vpop.eup %7214  ;;  %v2384_v40 = vmul.f32 1.442695, %v2368_v61  ;;  %v2185_v8 = vmul.f32 1.442695, %v2168_v1 }
 0x42e   :  { %9813 = vst [vmem:[#allocation39_spill] sm:$0xff] %v8296_v26  ;;  %v8300_v27 = vpop.f32.mrf.mxu0 }
 0x42f   :  { %7216 = vpow2.f32 %v2384_v40  ;;  %2215 = vadd.xlane.f32.xlu2 %v8296_v26 }
 0x430   :  { %7218 = vpow2.f32 %v2185_v8  ;;  %v8314_v8 = vpop.f32.mrf.mxu1 }
 0x431   :  { %7166 = vmatmul.lmr.bf16.vlgmr.msra.gmra.16.mxu0 }
 0x432   :  { %3775 = vmatmul.bf16.vlgmr.msrb.gmra.mxu1 %v8002_v33  ;;  %4306 = vmatpush.bf16.msra.mxu0 %v8132_v50  ;;  %v2339_v35 = vpop.xlane.xlu2 %2338  ;;  %v2140_v21 = vpop.xlane.xlu1 %2139 }
 0x433   :  { %v2369_v0 = vsub.f32 %v8140_v34, %v2339_v35  ;;  %v2169_v28 = vsub.f32 %v8152_v49, %v2140_v21 }
 0x435   :  { %v8307_v24 = vpop.eup %7216  ;;  %v2386_v61 = vmul.f32 1.442695, %v2369_v0  ;;  %v2187_v43 = vmul.f32 1.442695, %v2169_v28 }
 0x436   :  { %v8309_v1 = vpop.eup %7218  ;;  %4307 = vmatpush.bf16.msra.mxu0 %v8144_v51  ;;  %v8312_v40 = vpop.f32.mrf.mxu0 }
 0x437   :  { %9814 = vst [vmem:[#allocation40_spill] sm:$0xff] %v8309_v1  ;;  %7220 = vpow2.f32 %v2386_v61  ;;  %2217 = vadd.xlane.f32.xlu1 %v8309_v1  ;;  %2416 = vadd.xlane.f32.xlu2 %v8307_v24 }
 0x438   :  { %7222 = vpow2.f32 %v2187_v43 }
 0x439   :  { %7167 = vmatmul.lmr.bf16.gmra.16.mxu0 }
 0x43a   :  { %4308 = vmatpush.bf16.msra.mxu0 %v8158_v12  ;;  %v2341_v33 = vpop.xlane.xlu1 %2340  ;;  %v2142_v50 = vpop.xlane.xlu2 %2141 }
 0x43b   :  { %v2370_v34 = vsub.f32 %v8154_v37, %v2341_v33  ;;  %v2170_v49 = vsub.f32 %v8169_v29, %v2142_v50  ;;  %v8330_v12 = vpop.f32.mrf.mxu1 }
 0x43d   :  { %v8321_v51 = vpop.eup %7220  ;;  %v2388_v35 = vmul.f32 1.442695, %v2370_v34  ;;  %v2189_v21 = vmul.f32 1.442695, %v2170_v49 }
 0x43e   :  { %v8323_v0 = vpop.eup %7222  ;;  %4309 = vmatpush.bf16.msra.mxu0 %v8175_v16  ;;  %v8326_v28 = vpop.f32.mrf.mxu0 }
 0x43f   :  { %9815 = vst [vmem:[#allocation41_spill] sm:$0xff] %v8323_v0  ;;  %7224 = vpow2.f32 %v2388_v35  ;;  %2418 = vadd.xlane.f32.xlu1 %v8321_v51  ;;  %2219 = vadd.xlane.f32.xlu2 %v8323_v0 }
 0x440   :  { %7226 = vpow2.f32 %v2189_v21 }
 0x441   :  { %7168 = vmatmul.lmr.bf16.gmra.16.mxu0 }
 0x442   :  { %3780 = vmatmul.bf16.gmra.mxu1 %v7999_v22  ;;  %4310 = vmatpush.bf16.msra.mxu0 %v8189_v31  ;;  %v2343_v37 = vpop.xlane.xlu2 %2342  ;;  %v2144_v29 = vpop.xlane.xlu1 %2143 }
 0x443   :  { %v2371_v61 = vsub.f32 %v8171_v3, %v2343_v37  ;;  %v2171_v16 = vsub.f32 %v8183_v9, %v2144_v29  ;;  %v8347_v31 = vpop.f32.mrf.mxu1 }
 0x445   :  { %v8336_v43 = vpop.eup %7224  ;;  %v2390_v33 = vmul.f32 1.442695, %v2371_v61  ;;  %v2191_v50 = vmul.f32 1.442695, %v2171_v16 }
 0x446   :  { %v8338_v34 = vpop.eup %7226  ;;  %4311 = vmatpush.bf16.msra.mxu0 %v8204_v25  ;;  %v8341_v49 = vpop.f32.mrf.mxu0 }
 0x447   :  { %9816 = vst [vmem:[#allocation42_spill] sm:$0xff] %v8338_v34  ;;  %7228 = vpow2.f32 %v2390_v33  ;;  %2221 = vadd.xlane.f32.xlu1 %v8338_v34  ;;  %2420 = vadd.xlane.f32.xlu2 %v8336_v43 }
 0x448   :  { %7230 = vpow2.f32 %v2191_v50 }
 0x449   :  { %7169 = vmatmul.lmr.bf16.gmra.16.mxu0 }
 0x44a   :  { %4312 = vmatpush.bf16.msra.mxu0 %v8216_v54  ;;  %v2345_v22 = vpop.xlane.xlu2 %2344 }
 0x44b   :  { %v2347_v3 = vpop.xlane.xlu1 %2346  ;;  %v2372_v9 = vsub.f32 %v8185_v47, %v2345_v22  ;;  %v8362_v33 = vpop.f32.mrf.mxu1 }
 0x44c   :  { %v2373_v50 = vsub.f32 %v8198_v58, %v2347_v3 }
 0x44d   :  { %v8349_v35 = vpop.eup %7228  ;;  %v2392_v25 = vmul.f32 1.442695, %v2372_v9 }
 0x44e   :  { %v8351_v21 = vpop.eup %7230  ;;  %4313 = vmatpush.bf16.msra.mxu0 %v8229_v45  ;;  %v8354_v37 = vpop.f32.mrf.mxu0  ;;  %v2394_v22 = vmul.f32 1.442695, %v2373_v50 }
 0x44f   :  { %9817 = vst [vmem:[#allocation43_spill] sm:$0xff] %v8351_v21  ;;  %7232 = vpow2.f32 %v2392_v25  ;;  %2422 = vadd.xlane.f32.xlu1 %v8349_v35  ;;  %2223 = vadd.xlane.f32.xlu0 %v8351_v21 }
 0x450   :  { %9818 = vst [vmem:[#allocation44_spill] sm:$0xff] %v8354_v37 }
 0x451   :  { %7170 = vmatmul.lmr.bf16.gmra.16.mxu0 }
 0x452   :  { %3785 = vmatmul.bf16.gmra.mxu1 %v7996_v13  ;;  %v2146_v47 = vpop.xlane.xlu2 %2145 }
 0x453   :  { %v2172_v54 = vsub.f32 %v8196_v57, %v2146_v47  ;;  %v2148_v29 = vpop.xlane.xlu1 %2147  ;;  %v8375_v47 = vpop.f32.mrf.mxu1 }
 0x454   :  { %9822 = vst [vmem:[#allocation48_spill] sm:$0xff] %v8375_v47 }
 0x455   :  { %v8360_v61 = vpop.eup %7232  ;;  %v2193_v16 = vmul.f32 1.442695, %v2172_v54 }
 0x456   :  { %2424 = vadd.xlane.f32.xlu2 %v8360_v61  ;;  %v8365_v45 = vpop.f32.mrf.mxu0 }
 0x457   :  { %9819 = vst [vmem:[#allocation45_spill] sm:$0xff] %v8365_v45  ;;  %7234 = vpow2.f32 %v2193_v16  ;;  %2883 = vmax.xlane.f32.xlu0 %v8354_v37  ;;  %v2173_v16 = vsub.f32 %v8210_v19, %v2148_v29 }
 0x458   :  { %7236 = vpow2.f32 %v2394_v22 }
 0x459   :  { %7171 = vmatmul.lmr.bf16.gmra.16.mxu0 }
 0x45a   :  { %v2349_v13 = vpop.xlane.xlu2 %2348 }
 0x45b   :  { %v2351_v57 = vpop.xlane.xlu1 %2350  ;;  %v8387_v1 = vpop.f32.mrf.mxu1  ;;  %v2374_v29 = vsub.f32 %v8212_v56, %v2349_v13 }
 0x45c   :  { %v2375_v26 = vsub.f32 %v8225_v42, %v2351_v57  ;;  %9823 = vst [vmem:[#allocation49_spill] sm:$0xff] %v8387_v1 }
 0x45d   :  { %v8369_v9 = vpop.eup %7234 }
 0x45e   :  { %9820 = vst [vmem:[#allocation46_spill] sm:$0xff] %v8369_v9  ;;  %2225 = vadd.xlane.f32.xlu1 %v8369_v9  ;;  %v8372_v25 = vpop.f32.mrf.mxu0  ;;  %v8379_v54 = vpop.eup %7236 }
 0x45f   :  { %9821 = vst [vmem:[#allocation47_spill] sm:$0xff] %v8372_v25  ;;  %2887 = vmax.xlane.f32.xlu2 %v8372_v25 }
 0x461   :  { %7172 = vmatmul.lmr.bf16.gmra.16.mxu0 }
 0x462   :  { %3790 = vmatmul.bf16.gmra.mxu1 %v7987_v60  ;;  %v2150_v58 = vpop.xlane.xlu2 %2149  ;;  %v2195_v60 = vmul.f32 1.442695, %v2173_v16 }
 0x463   :  { %v2174_v3 = vsub.f32 %v8223_v20, %v2150_v58  ;;  %v2152_v37 = vpop.xlane.xlu1 %2151  ;;  %v2398_v20 = vmul.f32 1.442695, %v2375_v26 }
 0x464   :  { %v2175_v56 = vsub.f32 %v8237_v6, %v2152_v37 }
 0x465   :  { %v2197_v50 = vmul.f32 1.442695, %v2174_v3 }
 0x466   :  { %2426 = vadd.xlane.f32.xlu1 %v8379_v54  ;;  %v8384_v22 = vpop.f32.mrf.mxu0  ;;  %v2199_v13 = vmul.f32 1.442695, %v2175_v56 }
 0x467   :  { %7238 = vpow2.f32 %v2197_v50  ;;  %2889 = vmax.xlane.f32.xlu0 %v8384_v22  ;;  %v8405_v50 = vpop.f32.mrf.mxu1 }
 0x468   :  { %7240 = vpow2.f32 %v2195_v60 }
 0x469   :  { %7173 = vmatmul.lmr.bf16.gmra.16.mxu0  ;;  %7242 = vpow2.f32 %v2398_v20 }
 0x46a   :  { %v2353_v58 = vpop.xlane.xlu2 %2352 }
 0x46b   :  { %v2376_v25 = vsub.f32 %v8239_v55, %v2353_v58  ;;  %v8396_v57 = vpop.xlane.xlu1 %2354 }
 0x46d   :  { %v8390_v19 = vpop.eup %7238  ;;  %v2400_v42 = vmul.f32 1.442695, %v2376_v25  ;;  %v2396_v25 = vmul.f32 1.442695, %v2374_v29 }
 0x46e   :  { %9824 = vst [vmem:[#allocation50_spill] sm:$0xff] %v8390_v19  ;;  %2885 = vmax.xlane.f32.xlu1 %v8365_v45  ;;  %2229 = vadd.xlane.f32.xlu2 %v8390_v19  ;;  %v8399_v55 = vpop.f32.mrf.mxu0  ;;  %v8401_v3 = vpop.eup %7240 }
 0x46f   :  { %7244 = vpow2.f32 %v2400_v42  ;;  %2366 = vmax.xlane.f32.xlu0 %v8298_v23  ;;  %9825 = vst [vmem:[#allocation51_spill] sm:$0xff] %v8399_v55  ;;  %v8403_v16 = vpop.eup %7242  ;;  %v8420_v6 = vpop.f32.mrf.mxu1 }
 0x470   :  { %7246 = vpow2.f32 %v2396_v25  ;;  %9826 = vst [vmem:[#allocation52_spill] sm:$0xff] %v8420_v6 }
 0x471   :  { %7174 = vmatmul.lmr.bf16.gmra.16.mxu0  ;;  %7248 = vpow2.f32 %v2199_v13 }
 0x472   :  { %3795 = vmatmul.bf16.gmra.mxu1 %v7984_v48  ;;  %v2154_v26 = vpop.xlane.xlu2 %2153 }
 0x473   :  { %v2176_v48 = vsub.f32 %v8247_v52, %v2154_v26  ;;  %v2156_v42 = vpop.xlane.xlu1 %2155 }
 0x474   :  { %v2177_v25 = vsub.f32 %v8253_v59, %v2156_v42 }
 0x475   :  { %v8407_v60 = vpop.eup %7244  ;;  %v2201_v58 = vmul.f32 1.442695, %v2176_v48 }
 0x476   :  { %2227 = vadd.xlane.f32.xlu1 %v8401_v3  ;;  %2430 = vadd.xlane.f32.xlu2 %v8403_v16  ;;  %v8416_v29 = vpop.f32.mrf.mxu0  ;;  %v8418_v0 = vpop.eup %7246 }
 0x477   :  { %2432 = vadd.xlane.f32.xlu0 %v8407_v60  ;;  %7250 = vpow2.f32 %v2201_v58  ;;  %v8426_v37 = vpop.eup %7248  ;;  %v8438_v58 = vpop.f32.mrf.mxu1 }
 0x478   :  { %9828 = vst [vmem:[#allocation54_spill] sm:$0xff] %v8438_v58 }
 0x479   :  { %7175 = vmatmul.lmr.bf16.gmra.16.mxu0 }
 0x47a   :  { %v8414_v20 = vpop.xlane.xlu2 %2356 }
 0x47b   :  { %v8431_v56 = vpop.xlane.xlu1 %2358 }
 0x47d   :  { %v8428_v26 = vpop.eup %7250 }
 0x47e   :  { %2428 = vadd.xlane.f32.xlu1 %v8418_v0  ;;  %2891 = vmax.xlane.f32.xlu2 %v8399_v55  ;;  %v8433_v48 = vpop.f32.mrf.mxu0 }
 0x47f   :  { %3078 = vmax.xlane.f32.xlu0 %v8330_v12  ;;  %9827 = vst [vmem:[#allocation53_spill] sm:$0xff] %v8433_v48 }
 0x481   :  { %7176 = vmatmul.lmr.bf16.gmra.16.mxu0 }
 0x482   :  { %3800 = vmatmul.bf16.gmra.mxu1 %v7981_v36  ;;  %v2158_v52 = vpop.xlane.xlu2 %2157  ;;  %v2203_v36 = vmul.f32 1.442695, %v2177_v25 }
 0x483   :  { %v2178_v13 = vsub.f32 %v8262_v30, %v2158_v52  ;;  %v8447_v30 = vpop.f32.mrf.mxu1 }
 0x484   :  { %7252 = vpow2.f32 %v2203_v36  ;;  %9830 = vst [vmem:[#allocation56_spill] sm:$0xff] %v8447_v30 }
 0x485   :  { %v2205_v34 = vmul.f32 1.442695, %v2178_v13 }
 0x486   :  { %2231 = vadd.xlane.f32.xlu1 %v8426_v37  ;;  %2233 = vadd.xlane.f32.xlu2 %v8428_v26  ;;  %v8444_v59 = vpop.f32.mrf.mxu0 }
 0x487   :  { %7254 = vpow2.f32 %v2205_v34  ;;  %9829 = vst [vmem:[#allocation55_spill] sm:$0xff] %v8444_v59 }
 0x489   :  { %7177 = vmatmul.lmr.bf16.gmra.16.mxu0 }
 0x48a   :  { %v2160_v55 = vpop.xlane.xlu2 %2159  ;;  %v8450_v25 = vpop.eup %7252 }
 0x48b   :  { %v8440_v45 = vpop.xlane.xlu1 %2362  ;;  %v2179_v21 = vsub.f32 %v8268_v5, %v2160_v55 }
 0x48d   :  { %v8452_v13 = vpop.eup %7254 }
 0x48e   :  { %2893 = vmax.xlane.f32.xlu1 %v8416_v29  ;;  %2895 = vmax.xlane.f32.xlu2 %v8433_v48  ;;  %v8457_v9 = vpop.f32.mrf.mxu0 }
 0x48f   :  { %9831 = vst [vmem:[#allocation57_spill] sm:$0xff] %v8457_v9 }
 0x491   :  { %7178 = vmatmul.lmr.bf16.gmra.16.mxu0 }
 0x492   :  { %3805 = vmatmul.bf16.gmra.mxu1 %v7978_v32  ;;  %v2361_v42 = vpop.xlane.xlu2 %2360  ;;  %v2207_v32 = vmul.f32 1.442695, %v2179_v21 }
 0x493   :  { %v2380_v52 = vsub.f32 %v8270_v53, %v2361_v42  ;;  %v2164_v34 = vpop.xlane.xlu1 %2163  ;;  %v8460_v42 = vpop.f32.mrf.mxu1 }
 0x495   :  { %v2408_v36 = vmul.f32 1.442695, %v2380_v52 }
 0x496   :  { %2235 = vadd.xlane.f32.xlu1 %v8450_v25  ;;  %2237 = vadd.xlane.f32.xlu2 %v8452_v13  ;;  %v8472_v55 = vpop.f32.mrf.mxu0 }
 0x497   :  { %7256 = vpow2.f32 %v2408_v36  ;;  %9833 = vst [vmem:[#allocation59_spill] sm:$0xff] %v8472_v55 }
 0x498   :  { %7258 = vpow2.f32 %v2207_v32  ;;  %v2181_v32 = vsub.f32 %v8282_v2, %v2164_v34 }
 0x499   :  { %7179 = vmatmul.lmr.bf16.gmra.16.mxu0 }
 0x49a   :  { %v2162_v48 = vpop.xlane.xlu2 %2161 }
 0x49b   :  { %v2180_v53 = vsub.f32 %v8276_v63, %v2162_v48  ;;  %v2166_v5 = vpop.xlane.xlu1 %2165  ;;  %v8476_v36 = vpop.f32.mrf.mxu1 }
 0x49c   :  { %9834 = vst [vmem:[#allocation60_spill] sm:$0xff] %v8476_v36 }
 0x49d   :  { %v8462_v19 = vpop.eup %7256  ;;  %v2209_v52 = vmul.f32 1.442695, %v2180_v53 }
 0x49e   :  { %9832 = vst [vmem:[#allocation58_spill] sm:$0xff] %v8462_v19  ;;  %2440 = vadd.xlane.f32.xlu0 %v8462_v19  ;;  %2897 = vmax.xlane.f32.xlu1 %v8444_v59  ;;  %v8470_v63 = vpop.eup %7258  ;;  %v2211_v59 = vmul.f32 1.442695, %v2181_v32 }
 0x49f   :  { %7260 = vpow2.f32 %v2209_v52  ;;  %2899 = vmax.xlane.f32.xlu2 %v8457_v9  ;;  %v8485_v9 = vpop.f32.mrf.mxu0 }
 0x4a0   :  { %9835 = vst [vmem:[#allocation61_spill] sm:$0xff] %v8485_v9  ;;  %7262 = vpow2.f32 %v2211_v59 }
 0x4a1   :  { %7180 = vmatmul.lmr.bf16.gmra.16.mxu0 }
 0x4a2   :  { %3810 = vmatmul.bf16.gmra.mxu1 %v7969_v14  ;;  %v8468_v21 = vpop.xlane.xlu2 %2215  ;;  %v2182_v14 = vsub.f32 %v8290_v44, %v2166_v5 }
 0x4a3   :  { %v8490_v2 = vpop.f32.mrf.mxu1 }
 0x4a4   :  { %v2213_v19 = vmul.f32 1.442695, %v2182_v14  ;;  %9836 = vst [vmem:[#allocation62_spill] sm:$0xff] %v8490_v2  ;;  %v7031_v2 = vld [vmem:[#allocation2 + $0x278] sm:$0xf0] }
 0x4a5   :  { %v8474_v48 = vpop.eup %7260 }
 0x4a6   :  { %3084 = vmax.xlane.f32.xlu0 %v8375_v47  ;;  %2239 = vadd.xlane.f32.xlu1 %v8470_v63  ;;  %7264 = vpow2.f32 %v2213_v19  ;;  %v8496_v5 = vpop.eup %7262 }
 0x4a7   :  { %2241 = vadd.xlane.f32.xlu2 %v8474_v48 }
 0x4a9   :  { %7181 = vmatmul.lmr.bf16.gmra.16.mxu0 }
 0x4aa   :  { %v8483_v53 = vpop.xlane.xlu1 %2217  ;;  %v2417_v52 = vpop.xlane.xlu2 %2416 }
 0x4ab   :  { %7266 = vrcp.f32 %v2417_v52 }
 0x4ac   :  { %v8498_v32 = vpop.eup %7264 }
 0x4ae   :  { %3090 = vmax.xlane.f32.xlu0 %v8420_v6  ;;  %2901 = vmax.xlane.f32.xlu1 %v8472_v55  ;;  %v6510_v55 = vld [vmem:[#allocation2 + $0x274] sm:$0xf] }
 0x4af   :  { %2903 = vmax.xlane.f32.xlu2 %v8485_v9  ;;  %v8511_v9 = vor.u32 %v7031_v2, %v6510_v55 }
 0x4b1   :  { %4314 = vmatmul.bf16.vlgmr.msra.gmra.mxu0 %v8122_v4  ;;  %v7267_v59 = vpop.eup %7266  ;;  %v8505_v4 = vpop.f32.mrf.mxu1  ;;  %9838 = vst [vmem:[#allocation64_spill] sm:$0xff] %v8511_v9 }
 0x4b2   :  { %4515 = vmatmul.bf16.vlgmr.msra.gmra.mxu1 %v7955_v41  ;;  %v2419_v44 = vpop.xlane.xlu1 %2418  ;;  %v8494_v34 = vpop.xlane.xlu2 %2219  ;;  %v2377_v41 = vsub.f32 %v8249_v7, %v8396_v57  ;;  %9837 = vst [vmem:[#allocation63_spill] sm:$0xff] %v8505_v4  ;;  %v2464_v14 = vmul.f32 %v7267_v59, %v8307_v24 }
 0x4b3   :  { %7268 = vrcp.f32 %v2419_v44  ;;  %v8514_v7 = vpop.trf.xlu0 }
 0x4b4   :  { %v2402_v6 = vmul.f32 1.442695, %v2377_v41 }
 0x4b6   :  { %3092 = vmax.xlane.f32.xlu0 %v8438_v58  ;;  %2243 = vadd.xlane.f32.xlu1 %v8496_v5  ;;  %7270 = vpow2.f32 %v2402_v6 }
 0x4b7   :  { %2245 = vadd.xlane.f32.xlu2 %v8498_v32 }
 0x4b9   :  { %v7269_v19 = vpop.eup %7268  ;;  %v8521_v57 = vpop.f32.mrf.mxu1 }
 0x4ba   :  { %v2465_v52 = vmul.f32 %v7269_v19, %v8321_v51  ;;  %v8509_v44 = vpop.xlane.xlu1 %2221  ;;  %v2421_v47 = vpop.xlane.xlu2 %2420  ;;  %v7030_v51 = vld [vmem:[#allocation2 + $0x268] sm:$0xf0]  ;;  %9839 = vst [vmem:[#allocation65_spill] sm:$0xff] %v8521_v57  ;;  %v7029_v19 = vld [vmem:[#allocation2 + $0x258] sm:$0xf0] }
 0x4bb   :  { %7272 = vrcp.f32 %v2421_v47 }
 0x4bc   :  { %v2480_v58 = vpack.c.bf16 %v2465_v52, %v2464_v14  ;;  %v8525_v2 = vpop.eup %7270 }
 0x4be   :  { %2544 = vmatmul.bf16.vlgmr.msrb.gmra.mxu2 %v2480_v58  ;;  %3098 = vmax.xlane.f32.xlu0 %v8476_v36  ;;  %v6506_v58 = vld [vmem:[#allocation2 + $0x264] sm:$0xf] }
 0x4bf   :  { %4016 = vmatpush.bf16.xpose.msrb.mxu2 %v8511_v9  ;;  %2879 = vmax.xlane.f32.xlu1 %v8326_v28  ;;  %v8523_v55 = vor.u32 %v7030_v51, %v6506_v58 }
 0x4c0   :  { %2364 = vmax.xlane.f32.xlu2 %v8287_v10 }
 0x4c1   :  { %4319 = vmatmul.bf16.gmra.mxu0 %v8130_v18  ;;  %9840 = vst [vmem:[#allocation66_spill] sm:$0xff] %v8523_v55  ;;  %v7273_v59 = vpop.eup %7272  ;;  %v8538_v58 = vpop.f32.mrf.mxu1 }
 0x4c2   :  { %4520 = vmatmul.bf16.gmra.mxu1 %v7973_v17  ;;  %v2423_v24 = vpop.xlane.xlu1 %2422  ;;  %v2378_v17 = vsub.f32 %v8255_v38, %v8414_v20  ;;  %v8532_v18 = vpop.xlane.xlu0 %2223  ;;  %v2466_v6 = vmul.f32 %v7273_v59, %v8336_v43  ;;  %9842 = vst [vmem:[#allocation68_spill] sm:$0xff] %v8538_v58  ;;  %v2379_v43 = vsub.f32 %v8264_v15, %v8431_v56  ;;  %v7028_v59 = vld [vmem:[#allocation2 + $0x248] sm:$0xf0] }
 0x4c3   :  { %7274 = vrcp.f32 %v2423_v24  ;;  %v6502_v24 = vld [vmem:[#allocation2 + $0x254] sm:$0xf]  ;;  %v8542_v38 = vpop.f32.mrf.mxu0 }
 0x4c4   :  { %v2404_v14 = vmul.f32 1.442695, %v2378_v17  ;;  %v8536_v51 = vor.u32 %v7029_v19, %v6502_v24  ;;  %v6498_v17 = vld [vmem:[#allocation2 + $0x244] sm:$0xf] }
 0x4c6   :  { %9841 = vst [vmem:[#allocation67_spill] sm:$0xff] %v8536_v51  ;;  %7276 = vpow2.f32 %v2404_v14 }
 0x4c7   :  { %4017 = vmatpush.bf16.xpose.msrb.mxu2 %v8523_v55  ;;  %2434 = vadd.xlane.f32.xlu1 %v8525_v2  ;;  %v7026_v55 = vld [vmem:[#allocation2 + $0x228] sm:$0xf0] }
 0x4c8   :  { %2881 = vmax.xlane.f32.xlu2 %v8341_v49 }
 0x4c9   :  { %v7275_v47 = vpop.eup %7274  ;;  %v2425_v9 = vpop.xlane.xlu2 %2424 }
 0x4ca   :  { %v2467_v41 = vmul.f32 %v7275_v47, %v8349_v35  ;;  %v8551_v20 = vpop.xlane.xlu0 %2883  ;;  %v2406_v47 = vmul.f32 1.442695, %v2379_v43  ;;  %v8561_v15 = vpop.f32.mrf.mxu1  ;;  %7278 = vrcp.f32 %v2425_v9  ;;  %v6494_v43 = vld [vmem:[#allocation2 + $0x234] sm:$0xf] }
 0x4cb   :  { %9844 = vst [vmem:[#allocation70_spill] sm:$0xff] %v8561_v15  ;;  %v8566_v19 = vpop.f32.mrf.mxu0 }
 0x4cc   :  { %v2481_v52 = vpack.c.bf16 %v2467_v41, %v2466_v6  ;;  %v8553_v6 = vor.u32 %v7028_v59, %v6498_v17  ;;  %v8555_v41 = vpop.eup %7276  ;;  %7280 = vpow2.f32 %v2406_v47  ;;  %9845 = vst [vmem:[#allocation71_spill] sm:$0xff] %v8566_v19 }
 0x4ce   :  { %2549 = vmatmul.bf16.gmra.mxu2 %v2481_v52  ;;  %9843 = vst [vmem:[#allocation69_spill] sm:$0xff] %v8553_v6  ;;  %v7027_v52 = vld [vmem:[#allocation2 + $0x238] sm:$0xf0] }
 0x4cf   :  { %4018 = vmatpush.bf16.xpose.msrb.mxu2 %v8536_v51  ;;  %2875 = vmax.xlane.f32.xlu1 %v8300_v27  ;;  %v8570_v59 = vor.u32 %v7027_v52, %v6494_v43  ;;  %v9847_v52 = vld [vmem:[#allocation31_spill] sm:$0xff] }
 0x4d0   :  { %2877 = vmax.xlane.f32.xlu2 %v8312_v40 }
 0x4d1   :  { %v8548_v35 = vpop.xlane.xlu1 %2225  ;;  %4324 = vmatmul.bf16.gmra.mxu0 %v8165_v39  ;;  %9846 = vst [vmem:[#allocation72_spill] sm:$0xff] %v8570_v59 }
 0x4d2   :  { %4525 = vmatmul.bf16.gmra.mxu1 %v7991_v62  ;;  %v2381_v62 = vsub.f32 %v8278_v11, %v8440_v45  ;;  %v8564_v56 = vpop.xlane.xlu2 %2887  ;;  %v7279_v11 = vpop.eup %7278 }
 0x4d3   :  { %v8572_v45 = vpop.eup %7280 }
 0x4d4   :  { %v2410_v24 = vmul.f32 1.442695, %v2381_v62  ;;  %v2468_v62 = vmul.f32 %v7279_v11, %v8360_v61  ;;  %v6486_v11 = vld [vmem:[#allocation2 + $0x214] sm:$0xf] }
 0x4d7   :  { %4019 = vmatpush.bf16.xpose.msrb.mxu2 %v8553_v6  ;;  %2436 = vadd.xlane.f32.xlu1 %v8555_v41 }
 0x4d8   :  { %3076 = vmax.xlane.f32.xlu2 %v8314_v8 }
 0x4d9   :  { %v2427_v39 = vpop.xlane.xlu1 %2426 }
 0x4da   :  { %7282 = vrcp.f32 %v2427_v39  ;;  %v8568_v14 = vpop.xlane.xlu0 %2889 }
 0x4db   :  { %7284 = vpow2.f32 %v2410_v24  ;;  %v8586_v24 = vpop.f32.mrf.mxu1 }
 0x4dc   :  { %9848 = vst [vmem:[#allocation31_spill] sm:$0xff] %v8586_v24 }
 0x4df   :  { %4020 = vmatpush.bf16.xpose.msrb.mxu2 %v8570_v59  ;;  %3080 = vmax.xlane.f32.xlu1 %v8347_v31  ;;  %v8588_v59 = vpop.f32.mrf.mxu0 }
 0x4e0   :  { %v7283_v9 = vpop.eup %7282  ;;  %2438 = vadd.xlane.f32.xlu2 %v8572_v45  ;;  %9849 = vst [vmem:[#allocation73_spill] sm:$0xff] %v8588_v59 }
 0x4e1   :  { %v8578_v17 = vpop.xlane.xlu1 %2885  ;;  %v8580_v47 = vpop.xlane.xlu2 %2229  ;;  %v2469_v39 = vmul.f32 %v7283_v9, %v8379_v54  ;;  %4329 = vmatmul.bf16.gmra.mxu0 %v9847_v52  ;;  %v7025_v54 = vld [vmem:[#allocation2 + $0x218] sm:$0xf0]  ;;  %v9856_v52 = vld [vmem:[#allocation35_spill] sm:$0xff] }
 0x4e2   :  { %4530 = vmatmul.bf16.gmra.mxu1 %v8007_v46  ;;  %v2367_v43 = vpop.xlane.xlu0 %2366  ;;  %v6490_v46 = vld [vmem:[#allocation2 + $0x224] sm:$0xf]  ;;  %v8592_v36 = vpop.eup %7284 }
 0x4e3   :  { %v2383_v51 = vsub.f32 %v8298_v23, %v2367_v43  ;;  %v2482_v6 = vpack.c.bf16 %v2469_v39, %v2468_v62  ;;  %v8590_v58 = vor.u32 %v7026_v55, %v6490_v46  ;;  %v8603_v55 = vpop.f32.mrf.mxu1  ;;  %v7024_v43 = vld [vmem:[#allocation2 + $0x208] sm:$0xf0]  ;;  %v6482_v46 = vld [vmem:[#allocation2 + $0x204] sm:$0xf] }
 0x4e4   :  { %9853 = vst [vmem:[#allocation77_spill] sm:$0xff] %v8603_v55 }
 0x4e5   :  { %v2414_v19 = vmul.f32 1.442695, %v2383_v51  ;;  %2554 = vmatmul.bf16.gmra.mxu2 %v2482_v6  ;;  %9850 = vst [vmem:[#allocation74_spill] sm:$0xff] %v8590_v58  ;;  %v8601_v51 = vor.u32 %v7025_v54, %v6486_v11  ;;  %v8614_v54 = vor.u32 %v7024_v43, %v6482_v46  ;;  %v9860_v43 = vld [vmem:[#allocation16_spill] sm:$0xff] }
 0x4e7   :  { %7286 = vpow2.f32 %v2414_v19  ;;  %4021 = vmatpush.bf16.xpose.msrb.mxu2 %v8590_v58  ;;  %2442 = vadd.xlane.f32.xlu1 %v8592_v36  ;;  %9852 = vst [vmem:[#allocation76_spill] sm:$0xff] %v8601_v51  ;;  %v8605_v6 = vpop.f32.mrf.mxu0  ;;  %v9855_v19 = vld [vmem:[#allocation15_spill] sm:$0xff] }
 0x4e8   :  { %3082 = vmax.xlane.f32.xlu2 %v8362_v33  ;;  %9854 = vst [vmem:[#allocation78_spill] sm:$0xff] %v8605_v6 }
 0x4e9   :  { %v8597_v23 = vpop.xlane.xlu1 %2227  ;;  %v2431_v61 = vpop.xlane.xlu2 %2430  ;;  %9857 = vst [vmem:[#allocation15_spill] sm:$0xff] %v8614_v54 }
 0x4ea   :  { %7288 = vrcp.f32 %v2431_v61 }
 0x4ed   :  { %v8599_v9 = vpop.eup %7286 }
 0x4ee   :  { %9851 = vst [vmem:[#allocation75_spill] sm:$0xff] %v8599_v9  ;;  %2446 = vadd.xlane.f32.xlu0 %v8599_v9 }
 0x4ef   :  { %4022 = vmatpush.bf16.xpose.msrb.mxu2 %v8601_v51  ;;  %3086 = vmax.xlane.f32.xlu1 %v8387_v1  ;;  %v8618_v51 = vpop.f32.mrf.mxu1  ;;  %v8620_v61 = vpop.f32.mrf.mxu0 }
 0x4f0   :  { %v7289_v11 = vpop.eup %7288  ;;  %9858 = vst [vmem:[#allocation35_spill] sm:$0xff] %v8618_v51  ;;  %v9861_v51 = vld [vmem:[#allocation37_spill] sm:$0xff] }
 0x4f1   :  { %v2429_v62 = vpop.xlane.xlu1 %2428  ;;  %v8611_v39 = vpop.xlane.xlu2 %2891  ;;  %4334 = vmatmul.bf16.gmra.mxu0 %v9856_v52  ;;  %9859 = vst [vmem:[#allocation79_spill] sm:$0xff] %v8620_v61 }
 0x4f2   :  { %4535 = vmatmul.bf16.gmra.mxu1 %v9855_v19  ;;  %7290 = vrcp.f32 %v2429_v62  ;;  %v2471_v62 = vmul.f32 %v7289_v11, %v8403_v16 }
 0x4f7   :  { %4023 = vmatpush.bf16.xpose.msrb.mxu2 %v8614_v54  ;;  %3094 = vmax.xlane.f32.xlu1 %v8447_v30  ;;  %v8633_v24 = vpop.f32.mrf.mxu1  ;;  %v8635_v30 = vpop.f32.mrf.mxu0 }
 0x4f8   :  { %v7291_v58 = vpop.eup %7290  ;;  %9862 = vst [vmem:[#allocation16_spill] sm:$0xff] %v8633_v24 }
 0x4f9   :  { %v2232_v19 = vpop.xlane.xlu1 %2231  ;;  %v8622_v55 = vpop.xlane.xlu2 %2233  ;;  %v2470_v52 = vmul.f32 %v7291_v58, %v8418_v0  ;;  %9863 = vst [vmem:[#allocation37_spill] sm:$0xff] %v8635_v30 }
 0x4fb   :  { %v2483_v6 = vpack.c.bf16 %v2471_v62, %v2470_v52  ;;  %v9868_v52 = vld [vmem:[#allocation38_spill] sm:$0xff] }
 0x4fd   :  { %2559 = vmatmul.bf16.gmra.mxu2 %v2483_v6  ;;  %v9866_v6 = vld [vmem:[#allocation17_spill] sm:$0xff] }
 0x4ff   :  { %2905 = vmax.xlane.f32.xlu1 %v8542_v38  ;;  %v8637_v58 = vpop.f32.mrf.mxu1  ;;  %v8639_v16 = vpop.f32.mrf.mxu0 }
 0x500   :  { %9864 = vst [vmem:[#allocation80_spill] sm:$0xff] %v8637_v58  ;;  %v9873_v58 = vld [vmem:[#allocation18_spill] sm:$0xff] }
 0x501   :  { %v8628_v46 = vpop.xlane.xlu1 %2893  ;;  %v8630_v54 = vpop.xlane.xlu2 %2895  ;;  %4339 = vmatmul.bf16.gmra.mxu0 %v9861_v51  ;;  %9865 = vst [vmem:[#allocation81_spill] sm:$0xff] %v8639_v16 }
 0x502   :  { %4540 = vmatmul.bf16.gmra.mxu1 %v9860_v43 }
 0x507   :  { %v8647_v43 = vpop.f32.mrf.mxu1  ;;  %v8649_v51 = vpop.f32.mrf.mxu0 }
 0x508   :  { %9869 = vst [vmem:[#allocation38_spill] sm:$0xff] %v8647_v43 }
 0x509   :  { %v2236_v15 = vpop.xlane.xlu1 %2235  ;;  %v2238_v0 = vpop.xlane.xlu2 %2237  ;;  %9870 = vst [vmem:[#allocation82_spill] sm:$0xff] %v8649_v51 }
 0x50f   :  { %v8651_v30 = vpop.f32.mrf.mxu1  ;;  %v8653_v59 = vpop.f32.mrf.mxu0 }
 0x510   :  { %9871 = vst [vmem:[#allocation83_spill] sm:$0xff] %v8651_v30 }
 0x511   :  { %v8642_v11 = vpop.xlane.xlu1 %2897  ;;  %4344 = vmatmul.bf16.gmra.mxu0 %v9868_v52  ;;  %9872 = vst [vmem:[#allocation84_spill] sm:$0xff] %v8653_v59 }
 0x512   :  { %4545 = vmatmul.bf16.gmra.mxu1 %v9866_v6  ;;  %9867 = vst [vmem:[#allocation17_spill] sm:$0xff] %v8642_v11  ;;  %v8645_v62 = vpop.xlane.xlu2 %2899  ;;  %v2433_v11 = vpop.xlane.xlu0 %2432 }
 0x519   :  { %v2240_v24 = vpop.xlane.xlu1 %2239 }
 0x51a   :  { %v2242_v9 = vpop.xlane.xlu2 %2241 }
 0x521   :  { %v8656_v16 = vpop.xlane.xlu1 %2901  ;;  %4349 = vmatmul.bf16.gmra.mxu0 %v8514_v7 }
 0x522   :  { %4550 = vmatmul.bf16.gmra.mxu1 %v9873_v58  ;;  %9874 = vst [vmem:[#allocation18_spill] sm:$0xff] %v8656_v16  ;;  %v8659_v6 = vpop.xlane.xlu2 %2903 }
 0x529   :  { %v2244_v52 = vpop.xlane.xlu1 %2243 }
 0x52a   :  { %7292 = vrcp.f32 %v2244_v52  ;;  %v2246_v61 = vpop.xlane.xlu2 %2245 }
 0x52b   :  { %7294 = vrcp.f32 %v2246_v61 }
 0x52c   :  { %7296 = vrcp.f32 %v2240_v24 }
 0x52d   :  { %7298 = vrcp.f32 %v2242_v9 }
 0x52e   :  { %7300 = vrcp.f32 %v2236_v15 }
 0x52f   :  { %7302 = vrcp.f32 %v2238_v0 }
 0x530   :  { %v7293_v43 = vpop.eup %7292 }
 0x531   :  { %v7295_v4 = vpop.eup %7294  ;;  %v2277_v30 = vmul.f32 %v7293_v43, %v8496_v5 }
 0x532   :  { %v8662_v57 = vpop.xlane.xlu1 %2879  ;;  %v2278_v58 = vmul.f32 %v7295_v4, %v8498_v32  ;;  %v7297_v51 = vpop.eup %7296 }
 0x533   :  { %v2365_v59 = vpop.xlane.xlu2 %2364  ;;  %v7299_v16 = vpop.eup %7298  ;;  %v2275_v24 = vmul.f32 %v7297_v51, %v8470_v63 }
 0x534   :  { %v2382_v7 = vsub.f32 %v8287_v10, %v2365_v59  ;;  %v2286_v1 = vpack.c.bf16 %v2278_v58, %v2277_v30  ;;  %v2276_v5 = vmul.f32 %v7299_v16, %v8474_v48  ;;  %v7301_v4 = vpop.eup %7300  ;;  %v3079_v51 = vpop.xlane.xlu0 %3078 }
 0x535   :  { %v7303_v10 = vpop.eup %7302 }
 0x536   :  { %v2412_v52 = vmul.f32 1.442695, %v2382_v7  ;;  %2585 = vmatpush.bf16.xpose.msrb.mxu3 %v2286_v1  ;;  %v2285_v61 = vpack.c.bf16 %v2276_v5, %v2275_v24  ;;  %v2273_v1 = vmul.f32 %v7301_v4, %v8450_v25  ;;  %v2274_v63 = vmul.f32 %v7303_v10, %v8452_v13 }
 0x537   :  { %v2914_v25 = vsub.f32 %v8384_v22, %v8568_v14 }
 0x538   :  { %7304 = vpow2.f32 %v2412_v52  ;;  %v2284_v7 = vpack.c.bf16 %v2274_v63, %v2273_v1 }
 0x539   :  { %7306 = vrcp.f32 %v2433_v11 }
 0x53a   :  { %v2435_v9 = vpop.xlane.xlu1 %2434 }
 0x53b   :  { %7308 = vrcp.f32 %v2435_v9  ;;  %v8668_v32 = vpop.xlane.xlu2 %2881 }
 0x53c   :  { %7310 = vrcp.f32 %v2232_v19 }
 0x53d   :  { %7312 = vrcp.f32 %v8622_v55 }
 0x53e   :  { %v8670_v30 = vpop.eup %7304  ;;  %2586 = vmatpush.bf16.xpose.msrb.mxu3 %v2285_v61  ;;  %7314 = vrcp.f32 %v8597_v23 }
 0x53f   :  { %v7307_v15 = vpop.eup %7306  ;;  %2444 = vadd.xlane.f32.xlu2 %v8670_v30 }
 0x540   :  { %v2472_v0 = vmul.f32 %v7307_v15, %v8407_v60  ;;  %v3109_v60 = vsub.f32 %v8330_v12, %v3079_v51  ;;  %v8691_v12 = vpop.f32.mrf.mxu0  ;;  %v9875_v15 = vld [vmem:[#allocation50_spill] sm:$0xff] }
 0x541   :  { %v7309_v48 = vpop.eup %7308 }
 0x542   :  { %v2876_v59 = vpop.xlane.xlu1 %2875  ;;  %v2473_v16 = vmul.f32 %v7309_v48, %v8525_v2  ;;  %v7311_v19 = vpop.eup %7310  ;;  %v2937_v2 = vmul.f32 1.442695, %v2914_v25  ;;  %v3126_v5 = vmul.f32 1.442695, %v3109_v60 }
 0x543   :  { %v2907_v11 = vsub.f32 %v8300_v27, %v2876_v59  ;;  %v2878_v43 = vpop.xlane.xlu2 %2877  ;;  %v7313_v55 = vpop.eup %7312  ;;  %v2271_v27 = vmul.f32 %v7311_v19, %v8426_v37 }
 0x544   :  { %v2484_v58 = vpack.c.bf16 %v2473_v16, %v2472_v0  ;;  %v2272_v13 = vmul.f32 %v7313_v55, %v8428_v26  ;;  %v7315_v22 = vpop.eup %7314  ;;  %v2908_v61 = vsub.f32 %v8312_v40, %v2878_v43  ;;  %v9876_v40 = vld [vmem:[#allocation53_spill] sm:$0xff]  ;;  %v9877_v43 = vld [vmem:[#allocation46_spill] sm:$0xff] }
 0x545   :  { %v2923_v52 = vmul.f32 1.442695, %v2907_v11  ;;  %v2917_v0 = vsub.f32 %v9876_v40, %v8630_v54 }
 0x546   :  { %2564 = vmatmul.bf16.gmra.mxu2 %v2484_v58  ;;  %2587 = vmatpush.bf16.xpose.msrb.mxu3 %v2284_v7  ;;  %v2283_v23 = vpack.c.bf16 %v2272_v13, %v2271_v27  ;;  %v9878_v7 = vld [vmem:[#allocation43_spill] sm:$0xff] }
 0x547   :  { %7316 = vpow2.f32 %v2923_v52  ;;  %3088 = vmax.xlane.f32.xlu2 %v8405_v50  ;;  %v2943_v51 = vmul.f32 1.442695, %v2917_v0  ;;  %v9884_v0 = vld [vmem:[#allocation40_spill] sm:$0xff] }
 0x548   :  { %7318 = vrcp.f32 %v8580_v47  ;;  %v2916_v47 = vsub.f32 %v8416_v29, %v8628_v46  ;;  %v8716_v11 = vpop.f32.mrf.mxu0 }
 0x549   :  { %7320 = vrcp.f32 %v8548_v35  ;;  %v2269_v35 = vmul.f32 %v7315_v22, %v8401_v3  ;;  %v2925_v3 = vmul.f32 1.442695, %v2908_v61 }
 0x54a   :  { %v2437_v24 = vpop.xlane.xlu1 %2436  ;;  %7322 = vpow2.f32 %v2937_v2  ;;  %v2941_v48 = vmul.f32 1.442695, %v2916_v47 }
 0x54b   :  { %v3077_v9 = vpop.xlane.xlu2 %3076  ;;  %7324 = vpow2.f32 %v3126_v5 }
 0x54c   :  { %v3108_v14 = vsub.f32 %v8314_v8, %v3077_v9  ;;  %v2910_v8 = vsub.f32 %v8341_v49, %v8668_v32 }
 0x54d   :  { %v8688_v4 = vpop.eup %7316 }
 0x54e   :  { %v3124_v37 = vmul.f32 1.442695, %v3108_v14  ;;  %2955 = vadd.xlane.f32.xlu0 %v8688_v4  ;;  %2588 = vmatpush.bf16.xpose.msrb.mxu3 %v2283_v23  ;;  %v7319_v26 = vpop.eup %7318  ;;  %v2929_v59 = vmul.f32 1.442695, %v2910_v8  ;;  %v9881_v23 = vld [vmem:[#allocation42_spill] sm:$0xff] }
 0x54f   :  { %3096 = vmax.xlane.f32.xlu2 %v8460_v42  ;;  %v2270_v1 = vmul.f32 %v7319_v26, %v9875_v15  ;;  %v7321_v63 = vpop.eup %7320 }
 0x550   :  { %7326 = vpow2.f32 %v3124_v37  ;;  %v8705_v46 = vpop.eup %7322  ;;  %v2268_v19 = vmul.f32 %v7321_v63, %v9877_v43  ;;  %v8743_v26 = vpop.f32.mrf.mxu0 }
 0x551   :  { %7328 = vrcp.f32 %v8532_v18  ;;  %v2282_v49 = vpack.c.bf16 %v2270_v1, %v2269_v35  ;;  %v8707_v32 = vpop.eup %7324  ;;  %v9882_v35 = vld [vmem:[#allocation41_spill] sm:$0xff] }
 0x552   :  { %7330 = vrcp.f32 %v2437_v24  ;;  %v8702_v10 = vpop.xlane.xlu1 %3080 }
 0x553   :  { %v2439_v29 = vpop.xlane.xlu2 %2438  ;;  %v3110_v47 = vsub.f32 %v8347_v31, %v8702_v10 }
 0x554   :  { %7332 = vrcp.f32 %v2439_v29 }
 0x555   :  { %7334 = vrcp.f32 %v8494_v34 }
 0x556   :  { %v8710_v18 = vpop.eup %7326  ;;  %7336 = vrcp.f32 %v8509_v44  ;;  %2969 = vadd.xlane.f32.xlu0 %v8705_v46  ;;  %2589 = vmatpush.bf16.xpose.msrb.mxu3 %v2282_v49  ;;  %v2909_v44 = vsub.f32 %v8326_v28, %v8662_v57 }
 0x557   :  { %v7329_v16 = vpop.eup %7328  ;;  %7338 = vpow2.f32 %v2941_v48  ;;  %3158 = vadd.xlane.f32.xlu2 %v8707_v32  ;;  %3156 = vadd.xlane.f32.xlu1 %v8710_v18 }
 0x558   :  { %v7331_v34 = vpop.eup %7330  ;;  %7340 = vpow2.f32 %v2929_v59  ;;  %v2267_v55 = vmul.f32 %v7329_v16, %v9878_v7  ;;  %v2927_v28 = vmul.f32 1.442695, %v2909_v44  ;;  %v3128_v59 = vmul.f32 1.442695, %v3110_v47  ;;  %v9888_v7 = vld [vmem:[#allocation58_spill] sm:$0xff]  ;;  %v9894_v47 = vld [vmem:[#allocation17_spill] sm:$0xff] }
 0x559   :  { %7342 = vpow2.f32 %v2925_v3  ;;  %v2474_v60 = vmul.f32 %v7331_v34, %v8555_v41  ;;  %v9883_v3 = vld [vmem:[#allocation47_spill] sm:$0xff]  ;;  %v9885_v34 = vld [vmem:[#allocation44_spill] sm:$0xff] }
 0x55a   :  { %v7333_v54 = vpop.eup %7332  ;;  %v2443_v58 = vpop.xlane.xlu1 %2442  ;;  %7344 = vrcp.f32 %v8468_v21  ;;  %v2281_v24 = vpack.c.bf16 %v2268_v19, %v2267_v55  ;;  %v9879_v21 = vld [vmem:[#allocation57_spill] sm:$0xff]  ;;  %v2913_v40 = vsub.f32 %v9883_v3, %v8564_v56  ;;  %v2911_v43 = vsub.f32 %v9885_v34, %v8551_v20  ;;  %v9889_v20 = vld [vmem:[#allocation51_spill] sm:$0xff] }
 0x55b   :  { %v7335_v52 = vpop.eup %7334  ;;  %v3083_v25 = vpop.xlane.xlu2 %3082  ;;  %v2475_v27 = vmul.f32 %v7333_v54, %v8572_v45  ;;  %7346 = vrcp.f32 %v8483_v53  ;;  %v9880_v53 = vld [vmem:[#allocation45_spill] sm:$0xff]  ;;  %v9886_v54 = vld [vmem:[#allocation39_spill] sm:$0xff] }
 0x55c   :  { %v7337_v13 = vpop.eup %7336  ;;  %v3111_v2 = vsub.f32 %v8362_v33, %v3083_v25  ;;  %7348 = vpow2.f32 %v2943_v51  ;;  %v2441_v45 = vpop.xlane.xlu0 %2440  ;;  %v2919_v33 = vsub.f32 %v9879_v21, %v8645_v62  ;;  %v2912_v14 = vsub.f32 %v9880_v53, %v8578_v17 }
 0x55d   :  { %v8728_v5 = vpop.eup %7338  ;;  %v2485_v57 = vpack.c.bf16 %v2475_v27, %v2474_v60  ;;  %7350 = vrcp.f32 %v2443_v58  ;;  %v2266_v37 = vmul.f32 %v7337_v13, %v9881_v23  ;;  %v2265_v61 = vmul.f32 %v7335_v52, %v9882_v35  ;;  %v8768_v58 = vpop.f32.mrf.mxu0 }
 0x55e   :  { %v8731_v9 = vpop.eup %7340  ;;  %v3130_v22 = vmul.f32 1.442695, %v3111_v2  ;;  %2973 = vadd.xlane.f32.xlu0 %v8728_v5  ;;  %2590 = vmatpush.bf16.xpose.msrb.mxu3 %v2281_v24  ;;  %v2947_v1 = vmul.f32 1.442695, %v2919_v33  ;;  %v2933_v63 = vmul.f32 1.442695, %v2912_v14  ;;  %v2915_v2 = vsub.f32 %v9889_v20, %v8611_v39 }
 0x55f   :  { %v8734_v41 = vpop.eup %7342  ;;  %2961 = vadd.xlane.f32.xlu2 %v8731_v9  ;;  %2569 = vmatmul.bf16.gmra.mxu2 %v2485_v57  ;;  %v2280_v48 = vpack.c.bf16 %v2266_v37, %v2265_v61  ;;  %9887 = vst [vmem:[#allocation50_spill] sm:$0xff] %v8768_v58  ;;  %v2935_v56 = vmul.f32 1.442695, %v2913_v40  ;;  %v2931_v60 = vmul.f32 1.442695, %v2911_v43  ;;  %v9891_v33 = vld [vmem:[#allocation26_spill] sm:$0xff] }
 0x560   :  { %7352 = vpow2.f32 %v3130_v22  ;;  %2957 = vadd.xlane.f32.xlu1 %v8734_v41  ;;  %v7345_v8 = vpop.eup %7344  ;;  %v2939_v57 = vmul.f32 1.442695, %v2915_v2  ;;  %v9892_v39 = vld [vmem:[#allocation48_spill] sm:$0xff]  ;;  %v9898_v40 = vld [vmem:[#allocation25_spill] sm:$0xff]  ;;  %v9904_v20 = vld [vmem:[#allocation82_spill] sm:$0xff] }
 0x561   :  { %7354 = vpow2.f32 %v2927_v28  ;;  %v7347_v15 = vpop.eup %7346  ;;  %v2263_v51 = vmul.f32 %v7345_v8, %v9886_v54  ;;  %v9895_v8 = vld [vmem:[#allocation55_spill] sm:$0xff]  ;;  %v9900_v54 = vld [vmem:[#allocation52_spill] sm:$0xff] }
 0x562   :  { %7356 = vrcp.f32 %v2441_v45  ;;  %v8747_v62 = vpop.xlane.xlu1 %3086  ;;  %v8750_v17 = vpop.eup %7348  ;;  %v2264_v16 = vmul.f32 %v7347_v15, %v9884_v0  ;;  %v2918_v35 = vsub.f32 %v9895_v8, %v9894_v47  ;;  %v9911_v47 = vld [vmem:[#allocation22_spill] sm:$0xff]  ;;  %v9912_v8 = vld [vmem:[#allocation73_spill] sm:$0xff] }
 0x563   :  { %v7351_v29 = vpop.eup %7350  ;;  %7358 = vpow2.f32 %v2947_v1 }
 0x564   :  { %7360 = vpow2.f32 %v2933_v63  ;;  %v2477_v19 = vmul.f32 %v7351_v29, %v8592_v36  ;;  %v2279_v52 = vpack.c.bf16 %v2264_v16, %v2263_v51  ;;  %v3085_v22 = vpop.xlane.xlu0 %3084  ;;  %v2945_v63 = vmul.f32 1.442695, %v2918_v35  ;;  %v9897_v29 = vld [vmem:[#allocation59_spill] sm:$0xff] }
 0x565   :  { %7362 = vpow2.f32 %v3128_v59  ;;  %v8783_v45 = vpop.f32.mrf.mxu0  ;;  %v3112_v23 = vsub.f32 %v9892_v39, %v3085_v22  ;;  %v9906_v22 = vld [vmem:[#allocation65_spill] sm:$0xff] }
 0x566   :  { %v8752_v49 = vpop.eup %7352  ;;  %2975 = vadd.xlane.f32.xlu0 %v8750_v17  ;;  %2591 = vmatpush.bf16.xpose.msrb.mxu3 %v2280_v48  ;;  %7364 = vpow2.f32 %v2935_v56  ;;  %9890 = vst [vmem:[#allocation53_spill] sm:$0xff] %v8783_v45 }
 0x567   :  { %v8755_v31 = vpop.eup %7354  ;;  %3162 = vadd.xlane.f32.xlu2 %v8752_v49  ;;  %7366 = vpow2.f32 %v2931_v60  ;;  %v3132_v61 = vmul.f32 1.442695, %v3112_v23  ;;  %v9902_v60 = vld [vmem:[#allocation24_spill] sm:$0xff]  ;;  %v9909_v23 = vld [vmem:[#allocation79_spill] sm:$0xff] }
 0x568   :  { %v7357_v10 = vpop.eup %7356  ;;  %2959 = vadd.xlane.f32.xlu1 %v8755_v31 }
 0x569   :  { %v2476_v55 = vmul.f32 %v7357_v10, %v9888_v7  ;;  %v8771_v25 = vpop.eup %7358  ;;  %v9901_v7 = vld [vmem:[#allocation49_spill] sm:$0xff] }
 0x56a   :  { %v8765_v44 = vpop.xlane.xlu1 %3094  ;;  %v8773_v13 = vpop.eup %7360 }
 0x56b   :  { %v2486_v27 = vpack.c.bf16 %v2477_v19, %v2476_v55  ;;  %v8776_v36 = vpop.eup %7362  ;;  %v3113_v55 = vsub.f32 %v9901_v7, %v8747_v62 }
 0x56c   :  { %v8786_v53 = vpop.eup %7364  ;;  %v3091_v43 = vpop.xlane.xlu0 %3090 }
 0x56d   :  { %v8789_v14 = vpop.eup %7366  ;;  %v8817_v34 = vpop.f32.mrf.mxu0  ;;  %v3115_v51 = vsub.f32 %v9900_v54, %v3091_v43 }
 0x56e   :  { %2979 = vadd.xlane.f32.xlu0 %v8771_v25  ;;  %2592 = vmatpush.bf16.xpose.msrb.mxu3 %v2279_v52  ;;  %9899 = vst [vmem:[#allocation46_spill] sm:$0xff] %v8817_v34  ;;  %v3134_v52 = vmul.f32 1.442695, %v3113_v55  ;;  %v9916_v55 = vld [vmem:[#allocation70_spill] sm:$0xff] }
 0x56f   :  { %2574 = vmatmul.bf16.gmra.mxu2 %v2486_v27  ;;  %2965 = vadd.xlane.f32.xlu2 %v8773_v13  ;;  %v3138_v56 = vmul.f32 1.442695, %v3115_v51 }
 0x570   :  { %3160 = vadd.xlane.f32.xlu1 %v8776_v36 }
 0x572   :  { %v2906_v24 = vpop.xlane.xlu1 %2905 }
 0x573   :  { %v2922_v28 = vsub.f32 %v8542_v38, %v2906_v24  ;;  %v9893_v38 = vld [vmem:[#allocation61_spill] sm:$0xff] }
 0x574   :  { %v2921_v37 = vsub.f32 %v9893_v38, %v8659_v6  ;;  %v9896_v6 = vld [vmem:[#allocation18_spill] sm:$0xff]  ;;  %v3093_v2 = vpop.xlane.xlu0 %3092  ;;  %v9910_v38 = vld [vmem:[#allocation84_spill] sm:$0xff] }
 0x575   :  { %v2953_v21 = vmul.f32 1.442695, %v2922_v28  ;;  %2593 = vmatmul.bf16.vlgmr.msrb.gmra.mxu3 %v9891_v33  ;;  %v2920_v59 = vsub.f32 %v9897_v29, %v9896_v6  ;;  %v8828_v27 = vpop.f32.mrf.mxu0  ;;  %v9905_v28 = vld [vmem:[#allocation23_spill] sm:$0xff]  ;;  %v9908_v33 = vld [vmem:[#allocation62_spill] sm:$0xff] }
 0x576   :  { %3639 = vmax.xlane.f32.xlu0 %v8783_v45  ;;  %v2951_v15 = vmul.f32 1.442695, %v2921_v37  ;;  %9903 = vst [vmem:[#allocation43_spill] sm:$0xff] %v8828_v27 }
 0x577   :  { %7368 = vpow2.f32 %v2953_v21  ;;  %2967 = vadd.xlane.f32.xlu2 %v8786_v53  ;;  %v2949_v3 = vmul.f32 1.442695, %v2920_v59  ;;  %v9907_v21 = vld [vmem:[#allocation63_spill] sm:$0xff] }
 0x578   :  { %7370 = vpow2.f32 %v2939_v57  ;;  %2963 = vadd.xlane.f32.xlu1 %v8789_v14 }
 0x579   :  { %7372 = vpow2.f32 %v3132_v61  ;;  %v9913_v61 = vld [vmem:[#allocation37_spill] sm:$0xff] }
 0x57a   :  { %7374 = vpow2.f32 %v2951_v15 }
 0x57b   :  { %7376 = vpow2.f32 %v2945_v63  ;;  %v9914_v63 = vld [vmem:[#allocation54_spill] sm:$0xff] }
 0x57c   :  { %7378 = vpow2.f32 %v2949_v3  ;;  %v3099_v57 = vpop.xlane.xlu0 %3098  ;;  %v3116_v6 = vsub.f32 %v9914_v63, %v3093_v2  ;;  %v9915_v3 = vld [vmem:[#allocation75_spill] sm:$0xff] }
 0x57d   :  { %v8798_v1 = vpop.eup %7368  ;;  %7380 = vpow2.f32 %v3138_v56  ;;  %v9917_v56 = vld [vmem:[#allocation60_spill] sm:$0xff] }
 0x57e   :  { %v8800_v48 = vpop.eup %7370  ;;  %2985 = vadd.xlane.f32.xlu0 %v8798_v1  ;;  %7382 = vpow2.f32 %v3134_v52  ;;  %v3140_v51 = vmul.f32 1.442695, %v3116_v6  ;;  %v3119_v52 = vsub.f32 %v9917_v56, %v3099_v57  ;;  %v9923_v6 = vld [vmem:[#allocation81_spill] sm:$0xff] }
 0x57f   :  { %2971 = vadd.xlane.f32.xlu2 %v8800_v48  ;;  %v8807_v10 = vpop.eup %7372 }
 0x580   :  { %3635 = vmax.xlane.f32.xlu1 %v8743_v26  ;;  %v8810_v0 = vpop.eup %7374 }
 0x581   :  { %v8813_v16 = vpop.eup %7376 }
 0x582   :  { %v8820_v19 = vpop.eup %7378 }
 0x583   :  { %v8833_v24 = vpop.eup %7380 }
 0x584   :  { %v8836_v62 = vpop.eup %7382  ;;  %v2447_v39 = vpop.xlane.xlu0 %2446 }
 0x585   :  { %2598 = vmatmul.bf16.gmra.mxu3 %v9898_v40  ;;  %7384 = vrcp.f32 %v2447_v39 }
 0x586   :  { %3164 = vadd.xlane.f32.xlu0 %v8807_v10 }
 0x587   :  { %2983 = vadd.xlane.f32.xlu2 %v8810_v0 }
 0x588   :  { %2977 = vadd.xlane.f32.xlu1 %v8813_v16 }
 0x58b   :  { %v7385_v35 = vpop.eup %7384 }
 0x58c   :  { %v2479_v40 = vmul.f32 %v7385_v35, %v9915_v3  ;;  %v9925_v3 = vld [vmem:[#allocation31_spill] sm:$0xff] }
 0x58e   :  { %3633 = vmax.xlane.f32.xlu0 %v8716_v11 }
 0x58f   :  { %3637 = vmax.xlane.f32.xlu2 %v8768_v58  ;;  %v6586_v58 = vld [vmem:[#allocation2 + $0x2a4] sm:$0xf] }
 0x590   :  { %2981 = vadd.xlane.f32.xlu1 %v8820_v19 }
 0x595   :  { %2603 = vmatmul.bf16.gmra.mxu3 %v9902_v60  ;;  %v9918_v60 = vld [vmem:[#allocation68_spill] sm:$0xff] }
 0x596   :  { %3627 = vmax.xlane.f32.xlu0 %v9904_v20 }
 0x597   :  { %3643 = vmax.xlane.f32.xlu2 %v8828_v27  ;;  %v7050_v27 = vld [vmem:[#allocation2 + $0x2a8] sm:$0xf0] }
 0x598   :  { %3641 = vmax.xlane.f32.xlu1 %v8817_v34  ;;  %v8933_v45 = vor.u32 %v7050_v27, %v6586_v58 }
 0x59a   :  { %9941 = vst [vmem:[#allocation61_spill] sm:$0xff] %v8933_v45 }
 0x59e   :  { %3170 = vadd.xlane.f32.xlu0 %v8833_v24 }
 0x59f   :  { %3631 = vmax.xlane.f32.xlu2 %v8691_v12 }
 0x5a0   :  { %3166 = vadd.xlane.f32.xlu1 %v8836_v62 }
 0x5a5   :  { %2608 = vmatmul.bf16.gmra.mxu3 %v9905_v28 }
 0x5a6   :  { %3104 = vmax.xlane.f32.xlu0 %v9906_v22 }
 0x5a7   :  { %3102 = vmax.xlane.f32.xlu2 %v9907_v21 }
 0x5a8   :  { %3100 = vmax.xlane.f32.xlu1 %v9908_v33 }
 0x5ae   :  { %3621 = vmax.xlane.f32.xlu0 %v9909_v23  ;;  %v9933_v23 = vld [vmem:[#allocation71_spill] sm:$0xff] }
 0x5b0   :  { %3629 = vmax.xlane.f32.xlu1 %v9910_v38 }
 0x5b2   :  { %v2445_v37 = vpop.xlane.xlu2 %2444 }
 0x5b3   :  { %7386 = vrcp.f32 %v2445_v37  ;;  %v8860_v37 = vpop.f32.mrf.mxu0 }
 0x5b4   :  { %9919 = vst [vmem:[#allocation57_spill] sm:$0xff] %v8860_v37 }
 0x5b5   :  { %2613 = vmatmul.bf16.gmra.mxu3 %v9911_v47 }
 0x5b6   :  { %3617 = vmax.xlane.f32.xlu0 %v9912_v8  ;;  %v6598_v8 = vld [vmem:[#allocation2 + $0x2d4] sm:$0xf] }
 0x5b8   :  { %3623 = vmax.xlane.f32.xlu1 %v9913_v61 }
 0x5b9   :  { %v7387_v15 = vpop.eup %7386 }
 0x5ba   :  { %v3089_v29 = vpop.xlane.xlu2 %3088  ;;  %v2478_v59 = vmul.f32 %v7387_v15, %v8670_v30  ;;  %v3146_v30 = vmul.f32 1.442695, %v3119_v52 }
 0x5bb   :  { %v3114_v43 = vsub.f32 %v8405_v50, %v3089_v29  ;;  %v9920_v50 = vld [vmem:[#allocation21_spill] sm:$0xff]  ;;  %v9924_v29 = vld [vmem:[#allocation56_spill] sm:$0xff] }
 0x5bc   :  { %v2487_v54 = vpack.c.bf16 %v2479_v40, %v2478_v59  ;;  %v3117_v59 = vsub.f32 %v9924_v29, %v8765_v44  ;;  %v6606_v44 = vld [vmem:[#allocation2 + $0x2f4] sm:$0xf]  ;;  %v9927_v29 = vld [vmem:[#allocation78_spill] sm:$0xff] }
 0x5bd   :  { %v3136_v7 = vmul.f32 1.442695, %v3114_v43 }
 0x5be   :  { %2579 = vmatmul.bf16.gmra.mxu2 %v2487_v54  ;;  %3816 = vmax.xlane.f32.xlu0 %v9916_v55  ;;  %v3142_v56 = vmul.f32 1.442695, %v3117_v59  ;;  %v9929_v55 = vld [vmem:[#allocation35_spill] sm:$0xff] }
 0x5bf   :  { %7388 = vpow2.f32 %v3136_v7 }
 0x5c0   :  { %3106 = vmax.xlane.f32.xlu1 %v9918_v60  ;;  %7390 = vpow2.f32 %v3140_v51 }
 0x5c1   :  { %v8856_v2 = vpop.xlane.xlu0 %2955  ;;  %7392 = vpow2.f32 %v3146_v30 }
 0x5c2   :  { %v3097_v28 = vpop.xlane.xlu2 %3096 }
 0x5c5   :  { %v8858_v39 = vpop.eup %7388  ;;  %2618 = vmatmul.bf16.gmra.mxu3 %v9920_v50  ;;  %v7055_v50 = vld [vmem:[#allocation2 + $0x2f8] sm:$0xf0] }
 0x5c6   :  { %3168 = vadd.xlane.f32.xlu2 %v8858_v39  ;;  %3645 = vmax.xlane.f32.xlu0 %v8860_v37  ;;  %v8865_v47 = vpop.eup %7390 }
 0x5c7   :  { %9921 = vst [vmem:[#allocation45_spill] sm:$0xff] %v8865_v47  ;;  %v8870_v63 = vpop.eup %7392 }
 0x5c8   :  { %3172 = vadd.xlane.f32.xlu1 %v8865_v47  ;;  %9922 = vst [vmem:[#allocation42_spill] sm:$0xff] %v8870_v63 }
 0x5c9   :  { %v8868_v57 = vpop.xlane.xlu0 %2969 }
 0x5ca   :  { %v3159_v35 = vpop.xlane.xlu2 %3158  ;;  %v3157_v15 = vpop.xlane.xlu1 %3156 }
 0x5cb   :  { %7394 = vrcp.f32 %v3159_v35 }
 0x5cc   :  { %7396 = vrcp.f32 %v3157_v15  ;;  %v9926_v15 = vld [vmem:[#allocation20_spill] sm:$0xff] }
 0x5cd   :  { %7398 = vpow2.f32 %v3142_v56 }
 0x5ce   :  { %3625 = vmax.xlane.f32.xlu2 %v9923_v6  ;;  %3178 = vadd.xlane.f32.xlu0 %v8870_v63  ;;  %v9932_v63 = vld [vmem:[#allocation19_spill] sm:$0xff] }
 0x5d0   :  { %3818 = vmax.xlane.f32.xlu1 %v9925_v3  ;;  %v8887_v3 = vor.u32 %v7055_v50, %v6606_v44  ;;  %v3118_v50 = vsub.f32 %v8460_v42, %v3097_v28 }
 0x5d1   :  { %v7395_v40 = vpop.eup %7394  ;;  %v8877_v43 = vpop.xlane.xlu0 %2973 }
 0x5d2   :  { %v7397_v54 = vpop.eup %7396  ;;  %v3205_v51 = vmul.f32 %v7395_v40, %v8707_v32  ;;  %v8880_v7 = vpop.xlane.xlu2 %2961  ;;  %9928 = vst [vmem:[#allocation41_spill] sm:$0xff] %v8887_v3  ;;  %v7054_v40 = vld [vmem:[#allocation2 + $0x2e8] sm:$0xf0] }
 0x5d3   :  { %v3204_v52 = vmul.f32 %v7397_v54, %v8710_v18  ;;  %v8883_v30 = vpop.xlane.xlu1 %2957  ;;  %v8895_v54 = vpop.eup %7398 }
 0x5d4   :  { %9930 = vst [vmem:[#allocation47_spill] sm:$0xff] %v8895_v54 }
 0x5d5   :  { %v3220_v35 = vpack.c.bf16 %v3205_v51, %v3204_v52  ;;  %2623 = vmatmul.bf16.gmra.mxu3 %v9926_v15  ;;  %v6602_v51 = vld [vmem:[#allocation2 + $0x2e4] sm:$0xf]  ;;  %v3144_v15 = vmul.f32 1.442695, %v3118_v50 }
 0x5d6   :  { %3619 = vmax.xlane.f32.xlu2 %v9927_v29  ;;  %3822 = vmax.xlane.f32.xlu0 %v9929_v55  ;;  %v8898_v52 = vor.u32 %v7054_v40, %v6602_v51  ;;  %v2545_v55 = vpop.f32.mrf.mxu2 }
 0x5d7   :  { %3284 = vmatmul.bf16.vlgmr.msra.gmra.mxu2 %v3220_v35 }
 0x5d8   :  { %4756 = vmatpush.bf16.xpose.msra.mxu2 %v8887_v3  ;;  %9931 = vst [vmem:[#allocation40_spill] sm:$0xff] %v8898_v52  ;;  %v7053_v3 = vld [vmem:[#allocation2 + $0x2d8] sm:$0xf0] }
 0x5d9   :  { %v8891_v32 = vpop.xlane.xlu0 %2975  ;;  %v8906_v40 = vor.u32 %v7053_v3, %v6598_v8  ;;  %v6594_v3 = vld [vmem:[#allocation2 + $0x2c4] sm:$0xf] }
 0x5da   :  { %v3163_v18 = vpop.xlane.xlu2 %3162 }
 0x5db   :  { %v8893_v59 = vpop.xlane.xlu1 %2959  ;;  %7400 = vrcp.f32 %v3163_v18  ;;  %9934 = vst [vmem:[#allocation44_spill] sm:$0xff] %v8906_v40 }
 0x5de   :  { %3174 = vadd.xlane.f32.xlu2 %v8895_v54 }
 0x5e0   :  { %4757 = vmatpush.bf16.xpose.msra.mxu2 %v8898_v52  ;;  %v7052_v52 = vld [vmem:[#allocation2 + $0x2c8] sm:$0xf0] }
 0x5e1   :  { %v2980_v56 = vpop.xlane.xlu0 %2979  ;;  %v7401_v42 = vpop.eup %7400 }
 0x5e2   :  { %v8902_v35 = vpop.xlane.xlu2 %2965 }
 0x5e3   :  { %v3161_v44 = vpop.xlane.xlu1 %3160 }
 0x5e4   :  { %7402 = vrcp.f32 %v3161_v44 }
 0x5e5   :  { %2628 = vmatmul.bf16.gmra.mxu3 %v9932_v63  ;;  %7404 = vpow2.f32 %v3144_v15  ;;  %v3207_v63 = vmul.f32 %v7401_v42, %v8752_v49  ;;  %v2547_v15 = vpop.f32.mrf.mxu2  ;;  %v6590_v49 = vld [vmem:[#allocation2 + $0x2b4] sm:$0xf] }
 0x5e6   :  { %3615 = vmax.xlane.f32.xlu2 %v9933_v23  ;;  %v9938_v42 = vld [vmem:[#allocation77_spill] sm:$0xff] }
 0x5e8   :  { %4758 = vmatpush.bf16.xpose.msra.mxu2 %v8906_v40  ;;  %v8920_v40 = vor.u32 %v7052_v52, %v6594_v3  ;;  %v8931_v52 = vpop.f32.mrf.mxu0 }
 0x5e9   :  { %v8909_v28 = vpop.xlane.xlu0 %3639  ;;  %9940 = vst [vmem:[#allocation48_spill] sm:$0xff] %v8931_v52  ;;  %v6582_v52 = vld [vmem:[#allocation2 + $0x294] sm:$0xf] }
 0x5ea   :  { %9935 = vst [vmem:[#allocation39_spill] sm:$0xff] %v8909_v28  ;;  %v7403_v18 = vpop.eup %7402  ;;  %v8911_v51 = vpop.xlane.xlu2 %2967 }
 0x5eb   :  { %v8913_v50 = vpop.xlane.xlu1 %2963  ;;  %v3206_v44 = vmul.f32 %v7403_v18, %v8776_v36  ;;  %v8917_v34 = vpop.eup %7404  ;;  %9937 = vst [vmem:[#allocation51_spill] sm:$0xff] %v8920_v40  ;;  %v7051_v36 = vld [vmem:[#allocation2 + $0x2b8] sm:$0xf0] }
 0x5ec   :  { %9936 = vst [vmem:[#allocation58_spill] sm:$0xff] %v8917_v34  ;;  %v8928_v18 = vor.u32 %v7051_v36, %v6590_v49 }
 0x5ed   :  { %v3221_v8 = vpack.c.bf16 %v3207_v63, %v3206_v44  ;;  %v2550_v44 = vpop.f32.mrf.mxu2 }
 0x5ee   :  { %3176 = vadd.xlane.f32.xlu2 %v8917_v34  ;;  %9939 = vst [vmem:[#allocation26_spill] sm:$0xff] %v8928_v18 }
 0x5ef   :  { %3289 = vmatmul.bf16.gmra.mxu2 %v3221_v8 }
 0x5f0   :  { %4759 = vmatpush.bf16.xpose.msra.mxu2 %v8920_v40 }
 0x5f1   :  { %v2986_v23 = vpop.xlane.xlu0 %2985 }
 0x5f2   :  { %v8923_v54 = vpop.xlane.xlu2 %2971  ;;  %7406 = vrcp.f32 %v2986_v23 }
 0x5f3   :  { %v8925_v47 = vpop.xlane.xlu1 %3635 }
 0x5f5   :  { %v2552_v23 = vpop.f32.mrf.mxu2 }
 0x5f6   :  { %3820 = vmax.xlane.f32.xlu2 %v9938_v42 }
 0x5f8   :  { %4760 = vmatpush.bf16.xpose.msra.mxu2 %v8928_v18  ;;  %v2594_v63 = vpop.f32.mrf.mxu3  ;;  %v7407_v36 = vpop.eup %7406 }
 0x5f9   :  { %v2595_v8 = vadd.f32 %v2594_v63, %v2545_v55  ;;  %v3165_v3 = vpop.xlane.xlu0 %3164  ;;  %v3018_v55 = vmul.f32 %v7407_v36, %v8798_v1 }
 0x5fa   :  { %v2984_v40 = vpop.xlane.xlu2 %2983 }
 0x5fb   :  { %v2634_v34 = vpack.c.bf16 %v2595_v8, %v2595_v8  ;;  %7408 = vrcp.f32 %v2984_v40  ;;  %v2978_v37 = vpop.xlane.xlu1 %2977  ;;  %v7049_v8 = vld [vmem:[#allocation2 + $0x298] sm:$0xf0] }
 0x5fc   :  { %7410 = vrcp.f32 %v2980_v56 }
 0x5fd   :  { %2650 = vst [vmem:[#allocation3] sm:$0xf] %v2634_v34  ;;  %v8942_v34 = vpop.f32.mrf.mxu0  ;;  %v2555_v36 = vpop.f32.mrf.mxu2 }
 0x600   :  { %4761 = vmatpush.bf16.xpose.msra.mxu2 %v8933_v45  ;;  %v2596_v49 = vpop.f32.mrf.mxu3 }
 0x601   :  { %v7409_v18 = vpop.eup %7408  ;;  %v2597_v42 = vadd.f32 %v2596_v49, %v2547_v15  ;;  %v8936_v28 = vpop.xlane.xlu0 %3633  ;;  %v8944_v15 = vor.u32 %v7049_v8, %v6582_v52 }
 0x602   :  { %v3017_v40 = vmul.f32 %v7409_v18, %v8810_v0  ;;  %v8940_v63 = vpop.xlane.xlu2 %3637  ;;  %v7411_v49 = vpop.eup %7410 }
 0x603   :  { %v2635_v58 = vpack.c.bf16 %v2597_v42, %v2597_v42  ;;  %v2982_v27 = vpop.xlane.xlu1 %2981  ;;  %9942 = vst [vmem:[#allocation17_spill] sm:$0xff] %v8944_v15 }
 0x604   :  { %7412 = vrcp.f32 %v2982_v27  ;;  %v3026_v45 = vpack.c.bf16 %v3018_v55, %v3017_v40  ;;  %v6578_v27 = vld [vmem:[#allocation2 + $0x284] sm:$0xf] }
 0x605   :  { %2651 = vst [vmem:[#allocation3 + $0x8] sm:$0xf] %v2635_v58  ;;  %7414 = vrcp.f32 %v2978_v37  ;;  %v7048_v37 = vld [vmem:[#allocation2 + $0x288] sm:$0xf0]  ;;  %v8956_v58 = vpop.f32.mrf.mxu0 }
 0x606   :  { %3325 = vmatpush.bf16.xpose.msra.mxu3 %v3026_v45  ;;  %7416 = vrcp.f32 %v8891_v32  ;;  %v3015_v45 = vmul.f32 %v7411_v49, %v8771_v25 }
 0x607   :  { %7418 = vrcp.f32 %v8923_v54 }
 0x608   :  { %4762 = vmatpush.bf16.xpose.msra.mxu2 %v8944_v15  ;;  %v2599_v1 = vpop.f32.mrf.mxu3  ;;  %7420 = vrcp.f32 %v8877_v43 }
 0x609   :  { %v2600_v0 = vadd.f32 %v2599_v1, %v2550_v44  ;;  %v8947_v56 = vpop.xlane.xlu0 %3627  ;;  %v8958_v1 = vor.u32 %v7048_v37, %v6578_v27  ;;  %7422 = vrcp.f32 %v3165_v3  ;;  %v2557_v37 = vpop.f32.mrf.mxu2 }
 0x60a   :  { %v7413_v18 = vpop.eup %7412  ;;  %v8950_v42 = vpop.xlane.xlu2 %3643 }
 0x60b   :  { %v2636_v55 = vpack.c.bf16 %v2600_v0, %v2600_v0  ;;  %v8952_v40 = vpop.xlane.xlu1 %3641  ;;  %v3016_v52 = vmul.f32 %v7413_v18, %v8820_v19  ;;  %v7415_v8 = vpop.eup %7414  ;;  %9943 = vst [vmem:[#allocation55_spill] sm:$0xff] %v8958_v1 }
 0x60c   :  { %v7417_v32 = vpop.eup %7416  ;;  %v3014_v49 = vmul.f32 %v7415_v8, %v8813_v16 }
 0x60d   :  { %2652 = vst [vmem:[#allocation3 + $0x10] sm:$0xf] %v2636_v55  ;;  %v3025_v44 = vpack.c.bf16 %v3016_v52, %v3015_v45  ;;  %v3013_v52 = vmul.f32 %v7417_v32, %v8750_v17  ;;  %v8969_v15 = vpop.f32.mrf.mxu0 }
 0x60f   :  { %3326 = vmatpush.bf16.xpose.msra.mxu3 %v3025_v44  ;;  %v3024_v54 = vpack.c.bf16 %v3014_v49, %v3013_v52  ;;  %v7419_v44 = vpop.eup %7418 }
 0x610   :  { %4763 = vmatpush.bf16.xpose.msra.mxu2 %v8958_v1  ;;  %v2601_v0 = vpop.f32.mrf.mxu3  ;;  %v7421_v27 = vpop.eup %7420  ;;  %v3011_v8 = vmul.f32 %v7419_v44, %v8800_v48 }
 0x611   :  { %v2602_v25 = vadd.f32 %v2601_v0, %v2552_v23  ;;  %v8963_v19 = vpop.xlane.xlu0 %3170  ;;  %v7423_v43 = vpop.eup %7422 }
 0x612   :  { %v8966_v18 = vpop.xlane.xlu2 %3631  ;;  %v3208_v52 = vmul.f32 %v7423_v43, %v8807_v10 }
 0x613   :  { %v2637_v55 = vpack.c.bf16 %v2602_v25, %v2602_v25  ;;  %v3167_v45 = vpop.xlane.xlu1 %3166  ;;  %v3012_v25 = vmul.f32 %v7421_v27, %v8728_v5 }
 0x614   :  { %7424 = vrcp.f32 %v3167_v45 }
 0x615   :  { %2653 = vst [vmem:[#allocation3 + $0x18] sm:$0xf] %v2637_v55  ;;  %7426 = vrcp.f32 %v8911_v51  ;;  %v3023_v44 = vpack.c.bf16 %v3012_v25, %v3011_v8 }
 0x616   :  { %7428 = vrcp.f32 %v8868_v57 }
 0x617   :  { %3327 = vmatpush.bf16.xpose.msra.mxu3 %v3024_v54  ;;  %7430 = vrcp.f32 %v8913_v50 }
 0x618   :  { %v2604_v16 = vpop.f32.mrf.mxu3 }
 0x619   :  { %v2605_v3 = vadd.f32 %v2604_v16, %v2555_v36  ;;  %v3105_v23 = vpop.xlane.xlu0 %3104  ;;  %v2560_v36 = vpop.f32.mrf.mxu2 }
 0x61a   :  { %v7425_v0 = vpop.eup %7424  ;;  %v3122_v17 = vsub.f32 %v9906_v22, %v3105_v23  ;;  %v3103_v32 = vpop.xlane.xlu2 %3102 }
 0x61b   :  { %v2638_v49 = vpack.c.bf16 %v2605_v3, %v2605_v3  ;;  %v3101_v55 = vpop.xlane.xlu1 %3100  ;;  %v3121_v45 = vsub.f32 %v9907_v21, %v3103_v32  ;;  %v3209_v51 = vmul.f32 %v7425_v0, %v8836_v62  ;;  %v7427_v16 = vpop.eup %7426 }
 0x61c   :  { %v3152_v54 = vmul.f32 1.442695, %v3122_v17  ;;  %v3120_v48 = vsub.f32 %v9908_v33, %v3101_v55  ;;  %v7429_v21 = vpop.eup %7428  ;;  %v8981_v62 = vpop.f32.mrf.mxu0  ;;  %v3009_v33 = vmul.f32 %v7427_v16, %v8786_v53 }
 0x61d   :  { %2654 = vst [vmem:[#allocation3 + $0x20] sm:$0xf] %v2638_v49  ;;  %v3150_v57 = vmul.f32 1.442695, %v3121_v45  ;;  %v3222_v22 = vpack.c.bf16 %v3209_v51, %v3208_v52  ;;  %v7431_v50 = vpop.eup %7430  ;;  %v3010_v23 = vmul.f32 %v7429_v21, %v8705_v46 }
 0x61e   :  { %7432 = vpow2.f32 %v3152_v54  ;;  %v3148_v5 = vmul.f32 1.442695, %v3120_v48  ;;  %9944 = vst [vmem:[#allocation18_spill] sm:$0xff] %v8981_v62  ;;  %v3007_v25 = vmul.f32 %v7431_v50, %v8789_v14 }
 0x61f   :  { %7434 = vpow2.f32 %v3150_v57  ;;  %3294 = vmatmul.bf16.gmra.mxu2 %v3222_v22  ;;  %3328 = vmatpush.bf16.xpose.msra.mxu3 %v3023_v44  ;;  %v3022_v17 = vpack.c.bf16 %v3010_v23, %v3009_v33  ;;  %v9945_v57 = vld [vmem:[#allocation80_spill] sm:$0xff] }
 0x620   :  { %7436 = vpow2.f32 %v3148_v5  ;;  %v2606_v10 = vpop.f32.mrf.mxu3 }
 0x621   :  { %v2607_v27 = vadd.f32 %v2606_v10, %v2557_v37  ;;  %7438 = vrcp.f32 %v8902_v35  ;;  %v2562_v37 = vpop.f32.mrf.mxu2  ;;  %v9012_v10 = vpop.xlane.xlu0 %3621 }
 0x622   :  { %7440 = vrcp.f32 %v8893_v59  ;;  %v9946_v59 = vld [vmem:[#allocation16_spill] sm:$0xff] }
 0x623   :  { %v2639_v43 = vpack.c.bf16 %v2607_v27, %v2607_v27  ;;  %v3630_v3 = vpop.xlane.xlu1 %3629  ;;  %7442 = vrcp.f32 %v8880_v7 }
 0x624   :  { %v8986_v8 = vpop.eup %7432  ;;  %v8998_v49 = vpop.f32.mrf.mxu0  ;;  %7444 = vrcp.f32 %v8883_v30 }
 0x625   :  { %v8988_v0 = vpop.eup %7434  ;;  %2655 = vst [vmem:[#allocation3 + $0x28] sm:$0xf] %v2639_v43  ;;  %3184 = vadd.xlane.f32.xlu0 %v8986_v8  ;;  %7446 = vrcp.f32 %v8856_v2  ;;  %v3654_v2 = vsub.f32 %v9910_v38, %v3630_v3 }
 0x626   :  { %v8991_v32 = vpop.eup %7436  ;;  %3182 = vadd.xlane.f32.xlu2 %v8988_v0  ;;  %7448 = vrcp.f32 %v8963_v19 }
 0x627   :  { %3329 = vmatpush.bf16.xpose.msra.mxu3 %v3022_v17  ;;  %3180 = vadd.xlane.f32.xlu1 %v8991_v32  ;;  %v7439_v53 = vpop.eup %7438 }
 0x628   :  { %v2609_v46 = vpop.f32.mrf.mxu3  ;;  %v3008_v52 = vmul.f32 %v7439_v53, %v8773_v13  ;;  %v7441_v54 = vpop.eup %7440  ;;  %v3677_v53 = vmul.f32 1.442695, %v3654_v2 }
 0x629   :  { %v2610_v35 = vadd.f32 %v2609_v46, %v2560_v36  ;;  %v2565_v48 = vpop.f32.mrf.mxu2  ;;  %v7443_v36 = vpop.eup %7442  ;;  %v3005_v22 = vmul.f32 %v7441_v54, %v8755_v31 }
 0x62a   :  { %v3021_v51 = vpack.c.bf16 %v3008_v52, %v3007_v25  ;;  %v3006_v16 = vmul.f32 %v7443_v36, %v8731_v9  ;;  %v7445_v33 = vpop.eup %7444 }
 0x62b   :  { %v2640_v55 = vpack.c.bf16 %v2610_v35, %v2610_v35  ;;  %v9000_v45 = vpop.xlane.xlu1 %3623  ;;  %v7447_v31 = vpop.eup %7446 }
 0x62c   :  { %v9010_v21 = vpop.f32.mrf.mxu0  ;;  %v3020_v27 = vpack.c.bf16 %v3006_v16, %v3005_v22  ;;  %v7449_v46 = vpop.eup %7448 }
 0x62d   :  { %2656 = vst [vmem:[#allocation3 + $0x30] sm:$0xf] %v2640_v55  ;;  %v9022_v55 = vpop.xlane.xlu0 %3617 }
 0x62e   :  { %3826 = vmax.xlane.f32.xlu2 %v9945_v57  ;;  %9947 = vst [vmem:[#allocation59_spill] sm:$0xff] %v9010_v21 }
 0x62f   :  { %3330 = vmatpush.bf16.xpose.msra.mxu3 %v3021_v51  ;;  %3824 = vmax.xlane.f32.xlu1 %v9946_v59 }
 0x630   :  { %v2611_v14 = vpop.f32.mrf.mxu3 }
 0x631   :  { %v2612_v7 = vadd.f32 %v2611_v14, %v2562_v37  ;;  %v2567_v50 = vpop.f32.mrf.mxu2  ;;  %v3003_v37 = vmul.f32 %v7447_v31, %v8688_v4 }
 0x633   :  { %v2641_v44 = vpack.c.bf16 %v2612_v7, %v2612_v7  ;;  %v3107_v13 = vpop.xlane.xlu1 %3106 }
 0x634   :  { %v3123_v5 = vsub.f32 %v9918_v60, %v3107_v13  ;;  %v3004_v60 = vmul.f32 %v7445_v33, %v8734_v41  ;;  %v9020_v25 = vpop.f32.mrf.mxu0  ;;  %v3656_v41 = vsub.f32 %v8716_v11, %v8936_v28  ;;  %v3653_v13 = vsub.f32 %v9904_v20, %v8947_v56  ;;  %v9949_v28 = vld [vmem:[#allocation36_spill] sm:$0xff] }
 0x635   :  { %2657 = vst [vmem:[#allocation3 + $0x38] sm:$0xf] %v2641_v44  ;;  %v9038_v16 = vpop.xlane.xlu0 %3816 }
 0x636   :  { %v3154_v30 = vmul.f32 1.442695, %v3123_v5  ;;  %v3019_v35 = vpack.c.bf16 %v3004_v60, %v3003_v37  ;;  %9948 = vst [vmem:[#allocation25_spill] sm:$0xff] %v9020_v25  ;;  %v3681_v22 = vmul.f32 1.442695, %v3656_v41 }
 0x637   :  { %3331 = vmatpush.bf16.xpose.msra.mxu3 %v3020_v27 }
 0x638   :  { %7450 = vpow2.f32 %v3154_v30  ;;  %v2614_v43 = vpop.f32.mrf.mxu3 }
 0x639   :  { %v2615_v9 = vadd.f32 %v2614_v43, %v2565_v48  ;;  %v3169_v23 = vpop.xlane.xlu2 %3168  ;;  %v2570_v3 = vpop.f32.mrf.mxu2  ;;  %v3211_v48 = vmul.f32 %v7449_v46, %v8833_v24 }
 0x63a   :  { %7452 = vrcp.f32 %v3169_v23  ;;  %v9951_v23 = vld [vmem:[#allocation53_spill] sm:$0xff] }
 0x63b   :  { %v2642_v17 = vpack.c.bf16 %v2615_v9, %v2615_v9  ;;  %7454 = vpow2.f32 %v3677_v53  ;;  %v3651_v9 = vsub.f32 %v9913_v61, %v9000_v45 }
 0x63c   :  { %v9040_v20 = vpop.f32.mrf.mxu0 }
 0x63d   :  { %2658 = vst [vmem:[#allocation3 + $0x40] sm:$0xf] %v2642_v17  ;;  %v3671_v53 = vmul.f32 1.442695, %v3651_v9 }
 0x63e   :  { %v9018_v19 = vpop.eup %7450 }
 0x63f   :  { %3332 = vmatpush.bf16.xpose.msra.mxu3 %v3019_v35  ;;  %3186 = vadd.xlane.f32.xlu1 %v9018_v19  ;;  %v3646_v35 = vpop.xlane.xlu0 %3645 }
 0x640   :  { %v7453_v38 = vpop.eup %7452  ;;  %v2616_v4 = vpop.f32.mrf.mxu3 }
 0x641   :  { %v2617_v52 = vadd.f32 %v2616_v4, %v2567_v50  ;;  %v3626_v51 = vpop.xlane.xlu2 %3625  ;;  %v3210_v54 = vmul.f32 %v7453_v38, %v8858_v39  ;;  %v9032_v11 = vpop.eup %7454  ;;  %v3657_v39 = vsub.f32 %v8743_v26, %v8925_v47  ;;  %v3655_v26 = vsub.f32 %v8691_v12, %v8966_v18 }
 0x642   :  { %v3652_v36 = vsub.f32 %v9923_v6, %v3626_v51  ;;  %v3675_v6 = vmul.f32 1.442695, %v3653_v13  ;;  %v2572_v56 = vpop.f32.mrf.mxu2  ;;  %v3173_v47 = vpop.xlane.xlu1 %3172 }
 0x643   :  { %v2643_v14 = vpack.c.bf16 %v2617_v52, %v2617_v52  ;;  %v3223_v7 = vpack.c.bf16 %v3211_v48, %v3210_v54  ;;  %v3683_v30 = vmul.f32 1.442695, %v3657_v39  ;;  %v3679_v37 = vmul.f32 1.442695, %v3655_v26  ;;  %v9953_v52 = vld [vmem:[#allocation50_spill] sm:$0xff]  ;;  %v9954_v48 = vld [vmem:[#allocation43_spill] sm:$0xff] }
 0x644   :  { %v3673_v44 = vmul.f32 1.442695, %v3652_v36  ;;  %v9059_v61 = vpop.f32.mrf.mxu0  ;;  %v3658_v51 = vsub.f32 %v9953_v52, %v8940_v63  ;;  %v3661_v36 = vsub.f32 %v9954_v48, %v8950_v42  ;;  %v9959_v26 = vld [vmem:[#allocation46_spill] sm:$0xff] }
 0x645   :  { %2659 = vst [vmem:[#allocation3 + $0x48] sm:$0xf] %v2643_v14  ;;  %3299 = vmatmul.bf16.gmra.mxu2 %v3223_v7  ;;  %v9955_v14 = vld [vmem:[#allocation34_spill] sm:$0xff]  ;;  %v9956_v7 = vld [vmem:[#allocation57_spill] sm:$0xff] }
 0x646   :  { %7456 = vpow2.f32 %v3673_v44  ;;  %3333 = vmatmul.bf16.vlgmr.msra.gmra.mxu3 %v9949_v28  ;;  %9952 = vst [vmem:[#allocation52_spill] sm:$0xff] %v9059_v61  ;;  %v3685_v13 = vmul.f32 1.442695, %v3658_v51 }
 0x647   :  { %3709 = vadd.xlane.f32.xlu1 %v9032_v11  ;;  %7458 = vpow2.f32 %v3681_v22  ;;  %v3662_v22 = vsub.f32 %v9956_v7, %v3646_v35  ;;  %v3179_v9 = vpop.xlane.xlu0 %3178 }
 0x648   :  { %v2619_v24 = vpop.f32.mrf.mxu3  ;;  %7460 = vpow2.f32 %v3675_v6 }
 0x649   :  { %v2620_v5 = vadd.f32 %v2619_v24, %v2570_v3  ;;  %v3620_v27 = vpop.xlane.xlu2 %3619  ;;  %v9957_v24 = vld [vmem:[#allocation45_spill] sm:$0xff]  ;;  %v3693_v42 = vmul.f32 1.442695, %v3662_v22 }
 0x64a   :  { %v3649_v33 = vsub.f32 %v9927_v29, %v3620_v27  ;;  %v9950_v29 = vld [vmem:[#allocation39_spill] sm:$0xff]  ;;  %v2575_v41 = vpop.f32.mrf.mxu2  ;;  %v9964_v22 = vld [vmem:[#allocation33_spill] sm:$0xff] }
 0x64b   :  { %v2644_v31 = vpack.c.bf16 %v2620_v5, %v2620_v5  ;;  %v3659_v60 = vsub.f32 %v9951_v23, %v9950_v29  ;;  %v9958_v5 = vld [vmem:[#allocation47_spill] sm:$0xff] }
 0x64c   :  { %v9043_v50 = vpop.eup %7456  ;;  %v3667_v2 = vmul.f32 1.442695, %v3649_v33  ;;  %v9084_v23 = vpop.f32.mrf.mxu0 }
 0x64d   :  { %2660 = vst [vmem:[#allocation3 + $0x50] sm:$0xf] %v2644_v31  ;;  %3705 = vadd.xlane.f32.xlu0 %v9043_v50  ;;  %v9048_v43 = vpop.eup %7458  ;;  %v3687_v45 = vmul.f32 1.442695, %v3659_v60 }
 0x64e   :  { %7462 = vpow2.f32 %v3667_v2  ;;  %v9055_v46 = vpop.eup %7460  ;;  %9960 = vst [vmem:[#allocation49_spill] sm:$0xff] %v9084_v23 }
 0x64f   :  { %7464 = vpow2.f32 %v3683_v30  ;;  %3713 = vadd.xlane.f32.xlu1 %v9048_v43 }
 0x650   :  { %7466 = vrcp.f32 %v3173_v47  ;;  %v2621_v17 = vpop.f32.mrf.mxu3  ;;  %v3660_v47 = vsub.f32 %v9959_v26, %v8952_v40  ;;  %v9962_v40 = vld [vmem:[#allocation71_spill] sm:$0xff]  ;;  %v9967_v26 = vld [vmem:[#allocation70_spill] sm:$0xff] }
 0x651   :  { %v2622_v12 = vadd.f32 %v2621_v17, %v2572_v56  ;;  %v3175_v18 = vpop.xlane.xlu2 %3174  ;;  %v3691_v56 = vmul.f32 1.442695, %v3661_v36  ;;  %v9961_v17 = vld [vmem:[#allocation79_spill] sm:$0xff]  ;;  %v9963_v36 = vld [vmem:[#allocation73_spill] sm:$0xff] }
 0x652   :  { %7468 = vrcp.f32 %v3175_v18  ;;  %v2577_v60 = vpop.f32.mrf.mxu2 }
 0x653   :  { %v2645_v38 = vpack.c.bf16 %v2622_v12, %v2622_v12  ;;  %7470 = vpow2.f32 %v3679_v37  ;;  %v3650_v37 = vsub.f32 %v9961_v17, %v9012_v10 }
 0x654   :  { %v9057_v3 = vpop.eup %7462  ;;  %7472 = vpow2.f32 %v3671_v53  ;;  %v3689_v53 = vmul.f32 1.442695, %v3660_v47  ;;  %v3848_v47 = vsub.f32 %v9967_v26, %v9038_v16 }
 0x655   :  { %v9061_v4 = vpop.eup %7464  ;;  %2661 = vst [vmem:[#allocation3 + $0x58] sm:$0xf] %v2645_v38  ;;  %3699 = vadd.xlane.f32.xlu2 %v9057_v3  ;;  %3707 = vadd.xlane.f32.xlu0 %v9055_v46  ;;  %7474 = vpow2.f32 %v3687_v45  ;;  %v3669_v45 = vmul.f32 1.442695, %v3650_v37  ;;  %v9117_v37 = vpop.f32.mrf.mxu1 }
 0x656   :  { %v7467_v54 = vpop.eup %7466  ;;  %3338 = vmatmul.bf16.gmra.mxu3 %v9955_v14  ;;  %7476 = vpow2.f32 %v3685_v13  ;;  %v3648_v14 = vsub.f32 %v9963_v36, %v9022_v55 }
 0x657   :  { %3715 = vadd.xlane.f32.xlu1 %v9061_v4  ;;  %v3212_v6 = vmul.f32 %v7467_v54, %v9957_v24  ;;  %7478 = vpow2.f32 %v3691_v56 }
 0x658   :  { %v7469_v44 = vpop.eup %7468  ;;  %v2624_v63 = vpop.f32.mrf.mxu3  ;;  %7480 = vpow2.f32 %v3693_v42 }
 0x659   :  { %v2625_v28 = vadd.f32 %v2624_v63, %v2575_v41  ;;  %v3616_v39 = vpop.xlane.xlu2 %3615  ;;  %v3213_v27 = vmul.f32 %v7469_v44, %v9958_v5  ;;  %v9074_v33 = vpop.eup %7470  ;;  %7482 = vrcp.f32 %v3179_v9 }
 0x65a   :  { %v9076_v2 = vpop.eup %7472  ;;  %v3647_v12 = vsub.f32 %v9962_v40, %v3616_v39  ;;  %v2580_v7 = vpop.f32.mrf.mxu2  ;;  %v9965_v39 = vld [vmem:[#allocation58_spill] sm:$0xff] }
 0x65b   :  { %v2646_v30 = vpack.c.bf16 %v2625_v28, %v2625_v28  ;;  %v3224_v31 = vpack.c.bf16 %v3213_v27, %v3212_v6  ;;  %v9082_v29 = vpop.eup %7474  ;;  %v9102_v63 = vpop.f32.mrf.mxu0  ;;  %v9966_v6 = vld [vmem:[#allocation42_spill] sm:$0xff]  ;;  %v3665_v27 = vmul.f32 1.442695, %v3648_v14 }
 0x65c   :  { %v9090_v41 = vpop.eup %7476  ;;  %v3663_v54 = vmul.f32 1.442695, %v3647_v12  ;;  %v3819_v42 = vpop.xlane.xlu1 %3818 }
 0x65d   :  { %2662 = vst [vmem:[#allocation3 + $0x60] sm:$0xf] %v2646_v30  ;;  %3703 = vadd.xlane.f32.xlu2 %v9076_v2  ;;  %3711 = vadd.xlane.f32.xlu0 %v9074_v33  ;;  %v9092_v51 = vpop.eup %7478  ;;  %v9128_v36 = vpop.f32.mrf.mxu1 }
 0x65e   :  { %3304 = vmatmul.bf16.gmra.mxu2 %v3224_v31  ;;  %v9094_v10 = vpop.eup %7480  ;;  %v3823_v14 = vpop.xlane.xlu0 %3822 }
 0x65f   :  { %3719 = vadd.xlane.f32.xlu1 %v9082_v29  ;;  %v7483_v48 = vpop.eup %7482 }
 0x660   :  { %v2626_v18 = vpop.f32.mrf.mxu3  ;;  %v3215_v5 = vmul.f32 %v7483_v48, %v9966_v6  ;;  %v9971_v48 = vld [vmem:[#allocation83_spill] sm:$0xff] }
 0x661   :  { %v2627_v35 = vadd.f32 %v2626_v18, %v2577_v60  ;;  %v3177_v38 = vpop.xlane.xlu2 %3176  ;;  %v9968_v60 = vld [vmem:[#allocation31_spill] sm:$0xff]  ;;  %v3864_v18 = vmul.f32 1.442695, %v3848_v47 }
 0x662   :  { %7484 = vrcp.f32 %v3177_v38  ;;  %v3849_v17 = vsub.f32 %v9968_v60, %v3819_v42  ;;  %v2582_v40 = vpop.f32.mrf.mxu2 }
 0x663   :  { %v2647_v52 = vpack.c.bf16 %v2627_v35, %v2627_v35  ;;  %7486 = vpow2.f32 %v3689_v53  ;;  %v9120_v16 = vpop.f32.mrf.mxu0 }
 0x664   :  { %7488 = vpow2.f32 %v3669_v45  ;;  %v3866_v35 = vmul.f32 1.442695, %v3849_v17  ;;  %v7099_v17 = vld [vmem:[#allocation3 + $0x54] sm:$0xf0] }
 0x665   :  { %2663 = vst [vmem:[#allocation3 + $0x68] sm:$0xf] %v2647_v52  ;;  %3717 = vadd.xlane.f32.xlu2 %v9090_v41  ;;  %3723 = vadd.xlane.f32.xlu0 %v9092_v51  ;;  %7490 = vpow2.f32 %v3663_v54  ;;  %v9969_v52 = vld [vmem:[#allocation38_spill] sm:$0xff]  ;;  %v9970_v54 = vld [vmem:[#allocation32_spill] sm:$0xff] }
 0x666   :  { %3343 = vmatmul.bf16.gmra.mxu3 %v9964_v22  ;;  %7492 = vpow2.f32 %v3665_v27  ;;  %v9973_v27 = vld [vmem:[#allocation77_spill] sm:$0xff] }
 0x667   :  { %3725 = vadd.xlane.f32.xlu1 %v9094_v10  ;;  %7494 = vpow2.f32 %v3864_v18  ;;  %v6778_v18 = vld [vmem:[#allocation3 + $0x50] sm:$0xf] }
 0x668   :  { %v7485_v44 = vpop.eup %7484  ;;  %v2629_v13 = vpop.f32.mrf.mxu3  ;;  %7496 = vpow2.f32 %v3866_v35  ;;  %v9974_v35 = vld [vmem:[#allocation30_spill] sm:$0xff] }
 0x669   :  { %v2630_v28 = vadd.f32 %v2629_v13, %v2580_v7  ;;  %v3214_v24 = vmul.f32 %v7485_v44, %v9965_v39  ;;  %v9106_v56 = vpop.eup %7486  ;;  %v3821_v22 = vpop.xlane.xlu2 %3820 }
 0x66a   :  { %v9108_v31 = vpop.eup %7488  ;;  %v3850_v42 = vsub.f32 %v9973_v27, %v3821_v22  ;;  %v7095_v22 = vld [vmem:[#allocation3 + $0x34] sm:$0xf0]  ;;  %v7093_v27 = vld [vmem:[#allocation3 + $0x24] sm:$0xf0] }
 0x66b   :  { %v2648_v55 = vpack.c.bf16 %v2630_v28, %v2630_v28  ;;  %v3225_v30 = vpack.c.bf16 %v3215_v5, %v3214_v24  ;;  %v9114_v9 = vpop.eup %7490  ;;  %v9134_v13 = vpop.f32.mrf.mxu0  ;;  %v9972_v24 = vld [vmem:[#allocation35_spill] sm:$0xff] }
 0x66c   :  { %v9122_v45 = vpop.eup %7492  ;;  %v3851_v6 = vsub.f32 %v9972_v24, %v3823_v14  ;;  %v3868_v60 = vmul.f32 1.442695, %v3850_v42  ;;  %v6762_v24 = vld [vmem:[#allocation3 + $0x30] sm:$0xf]  ;;  %v6754_v42 = vld [vmem:[#allocation3 + $0x20] sm:$0xf] }
 0x66d   :  { %2664 = vst [vmem:[#allocation3 + $0x70] sm:$0xf] %v2648_v55  ;;  %3721 = vadd.xlane.f32.xlu2 %v9106_v56  ;;  %3701 = vadd.xlane.f32.xlu0 %v9108_v31  ;;  %v9130_v7 = vpop.eup %7494  ;;  %v7101_v55 = vld [vmem:[#allocation3 + $0x64] sm:$0xf0] }
 0x66e   :  { %3309 = vmatmul.bf16.gmra.mxu2 %v3225_v30  ;;  %v9132_v44 = vpop.eup %7496  ;;  %v6786_v30 = vld [vmem:[#allocation3 + $0x60] sm:$0xf]  ;;  %v3870_v26 = vmul.f32 1.442695, %v3851_v6  ;;  %v6763_v6 = vor.u32 %v7095_v22, %v6762_v24 }
 0x66f   :  { %3695 = vadd.xlane.f32.xlu1 %v9114_v9  ;;  %v6787_v47 = vor.u32 %v7101_v55, %v6786_v30  ;;  %v6755_v55 = vor.u32 %v7093_v27, %v6754_v42  ;;  %v7091_v30 = vld [vmem:[#allocation3 + $0x14] sm:$0xf0] }
 0x670   :  { %v2631_v12 = vpop.f32.mrf.mxu3  ;;  %7498 = vpow2.f32 %v3870_v26  ;;  %v6746_v26 = vld [vmem:[#allocation3 + $0x10] sm:$0xf] }
 0x671   :  { %v2632_v53 = vadd.f32 %v2631_v12, %v2582_v40  ;;  %v9141_v40 = vpop.f32.mrf.mxu1  ;;  %7500 = vpow2.f32 %v3868_v60  ;;  %v9975_v60 = vld [vmem:[#allocation29_spill] sm:$0xff] }
 0x673   :  { %v2649_v38 = vpack.c.bf16 %v2632_v53, %v2632_v53  ;;  %v9143_v12 = vpop.f32.mrf.mxu0  ;;  %v6779_v53 = vor.u32 %v7099_v17, %v6778_v18  ;;  %v7089_v17 = vld [vmem:[#allocation3 + $0x4] sm:$0xf0]  ;;  %v6738_v18 = vld [vmem:[#allocation3] sm:$0xf] }
 0x674   :  { %v6794_v28 = vld [vmem:[#allocation3 + $0x70] sm:$0xf] }
 0x675   :  { %2665 = vst [vmem:[#allocation3 + $0x78] sm:$0xf] %v2649_v38  ;;  %3697 = vadd.xlane.f32.xlu2 %v9122_v45  ;;  %3828 = vmax.xlane.f32.xlu0 %v9969_v52  ;;  %v7097_v38 = vld [vmem:[#allocation3 + $0x44] sm:$0xf0] }
 0x676   :  { %3348 = vmatmul.bf16.gmra.mxu3 %v9970_v54  ;;  %v6770_v54 = vld [vmem:[#allocation3 + $0x40] sm:$0xf] }
 0x677   :  { %3830 = vmax.xlane.f32.xlu1 %v9971_v48  ;;  %v6771_v14 = vor.u32 %v7097_v38, %v6770_v54 }
 0x67c   :  { %v7103_v39 = vld [vmem:[#allocation3 + $0x74] sm:$0xf0] }
 0x67d   :  { %3896 = vadd.xlane.f32.xlu2 %v9130_v7  ;;  %3898 = vadd.xlane.f32.xlu0 %v9132_v44  ;;  %v6795_v5 = vor.u32 %v7103_v39, %v6794_v28  ;;  %v9149_v28 = vpop.eup %7498 }
 0x67e   :  { %v9151_v39 = vpop.eup %7500 }
 0x67f   :  { %3832 = vmax.xlane.f32.xlu1 %v9117_v37  ;;  %5270 = vmatpush.bf16.msra.mxu0 %v6795_v5  ;;  %v9155_v5 = vpop.f32.mrf.mxu1 }
 0x683   :  { %5271 = vmatpush.bf16.msra.mxu0 %v6787_v47  ;;  %v6747_v47 = vor.u32 %v7091_v30, %v6746_v26 }
 0x685   :  { %3834 = vmax.xlane.f32.xlu2 %v9128_v36  ;;  %4383 = vmax.xlane.f32.xlu0 %v9143_v12 }
 0x686   :  { %3353 = vmatmul.bf16.gmra.mxu3 %v9974_v35  ;;  %v6739_v35 = vor.u32 %v7089_v17, %v6738_v18  ;;  %v9977_v17 = vld [vmem:[#allocation28_spill] sm:$0xff] }
 0x687   :  { %4379 = vmax.xlane.f32.xlu1 %v9120_v16  ;;  %5272 = vmatpush.bf16.msra.mxu0 %v6779_v53 }
 0x68b   :  { %5273 = vmatpush.bf16.msra.mxu0 %v6771_v14 }
 0x68d   :  { %3900 = vadd.xlane.f32.xlu2 %v9151_v39  ;;  %3902 = vadd.xlane.f32.xlu0 %v9149_v28 }
 0x68f   :  { %3838 = vmax.xlane.f32.xlu1 %v9155_v5  ;;  %5274 = vmatpush.bf16.msra.mxu0 %v6763_v6  ;;  %v9164_v6 = vpop.f32.mrf.mxu1 }
 0x690   :  { %9976 = vst [vmem:[#allocation24_spill] sm:$0xff] %v9164_v6 }
 0x693   :  { %5275 = vmatpush.bf16.msra.mxu0 %v6755_v55 }
 0x695   :  { %4381 = vmax.xlane.f32.xlu2 %v9134_v13  ;;  %3836 = vmax.xlane.f32.xlu0 %v9141_v40 }
 0x696   :  { %3358 = vmatmul.bf16.gmra.mxu3 %v9975_v60 }
 0x697   :  { %5276 = vmatpush.bf16.msra.mxu0 %v6747_v47  ;;  %v9173_v18 = vpop.f32.mrf.mxu1 }
 0x698   :  { %9978 = vst [vmem:[#allocation82_spill] sm:$0xff] %v9173_v18 }
 0x699   :  { %v3183_v53 = vpop.xlane.xlu2 %3182 }
 0x69a   :  { %v3181_v38 = vpop.xlane.xlu1 %3180  ;;  %7502 = vrcp.f32 %v3183_v53 }
 0x69b   :  { %7504 = vrcp.f32 %v3181_v38  ;;  %5277 = vmatpush.bf16.msra.mxu0 %v6739_v35 }
 0x69d   :  { %4375 = vmax.xlane.f32.xlu2 %v9084_v23  ;;  %4377 = vmax.xlane.f32.xlu0 %v9102_v63 }
 0x6a0   :  { %v7503_v54 = vpop.eup %7502 }
 0x6a1   :  { %v7505_v14 = vpop.eup %7504  ;;  %v3827_v22 = vpop.xlane.xlu2 %3826  ;;  %v3217_v24 = vmul.f32 %v7503_v54, %v8988_v0 }
 0x6a2   :  { %v3825_v27 = vpop.xlane.xlu1 %3824  ;;  %v3853_v42 = vsub.f32 %v9945_v57, %v3827_v22  ;;  %v3216_v55 = vmul.f32 %v7505_v14, %v8991_v32  ;;  %v3185_v32 = vpop.xlane.xlu0 %3184 }
 0x6a3   :  { %v3852_v30 = vsub.f32 %v9946_v59, %v3825_v27  ;;  %v9980_v59 = vld [vmem:[#allocation27_spill] sm:$0xff]  ;;  %v3285_v54 = vpop.f32.mrf.mxu2 }
 0x6a4   :  { %v3874_v26 = vmul.f32 1.442695, %v3853_v42  ;;  %v3226_v47 = vpack.c.bf16 %v3217_v24, %v3216_v55  ;;  %v9191_v55 = vpop.f32.mrf.mxu1 }
 0x6a5   :  { %v3872_v60 = vmul.f32 1.442695, %v3852_v30  ;;  %4371 = vmax.xlane.f32.xlu0 %v9040_v20 }
 0x6a6   :  { %7506 = vpow2.f32 %v3874_v26  ;;  %3363 = vmatmul.bf16.gmra.mxu3 %v9977_v17  ;;  %3314 = vmatmul.bf16.gmra.mxu2 %v3226_v47  ;;  %v9195_v47 = vpop.f32.mrf.mxu0 }
 0x6a7   :  { %7508 = vpow2.f32 %v3872_v60  ;;  %9981 = vst [vmem:[#allocation65_spill] sm:$0xff] %v9195_v47 }
 0x6a8   :  { %7510 = vrcp.f32 %v3185_v32 }
 0x6ab   :  { %v3287_v26 = vpop.f32.mrf.mxu2 }
 0x6ac   :  { %v9171_v0 = vpop.eup %7506 }
 0x6ad   :  { %v9175_v53 = vpop.eup %7508  ;;  %3906 = vadd.xlane.f32.xlu2 %v9171_v0  ;;  %3842 = vmax.xlane.f32.xlu0 %v9173_v18 }
 0x6ae   :  { %9979 = vst [vmem:[#allocation23_spill] sm:$0xff] %v9175_v53  ;;  %3904 = vadd.xlane.f32.xlu1 %v9175_v53  ;;  %v7511_v35 = vpop.eup %7510 }
 0x6af   :  { %v3218_v22 = vmul.f32 %v7511_v35, %v8986_v8 }
 0x6b2   :  { %v3187_v57 = vpop.xlane.xlu1 %3186 }
 0x6b3   :  { %7512 = vrcp.f32 %v3187_v57  ;;  %v3290_v57 = vpop.f32.mrf.mxu2 }
 0x6b5   :  { %3840 = vmax.xlane.f32.xlu2 %v9164_v6 }
 0x6b6   :  { %4373 = vmax.xlane.f32.xlu1 %v9059_v61  ;;  %3368 = vmatmul.bf16.gmra.mxu3 %v9980_v59  ;;  %v9203_v59 = vpop.f32.mrf.mxu1 }
 0x6b7   :  { %9982 = vst [vmem:[#allocation63_spill] sm:$0xff] %v9203_v59 }
 0x6b9   :  { %v7513_v38 = vpop.eup %7512 }
 0x6ba   :  { %v9183_v14 = vpop.xlane.xlu1 %3709  ;;  %v3219_v24 = vmul.f32 %v7513_v38, %v9018_v19 }
 0x6bb   :  { %v3292_v6 = vpop.f32.mrf.mxu2 }
 0x6bc   :  { %v3227_v27 = vpack.c.bf16 %v3219_v24, %v3218_v22 }
 0x6bd   :  { %4369 = vmax.xlane.f32.xlu2 %v9020_v25 }
 0x6be   :  { %4367 = vmax.xlane.f32.xlu1 %v9010_v21  ;;  %3319 = vmatmul.bf16.gmra.mxu2 %v3227_v27 }
 0x6c0   :  { %v9189_v42 = vpop.xlane.xlu0 %3705 }
 0x6c2   :  { %v9193_v30 = vpop.xlane.xlu1 %3713 }
 0x6c5   :  { %4363 = vmax.xlane.f32.xlu2 %v8981_v62  ;;  %v3295_v62 = vpop.f32.mrf.mxu2 }
 0x6c6   :  { %4385 = vmax.xlane.f32.xlu1 %v9195_v47 }
 0x6c8   :  { %v9199_v8 = vpop.xlane.xlu2 %3699  ;;  %v9201_v19 = vpop.xlane.xlu0 %3707 }
 0x6c9   :  { %v3334_v60 = vpop.f32.mrf.mxu3 }
 0x6ca   :  { %v3335_v17 = vadd.f32 %v3334_v60, %v3285_v54  ;;  %v3716_v32 = vpop.xlane.xlu1 %3715 }
 0x6cc   :  { %v3374_v35 = vpack.c.bf16 %v3335_v17, %v3335_v17 }
 0x6cd   :  { %3846 = vmax.xlane.f32.xlu2 %v9203_v59 }
 0x6ce   :  { %3390 = vst [vmem:[#allocation3 + $0x80] sm:$0xf] %v3374_v35 }
 0x6d0   :  { %v9206_v38 = vpop.xlane.xlu2 %3703  ;;  %v3712_v22 = vpop.xlane.xlu0 %3711 }
 0x6d1   :  { %v3336_v24 = vpop.f32.mrf.mxu3 }
 0x6d2   :  { %v3337_v27 = vadd.f32 %v3336_v24, %v3287_v26  ;;  %v3720_v1 = vpop.xlane.xlu1 %3719 }
 0x6d4   :  { %v3375_v25 = vpack.c.bf16 %v3337_v27, %v3337_v27 }
 0x6d6   :  { %3391 = vst [vmem:[#allocation3 + $0x88] sm:$0xf] %v3375_v25 }
 0x6d8   :  { %v3718_v61 = vpop.xlane.xlu2 %3717  ;;  %v3724_v23 = vpop.xlane.xlu0 %3723 }
 0x6d9   :  { %v3339_v54 = vpop.f32.mrf.mxu3  ;;  %7514 = vrcp.f32 %v3724_v23 }
 0x6da   :  { %v3340_v60 = vadd.f32 %v3339_v54, %v3290_v57  ;;  %v3726_v47 = vpop.xlane.xlu1 %3725 }
 0x6db   :  { %7516 = vrcp.f32 %v3726_v47 }
 0x6dc   :  { %v3376_v17 = vpack.c.bf16 %v3340_v60, %v3340_v60  ;;  %7518 = vrcp.f32 %v3720_v1  ;;  %v3297_v60 = vpop.f32.mrf.mxu2 }
 0x6de   :  { %3392 = vst [vmem:[#allocation3 + $0x90] sm:$0xf] %v3376_v17 }
 0x6df   :  { %v7515_v35 = vpop.eup %7514 }
 0x6e0   :  { %v3722_v59 = vpop.xlane.xlu2 %3721  ;;  %v9208_v21 = vpop.xlane.xlu0 %3701  ;;  %v3757_v24 = vmul.f32 %v7515_v35, %v9092_v51 }
 0x6e1   :  { %v7517_v26 = vpop.eup %7516  ;;  %v3341_v27 = vpop.f32.mrf.mxu3  ;;  %7520 = vrcp.f32 %v3722_v59 }
 0x6e2   :  { %v3758_v25 = vmul.f32 %v7517_v26, %v9094_v10  ;;  %v3342_v18 = vadd.f32 %v3341_v27, %v3292_v6  ;;  %v9212_v57 = vpop.xlane.xlu1 %3695  ;;  %v7519_v54 = vpop.eup %7518  ;;  %7522 = vrcp.f32 %v3718_v61 }
 0x6e3   :  { %v3755_v51 = vmul.f32 %v7519_v54, %v9082_v29  ;;  %7524 = vrcp.f32 %v3716_v32 }
 0x6e4   :  { %v3377_v23 = vpack.c.bf16 %v3342_v18, %v3342_v18  ;;  %v3766_v47 = vpack.c.bf16 %v3758_v25, %v3757_v24 }
 0x6e6   :  { %3393 = vst [vmem:[#allocation3 + $0x98] sm:$0xf] %v3377_v23  ;;  %4065 = vmatpush.bf16.xpose.msrb.mxu3 %v3766_v47  ;;  %v3300_v47 = vpop.f32.mrf.mxu2 }
 0x6e7   :  { %v7521_v1 = vpop.eup %7520 }
 0x6e8   :  { %v9214_v17 = vpop.xlane.xlu2 %3697  ;;  %v3829_v53 = vpop.xlane.xlu0 %3828  ;;  %v3756_v59 = vmul.f32 %v7521_v1, %v9106_v56 }
 0x6e9   :  { %v3344_v10 = vpop.f32.mrf.mxu3  ;;  %v3854_v6 = vsub.f32 %v9969_v52, %v3829_v53  ;;  %v7523_v23 = vpop.eup %7522 }
 0x6ea   :  { %v3345_v35 = vadd.f32 %v3344_v10, %v3295_v62  ;;  %v3831_v18 = vpop.xlane.xlu1 %3830  ;;  %v3765_v26 = vpack.c.bf16 %v3756_v59, %v3755_v51  ;;  %v7525_v29 = vpop.eup %7524  ;;  %v3754_v62 = vmul.f32 %v7523_v23, %v9090_v41 }
 0x6eb   :  { %v3876_v24 = vmul.f32 1.442695, %v3854_v6  ;;  %v3855_v27 = vsub.f32 %v9971_v48, %v3831_v18  ;;  %v3753_v54 = vmul.f32 %v7525_v29, %v9061_v4 }
 0x6ec   :  { %v3378_v25 = vpack.c.bf16 %v3345_v35, %v3345_v35 }
 0x6ed   :  { %7526 = vpow2.f32 %v3876_v24  ;;  %v3878_v61 = vmul.f32 1.442695, %v3855_v27 }
 0x6ee   :  { %7528 = vrcp.f32 %v3712_v22  ;;  %3394 = vst [vmem:[#allocation3 + $0xa0] sm:$0xf] %v3378_v25  ;;  %4066 = vmatpush.bf16.xpose.msrb.mxu3 %v3765_v26 }
 0x6ef   :  { %7530 = vpow2.f32 %v3878_v61  ;;  %v9238_v61 = vpop.f32.mrf.mxu1 }
 0x6f0   :  { %7532 = vrcp.f32 %v9193_v30  ;;  %v3897_v56 = vpop.xlane.xlu2 %3896  ;;  %v3899_v52 = vpop.xlane.xlu0 %3898  ;;  %v3764_v30 = vpack.c.bf16 %v3754_v62, %v3753_v54 }
 0x6f1   :  { %v3346_v53 = vpop.f32.mrf.mxu3  ;;  %7534 = vrcp.f32 %v3897_v56 }
 0x6f2   :  { %v3347_v32 = vadd.f32 %v3346_v53, %v3297_v60  ;;  %7536 = vrcp.f32 %v3899_v52  ;;  %v3833_v48 = vpop.xlane.xlu1 %3832 }
 0x6f3   :  { %v9223_v1 = vpop.eup %7526  ;;  %v3856_v22 = vsub.f32 %v9117_v37, %v3833_v48  ;;  %7538 = vrcp.f32 %v9201_v19  ;;  %v3302_v19 = vpop.f32.mrf.mxu2 }
 0x6f4   :  { %v7529_v51 = vpop.eup %7528  ;;  %v3379_v59 = vpack.c.bf16 %v3347_v32, %v3347_v32  ;;  %3908 = vadd.xlane.f32.xlu0 %v9223_v1 }
 0x6f5   :  { %v9227_v10 = vpop.eup %7530  ;;  %v3880_v6 = vmul.f32 1.442695, %v3856_v22  ;;  %v3751_v26 = vmul.f32 %v7529_v51, %v9074_v33 }
 0x6f6   :  { %v7533_v41 = vpop.eup %7532  ;;  %3395 = vst [vmem:[#allocation3 + $0xa8] sm:$0xf] %v3379_v59  ;;  %4067 = vmatpush.bf16.xpose.msrb.mxu3 %v3764_v30  ;;  %3910 = vadd.xlane.f32.xlu1 %v9227_v10 }
 0x6f7   :  { %v7535_v4 = vpop.eup %7534  ;;  %7540 = vpow2.f32 %v3880_v6  ;;  %v3752_v23 = vmul.f32 %v7533_v41, %v9048_v43  ;;  %v9252_v6 = vpop.f32.mrf.mxu1 }
 0x6f8   :  { %v7537_v60 = vpop.eup %7536  ;;  %v3944_v37 = vmul.f32 %v7535_v4, %v9130_v7  ;;  %v3835_v35 = vpop.xlane.xlu2 %3834  ;;  %7542 = vrcp.f32 %v9183_v14 }
 0x6f9   :  { %v9232_v18 = vpop.xlane.xlu0 %4383  ;;  %v3945_v24 = vmul.f32 %v7537_v60, %v9132_v44  ;;  %v3349_v27 = vpop.f32.mrf.mxu3  ;;  %v3763_v62 = vpack.c.bf16 %v3752_v23, %v3751_v26  ;;  %v3857_v33 = vsub.f32 %v9128_v36, %v3835_v35  ;;  %7544 = vrcp.f32 %v9206_v38 }
 0x6fa   :  { %v3350_v25 = vadd.f32 %v3349_v27, %v3300_v47  ;;  %v7539_v56 = vpop.eup %7538  ;;  %v4380_v7 = vpop.xlane.xlu1 %4379  ;;  %7546 = vrcp.f32 %v9189_v42 }
 0x6fb   :  { %v3960_v29 = vpack.c.bf16 %v3945_v24, %v3944_v37  ;;  %v4399_v43 = vsub.f32 %v9120_v16, %v4380_v7  ;;  %v3749_v32 = vmul.f32 %v7539_v56, %v9055_v46  ;;  %v3882_v48 = vmul.f32 1.442695, %v3857_v33  ;;  %v3305_v54 = vpop.f32.mrf.mxu2 }
 0x6fc   :  { %v3380_v52 = vpack.c.bf16 %v3350_v25, %v3350_v25  ;;  %4365 = vmax.xlane.f32.xlu0 %v8998_v49 }
 0x6fd   :  { %v9241_v53 = vpop.eup %7540  ;;  %4024 = vmatmul.bf16.vlgmr.msrb.gmra.mxu2 %v3960_v29  ;;  %v4427_v59 = vmul.f32 1.442695, %v4399_v43 }
 0x6fe   :  { %3396 = vst [vmem:[#allocation3 + $0xb0] sm:$0xf] %v3380_v52  ;;  %4068 = vmatpush.bf16.xpose.msrb.mxu3 %v3763_v62  ;;  %3912 = vadd.xlane.f32.xlu2 %v9241_v53  ;;  %v7543_v44 = vpop.eup %7542 }
 0x6ff   :  { %3844 = vmax.xlane.f32.xlu1 %v9191_v55  ;;  %v3750_v51 = vmul.f32 %v7543_v44, %v9032_v11  ;;  %v7545_v30 = vpop.eup %7544 }
 0x700   :  { %v3901_v14 = vpop.xlane.xlu2 %3900  ;;  %v7547_v42 = vpop.eup %7546  ;;  %v3747_v4 = vmul.f32 %v7545_v30, %v9076_v2 }
 0x701   :  { %v3903_v47 = vpop.xlane.xlu0 %3902  ;;  %v3351_v36 = vpop.f32.mrf.mxu3  ;;  %7548 = vrcp.f32 %v3901_v14  ;;  %v3762_v16 = vpack.c.bf16 %v3750_v51, %v3749_v32  ;;  %v3748_v26 = vmul.f32 %v7547_v42, %v9043_v50 }
 0x702   :  { %v3352_v22 = vadd.f32 %v3351_v36, %v3302_v19  ;;  %7550 = vrcp.f32 %v3903_v47  ;;  %v3839_v2 = vpop.xlane.xlu1 %3838  ;;  %v9983_v47 = vld [vmem:[#allocation48_spill] sm:$0xff] }
 0x703   :  { %7552 = vpow2.f32 %v3882_v48  ;;  %v3307_v25 = vpop.f32.mrf.mxu2  ;;  %v3859_v56 = vsub.f32 %v9155_v5, %v3839_v2  ;;  %v9985_v2 = vld [vmem:[#allocation23_spill] sm:$0xff] }
 0x704   :  { %v3381_v38 = vpack.c.bf16 %v3352_v22, %v3352_v22  ;;  %4359 = vmax.xlane.f32.xlu0 %v8956_v58  ;;  %7554 = vrcp.f32 %v9208_v21 }
 0x705   :  { %7556 = vpow2.f32 %v4427_v59  ;;  %v3886_v43 = vmul.f32 1.442695, %v3859_v56 }
 0x706   :  { %3397 = vst [vmem:[#allocation3 + $0xb8] sm:$0xf] %v3381_v38  ;;  %4069 = vmatpush.bf16.xpose.msrb.mxu3 %v3762_v16  ;;  %4558 = vmax.xlane.f32.xlu2 %v9252_v6  ;;  %7558 = vrcp.f32 %v9199_v8 }
 0x707   :  { %v7549_v46 = vpop.eup %7548  ;;  %4361 = vmax.xlane.f32.xlu1 %v8969_v15  ;;  %7560 = vrcp.f32 %v9214_v17 }
 0x708   :  { %v7551_v11 = vpop.eup %7550  ;;  %v3946_v41 = vmul.f32 %v7549_v46, %v9151_v39  ;;  %v3761_v39 = vpack.c.bf16 %v3748_v26, %v3747_v4  ;;  %7562 = vrcp.f32 %v9212_v57  ;;  %v4401_v57 = vsub.f32 %v9143_v12, %v9232_v18 }
 0x709   :  { %v3354_v60 = vpop.f32.mrf.mxu3  ;;  %v3837_v37 = vpop.xlane.xlu0 %3836  ;;  %v3947_v35 = vmul.f32 %v7551_v11, %v9149_v28 }
 0x70a   :  { %v3355_v21 = vadd.f32 %v3354_v60, %v3305_v54  ;;  %v9262_v24 = vpop.eup %7552  ;;  %v3858_v8 = vsub.f32 %v9141_v40, %v3837_v37  ;;  %v4382_v28 = vpop.xlane.xlu2 %4381  ;;  %v4431_v38 = vmul.f32 1.442695, %v4401_v57 }
 0x70b   :  { %v3961_v27 = vpack.c.bf16 %v3947_v35, %v3946_v41  ;;  %v7555_v19 = vpop.eup %7554  ;;  %v4400_v48 = vsub.f32 %v9134_v13, %v4382_v28  ;;  %v3310_v5 = vpop.f32.mrf.mxu2 }
 0x70c   :  { %v3382_v23 = vpack.c.bf16 %v3355_v21, %v3355_v21  ;;  %3914 = vadd.xlane.f32.xlu0 %v9262_v24  ;;  %v9265_v29 = vpop.eup %7556  ;;  %v3746_v52 = vmul.f32 %v7555_v19, %v9108_v31  ;;  %v3884_v7 = vmul.f32 1.442695, %v3858_v8  ;;  %v9984_v21 = vld [vmem:[#allocation15_spill] sm:$0xff] }
 0x70d   :  { %4029 = vmatmul.bf16.gmra.mxu2 %v3961_v27  ;;  %v7559_v50 = vpop.eup %7558  ;;  %v4429_v54 = vmul.f32 1.442695, %v4400_v48  ;;  %v9987_v48 = vld [vmem:[#allocation59_spill] sm:$0xff] }
 0x70e   :  { %3398 = vst [vmem:[#allocation3 + $0xc0] sm:$0xf] %v3382_v23  ;;  %4070 = vmatpush.bf16.xpose.msrb.mxu3 %v3761_v39  ;;  %4459 = vadd.xlane.f32.xlu2 %v9265_v29  ;;  %v3745_v33 = vmul.f32 %v7559_v50, %v9057_v3  ;;  %v7561_v17 = vpop.eup %7560  ;;  %7564 = vpow2.f32 %v3884_v7 }
 0x70f   :  { %4357 = vmax.xlane.f32.xlu1 %v8942_v34  ;;  %v7563_v31 = vpop.eup %7562  ;;  %7566 = vpow2.f32 %v3886_v43  ;;  %v3744_v36 = vmul.f32 %v7561_v17, %v9122_v45 }
 0x710   :  { %v3760_v32 = vpack.c.bf16 %v3746_v52, %v3745_v33  ;;  %v3743_v13 = vmul.f32 %v7563_v31, %v9114_v9  ;;  %7568 = vpow2.f32 %v4429_v54 }
 0x711   :  { %v3356_v62 = vpop.f32.mrf.mxu3  ;;  %v4378_v44 = vpop.xlane.xlu0 %4377  ;;  %7570 = vpow2.f32 %v4431_v38  ;;  %v9989_v38 = vld [vmem:[#allocation18_spill] sm:$0xff] }
 0x712   :  { %v3357_v40 = vadd.f32 %v3356_v62, %v3307_v25  ;;  %v9280_v3 = vpop.xlane.xlu2 %4375  ;;  %v3759_v30 = vpack.c.bf16 %v3744_v36, %v3743_v13  ;;  %v4398_v12 = vsub.f32 %v9102_v63, %v4378_v44  ;;  %v9305_v62 = vpop.f32.mrf.mxu1 }
 0x713   :  { %v3312_v45 = vpop.f32.mrf.mxu2 }
 0x714   :  { %v3383_v14 = vpack.c.bf16 %v3357_v40, %v3357_v40  ;;  %4355 = vmax.xlane.f32.xlu0 %v9983_v47  ;;  %v9284_v59 = vpop.eup %7564  ;;  %v4425_v11 = vmul.f32 1.442695, %v4398_v12  ;;  %v9986_v40 = vld [vmem:[#allocation82_spill] sm:$0xff]  ;;  %v9990_v12 = vld [vmem:[#allocation65_spill] sm:$0xff] }
 0x715   :  { %v9288_v42 = vpop.eup %7566 }
 0x716   :  { %3399 = vst [vmem:[#allocation3 + $0xc8] sm:$0xf] %v3383_v14  ;;  %4071 = vmatpush.bf16.xpose.msrb.mxu3 %v3760_v32  ;;  %v9292_v37 = vpop.eup %7568 }
 0x717   :  { %4556 = vmax.xlane.f32.xlu1 %v9238_v61  ;;  %v9296_v26 = vpop.eup %7570 }
 0x719   :  { %v3359_v22 = vpop.f32.mrf.mxu3  ;;  %v4372_v18 = vpop.xlane.xlu0 %4371 }
 0x71a   :  { %v3360_v51 = vadd.f32 %v3359_v22, %v3310_v5  ;;  %v4395_v9 = vsub.f32 %v9040_v20, %v4372_v18  ;;  %v9988_v22 = vld [vmem:[#allocation76_spill] sm:$0xff] }
 0x71c   :  { %v3384_v16 = vpack.c.bf16 %v3360_v51, %v3360_v51  ;;  %3916 = vadd.xlane.f32.xlu0 %v9284_v59  ;;  %v4419_v63 = vmul.f32 1.442695, %v4395_v9  ;;  %v9317_v51 = vpop.f32.mrf.mxu1 }
 0x71e   :  { %3400 = vst [vmem:[#allocation3 + $0xd0] sm:$0xf] %v3384_v16  ;;  %4072 = vmatpush.bf16.xpose.msrb.mxu3 %v3759_v30 }
 0x71f   :  { %3918 = vadd.xlane.f32.xlu1 %v9288_v42 }
 0x720   :  { %v3907_v46 = vpop.xlane.xlu2 %3906 }
 0x721   :  { %v3361_v41 = vpop.f32.mrf.mxu3  ;;  %v3905_v4 = vpop.xlane.xlu1 %3904  ;;  %7572 = vrcp.f32 %v3907_v46 }
 0x722   :  { %v3362_v60 = vadd.f32 %v3361_v41, %v3312_v45  ;;  %7574 = vrcp.f32 %v3905_v4  ;;  %v3843_v28 = vpop.xlane.xlu0 %3842  ;;  %v9991_v41 = vld [vmem:[#allocation49_spill] sm:$0xff] }
 0x723   :  { %7576 = vpow2.f32 %v4425_v11  ;;  %v3861_v33 = vsub.f32 %v9986_v40, %v3843_v28  ;;  %v4397_v4 = vsub.f32 %v9991_v41, %v9280_v3  ;;  %v9993_v3 = vld [vmem:[#allocation52_spill] sm:$0xff] }
 0x724   :  { %v3385_v35 = vpack.c.bf16 %v3362_v60, %v3362_v60  ;;  %4461 = vadd.xlane.f32.xlu0 %v9292_v37  ;;  %7578 = vpow2.f32 %v4419_v63  ;;  %v9330_v63 = vpop.f32.mrf.mxu1 }
 0x725   :  { %4073 = vmatmul.bf16.vlgmr.msrb.gmra.mxu3 %v9984_v21  ;;  %v3890_v14 = vmul.f32 1.442695, %v3861_v33  ;;  %v4423_v21 = vmul.f32 1.442695, %v4397_v4  ;;  %v7111_v4 = vld [vmem:[#allocation3 + $0xb4] sm:$0xf0] }
 0x726   :  { %3401 = vst [vmem:[#allocation3 + $0xd8] sm:$0xf] %v3385_v35 }
 0x727   :  { %v7573_v20 = vpop.eup %7572  ;;  %4463 = vadd.xlane.f32.xlu1 %v9296_v26  ;;  %7580 = vpow2.f32 %v3890_v14  ;;  %v9994_v14 = vld [vmem:[#allocation24_spill] sm:$0xff] }
 0x728   :  { %v7575_v27 = vpop.eup %7574  ;;  %v9299_v19 = vpop.xlane.xlu2 %3840  ;;  %v3949_v25 = vmul.f32 %v7573_v20, %v9171_v0 }
 0x729   :  { %v3364_v23 = vpop.f32.mrf.mxu3  ;;  %v4374_v39 = vpop.xlane.xlu1 %4373  ;;  %v3948_v8 = vmul.f32 %v7575_v27, %v9985_v2  ;;  %v9992_v2 = vld [vmem:[#allocation74_spill] sm:$0xff] }
 0x72a   :  { %v3315_v50 = vpop.f32.mrf.mxu2  ;;  %v9303_v56 = vpop.eup %7576 }
 0x72b   :  { %v3365_v52 = vadd.f32 %v3364_v23, %v3315_v50  ;;  %v3962_v7 = vpack.c.bf16 %v3949_v25, %v3948_v8  ;;  %v9309_v43 = vpop.eup %7578  ;;  %v4396_v8 = vsub.f32 %v9993_v3, %v4374_v39 }
 0x72c   :  { %4457 = vadd.xlane.f32.xlu0 %v9303_v56  ;;  %v9340_v40 = vpop.f32.mrf.mxu1 }
 0x72d   :  { %v3386_v44 = vpack.c.bf16 %v3365_v52, %v3365_v52  ;;  %4034 = vmatmul.bf16.gmra.mxu2 %v3962_v7  ;;  %v9322_v45 = vpop.eup %7580  ;;  %v4421_v52 = vmul.f32 1.442695, %v4396_v8  ;;  %v7109_v8 = vld [vmem:[#allocation3 + $0xa4] sm:$0xf0] }
 0x72f   :  { %3402 = vst [vmem:[#allocation3 + $0xe0] sm:$0xf] %v3386_v44  ;;  %4451 = vadd.xlane.f32.xlu1 %v9309_v43 }
 0x730   :  { %v9312_v0 = vpop.xlane.xlu2 %4369 }
 0x731   :  { %v3366_v32 = vpop.f32.mrf.mxu3  ;;  %v4368_v17 = vpop.xlane.xlu1 %4367 }
 0x732   :  { %v4393_v5 = vsub.f32 %v9987_v48, %v4368_v17  ;;  %v3317_v31 = vpop.f32.mrf.mxu2  ;;  %v9995_v48 = vld [vmem:[#allocation72_spill] sm:$0xff] }
 0x733   :  { %v3367_v57 = vadd.f32 %v3366_v32, %v3317_v31  ;;  %v3860_v32 = vsub.f32 %v9994_v14, %v9299_v19  ;;  %v6810_v14 = vld [vmem:[#allocation3 + $0x90] sm:$0xf] }
 0x734   :  { %v4415_v36 = vmul.f32 1.442695, %v4393_v5  ;;  %4560 = vmax.xlane.f32.xlu0 %v9305_v62 }
 0x735   :  { %v3387_v54 = vpack.c.bf16 %v3367_v57, %v3367_v57  ;;  %4078 = vmatmul.bf16.gmra.mxu3 %v9988_v22  ;;  %v3888_v39 = vmul.f32 1.442695, %v3860_v32  ;;  %v9996_v57 = vld [vmem:[#allocation25_spill] sm:$0xff] }
 0x736   :  { %7582 = vpow2.f32 %v4415_v36  ;;  %v4394_v36 = vsub.f32 %v9996_v57, %v9312_v0 }
 0x737   :  { %3403 = vst [vmem:[#allocation3 + $0xe8] sm:$0xf] %v3387_v54  ;;  %4562 = vmax.xlane.f32.xlu1 %v9317_v51 }
 0x738   :  { %v4364_v13 = vpop.xlane.xlu2 %4363 }
 0x739   :  { %v4391_v16 = vsub.f32 %v9989_v38, %v4364_v13  ;;  %v4386_v30 = vpop.xlane.xlu1 %4385  ;;  %v3369_v60 = vpop.f32.mrf.mxu3  ;;  %v6850_v13 = vld [vmem:[#allocation3 + $0xe0] sm:$0xf]  ;;  %v4417_v38 = vmul.f32 1.442695, %v4394_v36 }
 0x73a   :  { %v4402_v18 = vsub.f32 %v9990_v12, %v4386_v30  ;;  %v6842_v12 = vld [vmem:[#allocation3 + $0xd0] sm:$0xf] }
 0x73b   :  { %v4411_v9 = vmul.f32 1.442695, %v4391_v16  ;;  %v7115_v16 = vld [vmem:[#allocation3 + $0xd4] sm:$0xf0] }
 0x73c   :  { %v9324_v46 = vpop.eup %7582  ;;  %v4433_v11 = vmul.f32 1.442695, %v4402_v18  ;;  %3922 = vadd.xlane.f32.xlu0 %v9322_v45  ;;  %v6843_v18 = vor.u32 %v7115_v16, %v6842_v12 }
 0x73d   :  { %7584 = vpow2.f32 %v4411_v9  ;;  %v7113_v9 = vld [vmem:[#allocation3 + $0xc4] sm:$0xf0] }
 0x73e   :  { %7586 = vpow2.f32 %v4433_v11  ;;  %v7117_v22 = vld [vmem:[#allocation3 + $0xe4] sm:$0xf0]  ;;  %v6834_v11 = vld [vmem:[#allocation3 + $0xc0] sm:$0xf] }
 0x73f   :  { %4447 = vadd.xlane.f32.xlu1 %v9324_v46  ;;  %7588 = vpow2.f32 %v4423_v21  ;;  %v6851_v19 = vor.u32 %v7117_v22, %v6850_v13  ;;  %v6835_v41 = vor.u32 %v7113_v9, %v6834_v11  ;;  %v6826_v21 = vld [vmem:[#allocation3 + $0xb0] sm:$0xf] }
 0x740   :  { %7590 = vpow2.f32 %v4421_v52  ;;  %v3847_v0 = vpop.xlane.xlu2 %3846 }
 0x741   :  { %v3320_v35 = vpop.f32.mrf.mxu2  ;;  %v3371_v28 = vpop.f32.mrf.mxu3  ;;  %7592 = vpow2.f32 %v3888_v39 }
 0x742   :  { %v3370_v20 = vadd.f32 %v3369_v60, %v3320_v35  ;;  %7594 = vpow2.f32 %v4417_v38  ;;  %v9997_v35 = vld [vmem:[#allocation69_spill] sm:$0xff] }
 0x743   :  { %v9332_v27 = vpop.eup %7584 }
 0x744   :  { %v9334_v25 = vpop.eup %7586  ;;  %v3388_v23 = vpack.c.bf16 %v3370_v20, %v3370_v20  ;;  %4443 = vadd.xlane.f32.xlu0 %v9332_v27  ;;  %v9998_v20 = vld [vmem:[#allocation63_spill] sm:$0xff] }
 0x745   :  { %4465 = vadd.xlane.f32.xlu2 %v9334_v25  ;;  %4083 = vmatmul.bf16.gmra.mxu3 %v9992_v2  ;;  %v9342_v33 = vpop.eup %7588  ;;  %v6827_v2 = vor.u32 %v7111_v4, %v6826_v21 }
 0x746   :  { %3404 = vst [vmem:[#allocation3 + $0xf0] sm:$0xf] %v3388_v23  ;;  %v9348_v17 = vpop.eup %7590  ;;  %v3863_v23 = vsub.f32 %v9998_v20, %v3847_v0 }
 0x747   :  { %v9354_v30 = vpop.eup %7592 }
 0x748   :  { %v9357_v60 = vpop.eup %7594  ;;  %v3894_v52 = vmul.f32 1.442695, %v3863_v23 }
 0x749   :  { %v3322_v50 = vpop.f32.mrf.mxu2 }
 0x74a   :  { %v3372_v7 = vadd.f32 %v3371_v28, %v3322_v50  ;;  %v6818_v50 = vld [vmem:[#allocation3 + $0xa0] sm:$0xf] }
 0x74c   :  { %v3389_v44 = vpack.c.bf16 %v3372_v7, %v3372_v7  ;;  %4566 = vmax.xlane.f32.xlu0 %v9340_v40  ;;  %v6819_v7 = vor.u32 %v7109_v8, %v6818_v50  ;;  %v10000_v50 = vld [vmem:[#allocation66_spill] sm:$0xff] }
 0x74d   :  { %4455 = vadd.xlane.f32.xlu2 %v9342_v33  ;;  %v6858_v5 = vld [vmem:[#allocation3 + $0xf0] sm:$0xf] }
 0x74e   :  { %3405 = vst [vmem:[#allocation3 + $0xf8] sm:$0xf] %v3389_v44  ;;  %v7107_v44 = vld [vmem:[#allocation3 + $0x94] sm:$0xf0] }
 0x74f   :  { %v6811_v39 = vor.u32 %v7107_v44, %v6810_v14 }
 0x755   :  { %4453 = vadd.xlane.f32.xlu2 %v9348_v17  ;;  %4088 = vmatmul.bf16.gmra.mxu3 %v9995_v48  ;;  %v7119_v31 = vld [vmem:[#allocation3 + $0xf4] sm:$0xf0] }
 0x756   :  { %v6859_v54 = vor.u32 %v7119_v31, %v6858_v5  ;;  %v7105_v5 = vld [vmem:[#allocation3 + $0x84] sm:$0xf0] }
 0x758   :  { %5359 = vmatpush.bf16.msrb.mxu1 %v6859_v54  ;;  %v6802_v54 = vld [vmem:[#allocation3 + $0x80] sm:$0xf] }
 0x75c   :  { %5360 = vmatpush.bf16.msrb.mxu1 %v6851_v19  ;;  %v6803_v19 = vor.u32 %v7105_v5, %v6802_v54 }
 0x75d   :  { %3920 = vadd.xlane.f32.xlu2 %v9354_v30 }
 0x760   :  { %5361 = vmatpush.bf16.msrb.mxu1 %v6843_v18 }
 0x764   :  { %5362 = vmatpush.bf16.msrb.mxu1 %v6835_v41 }
 0x765   :  { %4449 = vadd.xlane.f32.xlu2 %v9357_v60  ;;  %4093 = vmatmul.bf16.gmra.mxu3 %v9997_v35  ;;  %v9376_v35 = vpop.f32.mrf.mxu1 }
 0x767   :  { %v3909_v3 = vpop.xlane.xlu0 %3908 }
 0x768   :  { %7596 = vrcp.f32 %v3909_v3  ;;  %5363 = vmatpush.bf16.msrb.mxu1 %v6827_v2 }
 0x769   :  { %v3911_v28 = vpop.xlane.xlu1 %3910 }
 0x76a   :  { %7598 = vrcp.f32 %v3911_v28 }
 0x76b   :  { %7600 = vpow2.f32 %v3894_v52 }
 0x76c   :  { %5364 = vmatpush.bf16.msrb.mxu1 %v6819_v7 }
 0x76d   :  { %4564 = vmax.xlane.f32.xlu2 %v9330_v63  ;;  %v9386_v52 = vpop.f32.mrf.mxu1 }
 0x76e   :  { %v7597_v32 = vpop.eup %7596 }
 0x76f   :  { %v4366_v48 = vpop.xlane.xlu0 %4365  ;;  %v3950_v31 = vmul.f32 %v7597_v32, %v9223_v1  ;;  %v9999_v1 = vld [vmem:[#allocation67_spill] sm:$0xff] }
 0x770   :  { %v7599_v57 = vpop.eup %7598  ;;  %v4392_v36 = vsub.f32 %v8998_v49, %v4366_v48  ;;  %5365 = vmatpush.bf16.msrb.mxu1 %v6811_v39 }
 0x771   :  { %v3951_v22 = vmul.f32 %v7599_v57, %v9227_v10  ;;  %v9367_v18 = vpop.eup %7600  ;;  %v3913_v4 = vpop.xlane.xlu2 %3912 }
 0x772   :  { %v4413_v13 = vmul.f32 1.442695, %v4392_v36  ;;  %v3845_v38 = vpop.xlane.xlu1 %3844 }
 0x773   :  { %v3862_v16 = vsub.f32 %v9191_v55, %v3845_v38  ;;  %v3963_v12 = vpack.c.bf16 %v3951_v22, %v3950_v31 }
 0x774   :  { %7602 = vpow2.f32 %v4413_v13  ;;  %5366 = vmatpush.bf16.msrb.mxu1 %v6803_v19  ;;  %v10001_v19 = vld [vmem:[#allocation64_spill] sm:$0xff] }
 0x775   :  { %3926 = vadd.xlane.f32.xlu2 %v9367_v18  ;;  %4039 = vmatmul.bf16.gmra.mxu2 %v3963_v12  ;;  %v3892_v49 = vmul.f32 1.442695, %v3862_v16  ;;  %v9399_v22 = vpop.f32.mrf.mxu1 }
 0x776   :  { %4098 = vmatmul.bf16.gmra.mxu3 %v9999_v1 }
 0x777   :  { %v4360_v9 = vpop.xlane.xlu0 %4359  ;;  %7604 = vpow2.f32 %v3892_v49 }
 0x778   :  { %v4389_v11 = vsub.f32 %v8956_v58, %v4360_v9 }
 0x779   :  { %v4559_v32 = vpop.xlane.xlu2 %4558 }
 0x77a   :  { %v9372_v10 = vpop.eup %7602  ;;  %v4407_v41 = vmul.f32 1.442695, %v4389_v11  ;;  %v4362_v0 = vpop.xlane.xlu1 %4361  ;;  %v4589_v36 = vsub.f32 %v9252_v6, %v4559_v32 }
 0x77b   :  { %4445 = vadd.xlane.f32.xlu1 %v9372_v10  ;;  %v4390_v55 = vsub.f32 %v8969_v15, %v4362_v0 }
 0x77c   :  { %7606 = vpow2.f32 %v4407_v41 }
 0x77d   :  { %7608 = vrcp.f32 %v3913_v4  ;;  %v4409_v20 = vmul.f32 1.442695, %v4390_v55  ;;  %v9378_v23 = vpop.eup %7604  ;;  %v9413_v41 = vpop.f32.mrf.mxu1 }
 0x77f   :  { %v3915_v21 = vpop.xlane.xlu0 %3914 }
 0x780   :  { %7610 = vrcp.f32 %v3915_v21  ;;  %v4025_v55 = vpop.f32.mrf.mxu2 }
 0x781   :  { %7612 = vpow2.f32 %v4409_v20 }
 0x782   :  { %v9380_v58 = vpop.eup %7606  ;;  %v4358_v2 = vpop.xlane.xlu1 %4357 }
 0x783   :  { %v4388_v3 = vsub.f32 %v8942_v34, %v4358_v2  ;;  %4439 = vadd.xlane.f32.xlu0 %v9380_v58  ;;  %3924 = vadd.xlane.f32.xlu1 %v9378_v23  ;;  %v7609_v8 = vpop.eup %7608 }
 0x784   :  { %v3952_v44 = vmul.f32 %v7609_v8, %v9241_v53 }
 0x785   :  { %v4405_v15 = vmul.f32 1.442695, %v4388_v3  ;;  %v9423_v21 = vpop.f32.mrf.mxu1 }
 0x786   :  { %v7611_v28 = vpop.eup %7610  ;;  %4103 = vmatmul.bf16.gmra.mxu3 %v10000_v50 }
 0x787   :  { %7614 = vpow2.f32 %v4405_v15  ;;  %v4356_v7 = vpop.xlane.xlu0 %4355  ;;  %v3953_v14 = vmul.f32 %v7611_v28, %v9262_v24  ;;  %v9391_v48 = vpop.eup %7612 }
 0x788   :  { %v4387_v34 = vsub.f32 %v9983_v47, %v4356_v7  ;;  %v4606_v47 = vmul.f32 1.442695, %v4589_v36  ;;  %v4027_v28 = vpop.f32.mrf.mxu2 }
 0x789   :  { %v3964_v39 = vpack.c.bf16 %v3953_v14, %v3952_v44 }
 0x78a   :  { %v4403_v5 = vmul.f32 1.442695, %v4387_v34  ;;  %v4557_v31 = vpop.xlane.xlu1 %4556  ;;  %v4460_v34 = vpop.xlane.xlu2 %4459 }
 0x78b   :  { %v4588_v57 = vsub.f32 %v9238_v61, %v4557_v31  ;;  %4441 = vadd.xlane.f32.xlu1 %v9391_v48  ;;  %4044 = vmatmul.bf16.gmra.mxu2 %v3964_v39 }
 0x78c   :  { %7616 = vpow2.f32 %v4403_v5 }
 0x78d   :  { %v9396_v54 = vpop.eup %7614  ;;  %v4604_v53 = vmul.f32 1.442695, %v4588_v57  ;;  %v9436_v36 = vpop.f32.mrf.mxu1 }
 0x78e   :  { %4437 = vadd.xlane.f32.xlu0 %v9396_v54 }
 0x78f   :  { %7618 = vpow2.f32 %v4604_v53  ;;  %v3917_v24 = vpop.xlane.xlu0 %3916 }
 0x790   :  { %7620 = vrcp.f32 %v3917_v24  ;;  %v4030_v57 = vpop.f32.mrf.mxu2 }
 0x792   :  { %v9401_v13 = vpop.eup %7616  ;;  %v3919_v61 = vpop.xlane.xlu1 %3918 }
 0x793   :  { %7622 = vrcp.f32 %v3919_v61  ;;  %4435 = vadd.xlane.f32.xlu2 %v9401_v13  ;;  %4568 = vmax.xlane.f32.xlu1 %v9376_v35 }
 0x794   :  { %7624 = vpow2.f32 %v4606_v47 }
 0x795   :  { %v9405_v6 = vpop.eup %7618 }
 0x796   :  { %v7621_v38 = vpop.eup %7620  ;;  %4636 = vadd.xlane.f32.xlu0 %v9405_v6  ;;  %4108 = vmatmul.bf16.gmra.mxu3 %v10001_v19 }
 0x797   :  { %v4462_v16 = vpop.xlane.xlu0 %4461  ;;  %v3954_v12 = vmul.f32 %v7621_v38, %v9284_v59 }
 0x799   :  { %v7623_v1 = vpop.eup %7622 }
 0x79a   :  { %v9410_v49 = vpop.eup %7624  ;;  %v4464_v9 = vpop.xlane.xlu1 %4463  ;;  %v3955_v11 = vmul.f32 %v7623_v1, %v9288_v42 }
 0x79b   :  { %4570 = vmax.xlane.f32.xlu2 %v9386_v52  ;;  %4638 = vadd.xlane.f32.xlu1 %v9410_v49 }
 0x79c   :  { %v3965_v0 = vpack.c.bf16 %v3955_v11, %v3954_v12  ;;  %v4032_v12 = vpop.f32.mrf.mxu2 }
 0x79e   :  { %4574 = vmax.xlane.f32.xlu0 %v9413_v41  ;;  %4049 = vmatmul.bf16.gmra.mxu2 %v3965_v0 }
 0x79f   :  { %v9418_v4 = vpop.xlane.xlu0 %4457 }
 0x7a2   :  { %v9420_v59 = vpop.xlane.xlu1 %4451 }
 0x7a3   :  { %4572 = vmax.xlane.f32.xlu2 %v9399_v22 }
 0x7a6   :  { %4576 = vmax.xlane.f32.xlu0 %v9423_v21 }
 0x7a7   :  { %v4561_v42 = vpop.xlane.xlu0 %4560 }
 0x7a8   :  { %v4590_v20 = vsub.f32 %v9305_v62, %v4561_v42  ;;  %v4074_v2 = vpop.f32.mrf.mxu3 }
 0x7a9   :  { %v4075_v3 = vadd.f32 %v4074_v2, %v4025_v55 }
 0x7aa   :  { %v4608_v8 = vmul.f32 1.442695, %v4590_v20  ;;  %v4563_v15 = vpop.xlane.xlu1 %4562  ;;  %v9442_v20 = vpop.f32.mrf.mxu1 }
 0x7ab   :  { %v4114_v50 = vpack.c.bf16 %v4075_v3, %v4075_v3  ;;  %v4591_v7 = vsub.f32 %v9317_v51, %v4563_v15 }
 0x7ac   :  { %7626 = vpow2.f32 %v4608_v8 }
 0x7ad   :  { %4130 = vst [vmem:[#allocation3 + $0x4] sm:$0xf] %v4114_v50  ;;  %v4610_v44 = vmul.f32 1.442695, %v4591_v7 }
 0x7af   :  { %7628 = vpow2.f32 %v4610_v44  ;;  %v3923_v14 = vpop.xlane.xlu0 %3922 }
 0x7b0   :  { %v4076_v32 = vpop.f32.mrf.mxu3  ;;  %7630 = vrcp.f32 %v4464_v9 }
 0x7b1   :  { %v4077_v39 = vadd.f32 %v4076_v32, %v4027_v28 }
 0x7b2   :  { %v9428_v5 = vpop.eup %7626 }
 0x7b3   :  { %v4115_v31 = vpack.c.bf16 %v4077_v39, %v4077_v39  ;;  %4640 = vadd.xlane.f32.xlu1 %v9428_v5 }
 0x7b5   :  { %v9431_v62 = vpop.eup %7628  ;;  %4131 = vst [vmem:[#allocation3 + $0xc] sm:$0xf] %v4115_v31 }
 0x7b6   :  { %4642 = vadd.xlane.f32.xlu2 %v9431_v62  ;;  %v7631_v38 = vpop.eup %7630 }
 0x7b7   :  { %v9434_v51 = vpop.xlane.xlu0 %4443  ;;  %v4497_v9 = vmul.f32 %v7631_v38, %v9296_v26 }
 0x7b8   :  { %v4466_v53 = vpop.xlane.xlu2 %4465  ;;  %v4079_v24 = vpop.f32.mrf.mxu3 }
 0x7b9   :  { %7632 = vrcp.f32 %v4466_v53  ;;  %v4080_v47 = vadd.f32 %v4079_v24, %v4030_v57 }
 0x7ba   :  { %7634 = vrcp.f32 %v4462_v16 }
 0x7bb   :  { %4578 = vmax.xlane.f32.xlu1 %v9436_v36  ;;  %v4116_v61 = vpack.c.bf16 %v4080_v47, %v4080_v47  ;;  %7636 = vrcp.f32 %v4460_v34 }
 0x7bd   :  { %4132 = vst [vmem:[#allocation3 + $0x14] sm:$0xf] %v4116_v61 }
 0x7bf   :  { %v7633_v19 = vpop.eup %7632  ;;  %v4567_v1 = vpop.xlane.xlu0 %4566 }
 0x7c0   :  { %v4498_v11 = vmul.f32 %v7633_v19, %v9334_v25  ;;  %v4593_v0 = vsub.f32 %v9340_v40, %v4567_v1  ;;  %v4456_v55 = vpop.xlane.xlu2 %4455  ;;  %v4081_v42 = vpop.f32.mrf.mxu3 }
 0x7c1   :  { %v4082_v3 = vadd.f32 %v4081_v42, %v4032_v12  ;;  %v7635_v15 = vpop.eup %7634  ;;  %v4035_v25 = vpop.f32.mrf.mxu2 }
 0x7c2   :  { %v4614_v2 = vmul.f32 1.442695, %v4593_v0  ;;  %v4506_v8 = vpack.c.bf16 %v4498_v11, %v4497_v9  ;;  %v7637_v28 = vpop.eup %7636  ;;  %v4496_v26 = vmul.f32 %v7635_v15, %v9292_v37  ;;  %v4448_v12 = vpop.xlane.xlu1 %4447 }
 0x7c3   :  { %4580 = vmax.xlane.f32.xlu1 %v9442_v20  ;;  %v4117_v16 = vpack.c.bf16 %v4082_v3, %v4082_v3  ;;  %v4495_v50 = vmul.f32 %v7637_v28, %v9265_v29 }
 0x7c4   :  { %7638 = vpow2.f32 %v4614_v2  ;;  %4805 = vmatpush.bf16.xpose.msra.mxu3 %v4506_v8 }
 0x7c5   :  { %7640 = vrcp.f32 %v4456_v55  ;;  %4133 = vst [vmem:[#allocation3 + $0x1c] sm:$0xf] %v4117_v16  ;;  %v4505_v32 = vpack.c.bf16 %v4496_v26, %v4495_v50  ;;  %v9465_v26 = vpop.f32.mrf.mxu1 }
 0x7c6   :  { %7642 = vrcp.f32 %v9418_v4 }
 0x7c8   :  { %v4454_v40 = vpop.xlane.xlu2 %4453  ;;  %v4084_v7 = vpop.f32.mrf.mxu3 }
 0x7c9   :  { %v4085_v34 = vadd.f32 %v4084_v7, %v4035_v25  ;;  %7644 = vrcp.f32 %v4454_v40  ;;  %v4037_v53 = vpop.f32.mrf.mxu2 }
 0x7ca   :  { %v9448_v44 = vpop.eup %7638  ;;  %7646 = vrcp.f32 %v9420_v59 }
 0x7cb   :  { %v7641_v39 = vpop.eup %7640  ;;  %4646 = vadd.xlane.f32.xlu0 %v9448_v44  ;;  %v4118_v31 = vpack.c.bf16 %v4085_v34, %v4085_v34  ;;  %7648 = vrcp.f32 %v3923_v14 }
 0x7cc   :  { %4806 = vmatpush.bf16.xpose.msra.mxu3 %v4505_v32  ;;  %v7643_v57 = vpop.eup %7642  ;;  %v4493_v37 = vmul.f32 %v7641_v39, %v9342_v33 }
 0x7cd   :  { %4134 = vst [vmem:[#allocation3 + $0x24] sm:$0xf] %v4118_v31  ;;  %v4494_v29 = vmul.f32 %v7643_v57, %v9303_v56  ;;  %v9470_v31 = vpop.f32.mrf.mxu1 }
 0x7cf   :  { %v4504_v61 = vpack.c.bf16 %v4494_v29, %v4493_v37  ;;  %v7645_v38 = vpop.eup %7644 }
 0x7d0   :  { %v3921_v4 = vpop.xlane.xlu2 %3920  ;;  %v4086_v24 = vpop.f32.mrf.mxu3  ;;  %v4492_v59 = vmul.f32 %v7645_v38, %v9348_v17 }
 0x7d1   :  { %7650 = vrcp.f32 %v3921_v4  ;;  %v4087_v47 = vadd.f32 %v4086_v24, %v4037_v53  ;;  %v7647_v19 = vpop.eup %7646 }
 0x7d2   :  { %v7649_v9 = vpop.eup %7648  ;;  %7652 = vrcp.f32 %v4448_v12  ;;  %v4491_v0 = vmul.f32 %v7647_v19, %v9309_v43 }
 0x7d3   :  { %v4119_v1 = vpack.c.bf16 %v4087_v47, %v4087_v47  ;;  %v3957_v56 = vmul.f32 %v7649_v9, %v9322_v45 }
 0x7d4   :  { %4807 = vmatpush.bf16.xpose.msra.mxu3 %v4504_v61  ;;  %v4503_v42 = vpack.c.bf16 %v4492_v59, %v4491_v0 }
 0x7d5   :  { %4135 = vst [vmem:[#allocation3 + $0x2c] sm:$0xf] %v4119_v1 }
 0x7d7   :  { %v7651_v11 = vpop.eup %7650 }
 0x7d8   :  { %v4450_v33 = vpop.xlane.xlu2 %4449  ;;  %v3956_v14 = vmul.f32 %v7651_v11, %v9354_v30  ;;  %v7653_v2 = vpop.eup %7652 }
 0x7d9   :  { %7654 = vrcp.f32 %v4450_v33  ;;  %v4489_v15 = vmul.f32 %v7653_v2, %v9324_v46 }
 0x7da   :  { %v3966_v55 = vpack.c.bf16 %v3957_v56, %v3956_v14 }
 0x7dc   :  { %4054 = vmatmul.bf16.gmra.mxu2 %v3966_v55  ;;  %4808 = vmatpush.bf16.xpose.msra.mxu3 %v4503_v42 }
 0x7df   :  { %v7655_v3 = vpop.eup %7654 }
 0x7e0   :  { %v4565_v8 = vpop.xlane.xlu2 %4564  ;;  %v4490_v17 = vmul.f32 %v7655_v3, %v9357_v60 }
 0x7e1   :  { %v4592_v16 = vsub.f32 %v9330_v63, %v4565_v8  ;;  %v4089_v63 = vpop.f32.mrf.mxu3 }
 0x7e2   :  { %v4502_v28 = vpack.c.bf16 %v4490_v17, %v4489_v15 }
 0x7e3   :  { %v4612_v30 = vmul.f32 1.442695, %v4592_v16 }
 0x7e4   :  { %4809 = vmatpush.bf16.xpose.msra.mxu3 %v4502_v28 }
 0x7e5   :  { %7656 = vpow2.f32 %v4612_v30 }
 0x7e6   :  { %7658 = vrcp.f32 %v9434_v51 }
 0x7e8   :  { %v3927_v46 = vpop.xlane.xlu2 %3926 }
 0x7e9   :  { %v4091_v53 = vpop.f32.mrf.mxu3 }
 0x7eb   :  { %v9461_v45 = vpop.eup %7656 }
 0x7ec   :  { %4644 = vadd.xlane.f32.xlu2 %v9461_v45  ;;  %v7659_v25 = vpop.eup %7658 }
 0x7ed   :  { %v4487_v50 = vmul.f32 %v7659_v25, %v9332_v27 }
 0x7ee   :  { %v4446_v43 = vpop.xlane.xlu1 %4445 }
 0x7ef   :  { %7660 = vrcp.f32 %v4446_v43 }
 0x7f0   :  { %7662 = vrcp.f32 %v3927_v46 }
 0x7f1   :  { %v4094_v0 = vpop.f32.mrf.mxu3 }
 0x7f4   :  { %4582 = vmax.xlane.f32.xlu2 %v9465_v26 }
 0x7f5   :  { %v7661_v60 = vpop.eup %7660 }
 0x7f6   :  { %v3925_v40 = vpop.xlane.xlu1 %3924  ;;  %v4488_v7 = vmul.f32 %v7661_v60, %v9372_v10  ;;  %v4440_v34 = vpop.xlane.xlu0 %4439 }
 0x7f7   :  { %7664 = vrcp.f32 %v3925_v40  ;;  %v7663_v37 = vpop.eup %7662 }
 0x7f8   :  { %v4040_v32 = vpop.f32.mrf.mxu2  ;;  %v4501_v51 = vpack.c.bf16 %v4488_v7, %v4487_v50  ;;  %7666 = vrcp.f32 %v4440_v34  ;;  %v3959_v10 = vmul.f32 %v7663_v37, %v9367_v18  ;;  %v10002_v37 = vld [vmem:[#allocation55_spill] sm:$0xff] }
 0x7f9   :  { %v4090_v39 = vadd.f32 %v4089_v63, %v4040_v32 }
 0x7fa   :  { %4810 = vmatpush.bf16.xpose.msra.mxu3 %v4501_v51  ;;  %v9490_v51 = vpop.f32.mrf.mxu1 }
 0x7fb   :  { %v4120_v57 = vpack.c.bf16 %v4090_v39, %v4090_v39 }
 0x7fc   :  { %4584 = vmax.xlane.f32.xlu2 %v9470_v31 }
 0x7fd   :  { %4136 = vst [vmem:[#allocation3 + $0x34] sm:$0xf] %v4120_v57  ;;  %v7665_v4 = vpop.eup %7664 }
 0x7fe   :  { %v4442_v29 = vpop.xlane.xlu1 %4441  ;;  %v3958_v27 = vmul.f32 %v7665_v4, %v9378_v23  ;;  %v7667_v19 = vpop.eup %7666 }
 0x7ff   :  { %7668 = vrcp.f32 %v4442_v29  ;;  %v4485_v11 = vmul.f32 %v7667_v19, %v9380_v58 }
 0x800   :  { %v4042_v24 = vpop.f32.mrf.mxu2  ;;  %v3967_v38 = vpack.c.bf16 %v3959_v10, %v3958_v27 }
 0x801   :  { %v4438_v47 = vpop.xlane.xlu0 %4437  ;;  %v4092_v61 = vadd.f32 %v4091_v53, %v4042_v24 }
 0x802   :  { %4059 = vmatmul.bf16.gmra.mxu2 %v3967_v38  ;;  %7670 = vrcp.f32 %v4438_v47 }
 0x803   :  { %v4121_v12 = vpack.c.bf16 %v4092_v61, %v4092_v61 }
 0x805   :  { %v7669_v1 = vpop.eup %7668  ;;  %4137 = vst [vmem:[#allocation3 + $0x3c] sm:$0xf] %v4121_v12  ;;  %v10003_v12 = vld [vmem:[#allocation17_spill] sm:$0xff] }
 0x806   :  { %v4436_v9 = vpop.xlane.xlu2 %4435  ;;  %v4569_v59 = vpop.xlane.xlu1 %4568  ;;  %v4486_v33 = vmul.f32 %v7669_v1, %v9391_v48 }
 0x807   :  { %7672 = vrcp.f32 %v4436_v9  ;;  %v4594_v18 = vsub.f32 %v9376_v35, %v4569_v59 }
 0x808   :  { %v4500_v23 = vpack.c.bf16 %v4486_v33, %v4485_v11  ;;  %v7671_v55 = vpop.eup %7670 }
 0x809   :  { %v4616_v14 = vmul.f32 1.442695, %v4594_v18  ;;  %v4637_v56 = vpop.xlane.xlu0 %4636  ;;  %v4484_v58 = vmul.f32 %v7671_v55, %v9396_v54 }
 0x80a   :  { %4811 = vmatpush.bf16.xpose.msra.mxu3 %v4500_v23 }
 0x80b   :  { %7674 = vpow2.f32 %v4616_v14 }
 0x80c   :  { %7676 = vrcp.f32 %v4637_v56 }
 0x80d   :  { %v7673_v42 = vpop.eup %7672 }
 0x80e   :  { %v4571_v2 = vpop.xlane.xlu2 %4570  ;;  %v4639_v3 = vpop.xlane.xlu1 %4638  ;;  %v4483_v8 = vmul.f32 %v7673_v42, %v9401_v13 }
 0x80f   :  { %v4595_v48 = vsub.f32 %v9386_v52, %v4571_v2  ;;  %7678 = vrcp.f32 %v4639_v3  ;;  %v4045_v15 = vpop.f32.mrf.mxu2  ;;  %v4096_v13 = vpop.f32.mrf.mxu3 }
 0x810   :  { %v4095_v35 = vadd.f32 %v4094_v0, %v4045_v15  ;;  %v4499_v17 = vpack.c.bf16 %v4484_v58, %v4483_v8  ;;  %v10004_v8 = vld [vmem:[#allocation61_spill] sm:$0xff] }
 0x811   :  { %v9481_v16 = vpop.eup %7674  ;;  %v4618_v28 = vmul.f32 1.442695, %v4595_v48  ;;  %v4575_v30 = vpop.xlane.xlu0 %4574 }
 0x812   :  { %v4122_v43 = vpack.c.bf16 %v4095_v35, %v4095_v35  ;;  %v4597_v25 = vsub.f32 %v9413_v41, %v4575_v30  ;;  %4812 = vmatpush.bf16.xpose.msra.mxu3 %v4499_v17  ;;  %4648 = vadd.xlane.f32.xlu0 %v9481_v16  ;;  %v7677_v46 = vpop.eup %7676 }
 0x813   :  { %7680 = vpow2.f32 %v4618_v28  ;;  %v4684_v60 = vmul.f32 %v7677_v46, %v9405_v6 }
 0x814   :  { %4138 = vst [vmem:[#allocation3 + $0x44] sm:$0xf] %v4122_v43  ;;  %v4622_v54 = vmul.f32 1.442695, %v4597_v25 }
 0x815   :  { %v7679_v52 = vpop.eup %7678 }
 0x816   :  { %v4685_v63 = vmul.f32 %v7679_v52, %v9410_v49  ;;  %7682 = vpow2.f32 %v4622_v54  ;;  %v4573_v40 = vpop.xlane.xlu2 %4572 }
 0x817   :  { %v4596_v50 = vsub.f32 %v9399_v22, %v4573_v40  ;;  %v4047_v7 = vpop.f32.mrf.mxu2  ;;  %v4099_v29 = vpop.f32.mrf.mxu3 }
 0x818   :  { %v4700_v34 = vpack.c.bf16 %v4685_v63, %v4684_v60  ;;  %v4097_v41 = vadd.f32 %v4096_v13, %v4047_v7  ;;  %v10007_v63 = vld [vmem:[#allocation44_spill] sm:$0xff] }
 0x819   :  { %v9488_v32 = vpop.eup %7680  ;;  %v4620_v39 = vmul.f32 1.442695, %v4596_v50  ;;  %v4577_v57 = vpop.xlane.xlu0 %4576  ;;  %4813 = vmatmul.bf16.vlgmr.msra.gmra.mxu3 %v10002_v37 }
 0x81a   :  { %v4123_v4 = vpack.c.bf16 %v4097_v41, %v4097_v41  ;;  %v4598_v6 = vsub.f32 %v9423_v21, %v4577_v57  ;;  %4650 = vadd.xlane.f32.xlu1 %v9488_v32  ;;  %4586 = vmax.xlane.f32.xlu0 %v9490_v51 }
 0x81b   :  { %7684 = vpow2.f32 %v4620_v39  ;;  %4764 = vmatmul.bf16.vlgmr.msra.gmra.mxu2 %v4700_v34 }
 0x81c   :  { %v9496_v22 = vpop.eup %7682  ;;  %4139 = vst [vmem:[#allocation3 + $0x4c] sm:$0xf] %v4123_v4  ;;  %v4624_v49 = vmul.f32 1.442695, %v4598_v6 }
 0x81d   :  { %4654 = vadd.xlane.f32.xlu2 %v9496_v22 }
 0x81e   :  { %7686 = vpow2.f32 %v4624_v49 }
 0x81f   :  { %v4101_v61 = vpop.f32.mrf.mxu3 }
 0x821   :  { %v9499_v27 = vpop.eup %7684  ;;  %v4050_v10 = vpop.f32.mrf.mxu2 }
 0x822   :  { %v4100_v53 = vadd.f32 %v4099_v29, %v4050_v10  ;;  %4652 = vadd.xlane.f32.xlu1 %v9499_v27  ;;  %v10009_v29 = vld [vmem:[#allocation41_spill] sm:$0xff] }
 0x824   :  { %v9502_v21 = vpop.eup %7686  ;;  %v4124_v24 = vpack.c.bf16 %v4100_v53, %v4100_v53 }
 0x825   :  { %4656 = vadd.xlane.f32.xlu0 %v9502_v21 }
 0x826   :  { %4140 = vst [vmem:[#allocation3 + $0x54] sm:$0xf] %v4124_v24  ;;  %v4641_v47 = vpop.xlane.xlu1 %4640 }
 0x827   :  { %7688 = vrcp.f32 %v4641_v47  ;;  %v4104_v48 = vpop.f32.mrf.mxu3 }
 0x829   :  { %v4643_v38 = vpop.xlane.xlu2 %4642  ;;  %v4052_v19 = vpop.f32.mrf.mxu2  ;;  %4818 = vmatmul.bf16.gmra.mxu3 %v10003_v12 }
 0x82a   :  { %7690 = vrcp.f32 %v4643_v38  ;;  %v4102_v1 = vadd.f32 %v4101_v61, %v4052_v19 }
 0x82c   :  { %v4125_v9 = vpack.c.bf16 %v4102_v1, %v4102_v1 }
 0x82d   :  { %v7689_v59 = vpop.eup %7688 }
 0x82e   :  { %4141 = vst [vmem:[#allocation3 + $0x5c] sm:$0xf] %v4125_v9  ;;  %v4579_v11 = vpop.xlane.xlu1 %4578  ;;  %v4686_v18 = vmul.f32 %v7689_v59, %v9428_v5  ;;  %v10005_v5 = vld [vmem:[#allocation26_spill] sm:$0xff] }
 0x82f   :  { %v4599_v33 = vsub.f32 %v9436_v36, %v4579_v11  ;;  %v4106_v43 = vpop.f32.mrf.mxu3 }
 0x830   :  { %v7691_v23 = vpop.eup %7690 }
 0x831   :  { %v4626_v14 = vmul.f32 1.442695, %v4599_v33  ;;  %v4687_v56 = vmul.f32 %v7691_v23, %v9431_v62  ;;  %v10006_v62 = vld [vmem:[#allocation51_spill] sm:$0xff] }
 0x833   :  { %7692 = vpow2.f32 %v4626_v14  ;;  %v4701_v0 = vpack.c.bf16 %v4687_v56, %v4686_v18 }
 0x835   :  { %4769 = vmatmul.bf16.gmra.mxu2 %v4701_v0 }
 0x836   :  { %v4581_v55 = vpop.xlane.xlu1 %4580 }
 0x837   :  { %v4600_v42 = vsub.f32 %v9442_v20, %v4581_v55 }
 0x839   :  { %v9510_v2 = vpop.eup %7692  ;;  %v4628_v3 = vmul.f32 1.442695, %v4600_v42  ;;  %4823 = vmatmul.bf16.gmra.mxu3 %v10004_v8  ;;  %v6780_v8 = vld [vmem:[#allocation3 + $0x58] sm:$0xf0] }
 0x83a   :  { %4658 = vadd.xlane.f32.xlu1 %v9510_v2 }
 0x83b   :  { %7694 = vpow2.f32 %v4628_v3 }
 0x83e   :  { %v4647_v58 = vpop.xlane.xlu0 %4646 }
 0x83f   :  { %7696 = vrcp.f32 %v4647_v58  ;;  %v7098_v58 = vld [vmem:[#allocation3 + $0x54] sm:$0xf] }
 0x841   :  { %v9514_v36 = vpop.eup %7694 }
 0x842   :  { %4660 = vadd.xlane.f32.xlu2 %v9514_v36 }
 0x845   :  { %v7697_v28 = vpop.eup %7696 }
 0x846   :  { %v4689_v54 = vmul.f32 %v7697_v28, %v9448_v44  ;;  %v10008_v44 = vld [vmem:[#allocation40_spill] sm:$0xff] }
 0x849   :  { %4828 = vmatmul.bf16.gmra.mxu3 %v10005_v5 }
 0x859   :  { %4833 = vmatmul.bf16.gmra.mxu3 %v10006_v62 }
 0x85f   :  { %v4645_v20 = vpop.xlane.xlu2 %4644  ;;  %v4055_v15 = vpop.f32.mrf.mxu2 }
 0x860   :  { %7698 = vrcp.f32 %v4645_v20  ;;  %v4105_v35 = vadd.f32 %v4104_v48, %v4055_v15  ;;  %v6783_v20 = vor.u32 %v7098_v58, %v6780_v8 }
 0x862   :  { %v4126_v17 = vpack.c.bf16 %v4105_v35, %v4105_v35  ;;  %v6772_v35 = vld [vmem:[#allocation3 + $0x48] sm:$0xf0] }
 0x864   :  { %4142 = vst [vmem:[#allocation3 + $0x64] sm:$0xf] %v4126_v17 }
 0x866   :  { %v7699_v30 = vpop.eup %7698 }
 0x867   :  { %v4583_v25 = vpop.xlane.xlu2 %4582  ;;  %v4057_v46 = vpop.f32.mrf.mxu2  ;;  %v4688_v13 = vmul.f32 %v7699_v30, %v9461_v45  ;;  %v7096_v30 = vld [vmem:[#allocation3 + $0x44] sm:$0xf] }
 0x868   :  { %v4601_v52 = vsub.f32 %v9465_v26, %v4583_v25  ;;  %v4107_v60 = vadd.f32 %v4106_v43, %v4057_v46  ;;  %v4109_v26 = vpop.f32.mrf.mxu3  ;;  %v6775_v46 = vor.u32 %v7096_v30, %v6772_v35 }
 0x869   :  { %4838 = vmatmul.bf16.gmra.mxu3 %v10007_v63  ;;  %v4702_v40 = vpack.c.bf16 %v4689_v54, %v4688_v13  ;;  %v6764_v54 = vld [vmem:[#allocation3 + $0x38] sm:$0xf0]  ;;  %v7094_v63 = vld [vmem:[#allocation3 + $0x34] sm:$0xf] }
 0x86a   :  { %v4630_v50 = vmul.f32 1.442695, %v4601_v52  ;;  %v4127_v7 = vpack.c.bf16 %v4107_v60, %v4107_v60 }
 0x86b   :  { %4774 = vmatmul.bf16.gmra.mxu2 %v4702_v40  ;;  %v6767_v40 = vor.u32 %v7094_v63, %v6764_v54 }
 0x86c   :  { %7700 = vpow2.f32 %v4630_v50  ;;  %4143 = vst [vmem:[#allocation3 + $0x6c] sm:$0xf] %v4127_v7  ;;  %v6756_v50 = vld [vmem:[#allocation3 + $0x28] sm:$0xf0]  ;;  %v7092_v7 = vld [vmem:[#allocation3 + $0x24] sm:$0xf] }
 0x86f   :  { %v4585_v34 = vpop.xlane.xlu2 %4584 }
 0x870   :  { %v4602_v41 = vsub.f32 %v9470_v31, %v4585_v34  ;;  %v4111_v53 = vpop.f32.mrf.mxu3  ;;  %v6759_v34 = vor.u32 %v7092_v7, %v6756_v50 }
 0x872   :  { %v9524_v39 = vpop.eup %7700  ;;  %v4632_v57 = vmul.f32 1.442695, %v4602_v41  ;;  %v6748_v41 = vld [vmem:[#allocation3 + $0x18] sm:$0xf0] }
 0x873   :  { %4662 = vadd.xlane.f32.xlu0 %v9524_v39  ;;  %v6788_v55 = vld [vmem:[#allocation3 + $0x68] sm:$0xf0] }
 0x874   :  { %7702 = vpow2.f32 %v4632_v57  ;;  %v7090_v57 = vld [vmem:[#allocation3 + $0x14] sm:$0xf] }
 0x879   :  { %4843 = vmatmul.bf16.gmra.mxu3 %v10008_v44  ;;  %v6751_v44 = vor.u32 %v7090_v57, %v6748_v41 }
 0x87a   :  { %v9528_v45 = vpop.eup %7702 }
 0x87b   :  { %4664 = vadd.xlane.f32.xlu1 %v9528_v45 }
 0x885   :  { %v4649_v37 = vpop.xlane.xlu0 %4648  ;;  %v4060_v4 = vpop.f32.mrf.mxu2 }
 0x886   :  { %v4110_v6 = vadd.f32 %v4109_v26, %v4060_v4  ;;  %7704 = vrcp.f32 %v4649_v37  ;;  %v6740_v37 = vld [vmem:[#allocation3 + $0x8] sm:$0xf0] }
 0x888   :  { %v4128_v49 = vpack.c.bf16 %v4110_v6, %v4110_v6 }
 0x889   :  { %4848 = vmatmul.bf16.gmra.mxu3 %v10009_v29  ;;  %v7088_v29 = vld [vmem:[#allocation3 + $0x4] sm:$0xf] }
 0x88a   :  { %4144 = vst [vmem:[#allocation3 + $0x74] sm:$0xf] %v4128_v49 }
 0x88c   :  { %v7705_v12 = vpop.eup %7704 }
 0x88d   :  { %v4587_v31 = vpop.xlane.xlu0 %4586  ;;  %v4651_v10 = vpop.xlane.xlu1 %4650  ;;  %v4690_v9 = vmul.f32 %v7705_v12, %v9481_v16  ;;  %v7100_v16 = vld [vmem:[#allocation3 + $0x64] sm:$0xf] }
 0x88e   :  { %v4603_v24 = vsub.f32 %v9490_v51, %v4587_v31  ;;  %7706 = vrcp.f32 %v4651_v10  ;;  %v4062_v47 = vpop.f32.mrf.mxu2  ;;  %v6743_v31 = vor.u32 %v7088_v29, %v6740_v37 }
 0x88f   :  { %v4112_v61 = vadd.f32 %v4111_v53, %v4062_v47 }
 0x890   :  { %v4634_v38 = vmul.f32 1.442695, %v4603_v24  ;;  %v4655_v51 = vpop.xlane.xlu2 %4654 }
 0x891   :  { %v4129_v19 = vpack.c.bf16 %v4112_v61, %v4112_v61  ;;  %v7102_v23 = vld [vmem:[#allocation3 + $0x74] sm:$0xf] }
 0x892   :  { %7708 = vpow2.f32 %v4634_v38 }
 0x893   :  { %4145 = vst [vmem:[#allocation3 + $0x7c] sm:$0xf] %v4129_v19 }
 0x894   :  { %v7707_v1 = vpop.eup %7706 }
 0x895   :  { %v4691_v59 = vmul.f32 %v7707_v1, %v9488_v32  ;;  %v4653_v18 = vpop.xlane.xlu1 %4652  ;;  %v6791_v32 = vor.u32 %v7100_v16, %v6788_v55 }
 0x896   :  { %7710 = vrcp.f32 %v4653_v18 }
 0x897   :  { %v4703_v11 = vpack.c.bf16 %v4691_v59, %v4690_v9  ;;  %7712 = vrcp.f32 %v4655_v51 }
 0x898   :  { %v9535_v33 = vpop.eup %7708  ;;  %v4657_v52 = vpop.xlane.xlu0 %4656 }
 0x899   :  { %4666 = vadd.xlane.f32.xlu2 %v9535_v33  ;;  %4779 = vmatmul.bf16.gmra.mxu2 %v4703_v11  ;;  %7714 = vrcp.f32 %v4657_v52 }
 0x89a   :  { %v6796_v14 = vld [vmem:[#allocation3 + $0x78] sm:$0xf0] }
 0x89b   :  { %v6799_v56 = vor.u32 %v7102_v23, %v6796_v14 }
 0x89c   :  { %v4814_v0 = vpop.f32.mrf.mxu3  ;;  %v7711_v5 = vpop.eup %7710 }
 0x89d   :  { %5448 = vmatpush.bf16.msrb.mxu2 %v6799_v56  ;;  %v7713_v48 = vpop.eup %7712  ;;  %v4692_v17 = vmul.f32 %v7711_v5, %v9499_v27 }
 0x89e   :  { %v4765_v42 = vpop.f32.mrf.mxu2  ;;  %v4693_v43 = vmul.f32 %v7713_v48, %v9496_v22 }
 0x89f   :  { %v4815_v3 = vadd.f32 %v4814_v0, %v4765_v42  ;;  %v7715_v22 = vpop.eup %7714 }
 0x8a0   :  { %v4704_v13 = vpack.c.bf16 %v4693_v43, %v4692_v17  ;;  %v4694_v4 = vmul.f32 %v7715_v22, %v9502_v21 }
 0x8a1   :  { %v4854_v62 = vpack.c.bf16 %v4815_v3, %v4815_v3  ;;  %5449 = vmatpush.bf16.msrb.mxu2 %v6791_v32 }
 0x8a3   :  { %4870 = vst [vmem:[#allocation3 + $0x84] sm:$0xf] %v4854_v62 }
 0x8a4   :  { %v4816_v15 = vpop.f32.mrf.mxu3 }
 0x8a5   :  { %5450 = vmatpush.bf16.msrb.mxu2 %v6783_v20 }
 0x8a6   :  { %v4767_v28 = vpop.f32.mrf.mxu2 }
 0x8a7   :  { %v4817_v25 = vadd.f32 %v4816_v15, %v4767_v28 }
 0x8a9   :  { %v4855_v60 = vpack.c.bf16 %v4817_v25, %v4817_v25  ;;  %5451 = vmatpush.bf16.msrb.mxu2 %v6775_v46 }
 0x8aa   :  { %4784 = vmatmul.bf16.gmra.mxu2 %v4704_v13 }
 0x8ab   :  { %4871 = vst [vmem:[#allocation3 + $0x8c] sm:$0xf] %v4855_v60 }
 0x8ac   :  { %v4819_v49 = vpop.f32.mrf.mxu3 }
 0x8ad   :  { %5452 = vmatpush.bf16.msrb.mxu2 %v6767_v40  ;;  %v4659_v27 = vpop.xlane.xlu1 %4658 }
 0x8ae   :  { %7716 = vrcp.f32 %v4659_v27 }
 0x8b1   :  { %5453 = vmatpush.bf16.msrb.mxu2 %v6759_v34 }
 0x8b4   :  { %v7717_v26 = vpop.eup %7716  ;;  %v4821_v61 = vpop.f32.mrf.mxu3 }
 0x8b5   :  { %5454 = vmatpush.bf16.msrb.mxu2 %v6751_v44  ;;  %v4695_v6 = vmul.f32 %v7717_v26, %v9510_v2  ;;  %v4661_v1 = vpop.xlane.xlu2 %4660 }
 0x8b6   :  { %7718 = vrcp.f32 %v4661_v1 }
 0x8b7   :  { %v4705_v10 = vpack.c.bf16 %v4695_v6, %v4694_v4 }
 0x8b8   :  { %v4770_v53 = vpop.f32.mrf.mxu2 }
 0x8b9   :  { %v4820_v24 = vadd.f32 %v4819_v49, %v4770_v53  ;;  %5455 = vmatpush.bf16.msrb.mxu2 %v6743_v31 }
 0x8ba   :  { %4789 = vmatmul.bf16.gmra.mxu2 %v4705_v10 }
 0x8bb   :  { %v4856_v47 = vpack.c.bf16 %v4820_v24, %v4820_v24 }
 0x8bc   :  { %v7719_v2 = vpop.eup %7718  ;;  %v4824_v9 = vpop.f32.mrf.mxu3 }
 0x8bd   :  { %4872 = vst [vmem:[#allocation3 + $0x94] sm:$0xf] %v4856_v47  ;;  %v4696_v18 = vmul.f32 %v7719_v2, %v9514_v36  ;;  %v6612_v2 = vld [vmem:[#allocation10 + $0x8] sm:$0xf0] }
 0x8c0   :  { %v4772_v38 = vpop.f32.mrf.mxu2 }
 0x8c1   :  { %v4822_v19 = vadd.f32 %v4821_v61, %v4772_v38 }
 0x8c3   :  { %v4857_v12 = vpack.c.bf16 %v4822_v19, %v4822_v19  ;;  %v6610_v19 = vld [vmem:[#allocation10] sm:$0xf] }
 0x8c4   :  { %v4826_v0 = vpop.f32.mrf.mxu3 }
 0x8c5   :  { %4873 = vst [vmem:[#allocation3 + $0x9c] sm:$0xf] %v4857_v12  ;;  %v7057_v12 = vld [vmem:[#allocation10 + $0x4] sm:$0xf0] }
 0x8c6   :  { %v6611_v1 = vor.u32 %v7057_v12, %v6610_v19  ;;  %v6660_v19 = vld [vmem:[#allocation10 + $0x68] sm:$0xf0] }
 0x8c8   :  { %5278 = vmatmul.bf16.vlgmr.msra.gmra.mxu0 %v6611_v1 }
 0x8cc   :  { %v4829_v62 = vpop.f32.mrf.mxu3 }
 0x8d4   :  { %v4831_v20 = vpop.f32.mrf.mxu3 }
 0x8dc   :  { %v4834_v30 = vpop.f32.mrf.mxu3 }
 0x8e4   :  { %v4836_v54 = vpop.f32.mrf.mxu3 }
 0x8e6   :  { %v4663_v21 = vpop.xlane.xlu0 %4662 }
 0x8e7   :  { %7720 = vrcp.f32 %v4663_v21  ;;  %v7056_v21 = vld [vmem:[#allocation10 + $0x4] sm:$0xf] }
 0x8ec   :  { %v4839_v60 = vpop.f32.mrf.mxu3 }
 0x8ed   :  { %v7721_v59 = vpop.eup %7720 }
 0x8ee   :  { %v4775_v11 = vpop.f32.mrf.mxu2  ;;  %v4697_v51 = vmul.f32 %v7721_v59, %v9524_v39  ;;  %v4665_v3 = vpop.xlane.xlu1 %4664 }
 0x8ef   :  { %v4825_v23 = vadd.f32 %v4824_v9, %v4775_v11  ;;  %7722 = vrcp.f32 %v4665_v3  ;;  %v6615_v11 = vor.u32 %v7056_v21, %v6612_v2  ;;  %v7071_v21 = vld [vmem:[#allocation10 + $0x74] sm:$0xf0] }
 0x8f0   :  { %v4706_v14 = vpack.c.bf16 %v4697_v51, %v4696_v18 }
 0x8f1   :  { %v4858_v56 = vpack.c.bf16 %v4825_v23, %v4825_v23  ;;  %5367 = vmatmul.bf16.vlgmr.msrb.gmra.mxu1 %v6615_v11 }
 0x8f2   :  { %4794 = vmatmul.bf16.gmra.mxu2 %v4706_v14 }
 0x8f3   :  { %4874 = vst [vmem:[#allocation3 + $0xa4] sm:$0xf] %v4858_v56  ;;  %v6618_v56 = vld [vmem:[#allocation10 + $0x10] sm:$0xf] }
 0x8f4   :  { %v4841_v27 = vpop.f32.mrf.mxu3 }
 0x8f5   :  { %v7723_v8 = vpop.eup %7722 }
 0x8f6   :  { %v4777_v55 = vpop.f32.mrf.mxu2  ;;  %v4698_v36 = vmul.f32 %v7723_v8, %v9528_v45  ;;  %v7058_v8 = vld [vmem:[#allocation10 + $0x14] sm:$0xf] }
 0x8f7   :  { %v4827_v42 = vadd.f32 %v4826_v0, %v4777_v55  ;;  %v7059_v0 = vld [vmem:[#allocation10 + $0x14] sm:$0xf0] }
 0x8f9   :  { %v4859_v16 = vpack.c.bf16 %v4827_v42, %v4827_v42 }
 0x8fb   :  { %4875 = vst [vmem:[#allocation3 + $0xac] sm:$0xf] %v4859_v16  ;;  %v6619_v16 = vor.u32 %v7059_v0, %v6618_v56  ;;  %v6676_v56 = vld [vmem:[#allocation10 + $0x88] sm:$0xf0] }
 0x8fc   :  { %v4844_v22 = vpop.f32.mrf.mxu3 }
 0x8fd   :  { %5283 = vmatmul.bf16.gmra.mxu0 %v6619_v16 }
 0x904   :  { %v4846_v37 = vpop.f32.mrf.mxu3 }
 0x90c   :  { %v4667_v32 = vpop.xlane.xlu2 %4666  ;;  %v4849_v29 = vpop.f32.mrf.mxu3 }
 0x90d   :  { %7724 = vrcp.f32 %v4667_v32 }
 0x913   :  { %v7725_v5 = vpop.eup %7724 }
 0x914   :  { %v4699_v39 = vmul.f32 %v7725_v5, %v9535_v33  ;;  %v4851_v24 = vpop.f32.mrf.mxu3  ;;  %v6620_v5 = vld [vmem:[#allocation10 + $0x18] sm:$0xf0] }
 0x916   :  { %v4707_v58 = vpack.c.bf16 %v4699_v39, %v4698_v36 }
 0x918   :  { %4799 = vmatmul.bf16.gmra.mxu2 %v4707_v58  ;;  %v6623_v58 = vor.u32 %v7058_v8, %v6620_v5  ;;  %v7726_v5 = vld [vmem:[#allocation5] sm:$0xff] }
 0x91a   :  { %5372 = vmatmul.bf16.gmra.mxu1 %v6623_v58 }
 0x91c   :  { %v4780_v48 = vpop.f32.mrf.mxu2 }
 0x91d   :  { %v4830_v15 = vadd.f32 %v4829_v62, %v4780_v48 }
 0x91f   :  { %v4860_v35 = vpack.c.bf16 %v4830_v15, %v4830_v15  ;;  %v6820_v15 = vld [vmem:[#allocation3 + $0xa8] sm:$0xf0] }
 0x921   :  { %4876 = vst [vmem:[#allocation3 + $0xb4] sm:$0xf] %v4860_v35  ;;  %v7108_v35 = vld [vmem:[#allocation3 + $0xa4] sm:$0xf] }
 0x924   :  { %v4782_v17 = vpop.f32.mrf.mxu2 }
 0x925   :  { %v4832_v28 = vadd.f32 %v4831_v20, %v4782_v17  ;;  %v6823_v17 = vor.u32 %v7108_v35, %v6820_v15  ;;  %v7075_v15 = vld [vmem:[#allocation10 + $0x94] sm:$0xf0] }
 0x927   :  { %v4861_v43 = vpack.c.bf16 %v4832_v28, %v4832_v28  ;;  %v6626_v28 = vld [vmem:[#allocation10 + $0x20] sm:$0xf] }
 0x928   :  { %5456 = vmatmul.bf16.vlgmr.msrb.gmra.mxu2 %v6611_v1  ;;  %v7110_v48 = vld [vmem:[#allocation3 + $0xb4] sm:$0xf]  ;;  %v6666_v1 = vld [vmem:[#allocation10 + $0x70] sm:$0xf] }
 0x929   :  { %4877 = vst [vmem:[#allocation3 + $0xbc] sm:$0xf] %v4861_v43  ;;  %v6812_v43 = vld [vmem:[#allocation3 + $0x98] sm:$0xf0]  ;;  %v6667_v2 = vor.u32 %v7071_v21, %v6666_v1 }
 0x92d   :  { %v4785_v25 = vpop.f32.mrf.mxu2 }
 0x92e   :  { %v4835_v46 = vadd.f32 %v4834_v30, %v4785_v25  ;;  %v7061_v30 = vld [vmem:[#allocation10 + $0x24] sm:$0xf0]  ;;  %v7106_v25 = vld [vmem:[#allocation3 + $0x94] sm:$0xf] }
 0x930   :  { %v4862_v13 = vpack.c.bf16 %v4835_v46, %v4835_v46  ;;  %v6828_v39 = vld [vmem:[#allocation3 + $0xb8] sm:$0xf0]  ;;  %v6627_v46 = vor.u32 %v7061_v30, %v6626_v28  ;;  %v7727_v28 = vld [vmem:[#allocation5 + $0x10] sm:$0xff] }
 0x931   :  { %v6831_v20 = vor.u32 %v7110_v48, %v6828_v39 }
 0x932   :  { %4878 = vst [vmem:[#allocation3 + $0xc4] sm:$0xf] %v4862_v13  ;;  %v6815_v13 = vor.u32 %v7106_v25, %v6812_v43  ;;  %5288 = vmatmul.bf16.gmra.mxu0 %v6627_v46  ;;  %v7074_v43 = vld [vmem:[#allocation10 + $0x94] sm:$0xf]  ;;  %v6684_v25 = vld [vmem:[#allocation10 + $0x98] sm:$0xf0] }
 0x935   :  { %v4787_v45 = vpop.f32.mrf.mxu2 }
 0x936   :  { %v4837_v52 = vadd.f32 %v4836_v54, %v4787_v45  ;;  %v6804_v54 = vld [vmem:[#allocation3 + $0x88] sm:$0xf0]  ;;  %v7060_v45 = vld [vmem:[#allocation10 + $0x24] sm:$0xf] }
 0x938   :  { %v4863_v33 = vpack.c.bf16 %v4837_v52, %v4837_v52  ;;  %5461 = vmatmul.bf16.gmra.mxu2 %v6619_v16  ;;  %v6628_v52 = vld [vmem:[#allocation10 + $0x28] sm:$0xf0] }
 0x939   :  { %v7112_v62 = vld [vmem:[#allocation3 + $0xc4] sm:$0xf] }
 0x93a   :  { %4879 = vst [vmem:[#allocation3 + $0xcc] sm:$0xf] %v4863_v33  ;;  %v7104_v33 = vld [vmem:[#allocation3 + $0x84] sm:$0xf] }
 0x93d   :  { %v4790_v63 = vpop.f32.mrf.mxu2 }
 0x93e   :  { %v4840_v40 = vadd.f32 %v4839_v60, %v4790_v63  ;;  %v6807_v60 = vor.u32 %v7104_v33, %v6804_v54  ;;  %v6631_v63 = vor.u32 %v7060_v45, %v6628_v52  ;;  %v9555_v54 = vor.u32 %v7074_v43, %v6684_v25  ;;  %v7734_v43 = vld [vmem:[#allocation5 + $0x60] sm:$0xff] }
 0x940   :  { %v4864_v50 = vpack.c.bf16 %v4840_v40, %v4840_v40  ;;  %5377 = vmatmul.bf16.gmra.mxu1 %v6631_v63  ;;  %v6634_v40 = vld [vmem:[#allocation10 + $0x30] sm:$0xf] }
 0x941   :  { %v6836_v32 = vld [vmem:[#allocation3 + $0xc8] sm:$0xf0] }
 0x942   :  { %4880 = vst [vmem:[#allocation3 + $0xd4] sm:$0xf] %v4864_v50  ;;  %v6839_v36 = vor.u32 %v7112_v62, %v6836_v32  ;;  %v7063_v50 = vld [vmem:[#allocation10 + $0x34] sm:$0xf0]  ;;  %v9549_v32 = vstv %s9684_s0  ;;  %s7899_s0 = smov [#allocation11]  }
 0x943   :  { %s5824_s7 = sshll.u32 %s7899_s0, 4  ;;  %s5825_s7 = int_to_ptr.vmem [resolvable:$true] %s5824_s7 }
 0x945   :  { %v4792_v7 = vpop.f32.mrf.mxu2 }
 0x946   :  { %v4842_v34 = vadd.f32 %v4841_v27, %v4792_v7  ;;  %v6635_v27 = vor.u32 %v7063_v50, %v6634_v40  ;;  %v7062_v7 = vld [vmem:[#allocation10 + $0x34] sm:$0xf]  ;;  %v7728_v40 = vld [vmem:[#allocation5 + $0x20] sm:$0xff] }
 0x948   :  { %v4865_v41 = vpack.c.bf16 %v4842_v34, %v4842_v34  ;;  %5466 = vmatmul.bf16.gmra.mxu2 %v6627_v46  ;;  %v6636_v34 = vld [vmem:[#allocation10 + $0x38] sm:$0xf0]  ;;  %5293 = vmatmul.bf16.gmra.mxu0 %v6635_v27 }
 0x949   :  { %v7114_v42 = vld [vmem:[#allocation3 + $0xd4] sm:$0xf] }
 0x94a   :  { %4881 = vst [vmem:[#allocation3 + $0xdc] sm:$0xf] %v4865_v41  ;;  %v6639_v41 = vor.u32 %v7062_v7, %v6636_v34  ;;  %v6690_v34 = vld [vmem:[#allocation10 + $0xa0] sm:$0xf] }
 0x950   :  { %5382 = vmatmul.bf16.gmra.mxu1 %v6639_v41 }
 0x951   :  { %v6844_v55 = vld [vmem:[#allocation3 + $0xd8] sm:$0xf0] }
 0x952   :  { %v6847_v3 = vor.u32 %v7114_v42, %v6844_v55  ;;  %v5279_v55 = vpop.f32.mrf.mxu0 }
 0x958   :  { %5471 = vmatmul.bf16.gmra.mxu2 %v6635_v27 }
 0x96e   :  { %v5368_v42 = vpop.f32.mrf.mxu1 }
 0x975   :  { %v4795_v57 = vpop.f32.mrf.mxu2 }
 0x976   :  { %v4845_v44 = vadd.f32 %v4844_v22, %v4795_v57  ;;  %v6642_v22 = vld [vmem:[#allocation10 + $0x40] sm:$0xf]  ;;  %v7065_v57 = vld [vmem:[#allocation10 + $0x44] sm:$0xf0]  ;;  %v5370_v39 = vpop.f32.mrf.mxu1 }
 0x978   :  { %v4866_v26 = vpack.c.bf16 %v4845_v44, %v4845_v44  ;;  %v6643_v44 = vor.u32 %v7065_v57, %v6642_v22 }
 0x97a   :  { %4882 = vst [vmem:[#allocation3 + $0xe4] sm:$0xf] %v4866_v26  ;;  %v7064_v26 = vld [vmem:[#allocation10 + $0x44] sm:$0xf]  ;;  %5476 = vmatmul.bf16.gmra.mxu2 %v6643_v44  ;;  %5298 = vmatmul.bf16.gmra.mxu0 %v6643_v44  ;;  %v7729_v44 = vld [vmem:[#allocation5 + $0x30] sm:$0xff] }
 0x97d   :  { %v4797_v4 = vpop.f32.mrf.mxu2 }
 0x97e   :  { %v4847_v6 = vadd.f32 %v4846_v37, %v4797_v4  ;;  %v6644_v37 = vld [vmem:[#allocation10 + $0x48] sm:$0xf0] }
 0x97f   :  { %v6647_v4 = vor.u32 %v7064_v26, %v6644_v37  ;;  %v7076_v37 = vld [vmem:[#allocation10 + $0xa4] sm:$0xf] }
 0x980   :  { %v4867_v49 = vpack.c.bf16 %v4847_v6, %v4847_v6  ;;  %v6650_v6 = vld [vmem:[#allocation10 + $0x50] sm:$0xf] }
 0x981   :  { %v7116_v23 = vld [vmem:[#allocation3 + $0xe4] sm:$0xf]  ;;  %5387 = vmatmul.bf16.gmra.mxu1 %v6647_v4 }
 0x982   :  { %4883 = vst [vmem:[#allocation3 + $0xec] sm:$0xf] %v4867_v49  ;;  %v7067_v49 = vld [vmem:[#allocation10 + $0x54] sm:$0xf0] }
 0x989   :  { %v6852_v51 = vld [vmem:[#allocation3 + $0xe8] sm:$0xf0] }
 0x98a   :  { %v6855_v14 = vor.u32 %v7116_v23, %v6852_v51  ;;  %v7073_v51 = vld [vmem:[#allocation10 + $0x84] sm:$0xf0] }
 0x99b   :  { %v4800_v31 = vpop.f32.mrf.mxu2 }
 0x99c   :  { %v4850_v10 = vadd.f32 %v4849_v29, %v4800_v31  ;;  %v6651_v29 = vor.u32 %v7067_v49, %v6650_v6  ;;  %v7066_v31 = vld [vmem:[#allocation10 + $0x54] sm:$0xf] }
 0x99e   :  { %v4868_v53 = vpack.c.bf16 %v4850_v10, %v4850_v10  ;;  %v6652_v10 = vld [vmem:[#allocation10 + $0x58] sm:$0xf0]  ;;  %5481 = vmatmul.bf16.gmra.mxu2 %v6651_v29  ;;  %5303 = vmatmul.bf16.gmra.mxu0 %v6651_v29 }
 0x9a0   :  { %4884 = vst [vmem:[#allocation3 + $0xf4] sm:$0xf] %v4868_v53  ;;  %v6655_v53 = vor.u32 %v7066_v31, %v6652_v10 }
 0x9a2   :  { %5392 = vmatmul.bf16.gmra.mxu1 %v6655_v53 }
 0x9a3   :  { %v4802_v47 = vpop.f32.mrf.mxu2 }
 0x9a4   :  { %v4852_v61 = vadd.f32 %v4851_v24, %v4802_v47  ;;  %v6658_v24 = vld [vmem:[#allocation10 + $0x60] sm:$0xf]  ;;  %v7069_v47 = vld [vmem:[#allocation10 + $0x64] sm:$0xf0] }
 0x9a6   :  { %v4869_v38 = vpack.c.bf16 %v4852_v61, %v4852_v61  ;;  %v6659_v61 = vor.u32 %v7069_v47, %v6658_v24 }
 0x9a7   :  { %v7118_v9 = vld [vmem:[#allocation3 + $0xf4] sm:$0xf] }
 0x9a8   :  { %4885 = vst [vmem:[#allocation3 + $0xfc] sm:$0xf] %v4869_v38  ;;  %v7068_v38 = vld [vmem:[#allocation10 + $0x64] sm:$0xf] }
 0x9a9   :  { %v6663_v12 = vor.u32 %v7068_v38, %v6660_v19 }
 0x9ab   :  { %v5457_v16 = vpop.f32.mrf.mxu2 }
 0x9ae   :  { %5486 = vmatmul.bf16.gmra.mxu2 %v6659_v61  ;;  %5308 = vmatmul.bf16.gmra.mxu0 %v6659_v61 }
 0x9af   :  { %v6860_v59 = vld [vmem:[#allocation3 + $0xf8] sm:$0xf0] }
 0x9b0   :  { %v6863_v18 = vor.u32 %v7118_v9, %v6860_v59  ;;  %v7070_v9 = vld [vmem:[#allocation10 + $0x74] sm:$0xf]  ;;  %v6668_v59 = vld [vmem:[#allocation10 + $0x78] sm:$0xf0] }
 0x9b2   :  { %5537 = vmatpush.bf16.msrb.mxu3 %v6863_v18  ;;  %5397 = vmatmul.bf16.gmra.mxu1 %v6663_v12  ;;  %v6674_v18 = vld [vmem:[#allocation10 + $0x80] sm:$0xf] }
 0x9b3   :  { %v6675_v23 = vor.u32 %v7073_v51, %v6674_v18  ;;  %v9552_v48 = vpop.f32.mrf.mxu2 }
 0x9b6   :  { %5538 = vmatpush.bf16.msrb.mxu3 %v6855_v14  ;;  %v7072_v14 = vld [vmem:[#allocation10 + $0x84] sm:$0xf] }
 0x9b7   :  { %v6679_v0 = vor.u32 %v7072_v14, %v6676_v56  ;;  %v7732_v14 = vld [vmem:[#allocation5 + $0x50] sm:$0xff] }
 0x9ba   :  { %5539 = vmatpush.bf16.msrb.mxu3 %v6847_v3  ;;  %v5369_v3 = vadd.f32 %v5368_v42, %v5279_v55  ;;  %v7078_v42 = vld [vmem:[#allocation10 + $0xb4] sm:$0xf] }
 0x9bb   :  { %v9557_v45 = vpop.f32.mrf.mxu2 }
 0x9bc   :  { %v5628_v8 = vmul.f32 %v9549_v32, %v5369_v3 }
 0x9be   :  { %5540 = vmatpush.bf16.msrb.mxu3 %v6839_v36  ;;  %5491 = vmatmul.bf16.gmra.mxu2 %v6667_v2  ;;  %v5692_v62 = vadd.f32 %v7726_v5, %v5628_v8  ;;  %v5281_v36 = vpop.f32.mrf.mxu0 }
 0x9bf   :  { %5313 = vmatmul.bf16.gmra.mxu0 %v6667_v2 }
 0x9c0   :  { %5756 = vst [vmem:[#allocation11] sm:$0xff] %v5692_v62 }
 0x9c2   :  { %5541 = vmatpush.bf16.msrb.mxu3 %v6831_v20  ;;  %v6682_v20 = vld [vmem:[#allocation10 + $0x90] sm:$0xf] }
 0x9c3   :  { %v9561_v7 = vpop.f32.mrf.mxu2 }
 0x9c6   :  { %5542 = vmatpush.bf16.msrb.mxu3 %v6823_v17  ;;  %v6683_v17 = vor.u32 %v7075_v15, %v6682_v20  ;;  %v5284_v46 = vpop.f32.mrf.mxu0 }
 0x9ca   :  { %5543 = vmatpush.bf16.msrb.mxu3 %v6815_v13  ;;  %v5373_v13 = vpop.f32.mrf.mxu1 }
 0x9cb   :  { %v5374_v52 = vadd.f32 %v5373_v13, %v5284_v46  ;;  %v9566_v31 = vpop.f32.mrf.mxu2 }
 0x9cd   :  { %v5632_v33 = vmul.f32 %v9549_v32, %v5374_v52  ;;  %v6706_v52 = vld [vmem:[#allocation10 + $0xc0] sm:$0xf] }
 0x9ce   :  { %5544 = vmatpush.bf16.msrb.mxu3 %v6807_v60  ;;  %5496 = vmatmul.bf16.gmra.mxu2 %v6675_v23  ;;  %v5286_v60 = vpop.f32.mrf.mxu0 }
 0x9cf   :  { %5318 = vmatmul.bf16.gmra.mxu0 %v6675_v23  ;;  %v5696_v50 = vadd.f32 %v7728_v40, %v5632_v33  ;;  %v7735_v33 = vld [vmem:[#allocation5 + $0x28] sm:$0xff] }
 0x9d1   :  { %5545 = vmatmul.bf16.vlgmr.msrb.gmra.mxu3 %v6615_v11  ;;  %v6671_v11 = vor.u32 %v7070_v9, %v6668_v59  ;;  %5760 = vst [vmem:[#allocation11 + $0x20] sm:$0xff] %v5696_v50  ;;  %v6698_v9 = vld [vmem:[#allocation10 + $0xb0] sm:$0xf]  ;;  %v7079_v59 = vld [vmem:[#allocation10 + $0xb4] sm:$0xf0] }
 0x9d2   :  { %v6699_v23 = vor.u32 %v7079_v59, %v6698_v9  ;;  %v6714_v9 = vld [vmem:[#allocation10 + $0xd0] sm:$0xf]  ;;  %v7739_v59 = vld [vmem:[#allocation5 + $0x48] sm:$0xff] }
 0x9d3   :  { %5402 = vmatmul.bf16.gmra.mxu1 %v6671_v11  ;;  %v9571_v2 = vpop.f32.mrf.mxu2 }
 0x9d6   :  { %v5289_v6 = vpop.f32.mrf.mxu0 }
 0x9de   :  { %5501 = vmatmul.bf16.gmra.mxu2 %v6683_v17  ;;  %v5291_v61 = vpop.f32.mrf.mxu0 }
 0x9df   :  { %5323 = vmatmul.bf16.gmra.mxu0 %v6683_v17 }
 0x9e1   :  { %5550 = vmatmul.bf16.gmra.mxu3 %v6623_v58  ;;  %v5371_v58 = vadd.f32 %v5370_v39, %v5281_v36  ;;  %v9578_v36 = vpop.f32.mrf.mxu2  ;;  %v7733_v39 = vld [vmem:[#allocation5 + $0x18] sm:$0xff] }
 0x9e3   :  { %5407 = vmatmul.bf16.gmra.mxu1 %v6679_v0  ;;  %v5630_v35 = vmul.f32 %v9549_v32, %v5371_v58 }
 0x9e5   :  { %v5694_v30 = vadd.f32 %v7727_v28, %v5630_v35 }
 0x9e6   :  { %v5294_v3 = vpop.f32.mrf.mxu0 }
 0x9e7   :  { %5758 = vst [vmem:[#allocation11 + $0x10] sm:$0xff] %v5694_v30 }
 0x9e9   :  { %v9585_v13 = vpop.f32.mrf.mxu2 }
 0x9ee   :  { %v5296_v17 = vpop.f32.mrf.mxu0 }
 0x9f1   :  { %5555 = vmatmul.bf16.gmra.mxu3 %v6631_v63  ;;  %v5375_v63 = vpop.f32.mrf.mxu1 }
 0x9f2   :  { %v5376_v27 = vadd.f32 %v5375_v63, %v5286_v60 }
 0x9f3   :  { %5412 = vmatmul.bf16.gmra.mxu1 %v9555_v54 }
 0x9f4   :  { %v5634_v22 = vmul.f32 %v9549_v32, %v5376_v27 }
 0x9f6   :  { %v5698_v26 = vadd.f32 %v7729_v44, %v5634_v22  ;;  %v6708_v22 = vld [vmem:[#allocation10 + $0xc8] sm:$0xf0] }
 0x9f8   :  { %5762 = vst [vmem:[#allocation11 + $0x30] sm:$0xff] %v5698_v26 }
 0x9f9   :  { %v5378_v49 = vpop.f32.mrf.mxu1 }
 0x9fa   :  { %v5379_v10 = vadd.f32 %v5378_v49, %v5289_v6  ;;  %v7737_v6 = vld [vmem:[#allocation5 + $0x38] sm:$0xff] }
 0x9fc   :  { %v5636_v47 = vmul.f32 %v9549_v32, %v5379_v10 }
 0xa01   :  { %5560 = vmatmul.bf16.gmra.mxu3 %v6639_v41  ;;  %v7077_v41 = vld [vmem:[#allocation10 + $0xa4] sm:$0xf0]  ;;  %v5380_v38 = vpop.f32.mrf.mxu1 }
 0xa02   :  { %v6691_v57 = vor.u32 %v7077_v41, %v6690_v34  ;;  %v5381_v21 = vadd.f32 %v5380_v38, %v5291_v61  ;;  %v7080_v41 = vld [vmem:[#allocation10 + $0xc4] sm:$0xf] }
 0xa04   :  { %5506 = vmatmul.bf16.gmra.mxu2 %v6691_v57  ;;  %5328 = vmatmul.bf16.gmra.mxu0 %v6691_v57  ;;  %v5638_v51 = vmul.f32 %v9549_v32, %v5381_v21  ;;  %v5299_v57 = vpop.f32.mrf.mxu0 }
 0xa06   :  { %v5702_v56 = vadd.f32 %v7732_v14, %v5638_v51 }
 0xa08   :  { %5766 = vst [vmem:[#allocation11 + $0x50] sm:$0xff] %v5702_v56 }
 0xa09   :  { %v5383_v8 = vpop.f32.mrf.mxu1 }
 0xa0a   :  { %v5384_v20 = vadd.f32 %v5383_v8, %v5294_v3 }
 0xa0c   :  { %v5640_v35 = vmul.f32 %v9549_v32, %v5384_v20 }
 0xa0e   :  { %v5704_v25 = vadd.f32 %v7734_v43, %v5640_v35 }
 0xa10   :  { %5768 = vst [vmem:[#allocation11 + $0x60] sm:$0xff] %v5704_v25 }
 0xa11   :  { %5565 = vmatmul.bf16.gmra.mxu3 %v6647_v4  ;;  %v6692_v4 = vld [vmem:[#allocation10 + $0xa8] sm:$0xf0]  ;;  %v5385_v28 = vpop.f32.mrf.mxu1 }
 0xa12   :  { %v9564_v29 = vor.u32 %v7076_v37, %v6692_v4  ;;  %v5386_v46 = vadd.f32 %v5385_v28, %v5296_v17  ;;  %v9590_v37 = vor.u32 %v7080_v41, %v6708_v22  ;;  %v9592_v4 = vpop.f32.mrf.mxu2 }
 0xa14   :  { %5417 = vmatmul.bf16.gmra.mxu1 %v9564_v29  ;;  %5511 = vmatmul.bf16.gmra.mxu2 %v6699_v23  ;;  %v5642_v63 = vmul.f32 %v9549_v32, %v5386_v46 }
 0xa15   :  { %5333 = vmatmul.bf16.gmra.mxu0 %v6699_v23 }
 0xa19   :  { %v5388_v44 = vpop.f32.mrf.mxu1 }
 0xa1a   :  { %v5389_v10 = vadd.f32 %v5388_v44, %v5299_v57  ;;  %v9599_v21 = vpop.f32.mrf.mxu2 }
 0xa21   :  { %5570 = vmatmul.bf16.gmra.mxu3 %v6655_v53  ;;  %v5390_v61 = vpop.f32.mrf.mxu1 }
 0xa31   :  { %5575 = vmatmul.bf16.gmra.mxu3 %v6663_v12  ;;  %v7730_v12 = vld [vmem:[#allocation5 + $0x40] sm:$0xff] }
 0xa32   :  { %v5700_v1 = vadd.f32 %v7730_v12, %v5636_v47  ;;  %v5301_v47 = vpop.f32.mrf.mxu0 }
 0xa34   :  { %5764 = vst [vmem:[#allocation11 + $0x40] sm:$0xff] %v5700_v1  ;;  %v5391_v1 = vadd.f32 %v5390_v61, %v5301_v47 }
 0xa41   :  { %5580 = vmatmul.bf16.gmra.mxu3 %v6671_v11  ;;  %v7731_v11 = vld [vmem:[#allocation5 + $0x8] sm:$0xff] }
 0xa51   :  { %5585 = vmatmul.bf16.gmra.mxu3 %v6679_v0 }
 0xa54   :  { %v5546_v53 = vpop.f32.mrf.mxu3 }
 0xa55   :  { %v5547_v24 = vadd.f32 %v5546_v53, %v5457_v16  ;;  %v6700_v16 = vld [vmem:[#allocation10 + $0xb8] sm:$0xf0] }
 0xa56   :  { %v9576_v62 = vor.u32 %v7078_v42, %v6700_v16  ;;  %v5304_v42 = vpop.f32.mrf.mxu0  ;;  %v5393_v16 = vpop.f32.mrf.mxu1 }
 0xa57   :  { %v5629_v19 = vmul.f32 %v9549_v32, %v5547_v24  ;;  %v5644_v24 = vmul.f32 %v9549_v32, %v5389_v10  ;;  %v5394_v20 = vadd.f32 %v5393_v16, %v5304_v42 }
 0xa58   :  { %5422 = vmatmul.bf16.gmra.mxu1 %v9576_v62 }
 0xa59   :  { %v5693_v18 = vadd.f32 %v7731_v11, %v5629_v19  ;;  %v7738_v19 = vld [vmem:[#allocation5 + $0x80] sm:$0xff] }
 0xa5a   :  { %v5708_v12 = vadd.f32 %v7738_v19, %v5644_v24 }
 0xa5b   :  { %5757 = vst [vmem:[#allocation11 + $0x8] sm:$0xff] %v5693_v18  ;;  %v5646_v18 = vmul.f32 %v9549_v32, %v5391_v1 }
 0xa5c   :  { %v5548_v0 = vpop.f32.mrf.mxu3  ;;  %5772 = vst [vmem:[#allocation11 + $0x80] sm:$0xff] %v5708_v12 }
 0xa5d   :  { %v5549_v55 = vadd.f32 %v5548_v0, %v9552_v48  ;;  %v7082_v0 = vld [vmem:[#allocation10 + $0xd4] sm:$0xf] }
 0xa5e   :  { %v5306_v35 = vpop.f32.mrf.mxu0  ;;  %v5395_v17 = vpop.f32.mrf.mxu1 }
 0xa5f   :  { %v5631_v5 = vmul.f32 %v9549_v32, %v5549_v55  ;;  %v6716_v55 = vld [vmem:[#allocation10 + $0xd8] sm:$0xf0]  ;;  %v5396_v25 = vadd.f32 %v5395_v17, %v5306_v35 }
 0xa60   :  { %v9604_v8 = vor.u32 %v7082_v0, %v6716_v55 }
 0xa61   :  { %v5695_v58 = vadd.f32 %v7733_v39, %v5631_v5  ;;  %5590 = vmatmul.bf16.gmra.mxu3 %v9555_v54  ;;  %v7081_v54 = vld [vmem:[#allocation10 + $0xc4] sm:$0xf0]  ;;  %v9606_v5 = vpop.f32.mrf.mxu2  ;;  %v7741_v39 = vld [vmem:[#allocation5 + $0x58] sm:$0xff] }
 0xa62   :  { %v6707_v40 = vor.u32 %v7081_v54, %v6706_v52  ;;  %v6722_v52 = vld [vmem:[#allocation10 + $0xe0] sm:$0xf]  ;;  %v7743_v54 = vld [vmem:[#allocation5 + $0x68] sm:$0xff] }
 0xa63   :  { %5759 = vst [vmem:[#allocation11 + $0x18] sm:$0xff] %v5695_v58 }
 0xa64   :  { %v5551_v48 = vpop.f32.mrf.mxu3  ;;  %5516 = vmatmul.bf16.gmra.mxu2 %v6707_v40  ;;  %5338 = vmatmul.bf16.gmra.mxu0 %v6707_v40 }
 0xa65   :  { %v5552_v15 = vadd.f32 %v5551_v48, %v9557_v45  ;;  %v7736_v45 = vld [vmem:[#allocation5 + $0x70] sm:$0xff] }
 0xa66   :  { %v5706_v50 = vadd.f32 %v7736_v45, %v5642_v63  ;;  %v5309_v41 = vpop.f32.mrf.mxu0  ;;  %v5398_v22 = vpop.f32.mrf.mxu1 }
 0xa67   :  { %v5633_v30 = vmul.f32 %v9549_v32, %v5552_v15  ;;  %v5648_v15 = vmul.f32 %v9549_v32, %v5394_v20  ;;  %v5399_v10 = vadd.f32 %v5398_v22, %v5309_v41 }
 0xa68   :  { %5770 = vst [vmem:[#allocation11 + $0x70] sm:$0xff] %v5706_v50  ;;  %5427 = vmatmul.bf16.gmra.mxu1 %v9590_v37 }
 0xa69   :  { %v5697_v60 = vadd.f32 %v7735_v33, %v5633_v30  ;;  %v7742_v30 = vld [vmem:[#allocation5 + $0xa0] sm:$0xff]  ;;  %v9613_v46 = vpop.f32.mrf.mxu2 }
 0xa6a   :  { %v5712_v43 = vadd.f32 %v7742_v30, %v5648_v15 }
 0xa6b   :  { %5761 = vst [vmem:[#allocation11 + $0x28] sm:$0xff] %v5697_v60  ;;  %v5650_v60 = vmul.f32 %v9549_v32, %v5396_v25  ;;  %v7751_v25 = vld [vmem:[#allocation5 + $0xa8] sm:$0xff] }
 0xa6c   :  { %v5553_v27 = vpop.f32.mrf.mxu3  ;;  %5776 = vst [vmem:[#allocation11 + $0xa0] sm:$0xff] %v5712_v43 }
 0xa6d   :  { %v5554_v34 = vadd.f32 %v5553_v27, %v9561_v7  ;;  %v7084_v27 = vld [vmem:[#allocation10 + $0xe4] sm:$0xf] }
 0xa6e   :  { %v5311_v24 = vpop.f32.mrf.mxu0  ;;  %v5400_v47 = vpop.f32.mrf.mxu1 }
 0xa6f   :  { %v5635_v26 = vmul.f32 %v9549_v32, %v5554_v34  ;;  %v6724_v34 = vld [vmem:[#allocation10 + $0xe8] sm:$0xf0]  ;;  %v5401_v12 = vadd.f32 %v5400_v47, %v5311_v24  ;;  %v7756_v47 = vld [vmem:[#allocation5 + $0x110] sm:$0xff] }
 0xa70   :  { %v9618_v44 = vor.u32 %v7084_v27, %v6724_v34 }
 0xa71   :  { %v5699_v49 = vadd.f32 %v7737_v6, %v5635_v26  ;;  %5595 = vmatmul.bf16.gmra.mxu3 %v9564_v29  ;;  %v7083_v29 = vld [vmem:[#allocation10 + $0xd4] sm:$0xf0]  ;;  %v9620_v26 = vpop.f32.mrf.mxu2 }
 0xa72   :  { %v6715_v51 = vor.u32 %v7083_v29, %v6714_v9  ;;  %v7745_v6 = vld [vmem:[#allocation5 + $0x78] sm:$0xff]  ;;  %v6730_v9 = vld [vmem:[#allocation10 + $0xf0] sm:$0xf]  ;;  %v7747_v29 = vld [vmem:[#allocation5 + $0x88] sm:$0xff] }
 0xa73   :  { %5763 = vst [vmem:[#allocation11 + $0x38] sm:$0xff] %v5699_v49 }
 0xa74   :  { %v5556_v7 = vpop.f32.mrf.mxu3  ;;  %5521 = vmatmul.bf16.gmra.mxu2 %v6715_v51  ;;  %5343 = vmatmul.bf16.gmra.mxu0 %v6715_v51 }
 0xa75   :  { %v5557_v53 = vadd.f32 %v5556_v7, %v9566_v31  ;;  %v7740_v31 = vld [vmem:[#allocation5 + $0x90] sm:$0xff] }
 0xa76   :  { %v5710_v23 = vadd.f32 %v7740_v31, %v5646_v18  ;;  %v5314_v0 = vpop.f32.mrf.mxu0  ;;  %v5403_v55 = vpop.f32.mrf.mxu1 }
 0xa77   :  { %v5637_v38 = vmul.f32 %v9549_v32, %v5557_v53  ;;  %v5652_v53 = vmul.f32 %v9549_v32, %v5399_v10  ;;  %v5404_v20 = vadd.f32 %v5403_v55, %v5314_v0  ;;  %v7754_v10 = vld [vmem:[#allocation5 + $0x100] sm:$0xff]  ;;  %v7759_v55 = vld [vmem:[#allocation5 + $0xe8] sm:$0xff] }
 0xa78   :  { %5774 = vst [vmem:[#allocation11 + $0x90] sm:$0xff] %v5710_v23  ;;  %5432 = vmatmul.bf16.gmra.mxu1 %v9604_v8 }
 0xa79   :  { %v5701_v11 = vadd.f32 %v7739_v59, %v5637_v38  ;;  %v7746_v38 = vld [vmem:[#allocation5 + $0xc0] sm:$0xff]  ;;  %v9627_v1 = vpop.f32.mrf.mxu2 }
 0xa7a   :  { %v5716_v19 = vadd.f32 %v7746_v38, %v5652_v53  ;;  %v7755_v53 = vld [vmem:[#allocation5 + $0xc8] sm:$0xff] }
 0xa7b   :  { %5765 = vst [vmem:[#allocation11 + $0x48] sm:$0xff] %v5701_v11  ;;  %v5654_v11 = vmul.f32 %v9549_v32, %v5401_v12 }
 0xa7c   :  { %v5558_v14 = vpop.f32.mrf.mxu3  ;;  %5780 = vst [vmem:[#allocation11 + $0xc0] sm:$0xff] %v5716_v19 }
 0xa7d   :  { %v5559_v56 = vadd.f32 %v5558_v14, %v9571_v2  ;;  %v7086_v14 = vld [vmem:[#allocation10 + $0xf4] sm:$0xf] }
 0xa7e   :  { %v5316_v15 = vpop.f32.mrf.mxu0  ;;  %v5405_v35 = vpop.f32.mrf.mxu1 }
 0xa7f   :  { %v5639_v3 = vmul.f32 %v9549_v32, %v5559_v56  ;;  %v6732_v56 = vld [vmem:[#allocation10 + $0xf8] sm:$0xf0]  ;;  %v5406_v43 = vadd.f32 %v5405_v35, %v5316_v15 }
 0xa80   :  { %v6735_v16 = vor.u32 %v7086_v14, %v6732_v56  ;;  %v7761_v35 = vld [vmem:[#allocation5 + $0xf8] sm:$0xff] }
 0xa81   :  { %v5703_v58 = vadd.f32 %v7741_v39, %v5639_v3  ;;  %5600 = vmatmul.bf16.gmra.mxu3 %v9576_v62  ;;  %v7085_v62 = vld [vmem:[#allocation10 + $0xe4] sm:$0xf0]  ;;  %v7749_v3 = vld [vmem:[#allocation5 + $0x98] sm:$0xff] }
 0xa82   :  { %v6723_v63 = vor.u32 %v7085_v62, %v6722_v52  ;;  %v7752_v62 = vld [vmem:[#allocation5 + $0xf0] sm:$0xff] }
 0xa83   :  { %5767 = vst [vmem:[#allocation11 + $0x58] sm:$0xff] %v5703_v58  ;;  %v5492_v58 = vpop.f32.mrf.mxu2 }
 0xa84   :  { %v5561_v2 = vpop.f32.mrf.mxu3  ;;  %5526 = vmatmul.bf16.gmra.mxu2 %v6723_v63  ;;  %5348 = vmatmul.bf16.gmra.mxu0 %v6723_v63 }
 0xa85   :  { %v5562_v48 = vadd.f32 %v5561_v2, %v9578_v36  ;;  %v7744_v36 = vld [vmem:[#allocation5 + $0xb0] sm:$0xff] }
 0xa86   :  { %v5714_v40 = vadd.f32 %v7744_v36, %v5650_v60  ;;  %v5319_v63 = vpop.f32.mrf.mxu0  ;;  %v5408_v36 = vpop.f32.mrf.mxu1 }
 0xa87   :  { %v5641_v28 = vmul.f32 %v9549_v32, %v5562_v48  ;;  %v5409_v27 = vadd.f32 %v5408_v36, %v5319_v63  ;;  %v7763_v63 = vld [vmem:[#allocation5 + $0x108] sm:$0xff] }
 0xa88   :  { %5778 = vst [vmem:[#allocation11 + $0xb0] sm:$0xff] %v5714_v40  ;;  %5437 = vmatmul.bf16.gmra.mxu1 %v9618_v44 }
 0xa89   :  { %v5705_v33 = vadd.f32 %v7743_v54, %v5641_v28  ;;  %v7750_v28 = vld [vmem:[#allocation5 + $0xe0] sm:$0xff]  ;;  %v5660_v22 = vmul.f32 %v9549_v32, %v5409_v27 }
 0xa8b   :  { %5769 = vst [vmem:[#allocation11 + $0x68] sm:$0xff] %v5705_v33  ;;  %v5494_v33 = vpop.f32.mrf.mxu2 }
 0xa8c   :  { %v5563_v45 = vpop.f32.mrf.mxu3 }
 0xa8d   :  { %v5564_v50 = vadd.f32 %v5563_v45, %v9585_v13  ;;  %v7753_v45 = vld [vmem:[#allocation5 + $0xb8] sm:$0xff] }
 0xa8f   :  { %v5643_v57 = vmul.f32 %v9549_v32, %v5564_v50 }
 0xa91   :  { %v5707_v49 = vadd.f32 %v7745_v6, %v5643_v57  ;;  %5605 = vmatmul.bf16.gmra.mxu3 %v9590_v37  ;;  %v7087_v37 = vld [vmem:[#allocation10 + $0xf4] sm:$0xf0]  ;;  %v5321_v6 = vpop.f32.mrf.mxu0 }
 0xa92   :  { %v6731_v18 = vor.u32 %v7087_v37, %v6730_v9 }
 0xa93   :  { %5771 = vst [vmem:[#allocation11 + $0x78] sm:$0xff] %v5707_v49  ;;  %v5497_v57 = vpop.f32.mrf.mxu2  ;;  %v5410_v49 = vpop.f32.mrf.mxu1 }
 0xa94   :  { %v5566_v13 = vpop.f32.mrf.mxu3  ;;  %5531 = vmatmul.bf16.gmra.mxu2 %v6731_v18  ;;  %5353 = vmatmul.bf16.gmra.mxu0 %v6731_v18 }
 0xa95   :  { %v5567_v7 = vadd.f32 %v5566_v13, %v9592_v4  ;;  %v7748_v4 = vld [vmem:[#allocation5 + $0xd0] sm:$0xff]  ;;  %v5724_v13 = vadd.f32 %v7754_v10, %v5660_v22 }
 0xa96   :  { %v5718_v51 = vadd.f32 %v7748_v4, %v5654_v11 }
 0xa97   :  { %v5645_v61 = vmul.f32 %v9549_v32, %v5567_v7  ;;  %v5411_v7 = vadd.f32 %v5410_v49, %v5321_v6  ;;  %5788 = vst [vmem:[#allocation11 + $0x100] sm:$0xff] %v5724_v13  ;;  %v7765_v49 = vld [vmem:[#allocation5 + $0x118] sm:$0xff] }
 0xa98   :  { %5782 = vst [vmem:[#allocation11 + $0xd0] sm:$0xff] %v5718_v51  ;;  %5442 = vmatmul.bf16.gmra.mxu1 %v6735_v16 }
 0xa99   :  { %v5709_v59 = vadd.f32 %v7747_v29, %v5645_v61  ;;  %v5324_v19 = vpop.f32.mrf.mxu0  ;;  %v7757_v29 = vld [vmem:[#allocation5 + $0xd8] sm:$0xff] }
 0xa9b   :  { %5773 = vst [vmem:[#allocation11 + $0x88] sm:$0xff] %v5709_v59  ;;  %v5413_v12 = vpop.f32.mrf.mxu1  ;;  %v5499_v37 = vpop.f32.mrf.mxu2 }
 0xa9c   :  { %v5568_v31 = vpop.f32.mrf.mxu3  ;;  %v5414_v11 = vadd.f32 %v5413_v12, %v5324_v19  ;;  %v7767_v12 = vld [vmem:[#allocation5 + $0x128] sm:$0xff] }
 0xa9d   :  { %v5569_v23 = vadd.f32 %v5568_v31, %v9599_v21  ;;  %v5656_v21 = vmul.f32 %v9549_v32, %v5404_v20 }
 0xa9e   :  { %v5664_v51 = vmul.f32 %v9549_v32, %v5414_v11 }
 0xa9f   :  { %v5647_v42 = vmul.f32 %v9549_v32, %v5569_v23  ;;  %v5720_v30 = vadd.f32 %v7750_v28, %v5656_v21 }
 0xaa1   :  { %v5711_v39 = vadd.f32 %v7749_v3, %v5647_v42  ;;  %5610 = vmatmul.bf16.gmra.mxu3 %v9604_v8  ;;  %5784 = vst [vmem:[#allocation11 + $0xe0] sm:$0xff] %v5720_v30  ;;  %v5658_v8 = vmul.f32 %v9549_v32, %v5406_v43  ;;  %v5326_v31 = vpop.f32.mrf.mxu0 }
 0xaa3   :  { %5775 = vst [vmem:[#allocation11 + $0x98] sm:$0xff] %v5711_v39  ;;  %v5722_v54 = vadd.f32 %v7752_v62, %v5658_v8  ;;  %v5415_v23 = vpop.f32.mrf.mxu1  ;;  %v5502_v3 = vpop.f32.mrf.mxu2 }
 0xaa4   :  { %v5571_v2 = vpop.f32.mrf.mxu3  ;;  %v5416_v0 = vadd.f32 %v5415_v23, %v5326_v31  ;;  %v7769_v23 = vld [vmem:[#allocation5 + $0x138] sm:$0xff] }
 0xaa5   :  { %v5572_v48 = vadd.f32 %v5571_v2, %v9606_v5  ;;  %5786 = vst [vmem:[#allocation11 + $0xf0] sm:$0xff] %v5722_v54 }
 0xaa6   :  { %v5666_v39 = vmul.f32 %v9549_v32, %v5416_v0 }
 0xaa7   :  { %v5649_v17 = vmul.f32 %v9549_v32, %v5572_v48 }
 0xaa9   :  { %v5713_v52 = vadd.f32 %v7751_v25, %v5649_v17  ;;  %v5329_v48 = vpop.f32.mrf.mxu0 }
 0xaab   :  { %5777 = vst [vmem:[#allocation11 + $0xa8] sm:$0xff] %v5713_v52  ;;  %v5418_v21 = vpop.f32.mrf.mxu1  ;;  %v5504_v28 = vpop.f32.mrf.mxu2 }
 0xaac   :  { %v5573_v60 = vpop.f32.mrf.mxu3  ;;  %v5419_v30 = vadd.f32 %v5418_v21, %v5329_v48  ;;  %v7771_v48 = vld [vmem:[#allocation5 + $0x148] sm:$0xff] }
 0xaad   :  { %v5574_v5 = vadd.f32 %v5573_v60, %v9613_v46  ;;  %v7762_v60 = vld [vmem:[#allocation5 + $0x140] sm:$0xff] }
 0xaae   :  { %v5668_v52 = vmul.f32 %v9549_v32, %v5419_v30 }
 0xaaf   :  { %v5651_v40 = vmul.f32 %v9549_v32, %v5574_v5 }
 0xab1   :  { %v5715_v50 = vadd.f32 %v7753_v45, %v5651_v40  ;;  %5615 = vmatmul.bf16.gmra.mxu3 %v9618_v44  ;;  %v5662_v44 = vmul.f32 %v9549_v32, %v5411_v7  ;;  %v5331_v8 = vpop.f32.mrf.mxu0  ;;  %v7764_v45 = vld [vmem:[#allocation5 + $0x150] sm:$0xff] }
 0xab3   :  { %5779 = vst [vmem:[#allocation11 + $0xb8] sm:$0xff] %v5715_v50  ;;  %v5726_v61 = vadd.f32 %v7756_v47, %v5662_v44  ;;  %v5420_v62 = vpop.f32.mrf.mxu1 }
 0xab4   :  { %v5576_v34 = vpop.f32.mrf.mxu3  ;;  %v5421_v5 = vadd.f32 %v5420_v62, %v5331_v8  ;;  %v7773_v62 = vld [vmem:[#allocation5 + $0x158] sm:$0xff] }
 0xab5   :  { %v5577_v41 = vadd.f32 %v5576_v34, %v9620_v26  ;;  %5790 = vst [vmem:[#allocation11 + $0x110] sm:$0xff] %v5726_v61 }
 0xab6   :  { %v5670_v40 = vmul.f32 %v9549_v32, %v5421_v5 }
 0xab7   :  { %v5653_v46 = vmul.f32 %v9549_v32, %v5577_v41  ;;  %v5507_v41 = vpop.f32.mrf.mxu2 }
 0xab8   :  { %v5734_v50 = vadd.f32 %v7764_v45, %v5670_v40 }
 0xab9   :  { %v5717_v24 = vadd.f32 %v7755_v53, %v5653_v46  ;;  %v5334_v22 = vpop.f32.mrf.mxu0 }
 0xaba   :  { %5798 = vst [vmem:[#allocation11 + $0x150] sm:$0xff] %v5734_v50 }
 0xabb   :  { %5781 = vst [vmem:[#allocation11 + $0xc8] sm:$0xff] %v5717_v24 }
 0xabc   :  { %v5578_v38 = vpop.f32.mrf.mxu3 }
 0xabd   :  { %v5579_v26 = vadd.f32 %v5578_v38, %v9627_v1  ;;  %v7758_v1 = vld [vmem:[#allocation5 + $0x120] sm:$0xff] }
 0xabe   :  { %v5728_v56 = vadd.f32 %v7758_v1, %v5664_v51  ;;  %v7766_v38 = vld [vmem:[#allocation5 + $0x160] sm:$0xff] }
 0xabf   :  { %v5655_v9 = vmul.f32 %v9549_v32, %v5579_v26  ;;  %v5509_v61 = vpop.f32.mrf.mxu2 }
 0xac0   :  { %5792 = vst [vmem:[#allocation11 + $0x120] sm:$0xff] %v5728_v56 }
 0xac1   :  { %v5719_v59 = vadd.f32 %v7757_v29, %v5655_v9  ;;  %5620 = vmatmul.bf16.gmra.mxu3 %v6735_v16  ;;  %v7760_v16 = vld [vmem:[#allocation5 + $0x130] sm:$0xff]  ;;  %v5336_v24 = vpop.f32.mrf.mxu0 }
 0xac2   :  { %v5730_v20 = vadd.f32 %v7760_v16, %v5666_v39  ;;  %v7768_v29 = vld [vmem:[#allocation5 + $0x170] sm:$0xff] }
 0xac3   :  { %5783 = vst [vmem:[#allocation11 + $0xd8] sm:$0xff] %v5719_v59 }
 0xac4   :  { %v5581_v18 = vpop.f32.mrf.mxu3  ;;  %5794 = vst [vmem:[#allocation11 + $0x130] sm:$0xff] %v5730_v20  ;;  %v7770_v20 = vld [vmem:[#allocation5 + $0x180] sm:$0xff] }
 0xac5   :  { %v5582_v4 = vadd.f32 %v5581_v18, %v5492_v58 }
 0xac7   :  { %v5657_v14 = vmul.f32 %v9549_v32, %v5582_v4  ;;  %v5512_v1 = vpop.f32.mrf.mxu2 }
 0xac9   :  { %v5721_v42 = vadd.f32 %v7759_v55, %v5657_v14 }
 0xacb   :  { %5785 = vst [vmem:[#allocation11 + $0xe8] sm:$0xff] %v5721_v42 }
 0xacc   :  { %v5583_v2 = vpop.f32.mrf.mxu3 }
 0xacd   :  { %v5584_v58 = vadd.f32 %v5583_v2, %v5494_v33  ;;  %v5732_v33 = vadd.f32 %v7762_v60, %v5668_v52 }
 0xacf   :  { %v5659_v15 = vmul.f32 %v9549_v32, %v5584_v58  ;;  %5796 = vst [vmem:[#allocation11 + $0x140] sm:$0xff] %v5732_v33 }
 0xad1   :  { %v5723_v17 = vadd.f32 %v7761_v35, %v5659_v15  ;;  %v5514_v35 = vpop.f32.mrf.mxu2 }
 0xad3   :  { %5787 = vst [vmem:[#allocation11 + $0xf8] sm:$0xff] %v5723_v17  ;;  %v7772_v17 = vld [vmem:[#allocation5 + $0x190] sm:$0xff] }
 0xad4   :  { %v5586_v43 = vpop.f32.mrf.mxu3 }
 0xad5   :  { %v5587_v25 = vadd.f32 %v5586_v43, %v5497_v57  ;;  %v5423_v57 = vpop.f32.mrf.mxu1 }
 0xad6   :  { %v5424_v10 = vadd.f32 %v5423_v57, %v5334_v22  ;;  %v7775_v22 = vld [vmem:[#allocation5 + $0x168] sm:$0xff] }
 0xad7   :  { %v5661_v54 = vmul.f32 %v9549_v32, %v5587_v25 }
 0xad8   :  { %v5672_v53 = vmul.f32 %v9549_v32, %v5424_v10 }
 0xad9   :  { %v5725_v36 = vadd.f32 %v7763_v63, %v5661_v54 }
 0xada   :  { %v5736_v26 = vadd.f32 %v7766_v38, %v5672_v53 }
 0xadb   :  { %5789 = vst [vmem:[#allocation11 + $0x108] sm:$0xff] %v5725_v36 }
 0xadc   :  { %v5588_v27 = vpop.f32.mrf.mxu3  ;;  %5800 = vst [vmem:[#allocation11 + $0x160] sm:$0xff] %v5736_v26 }
 0xadd   :  { %v5589_v34 = vadd.f32 %v5588_v27, %v5499_v37  ;;  %v5425_v44 = vpop.f32.mrf.mxu1  ;;  %v7774_v27 = vld [vmem:[#allocation5 + $0x1a0] sm:$0xff] }
 0xade   :  { %v5426_v19 = vadd.f32 %v5425_v44, %v5336_v24 }
 0xadf   :  { %v5663_v6 = vmul.f32 %v9549_v32, %v5589_v34 }
 0xae0   :  { %v5674_v37 = vmul.f32 %v9549_v32, %v5426_v19 }
 0xae1   :  { %v5727_v46 = vadd.f32 %v7765_v49, %v5663_v6  ;;  %v5339_v4 = vpop.f32.mrf.mxu0  ;;  %v7776_v49 = vld [vmem:[#allocation5 + $0x1b0] sm:$0xff] }
 0xae2   :  { %v5738_v59 = vadd.f32 %v7768_v29, %v5674_v37 }
 0xae3   :  { %5791 = vst [vmem:[#allocation11 + $0x118] sm:$0xff] %v5727_v46 }
 0xae4   :  { %v5591_v13 = vpop.f32.mrf.mxu3  ;;  %5802 = vst [vmem:[#allocation11 + $0x170] sm:$0xff] %v5738_v59  ;;  %v7778_v59 = vld [vmem:[#allocation5 + $0x1c0] sm:$0xff] }
 0xae5   :  { %v5592_v7 = vadd.f32 %v5591_v13, %v5502_v3  ;;  %v5428_v51 = vpop.f32.mrf.mxu1 }
 0xae6   :  { %v5429_v56 = vadd.f32 %v5428_v51, %v5339_v4  ;;  %v7779_v4 = vld [vmem:[#allocation5 + $0x188] sm:$0xff] }
 0xae7   :  { %v5665_v47 = vmul.f32 %v9549_v32, %v5592_v7  ;;  %v5517_v63 = vpop.f32.mrf.mxu2 }
 0xae8   :  { %v5676_v42 = vmul.f32 %v9549_v32, %v5429_v56 }
 0xae9   :  { %v5729_v9 = vadd.f32 %v7767_v12, %v5665_v47  ;;  %v5341_v3 = vpop.f32.mrf.mxu0  ;;  %v7777_v47 = vld [vmem:[#allocation5 + $0x178] sm:$0xff] }
 0xaea   :  { %v5740_v2 = vadd.f32 %v7770_v20, %v5676_v42 }
 0xaeb   :  { %5793 = vst [vmem:[#allocation11 + $0x128] sm:$0xff] %v5729_v9 }
 0xaec   :  { %v5593_v11 = vpop.f32.mrf.mxu3  ;;  %5804 = vst [vmem:[#allocation11 + $0x180] sm:$0xff] %v5740_v2 }
 0xaed   :  { %v5594_v18 = vadd.f32 %v5593_v11, %v5504_v28  ;;  %v5430_v39 = vpop.f32.mrf.mxu1 }
 0xaee   :  { %v5431_v58 = vadd.f32 %v5430_v39, %v5341_v3  ;;  %v7781_v39 = vld [vmem:[#allocation5 + $0x198] sm:$0xff] }
 0xaef   :  { %v5667_v31 = vmul.f32 %v9549_v32, %v5594_v18  ;;  %v5519_v44 = vpop.f32.mrf.mxu2 }
 0xaf0   :  { %v5678_v15 = vmul.f32 %v9549_v32, %v5431_v58 }
 0xaf1   :  { %v5731_v14 = vadd.f32 %v7769_v23, %v5667_v31  ;;  %v5344_v25 = vpop.f32.mrf.mxu0 }
 0xaf2   :  { %v5742_v28 = vadd.f32 %v7772_v17, %v5678_v15 }
 0xaf3   :  { %5795 = vst [vmem:[#allocation11 + $0x138] sm:$0xff] %v5731_v14  ;;  %v7780_v14 = vld [vmem:[#allocation5 + $0x1d0] sm:$0xff] }
 0xaf4   :  { %v5596_v0 = vpop.f32.mrf.mxu3  ;;  %5806 = vst [vmem:[#allocation11 + $0x190] sm:$0xff] %v5742_v28  ;;  %v7782_v28 = vld [vmem:[#allocation5 + $0x1e0] sm:$0xff] }
 0xaf5   :  { %v5597_v55 = vadd.f32 %v5596_v0, %v5507_v41  ;;  %v5433_v52 = vpop.f32.mrf.mxu1 }
 0xaf6   :  { %v5434_v60 = vadd.f32 %v5433_v52, %v5344_v25  ;;  %v7783_v25 = vld [vmem:[#allocation5 + $0x1a8] sm:$0xff] }
 0xaf7   :  { %v5669_v16 = vmul.f32 %v9549_v32, %v5597_v55  ;;  %v5522_v23 = vpop.f32.mrf.mxu2 }
 0xaf8   :  { %v5680_v36 = vmul.f32 %v9549_v32, %v5434_v60 }
 0xaf9   :  { %v5733_v21 = vadd.f32 %v7771_v48, %v5669_v16  ;;  %v5346_v40 = vpop.f32.mrf.mxu0 }
 0xafa   :  { %v5744_v34 = vadd.f32 %v7774_v27, %v5680_v36  ;;  %v7785_v36 = vld [vmem:[#allocation5 + $0x1b8] sm:$0xff] }
 0xafb   :  { %5797 = vst [vmem:[#allocation11 + $0x148] sm:$0xff] %v5733_v21 }
 0xafc   :  { %v5598_v30 = vpop.f32.mrf.mxu3  ;;  %5808 = vst [vmem:[#allocation11 + $0x1a0] sm:$0xff] %v5744_v34 }
 0xafd   :  { %v5599_v43 = vadd.f32 %v5598_v30, %v5509_v61  ;;  %v5435_v45 = vpop.f32.mrf.mxu1 }
 0xafe   :  { %v5436_v41 = vadd.f32 %v5435_v45, %v5346_v40 }
 0xaff   :  { %v5671_v8 = vmul.f32 %v9549_v32, %v5599_v43  ;;  %v5524_v58 = vpop.f32.mrf.mxu2 }
 0xb00   :  { %v5682_v6 = vmul.f32 %v9549_v32, %v5436_v41  ;;  %v7786_v41 = vld [vmem:[#allocation5 + $0x1c8] sm:$0xff] }
 0xb01   :  { %v5735_v54 = vadd.f32 %v7773_v62, %v5671_v8  ;;  %v5349_v7 = vpop.f32.mrf.mxu0  ;;  %v7784_v62 = vld [vmem:[#allocation5 + $0x1f0] sm:$0xff] }
 0xb02   :  { %v5746_v46 = vadd.f32 %v7776_v49, %v5682_v6 }
 0xb03   :  { %5799 = vst [vmem:[#allocation11 + $0x158] sm:$0xff] %v5735_v54 }
 0xb04   :  { %v5601_v33 = vpop.f32.mrf.mxu3  ;;  %5810 = vst [vmem:[#allocation11 + $0x1b0] sm:$0xff] %v5746_v46  ;;  %v7787_v46 = vld [vmem:[#allocation5 + $0x1d8] sm:$0xff] }
 0xb05   :  { %v5602_v5 = vadd.f32 %v5601_v33, %v5512_v1  ;;  %v5438_v53 = vpop.f32.mrf.mxu1 }
 0xb06   :  { %v5439_v38 = vadd.f32 %v5438_v53, %v5349_v7 }
 0xb07   :  { %v5673_v50 = vmul.f32 %v9549_v32, %v5602_v5  ;;  %v5527_v5 = vpop.f32.mrf.mxu2 }
 0xb08   :  { %v5684_v12 = vmul.f32 %v9549_v32, %v5439_v38 }
 0xb09   :  { %v5737_v57 = vadd.f32 %v7775_v22, %v5673_v50  ;;  %v5351_v9 = vpop.f32.mrf.mxu0 }
 0xb0a   :  { %v5748_v11 = vadd.f32 %v7778_v59, %v5684_v12  ;;  %v7789_v12 = vld [vmem:[#allocation5 + $0x1f8] sm:$0xff] }
 0xb0b   :  { %5801 = vst [vmem:[#allocation11 + $0x168] sm:$0xff] %v5737_v57 }
 0xb0c   :  { %v5603_v10 = vpop.f32.mrf.mxu3  ;;  %5812 = vst [vmem:[#allocation11 + $0x1c0] sm:$0xff] %v5748_v11 }
 0xb0d   :  { %v5604_v13 = vadd.f32 %v5603_v10, %v5514_v35  ;;  %v5440_v37 = vpop.f32.mrf.mxu1 }
 0xb0e   :  { %v5441_v18 = vadd.f32 %v5440_v37, %v5351_v9 }
 0xb0f   :  { %v5675_v24 = vmul.f32 %v9549_v32, %v5604_v13  ;;  %v5529_v34 = vpop.f32.mrf.mxu2 }
 0xb10   :  { %v5686_v31 = vmul.f32 %v9549_v32, %v5441_v18 }
 0xb11   :  { %v5739_v61 = vadd.f32 %v7777_v47, %v5675_v24  ;;  %v5354_v55 = vpop.f32.mrf.mxu0 }
 0xb12   :  { %v5750_v1 = vadd.f32 %v7780_v14, %v5686_v31 }
 0xb13   :  { %5803 = vst [vmem:[#allocation11 + $0x178] sm:$0xff] %v5739_v61 }
 0xb14   :  { %v5606_v26 = vpop.f32.mrf.mxu3  ;;  %5814 = vst [vmem:[#allocation11 + $0x1d0] sm:$0xff] %v5750_v1 }
 0xb15   :  { %v5607_v19 = vadd.f32 %v5606_v26, %v5517_v63  ;;  %v5443_v42 = vpop.f32.mrf.mxu1 }
 0xb16   :  { %v5444_v20 = vadd.f32 %v5443_v42, %v5354_v55 }
 0xb17   :  { %v5677_v29 = vmul.f32 %v9549_v32, %v5607_v19  ;;  %v5532_v13 = vpop.f32.mrf.mxu2 }
 0xb18   :  { %v5688_v21 = vmul.f32 %v9549_v32, %v5444_v20 }
 0xb19   :  { %v5741_v51 = vadd.f32 %v7779_v4, %v5677_v29  ;;  %v5356_v15 = vpop.f32.mrf.mxu0 }
 0xb1a   :  { %v5752_v30 = vadd.f32 %v7782_v28, %v5688_v21 }
 0xb1b   :  { %5805 = vst [vmem:[#allocation11 + $0x188] sm:$0xff] %v5741_v51 }
 0xb1c   :  { %v5608_v56 = vpop.f32.mrf.mxu3  ;;  %5816 = vst [vmem:[#allocation11 + $0x1e0] sm:$0xff] %v5752_v30 }
 0xb1d   :  { %v5609_v0 = vadd.f32 %v5608_v56, %v5519_v44  ;;  %v5445_v35 = vpop.f32.mrf.mxu1  ;;  %v7788_v44 = vld [vmem:[#allocation5 + $0x1e8] sm:$0xff] }
 0xb1e   :  { %v5446_v43 = vadd.f32 %v5445_v35, %v5356_v15 }
 0xb1f   :  { %v5679_v3 = vmul.f32 %v9549_v32, %v5609_v0  ;;  %v5534_v61 = vpop.f32.mrf.mxu2 }
 0xb20   :  { %v5690_v8 = vmul.f32 %v9549_v32, %v5446_v43 }
 0xb21   :  { %v5743_v16 = vadd.f32 %v7781_v39, %v5679_v3 }
 0xb22   :  { %v5754_v54 = vadd.f32 %v7784_v62, %v5690_v8 }
 0xb23   :  { %5807 = vst [vmem:[#allocation11 + $0x198] sm:$0xff] %v5743_v16 }
 0xb24   :  { %v5611_v2 = vpop.f32.mrf.mxu3  ;;  %5818 = vst [vmem:[#allocation11 + $0x1f0] sm:$0xff] %v5754_v54 }
 0xb25   :  { %v5612_v48 = vadd.f32 %v5611_v2, %v5522_v23 }
 0xb27   :  { %v5681_v17 = vmul.f32 %v9549_v32, %v5612_v48 }
 0xb29   :  { %v5745_v52 = vadd.f32 %v7783_v25, %v5681_v17 }
 0xb2b   :  { %5809 = vst [vmem:[#allocation11 + $0x1a8] sm:$0xff] %v5745_v52 }
 0xb2c   :  { %v5613_v60 = vpop.f32.mrf.mxu3 }
 0xb2d   :  { %v5614_v33 = vadd.f32 %v5613_v60, %v5524_v58 }
 0xb2f   :  { %v5683_v63 = vmul.f32 %v9549_v32, %v5614_v33 }
 0xb31   :  { %v5747_v40 = vadd.f32 %v7785_v36, %v5683_v63 }
 0xb33   :  { %5811 = vst [vmem:[#allocation11 + $0x1b8] sm:$0xff] %v5747_v40 }
 0xb34   :  { %v5616_v45 = vpop.f32.mrf.mxu3 }
 0xb35   :  { %v5617_v50 = vadd.f32 %v5616_v45, %v5527_v5 }
 0xb37   :  { %v5685_v27 = vmul.f32 %v9549_v32, %v5617_v50 }
 0xb39   :  { %v5749_v22 = vadd.f32 %v7786_v41, %v5685_v27 }
 0xb3b   :  { %5813 = vst [vmem:[#allocation11 + $0x1c8] sm:$0xff] %v5749_v22 }
 0xb3c   :  { %v5618_v57 = vpop.f32.mrf.mxu3 }
 0xb3d   :  { %v5619_v6 = vadd.f32 %v5618_v57, %v5529_v34 }
 0xb3f   :  { %v5687_v49 = vmul.f32 %v9549_v32, %v5619_v6 }
 0xb41   :  { %v5751_v10 = vadd.f32 %v7787_v46, %v5687_v49 }
 0xb43   :  { %5815 = vst [vmem:[#allocation11 + $0x1d8] sm:$0xff] %v5751_v10 }
 0xb44   :  { %v5621_v7 = vpop.f32.mrf.mxu3 }
 0xb45   :  { %v5622_v53 = vadd.f32 %v5621_v7, %v5532_v13 }
 0xb47   :  { %v5689_v24 = vmul.f32 %v9549_v32, %v5622_v53 }
 0xb49   :  { %v5753_v47 = vadd.f32 %v7788_v44, %v5689_v24 }
 0xb4b   :  { %5817 = vst [vmem:[#allocation11 + $0x1e8] sm:$0xff] %v5753_v47 }
 0xb4c   :  { %v5623_v38 = vpop.f32.mrf.mxu3 }
 0xb4d   :  { %v5624_v26 = vadd.f32 %v5623_v38, %v5534_v61 }
 0xb4f   :  { %v5691_v19 = vmul.f32 %v9549_v32, %v5624_v26 }
 0xb51   :  { %v5755_v9 = vadd.f32 %v7789_v12, %v5691_v19 }
 0xb53   :  { %5819 = vst [vmem:[#allocation11 + $0x1f8] sm:$0xff] %v5755_v9 }
 0xb54   :  { %5832 = dma.vmem_to_hbm [thread:$0]  %s5825_s7, 8192, %s5827_s10, [#allocation7], %s7896_s27, %s7896_s27, %s7897_s28  }
 0xb55   :  { %7890 = dma.done.wait [#allocation7], 8192  }
 0xb56   :  { %7891 = vsyncadd [#allocation7], 4294959104 }
 0xb57   :  { %5837 = vsyncpa [#allocation6], 1 }
 0xb58   :  { %5838 = vsyncpa [#allocation9], 1 }
 0xb59   :  { %5839 = vsyncpa [#allocation7], 1 }

</bundles_post_ra>
